<compile_context>
chip_gen: v7x
topology: tpu7x:2x2x1
jax: 0.10.0
libtpu: 0.0.40
codegen_flags: <defaults>
</compile_context>

<pallas_src>
import functools

import jax
import jax.numpy as jnp
from jax.experimental import pallas as pl
from jax.experimental.pallas import tpu as pltpu


# ----------------------------------------------------------------------------
# Pallas GEMM kernels
# ----------------------------------------------------------------------------
def _gemm_bias_single_kernel(a_ref, b_ref, bias_ref, o_ref, *, apply_relu):
    """Single reduction step: out = act(A @ B + bias) written straight to o_ref."""
    out = jnp.dot(a_ref[...], b_ref[...], preferred_element_type=jnp.float32)
    out = out + bias_ref[...]                      # (1, tn) broadcasts over rows
    if apply_relu:
        out = jnp.maximum(out, 0.0)
    o_ref[...] = out.astype(o_ref.dtype)


def _gemm_bias_multi_kernel(a_ref, b_ref, bias_ref, o_ref, acc_ref, *, apply_relu):
    """K-tiled fallback: accumulate in f32 scratch over the K grid axis."""
    @pl.when(pl.program_id(2) == 0)
    def _():
        acc_ref[...] = jnp.zeros_like(acc_ref)

    acc_ref[...] += jnp.dot(a_ref[...], b_ref[...],
                            preferred_element_type=jnp.float32)

    @pl.when(pl.program_id(2) == pl.num_programs(2) - 1)
    def _():
        out = acc_ref[...] + bias_ref[...]
        if apply_relu:
            out = jnp.maximum(out, 0.0)
        o_ref[...] = out.astype(o_ref.dtype)


def _fc_partial_kernel(a_ref, b_ref, o_ref):
    """Partial GEMM; accumulates directly into the (resident) f32 output block."""
    @pl.when(pl.program_id(1) == 0)
    def _():
        o_ref[...] = jnp.zeros_like(o_ref)
    o_ref[...] += jnp.dot(a_ref[...], b_ref[...],
                          preferred_element_type=jnp.float32)


# ----------------------------------------------------------------------------
# Tiling helpers
# ----------------------------------------------------------------------------
def _round_up(x, m):
    return ((x + m - 1) // m) * m


def _pick_tile(n, candidates):
    for c in candidates:
        if n % c == 0:
            return c
    return None


def _pick_tk(K, tm, tn, budget_bytes=8 << 20):
    """Largest K tile (prefer full K => single reduction step) within a VMEM budget."""
    if (tm + tn) * K * 2 <= budget_bytes:          # bf16 operand bytes
        return K
    for cand in (8192, 4096, 2048, 1024, 512, 256, 128):
        if K % cand == 0 and (tm + tn) * cand * 2 <= budget_bytes:
            return cand
    return None


# ----------------------------------------------------------------------------
# GEMM wrappers
# ----------------------------------------------------------------------------
def pallas_gemm_bias(a, b, bias, *, apply_relu, out_dtype=jnp.float32):
    """act(A @ B + bias). A:(M,K), B:(K,N), bias:(N,). bf16 operands, f32 accum."""
    M, K = a.shape
    K2, N = b.shape
    assert K == K2 and bias.shape[0] == N

    a = a.astype(jnp.bfloat16)
    b = b.astype(jnp.bfloat16)
    bias2d = bias.reshape(1, N).astype(jnp.float32)

    # -- M tile (pad only if M is not a multiple of the sublane minimum) -----
    tm = _pick_tile(M, (512, 256, 128, 64, 32, 16, 8))
    if tm is None:
        Mp = _round_up(M, 8)
        a = jnp.pad(a, ((0, Mp - M), (0, 0)))
        tm = _pick_tile(Mp, (512, 256, 128, 64, 32, 16, 8)) or Mp
    else:
        Mp = M

    # -- N tile (N is always <= 256 here -> full-width, lane friendly) -------
    if N <= 256:
        tn = N
    else:
        tn = _pick_tile(N, (256, 128)) or N

    # -- K tile (full K when it fits VMEM; otherwise 128-multiple tiles) -----
    tk = _pick_tk(K, tm, tn)
    if tk is None:                                  # not hit for this model
        Kp = _round_up(K, 512)
        a = jnp.pad(a, ((0, 0), (0, Kp - K)))
        b = jnp.pad(b, ((0, Kp - K), (0, 0)))
        K = Kp
        tk = 512

    grid_mn = (Mp // tm, N // tn)

    if tk == K:
        # Single reduction step: no accumulator scratch, 2-D parallel grid.
        out = pl.pallas_call(
            functools.partial(_gemm_bias_single_kernel, apply_relu=apply_relu),
            out_shape=jax.ShapeDtypeStruct((Mp, N), out_dtype),
            grid_spec=pltpu.PrefetchScalarGridSpec(
                num_scalar_prefetch=0,
                grid=grid_mn,
                in_specs=[
                    pl.BlockSpec((tm, K), lambda i, j: (i, 0)),
                    pl.BlockSpec((K, tn), lambda i, j: (0, j)),
                    pl.BlockSpec((1, tn), lambda i, j: (0, j)),
                ],
                out_specs=pl.BlockSpec((tm, tn), lambda i, j: (i, j)),
            ),
            compiler_params=pltpu.CompilerParams(
                dimension_semantics=("parallel", "parallel")),
        )(a, b, bias2d)
    else:
        grid = grid_mn + (K // tk,)
        out = pl.pallas_call(
            functools.partial(_gemm_bias_multi_kernel, apply_relu=apply_relu),
            out_shape=jax.ShapeDtypeStruct((Mp, N), out_dtype),
            grid_spec=pltpu.PrefetchScalarGridSpec(
                num_scalar_prefetch=0,
                grid=grid,
                in_specs=[
                    pl.BlockSpec((tm, tk), lambda i, j, k: (i, k)),
                    pl.BlockSpec((tk, tn), lambda i, j, k: (k, j)),
                    pl.BlockSpec((1, tn), lambda i, j, k: (0, j)),
                ],
                out_specs=pl.BlockSpec((tm, tn), lambda i, j, k: (i, j)),
                scratch_shapes=[pltpu.VMEM((tm, tn), jnp.float32)],
            ),
            compiler_params=pltpu.CompilerParams(
                dimension_semantics=("parallel", "parallel", "arbitrary")),
        )(a, b, bias2d)

    return out if Mp == M else out[:M]


def pallas_fc(a, b, bias, *, n_split=2, tk=8192):
    """fc layer: A:(M,K) @ B:(K,N) + bias, with the reduction split into
    `n_split` independent ("parallel") partials so both v7x TensorCores stream
    half of the weight; partials are summed (+bias) in the wrapper."""
    M, K = a.shape
    K2, N = b.shape
    assert K == K2 and bias.shape[0] == N

    a = a.astype(jnp.bfloat16)
    b = b.astype(jnp.bfloat16)

    Mp = max(_round_up(M, 8), 8)
    if Mp != M:
        a = jnp.pad(a, ((0, Mp - M), (0, 0)))

    if K % (n_split * tk) != 0:                     # not hit for this model
        n_split = 1
        tk = _pick_tk(K, Mp, N) or K
    steps = K // (n_split * tk)

    partials = pl.pallas_call(
        _fc_partial_kernel,
        out_shape=jax.ShapeDtypeStruct((n_split, Mp, N), jnp.float32),
        grid_spec=pltpu.PrefetchScalarGridSpec(
            num_scalar_prefetch=0,
            grid=(n_split, steps),
            in_specs=[
                pl.BlockSpec((Mp, tk), lambda c, k: (0, c * steps + k)),
                pl.BlockSpec((tk, N), lambda c, k: (c * steps + k, 0)),
            ],
            out_specs=pl.BlockSpec((None, Mp, N), lambda c, k: (c, 0, 0)),
        ),
        compiler_params=pltpu.CompilerParams(
            dimension_semantics=("parallel", "arbitrary")),
    )(a, b)

    out = partials.sum(axis=0) + bias.astype(jnp.float32)[None, :]
    return out[:M]


# ----------------------------------------------------------------------------
# NHWC im2col glue + layers
# ----------------------------------------------------------------------------
def _im2col_nhwc(x, kh=4, kw=4, stride=2, pad=1):
    """x: (N, H, W, C) -> (N*Ho*Wo, kh*kw*C); K order = (kh, kw, c_in)."""
    n, h, w, c = x.shape
    xp = jnp.pad(x, ((0, 0), (pad, pad), (pad, pad), (0, 0)))
    ho = (h + 2 * pad - kh) // stride + 1
    wo = (w + 2 * pad - kw) // stride + 1
    cols = []
    for u in range(kh):
        for v in range(kw):
            cols.append(xp[:, u:u + stride * ho:stride,
                           v:v + stride * wo:stride, :])
    patches = jnp.concatenate(cols, axis=-1)        # (N, Ho, Wo, kh*kw*C)
    return patches.reshape(n * ho * wo, kh * kw * c), (n, ho, wo)


def conv2d_relu(x, w_kkc_co, bias):
    """Conv2d(k=4, s=2, p=1) + ReLU on NHWC input; weight already (kh*kw*Cin, Cout)."""
    c_out = w_kkc_co.shape[1]
    patches, (n, ho, wo) = _im2col_nhwc(x)
    y = pallas_gemm_bias(patches, w_kkc_co, bias,
                         apply_relu=True, out_dtype=jnp.bfloat16)
    return y.reshape(n, ho, wo, c_out)              # stays NHWC


# ----------------------------------------------------------------------------
# Parameters (torch layout) + one-time preparation for the NHWC/bf16 pipeline
# ----------------------------------------------------------------------------
def init_params(key):
    """Deterministic init mimicking PyTorch defaults (uniform(-1/sqrt(fan_in), ...))."""
    params = {}
    specs = [
        ("w1", "b1", (32, 1, 4, 4)),
        ("w2", "b2", (64, 32, 4, 4)),
        ("w3", "b3", (128, 64, 4, 4)),
        ("w4", "b4", (256, 128, 4, 4)),
    ]
    for wname, bname, shape in specs:
        key, kw_, kb_ = jax.random.split(key, 3)
        fan_in = shape[1] * shape[2] * shape[3]
        bound = 1.0 / jnp.sqrt(fan_in)
        params[wname] = jax.random.uniform(kw_, shape, jnp.float32, -bound, bound)
        params[bname] = jax.random.uniform(kb_, (shape[0],), jnp.float32, -bound, bound)
    key, kw_, kb_ = jax.random.split(key, 3)
    fc_in = 256 * 16 * 16
    bound = 1.0 / jnp.sqrt(fc_in)
    params["fc_w"] = jax.random.uniform(kw_, (128, fc_in), jnp.float32, -bound, bound)
    params["fc_b"] = jax.random.uniform(kb_, (128,), jnp.float32, -bound, bound)
    return params


def prepare_params(p):
    """One-time reshape/cast of torch-layout params for the NHWC bf16 GEMMs."""
    prep = {}
    for i in (1, 2, 3, 4):
        w = p[f"w{i}"]                              # (Cout, Cin, 4, 4)
        c_out = w.shape[0]
        # K order (kh, kw, c_in) to match the NHWC im2col patch layout.
        prep[f"w{i}"] = (w.transpose(2, 3, 1, 0)
                          .reshape(-1, c_out).astype(jnp.bfloat16))
        prep[f"b{i}"] = p[f"b{i}"].astype(jnp.float32)
    # Permute fc columns so the NHWC flatten matches torch's NCHW .view(N, -1).
    fw = p["fc_w"].reshape(128, 256, 16, 16).transpose(0, 2, 3, 1).reshape(128, -1)
    prep["fc_w"] = fw.T.astype(jnp.bfloat16)        # (K, 128)
    prep["fc_b"] = p["fc_b"].astype(jnp.float32)
    return prep


# ----------------------------------------------------------------------------
# Forward pass
# ----------------------------------------------------------------------------
def vae_encoder(prep, x):
    """x: (N, 1, H, W) NCHW f32 (torch convention); output (N, 128) f32."""
    x = x.astype(jnp.bfloat16).transpose(0, 2, 3, 1)      # NCHW -> NHWC, bf16
    x = conv2d_relu(x, prep["w1"], prep["b1"])            # (N, 128, 128, 32)
    x = conv2d_relu(x, prep["w2"], prep["b2"])            # (N,  64,  64, 64)
    x = conv2d_relu(x, prep["w3"], prep["b3"])            # (N,  32,  32, 128)
    x = conv2d_relu(x, prep["w4"], prep["b4"])            # (N,  16,  16, 256)
    x = x.reshape(x.shape[0], -1)                         # NHWC flatten (fc_w pre-permuted)
    return pallas_fc(x, prep["fc_w"], prep["fc_b"])       # (N, 128)


if __name__ == "__main__":
    key = jax.random.PRNGKey(0)
    k_param, k_x = jax.random.split(key)
    params = init_params(k_param)
    prepared = prepare_params(params)

    # The fc layer (256*16*16 inputs) pins the input spatial size to 256x256
    # after four stride-2 convs; batch kept small.
    x = jax.random.normal(k_x, (2, 1, 256, 256), dtype=jnp.float32)

    out = jax.jit(vae_encoder)(prepared, x)
    out = jax.block_until_ready(out)
    assert out.shape == (2, 128), out.shape
    assert jnp.all(jnp.isfinite(out))
    print("KERNEL_OK")
</pallas_src>

<mosaic_0001>
module attributes {stable_mosaic.version = 11 : i64} {
  func.func @_gemm_bias_single_kernel(%arg0: i32, %arg1: i32, %arg2: memref<512x16xbf16, #tpu.memory_space<vmem>>, %arg3: memref<16x32xbf16, #tpu.memory_space<vmem>>, %arg4: memref<1x32xf32, #tpu.memory_space<vmem>>, %arg5: memref<512x32xbf16, #tpu.memory_space<vmem>>) attributes {dimension_semantics = [#tpu.dimension_semantics<parallel>, #tpu.dimension_semantics<parallel>], iteration_bounds = array<i64: 64, 1>, scalar_prefetch = 0 : i64, scratch_operands = 0 : i64, tpu.core_type = #tpu.core_type<tc>, window_params = [{transform_indices = @transform_0, window_bounds = array<i64: 512, 16>}, {transform_indices = @transform_1, window_bounds = array<i64: 16, 32>}, {transform_indices = @transform_2, window_bounds = array<i64: 1, 32>}, {transform_indices = @transform_3, window_bounds = array<i64: 512, 32>}]} {
    %c0 = arith.constant 0 : index
    %c0_0 = arith.constant 0 : index
    %0 = vector.load %arg2[%c0, %c0_0] : memref<512x16xbf16, #tpu.memory_space<vmem>>, vector<512x16xbf16>
    %c0_1 = arith.constant 0 : index
    %c0_2 = arith.constant 0 : index
    %1 = vector.load %arg3[%c0_1, %c0_2] : memref<16x32xbf16, #tpu.memory_space<vmem>>, vector<16x32xbf16>
    %cst = arith.constant dense<0.000000e+00> : vector<512x32xf32>
    %2 = tpu.matmul %0, %1, %cst {dimension_numbers = #tpu.dot_dimension_numbers<[1], [0], [0], [1], [0, 0, 1, 1], [], []>} : vector<512x16xbf16>, vector<16x32xbf16>, vector<512x32xf32> -> vector<512x32xf32>
    %c0_3 = arith.constant 0 : index
    %c0_4 = arith.constant 0 : index
    %3 = vector.load %arg4[%c0_3, %c0_4] : memref<1x32xf32, #tpu.memory_space<vmem>>, vector<1x32xf32>
    %4 = vector.broadcast %3 : vector<1x32xf32> to vector<512x32xf32>
    %5 = arith.addf %2, %4 : vector<512x32xf32>
    %cst_5 = arith.constant 0.000000e+00 : f32
    %6 = vector.broadcast %cst_5 : f32 to vector<512x32xf32>
    %7 = arith.maximumf %5, %6 : vector<512x32xf32>
    %8 = arith.truncf %7 : vector<512x32xf32> to vector<512x32xbf16>
    %c0_6 = arith.constant 0 : index
    %c0_7 = arith.constant 0 : index
    %9 = vector.load %arg5[%c0_6, %c0_7] : memref<512x32xbf16, #tpu.memory_space<vmem>>, vector<512x32xbf16>
    tpu.vector_store %arg5[%c0_6, %c0_7], %8 {strides = array<i32>} : memref<512x32xbf16, #tpu.memory_space<vmem>>, vector<512x32xbf16>,
    return
  }
  func.func @transform_0(%arg0: i32, %arg1: i32) -> (i32, i32) {
    %c0_i32 = arith.constant 0 : i32
    %c0_i32_0 = arith.constant 0 : i32
    return %arg0, %c0_i32 : i32, i32
  }
  func.func @transform_1(%arg0: i32, %arg1: i32) -> (i32, i32) {
    %c0_i32 = arith.constant 0 : i32
    %c0_i32_0 = arith.constant 0 : i32
    return %c0_i32, %arg1 : i32, i32
  }
  func.func @transform_2(%arg0: i32, %arg1: i32) -> (i32, i32) {
    %c0_i32 = arith.constant 0 : i32
    %c0_i32_0 = arith.constant 0 : i32
    return %c0_i32, %arg1 : i32, i32
  }
  func.func @transform_3(%arg0: i32, %arg1: i32) -> (i32, i32) {
    %c0_i32 = arith.constant 0 : i32
    return %arg0, %arg1 : i32, i32
  }
}

module attributes {stable_mosaic.version = 11 : i64} {
  func.func @_gemm_bias_single_kernel(%arg0: i32, %arg1: i32, %arg2: memref<512x512xbf16, #tpu.memory_space<vmem>>, %arg3: memref<512x64xbf16, #tpu.memory_space<vmem>>, %arg4: memref<1x64xf32, #tpu.memory_space<vmem>>, %arg5: memref<512x64xbf16, #tpu.memory_space<vmem>>) attributes {dimension_semantics = [#tpu.dimension_semantics<parallel>, #tpu.dimension_semantics<parallel>], iteration_bounds = array<i64: 16, 1>, scalar_prefetch = 0 : i64, scratch_operands = 0 : i64, tpu.core_type = #tpu.core_type<tc>, window_params = [{transform_indices = @transform_0, window_bounds = array<i64: 512, 512>}, {transform_indices = @transform_1, window_bounds = array<i64: 512, 64>}, {transform_indices = @transform_2, window_bounds = array<i64: 1, 64>}, {transform_indices = @transform_3, window_bounds = array<i64: 512, 64>}]} {
    %c0 = arith.constant 0 : index
    %c0_0 = arith.constant 0 : index
    %0 = vector.load %arg2[%c0, %c0_0] : memref<512x512xbf16, #tpu.memory_space<vmem>>, vector<512x512xbf16>
    %c0_1 = arith.constant 0 : index
    %c0_2 = arith.constant 0 : index
    %1 = vector.load %arg3[%c0_1, %c0_2] : memref<512x64xbf16, #tpu.memory_space<vmem>>, vector<512x64xbf16>
    %cst = arith.constant dense<0.000000e+00> : vector<512x64xf32>
    %2 = tpu.matmul %0, %1, %cst {dimension_numbers = #tpu.dot_dimension_numbers<[1], [0], [0], [1], [0, 0, 1, 1], [], []>} : vector<512x512xbf16>, vector<512x64xbf16>, vector<512x64xf32> -> vector<512x64xf32>
    %c0_3 = arith.constant 0 : index
    %c0_4 = arith.constant 0 : index
    %3 = vector.load %arg4[%c0_3, %c0_4] : memref<1x64xf32, #tpu.memory_space<vmem>>, vector<1x64xf32>
    %4 = vector.broadcast %3 : vector<1x64xf32> to vector<512x64xf32>
    %5 = arith.addf %2, %4 : vector<512x64xf32>
    %cst_5 = arith.constant 0.000000e+00 : f32
    %6 = vector.broadcast %cst_5 : f32 to vector<512x64xf32>
    %7 = arith.maximumf %5, %6 : vector<512x64xf32>
    %8 = arith.truncf %7 : vector<512x64xf32> to vector<512x64xbf16>
    %c0_6 = arith.constant 0 : index
    %c0_7 = arith.constant 0 : index
    %9 = vector.load %arg5[%c0_6, %c0_7] : memref<512x64xbf16, #tpu.memory_space<vmem>>, vector<512x64xbf16>
    tpu.vector_store %arg5[%c0_6, %c0_7], %8 {strides = array<i32>} : memref<512x64xbf16, #tpu.memory_space<vmem>>, vector<512x64xbf16>,
    return
  }
  func.func @transform_0(%arg0: i32, %arg1: i32) -> (i32, i32) {
    %c0_i32 = arith.constant 0 : i32
    %c0_i32_0 = arith.constant 0 : i32
    return %arg0, %c0_i32 : i32, i32
  }
  func.func @transform_1(%arg0: i32, %arg1: i32) -> (i32, i32) {
    %c0_i32 = arith.constant 0 : i32
    %c0_i32_0 = arith.constant 0 : i32
    return %c0_i32, %arg1 : i32, i32
  }
  func.func @transform_2(%arg0: i32, %arg1: i32) -> (i32, i32) {
    %c0_i32 = arith.constant 0 : i32
    %c0_i32_0 = arith.constant 0 : i32
    return %c0_i32, %arg1 : i32, i32
  }
  func.func @transform_3(%arg0: i32, %arg1: i32) -> (i32, i32) {
    %c0_i32 = arith.constant 0 : i32
    return %arg0, %arg1 : i32, i32
  }
}

module attributes {stable_mosaic.version = 11 : i64} {
  func.func @_gemm_bias_single_kernel(%arg0: i32, %arg1: i32, %arg2: memref<512x1024xbf16, #tpu.memory_space<vmem>>, %arg3: memref<1024x128xbf16, #tpu.memory_space<vmem>>, %arg4: memref<1x128xf32, #tpu.memory_space<vmem>>, %arg5: memref<512x128xbf16, #tpu.memory_space<vmem>>) attributes {dimension_semantics = [#tpu.dimension_semantics<parallel>, #tpu.dimension_semantics<parallel>], iteration_bounds = array<i64: 4, 1>, scalar_prefetch = 0 : i64, scratch_operands = 0 : i64, tpu.core_type = #tpu.core_type<tc>, window_params = [{transform_indices = @transform_0, window_bounds = array<i64: 512, 1024>}, {transform_indices = @transform_1, window_bounds = array<i64: 1024, 128>}, {transform_indices = @transform_2, window_bounds = array<i64: 1, 128>}, {transform_indices = @transform_3, window_bounds = array<i64: 512, 128>}]} {
    %c0 = arith.constant 0 : index
    %c0_0 = arith.constant 0 : index
    %0 = vector.load %arg2[%c0, %c0_0] : memref<512x1024xbf16, #tpu.memory_space<vmem>>, vector<512x1024xbf16>
    %c0_1 = arith.constant 0 : index
    %c0_2 = arith.constant 0 : index
    %1 = vector.load %arg3[%c0_1, %c0_2] : memref<1024x128xbf16, #tpu.memory_space<vmem>>, vector<1024x128xbf16>
    %cst = arith.constant dense<0.000000e+00> : vector<512x128xf32>
    %2 = tpu.matmul %0, %1, %cst {dimension_numbers = #tpu.dot_dimension_numbers<[1], [0], [0], [1], [0, 0, 1, 1], [], []>} : vector<512x1024xbf16>, vector<1024x128xbf16>, vector<512x128xf32> -> vector<512x128xf32>
    %c0_3 = arith.constant 0 : index
    %c0_4 = arith.constant 0 : index
    %3 = vector.load %arg4[%c0_3, %c0_4] : memref<1x128xf32, #tpu.memory_space<vmem>>, vector<1x128xf32>
    %4 = vector.broadcast %3 : vector<1x128xf32> to vector<512x128xf32>
    %5 = arith.addf %2, %4 : vector<512x128xf32>
    %cst_5 = arith.constant 0.000000e+00 : f32
    %6 = vector.broadcast %cst_5 : f32 to vector<512x128xf32>
    %7 = arith.maximumf %5, %6 : vector<512x128xf32>
    %8 = arith.truncf %7 : vector<512x128xf32> to vector<512x128xbf16>
    %c0_6 = arith.constant 0 : index
    %c0_7 = arith.constant 0 : index
    %9 = vector.load %arg5[%c0_6, %c0_7] : memref<512x128xbf16, #tpu.memory_space<vmem>>, vector<512x128xbf16>
    tpu.vector_store %arg5[%c0_6, %c0_7], %8 {strides = array<i32>} : memref<512x128xbf16, #tpu.memory_space<vmem>>, vector<512x128xbf16>,
    return
  }
  func.func @transform_0(%arg0: i32, %arg1: i32) -> (i32, i32) {
    %c0_i32 = arith.constant 0 : i32
    %c0_i32_0 = arith.constant 0 : i32
    return %arg0, %c0_i32 : i32, i32
  }
  func.func @transform_1(%arg0: i32, %arg1: i32) -> (i32, i32) {
    %c0_i32 = arith.constant 0 : i32
    %c0_i32_0 = arith.constant 0 : i32
    return %c0_i32, %arg1 : i32, i32
  }
  func.func @transform_2(%arg0: i32, %arg1: i32) -> (i32, i32) {
    %c0_i32 = arith.constant 0 : i32
    %c0_i32_0 = arith.constant 0 : i32
    return %c0_i32, %arg1 : i32, i32
  }
  func.func @transform_3(%arg0: i32, %arg1: i32) -> (i32, i32) {
    %c0_i32 = arith.constant 0 : i32
    return %arg0, %arg1 : i32, i32
  }
}

module attributes {stable_mosaic.version = 11 : i64} {
  func.func @_gemm_bias_single_kernel(%arg0: i32, %arg1: i32, %arg2: memref<512x2048xbf16, #tpu.memory_space<vmem>>, %arg3: memref<2048x256xbf16, #tpu.memory_space<vmem>>, %arg4: memref<1x256xf32, #tpu.memory_space<vmem>>, %arg5: memref<512x256xbf16, #tpu.memory_space<vmem>>) attributes {dimension_semantics = [#tpu.dimension_semantics<parallel>, #tpu.dimension_semantics<parallel>], iteration_bounds = array<i64: 1, 1>, scalar_prefetch = 0 : i64, scratch_operands = 0 : i64, tpu.core_type = #tpu.core_type<tc>, window_params = [{transform_indices = @transform_0, window_bounds = array<i64: 512, 2048>}, {transform_indices = @transform_1, window_bounds = array<i64: 2048, 256>}, {transform_indices = @transform_2, window_bounds = array<i64: 1, 256>}, {transform_indices = @transform_3, window_bounds = array<i64: 512, 256>}]} {
    %c0 = arith.constant 0 : index
    %c0_0 = arith.constant 0 : index
    %0 = vector.load %arg2[%c0, %c0_0] : memref<512x2048xbf16, #tpu.memory_space<vmem>>, vector<512x2048xbf16>
    %c0_1 = arith.constant 0 : index
    %c0_2 = arith.constant 0 : index
    %1 = vector.load %arg3[%c0_1, %c0_2] : memref<2048x256xbf16, #tpu.memory_space<vmem>>, vector<2048x256xbf16>
    %cst = arith.constant dense<0.000000e+00> : vector<512x256xf32>
    %2 = tpu.matmul %0, %1, %cst {dimension_numbers = #tpu.dot_dimension_numbers<[1], [0], [0], [1], [0, 0, 1, 1], [], []>} : vector<512x2048xbf16>, vector<2048x256xbf16>, vector<512x256xf32> -> vector<512x256xf32>
    %c0_3 = arith.constant 0 : index
    %c0_4 = arith.constant 0 : index
    %3 = vector.load %arg4[%c0_3, %c0_4] : memref<1x256xf32, #tpu.memory_space<vmem>>, vector<1x256xf32>
    %4 = vector.broadcast %3 : vector<1x256xf32> to vector<512x256xf32>
    %5 = arith.addf %2, %4 : vector<512x256xf32>
    %cst_5 = arith.constant 0.000000e+00 : f32
    %6 = vector.broadcast %cst_5 : f32 to vector<512x256xf32>
    %7 = arith.maximumf %5, %6 : vector<512x256xf32>
    %8 = arith.truncf %7 : vector<512x256xf32> to vector<512x256xbf16>
    %c0_6 = arith.constant 0 : index
    %c0_7 = arith.constant 0 : index
    %9 = vector.load %arg5[%c0_6, %c0_7] : memref<512x256xbf16, #tpu.memory_space<vmem>>, vector<512x256xbf16>
    tpu.vector_store %arg5[%c0_6, %c0_7], %8 {strides = array<i32>} : memref<512x256xbf16, #tpu.memory_space<vmem>>, vector<512x256xbf16>,
    return
  }
  func.func @transform_0(%arg0: i32, %arg1: i32) -> (i32, i32) {
    %c0_i32 = arith.constant 0 : i32
    %c0_i32_0 = arith.constant 0 : i32
    return %arg0, %c0_i32 : i32, i32
  }
  func.func @transform_1(%arg0: i32, %arg1: i32) -> (i32, i32) {
    %c0_i32 = arith.constant 0 : i32
    %c0_i32_0 = arith.constant 0 : i32
    return %c0_i32, %arg1 : i32, i32
  }
  func.func @transform_2(%arg0: i32, %arg1: i32) -> (i32, i32) {
    %c0_i32 = arith.constant 0 : i32
    %c0_i32_0 = arith.constant 0 : i32
    return %c0_i32, %arg1 : i32, i32
  }
  func.func @transform_3(%arg0: i32, %arg1: i32) -> (i32, i32) {
    %c0_i32 = arith.constant 0 : i32
    return %arg0, %arg1 : i32, i32
  }
}

module attributes {stable_mosaic.version = 11 : i64} {
  func.func @_fc_partial_kernel(%arg0: i32, %arg1: i32, %arg2: memref<8x8192xbf16, #tpu.memory_space<vmem>>, %arg3: memref<8192x128xbf16, #tpu.memory_space<vmem>>, %arg4: memref<1x8x128xf32, #tpu.memory_space<vmem>>) attributes {dimension_semantics = [#tpu.dimension_semantics<parallel>, #tpu.dimension_semantics<arbitrary>], iteration_bounds = array<i64: 2, 4>, scalar_prefetch = 0 : i64, scratch_operands = 0 : i64, tpu.core_type = #tpu.core_type<tc>, window_params = [{transform_indices = @transform_0, window_bounds = array<i64: 8, 8192>}, {transform_indices = @transform_1, window_bounds = array<i64: 8192, 128>}, {transform_indices = @transform_2, window_bounds = array<i64: 1, 8, 128>}]} {
    %c0_i32 = arith.constant 0 : i32
    %0 = arith.cmpi eq, %arg1, %c0_i32 : i32
    %1 = arith.extui %0 : i1 to i32
    %c0_i32_0 = arith.constant 0 : i32
    %2 = arith.cmpi ne, %1, %c0_i32_0 : i32
    scf.if %2 {
      %cst_10 = arith.constant 0.000000e+00 : f32
      %12 = vector.broadcast %cst_10 : f32 to vector<8x128xf32>
      %c0_11 = arith.constant 0 : index
      %c0_12 = arith.constant 0 : index
      %c0_13 = arith.constant 0 : index
      %13 = vector.load %arg4[%c0_11, %c0_12, %c0_13] : memref<1x8x128xf32, #tpu.memory_space<vmem>>, vector<1x8x128xf32>
      %14 = vector.shape_cast %13 : vector<1x8x128xf32> to vector<8x128xf32>
      %15 = vector.shape_cast %12 : vector<8x128xf32> to vector<1x8x128xf32>
      tpu.vector_store %arg4[%c0_11, %c0_12, %c0_13], %15 {strides = array<i32>} : memref<1x8x128xf32, #tpu.memory_space<vmem>>, vector<1x8x128xf32>,
    } else {
    }
    %c0 = arith.constant 0 : index
    %c0_1 = arith.constant 0 : index
    %c0_2 = arith.constant 0 : index
    %3 = vector.load %arg4[%c0, %c0_1, %c0_2] : memref<1x8x128xf32, #tpu.memory_space<vmem>>, vector<1x8x128xf32>
    %4 = vector.shape_cast %3 : vector<1x8x128xf32> to vector<8x128xf32>
    %c0_3 = arith.constant 0 : index
    %c0_4 = arith.constant 0 : index
    %5 = vector.load %arg2[%c0_3, %c0_4] : memref<8x8192xbf16, #tpu.memory_space<vmem>>, vector<8x8192xbf16>
    %c0_5 = arith.constant 0 : index
    %c0_6 = arith.constant 0 : index
    %6 = vector.load %arg3[%c0_5, %c0_6] : memref<8192x128xbf16, #tpu.memory_space<vmem>>, vector<8192x128xbf16>
    %cst = arith.constant dense<0.000000e+00> : vector<8x128xf32>
    %7 = tpu.matmul %5, %6, %cst {dimension_numbers = #tpu.dot_dimension_numbers<[1], [0], [0], [1], [0, 0, 1, 1], [], []>} : vector<8x8192xbf16>, vector<8192x128xbf16>, vector<8x128xf32> -> vector<8x128xf32>
    %8 = arith.addf %4, %7 : vector<8x128xf32>
    %c0_7 = arith.constant 0 : index
    %c0_8 = arith.constant 0 : index
    %c0_9 = arith.constant 0 : index
    %9 = vector.load %arg4[%c0_7, %c0_8, %c0_9] : memref<1x8x128xf32, #tpu.memory_space<vmem>>, vector<1x8x128xf32>
    %10 = vector.shape_cast %9 : vector<1x8x128xf32> to vector<8x128xf32>
    %11 = vector.shape_cast %8 : vector<8x128xf32> to vector<1x8x128xf32>
    tpu.vector_store %arg4[%c0_7, %c0_8, %c0_9], %11 {strides = array<i32>} : memref<1x8x128xf32, #tpu.memory_space<vmem>>, vector<1x8x128xf32>,
    return
  }
  func.func @transform_0(%arg0: i32, %arg1: i32) -> (i32, i32) {
    %c4_i32 = arith.constant 4 : i32
    %0 = arith.muli %arg0, %c4_i32 : i32
    %1 = arith.addi %0, %arg1 : i32
    %c0_i32 = arith.constant 0 : i32
    %c0_i32_0 = arith.constant 0 : i32
    return %c0_i32, %1 : i32, i32
  }
  func.func @transform_1(%arg0: i32, %arg1: i32) -> (i32, i32) {
    %c4_i32 = arith.constant 4 : i32
    %0 = arith.muli %arg0, %c4_i32 : i32
    %1 = arith.addi %0, %arg1 : i32
    %c0_i32 = arith.constant 0 : i32
    %c0_i32_0 = arith.constant 0 : i32
    return %1, %c0_i32 : i32, i32
  }
  func.func @transform_2(%arg0: i32, %arg1: i32) -> (i32, i32, i32) {
    %c0_i32 = arith.constant 0 : i32
    %c0_i32_0 = arith.constant 0 : i32
    %c0_i32_1 = arith.constant 0 : i32
    return %arg0, %c0_i32, %c0_i32_0 : i32, i32, i32
  }
}

</mosaic_0001>

<bundles_post_ra>
// kernel: vae_encoder.5
= control target key start
LH: loop header
LB: loop body
LE: loop exit
PB: predicated region body
PF: predicated region fallthrough
CT: control target
= control target key end

     0   :  { %s1747_s12 = smov 0   ;;  %s1749_s13 = smov 0   ;;  %s2055_s0 = inlined_call_operand.vmem [shape: bf16[32768,16], index: 0, kind: input, shape index: {}]   ;;  %s2056_s1 = inlined_call_operand.vmem [shape: bf16[16,32], index: 1, kind: input, shape index: {}]   ;;  %s2057_s2 = inlined_call_operand.vmem [shape: f32[1,32], index: 2, kind: input, shape index: {}]   ;;  %s2058_s3 = inlined_call_operand.vmem [shape: bf16[32768,32], index: 3, kind: output, shape index: {}]  }
   0x1   :  { %s1751_s14 = smov 0  }
   0x2 LB: > { %s25_s15 = sadd.s32 1, %s1721_s13  ;;  %p1344_p0 = scmp.ge.s32.totalorder %s1725_s14, 1  ;;  %s1725_s14 = sphi %s1751_s14, %s13_s14   ;;  %s1721_s13 = sphi %s1749_s13, %s2060_s13   ;;  %s1717_s12 = sphi %s1747_s12, %s2059_s12  }
   0x3   : > { %p27_p1 = scmp.ge.s32.totalorder %s25_s15, 64  ;;  %p169_p2 = scmp.lt.s32.totalorder %s1725_s14, 65 }
   0x5   : > { %s2062_s15 = smov (%p27_p1, %s25_s15), 0  ;;  %p170_p3 = pnand %p1344_p0, %p169_p2 }
   0x6   : > { %v1670_v0 = vld [vmem:[%s2056_s1] sm:$0xff] (!%p170_p3)   ;;  %s1345_s18 = sshll.u32 (!%p170_p3), %s1717_s12, 6  ;;  %vm465_vm0 = vcmask (!%p170_p3), 130048   ;;  %vm1171_vm1 = vcmask (!%p170_p3), 257024  }
   0x7   : > { %173 = sbr.rel (%p170_p3) target bundleno = 298 (0x12a), region = 32  ;;  %p204_p4 = scmp.lt.s32.totalorder (!%p170_p3), %s1345_s18, 4095  ;;  %1578 = vmatprep.subr.bf16.mxu0 (!%p170_p3), %v1670_v0  ;;  %1644 = vmatprep.subr.bf16.mxu1 (!%p170_p3), %v1670_v0  ;;  %v1845_v33 = vld [vmem:[%s2057_s2] ss:$0 sm:$0xff] (!%p170_p3) }
   0x8   : > { %1579 = vmatpush3.bf16.msra.mxu0 (!%p170_p3), %v1670_v0  ;;  %1645 = vmatpush3.bf16.msra.mxu1 (!%p170_p3), %v1670_v0 }
   0xe   : > { %s2064_s18 = smov (!%p204_p4, %s1345_s18), 4095 }
   0xf   : > { %s1346_s19 = sshll.u32 %s2064_s18, 2 }
  0x10   : > { %s1776_s22 = scalar_lea.vmem %s2055_s0, %s1346_s19  ;;  %s1857_s27 = scalar_lea.vmem %s2058_s3, %s1346_s19 }
  0x11   : > { %v1671_v1 = vld [vmem:[%s1776_s22] sm:$0xff]   ;;  %v1673_v3 = vld [vmem:[%s1776_s22 + $0x8] sm:$0xff]   ;;  %v1675_v5 = vld [vmem:[%s1776_s22 + $0x10] sm:$0xff]  }
  0x12   : > { %v1672_v2 = vld [vmem:[%s1776_s22 + $0x80] sm:$0xff]   ;;  %1580 = vmatprep.mubr.msk.bf16.mxu0 %vm465_vm0, %v1671_v1  ;;  %v1674_v4 = vld [vmem:[%s1776_s22 + $0x88] sm:$0xff]   ;;  %v1676_v6 = vld [vmem:[%s1776_s22 + $0x90] sm:$0xff]  }
  0x13   : > { %1612 = vmatprep.mubr.msk.bf16.mxu1 %vm465_vm0, %v1672_v2  ;;  %1581 = vmatmul.mubr.msk.bf16.vlgmr.msra.gmra.mrb[0].mxu0 %vm465_vm0, %v1673_v3  ;;  %v1677_v7 = vld [vmem:[%s1776_s22 + $0x18] sm:$0xff]   ;;  %v1679_v9 = vld [vmem:[%s1776_s22 + $0x20] sm:$0xff]   ;;  %v1681_v11 = vld [vmem:[%s1776_s22 + $0x28] sm:$0xff]  }
  0x14   : > { %1613 = vmatmul.mubr.msk.bf16.vlgmr.msra.gmra.mrb[0].mxu1 %vm465_vm0, %v1674_v4  ;;  %1584 = vmatprep.mubr.msk.bf16.mxu0 %vm465_vm0, %v1675_v5  ;;  %v1678_v8 = vld [vmem:[%s1776_s22 + $0x98] sm:$0xff]   ;;  %v1680_v10 = vld [vmem:[%s1776_s22 + $0xa0] sm:$0xff]   ;;  %v1682_v12 = vld [vmem:[%s1776_s22 + $0xa8] sm:$0xff]  }
  0x15   : > { %1616 = vmatprep.mubr.msk.bf16.mxu1 %vm465_vm0, %v1676_v6  ;;  %v1683_v13 = vld [vmem:[%s1776_s22 + $0x30] sm:$0xff]   ;;  %v1685_v15 = vld [vmem:[%s1776_s22 + $0x38] sm:$0xff]   ;;  %v1687_v17 = vld [vmem:[%s1776_s22 + $0x40] sm:$0xff]  }
  0x16   : > { %v1684_v14 = vld [vmem:[%s1776_s22 + $0xb0] sm:$0xff]   ;;  %v1686_v16 = vld [vmem:[%s1776_s22 + $0xb8] sm:$0xff]   ;;  %v1688_v18 = vld [vmem:[%s1776_s22 + $0xc0] sm:$0xff]  }
  0x17   : > { %v1689_v19 = vld [vmem:[%s1776_s22 + $0x48] sm:$0xff]   ;;  %v1691_v21 = vld [vmem:[%s1776_s22 + $0x50] sm:$0xff]   ;;  %v1693_v23 = vld [vmem:[%s1776_s22 + $0x58] sm:$0xff]  }
  0x18   : > { %v1690_v20 = vld [vmem:[%s1776_s22 + $0xc8] sm:$0xff]   ;;  %v1692_v22 = vld [vmem:[%s1776_s22 + $0xd0] sm:$0xff]   ;;  %v1694_v24 = vld [vmem:[%s1776_s22 + $0xd8] sm:$0xff]  }
  0x19   : > { %v1695_v25 = vld [vmem:[%s1776_s22 + $0x60] sm:$0xff]   ;;  %v1697_v27 = vld [vmem:[%s1776_s22 + $0x68] sm:$0xff]   ;;  %v1699_v29 = vld [vmem:[%s1776_s22 + $0x70] sm:$0xff]  }
  0x1a   : > { %v1696_v26 = vld [vmem:[%s1776_s22 + $0xe0] sm:$0xff]   ;;  %v1698_v28 = vld [vmem:[%s1776_s22 + $0xe8] sm:$0xff]   ;;  %v1700_v30 = vld [vmem:[%s1776_s22 + $0xf0] sm:$0xff]  }
  0x1b   : > { %1585 = vmatmul.mubr.msk.bf16.gmra.mrb[4].mxu0 %vm465_vm0, %v1677_v7  ;;  %v1701_v31 = vld [vmem:[%s1776_s22 + $0x78] sm:$0xff]  }
  0x1c   : > { %1617 = vmatmul.mubr.msk.bf16.gmra.mrb[4].mxu1 %vm465_vm0, %v1678_v8  ;;  %1588 = vmatprep.mubr.msk.bf16.mxu0 %vm465_vm0, %v1679_v9  ;;  %v1702_v32 = vld [vmem:[%s1776_s22 + $0xf8] sm:$0xff]  }
  0x1d   : > { %1620 = vmatprep.mubr.msk.bf16.mxu1 %vm465_vm0, %v1680_v10 }
  0x23   : > { %1589 = vmatmul.mubr.msk.bf16.gmra.mrb[8].mxu0 %vm465_vm0, %v1681_v11 }
  0x24   : > { %1621 = vmatmul.mubr.msk.bf16.gmra.mrb[8].mxu1 %vm465_vm0, %v1682_v12  ;;  %1592 = vmatprep.mubr.msk.bf16.mxu0 %vm465_vm0, %v1683_v13 }
  0x25   : > { %1624 = vmatprep.mubr.msk.bf16.mxu1 %vm465_vm0, %v1684_v14 }
  0x2b   : > { %1593 = vmatmul.mubr.msk.bf16.gmra.mrb[12].mxu0 %vm465_vm0, %v1685_v15 }
  0x2c   : > { %1625 = vmatmul.mubr.msk.bf16.gmra.mrb[12].mxu1 %vm465_vm0, %v1686_v16  ;;  %1596 = vmatprep.mubr.msk.bf16.mxu0 %vm465_vm0, %v1687_v17 }
  0x2d   : > { %1628 = vmatprep.mubr.msk.bf16.mxu1 %vm465_vm0, %v1688_v18 }
  0x33   : > { %1597 = vmatmul.mubr.msk.bf16.gmra.mrb[16].mxu0 %vm465_vm0, %v1689_v19 }
  0x34   : > { %1629 = vmatmul.mubr.msk.bf16.gmra.mrb[16].mxu1 %vm465_vm0, %v1690_v20  ;;  %1600 = vmatprep.mubr.msk.bf16.mxu0 %vm465_vm0, %v1691_v21 }
  0x35   : > { %1632 = vmatprep.mubr.msk.bf16.mxu1 %vm465_vm0, %v1692_v22 }
  0x3b   : > { %1601 = vmatmul.mubr.msk.bf16.gmra.mrb[20].mxu0 %vm465_vm0, %v1693_v23 }
  0x3c   : > { %1633 = vmatmul.mubr.msk.bf16.gmra.mrb[20].mxu1 %vm465_vm0, %v1694_v24  ;;  %1604 = vmatprep.mubr.msk.bf16.mxu0 %vm465_vm0, %v1695_v25 }
  0x3d   : > { %1636 = vmatprep.mubr.msk.bf16.mxu1 %vm465_vm0, %v1696_v26 }
  0x43   : > { %1605 = vmatmul.mubr.msk.bf16.gmra.mrb[24].mxu0 %vm465_vm0, %v1697_v27 }
  0x44   : > { %1637 = vmatmul.mubr.msk.bf16.gmra.mrb[24].mxu1 %vm465_vm0, %v1698_v28  ;;  %1608 = vmatprep.mubr.msk.bf16.mxu0 %vm465_vm0, %v1699_v29 }
  0x45   : > { %1640 = vmatprep.mubr.msk.bf16.mxu1 %vm465_vm0, %v1700_v30 }
  0x4b   : > { %1609 = vmatmul.mubr.msk.bf16.gmra.mrb[28].mxu0 %vm465_vm0, %v1701_v31 }
  0x4c   : > { %1641 = vmatmul.mubr.msk.bf16.gmra.mrb[28].mxu1 %vm465_vm0, %v1702_v32 }
  0xe6   : > { %v1582_v34 = vpop.f32.mrb[0].mxu0 }
  0xe7   : > { %v605_v35 = vadd.f32 %v1582_v34, %v1845_v33  ;;  %v1614_v36 = vpop.f32.mrb[0].mxu1  ;;  %v596_v37 = vpop.f32.mrb[1].mxu0 }
  0xe8   : > { %v733_v38 = vadd.f32 %v1614_v36, %v1845_v33  ;;  %v597_v39 = vadd.f32 %v1845_v33, %v596_v37  ;;  %v724_v40 = vpop.f32.mrb[1].mxu1  ;;  %v1583_v41 = vpop.f32.mrb[2].mxu0 }
  0xe9   : > { %v853_v42 = vmax.f32 %v605_v35, 0.0  ;;  %v725_v43 = vadd.f32 %v1845_v33, %v724_v40  ;;  %v608_v44 = vadd.f32 %v1583_v41, %v1845_v33  ;;  %v1615_v45 = vpop.f32.mrb[2].mxu1  ;;  %v599_v46 = vpop.f32.mrb[3].mxu0 }
  0xea   : > { %v885_v47 = vmax.f32 %v733_v38, 0.0  ;;  %v851_v48 = vmax.f32 %v597_v39, 0.0  ;;  %v736_v49 = vadd.f32 %v1615_v45, %v1845_v33  ;;  %v600_v50 = vadd.f32 %v1845_v33, %v599_v46  ;;  %v727_v51 = vpop.f32.mrb[3].mxu1 }
  0xeb   : > { %v1483_v52 = vpack.c.bf16 %v853_v42, %v853_v42  ;;  %v883_v53 = vmax.f32 %v725_v43, 0.0  ;;  %v854_v54 = vmax.f32 %v608_v44, 0.0  ;;  %v728_v55 = vadd.f32 %v1845_v33, %v727_v51 }
  0xec   : > { %v1515_v56 = vpack.c.bf16 %v885_v47, %v885_v47  ;;  %v1481_v57 = vpack.c.bf16 %v851_v48, %v851_v48  ;;  %v886_v58 = vmax.f32 %v736_v49, 0.0  ;;  %v852_v59 = vmax.f32 %v600_v50, 0.0 }
  0xed   : > { %1174 = vst.msk [vmem:[%s1857_s27 + $0x8] sm:$0xf] %vm1171_vm1, %v1483_v52  ;;  %v1513_v60 = vpack.c.bf16 %v883_v53, %v883_v53  ;;  %v1484_v61 = vpack.c.bf16 %v854_v54, %v854_v54  ;;  %v884_v62 = vmax.f32 %v728_v55, 0.0 }
  0xee   : > { %1206 = vst.msk [vmem:[%s1857_s27 + $0x88] sm:$0xf] %vm1171_vm1, %v1515_v56  ;;  %1172 = vst.msk [vmem:[%s1857_s27] sm:$0xf] %vm1171_vm1, %v1481_v57  ;;  %v1516_v63 = vpack.c.bf16 %v886_v58, %v886_v58  ;;  %v1482_v0 = vpack.c.bf16 %v852_v59, %v852_v59  ;;  %v1586_v1 = vpop.f32.mrb[4].mxu0 }
  0xef   : > { %1204 = vst.msk [vmem:[%s1857_s27 + $0x80] sm:$0xf] %vm1171_vm1, %v1513_v60  ;;  %1175 = vst.msk [vmem:[%s1857_s27 + $0xc] sm:$0xf] %vm1171_vm1, %v1484_v61  ;;  %v1514_v2 = vpack.c.bf16 %v884_v62, %v884_v62  ;;  %v621_v3 = vadd.f32 %v1586_v1, %v1845_v33  ;;  %v1618_v4 = vpop.f32.mrb[4].mxu1  ;;  %v612_v5 = vpop.f32.mrb[5].mxu0 }
  0xf0   : > { %1207 = vst.msk [vmem:[%s1857_s27 + $0x8c] sm:$0xf] %vm1171_vm1, %v1516_v63  ;;  %1173 = vst.msk [vmem:[%s1857_s27 + $0x4] sm:$0xf] %vm1171_vm1, %v1482_v0  ;;  %v749_v6 = vadd.f32 %v1618_v4, %v1845_v33  ;;  %v613_v7 = vadd.f32 %v1845_v33, %v612_v5  ;;  %v740_v8 = vpop.f32.mrb[5].mxu1  ;;  %v1587_v9 = vpop.f32.mrb[6].mxu0 }
  0xf1   : > { %1205 = vst.msk [vmem:[%s1857_s27 + $0x84] sm:$0xf] %vm1171_vm1, %v1514_v2  ;;  %v857_v10 = vmax.f32 %v621_v3, 0.0  ;;  %v741_v11 = vadd.f32 %v1845_v33, %v740_v8  ;;  %v624_v12 = vadd.f32 %v1587_v9, %v1845_v33  ;;  %v1619_v13 = vpop.f32.mrb[6].mxu1  ;;  %v615_v14 = vpop.f32.mrb[7].mxu0 }
  0xf2   : > { %v889_v15 = vmax.f32 %v749_v6, 0.0  ;;  %v855_v16 = vmax.f32 %v613_v7, 0.0  ;;  %v752_v17 = vadd.f32 %v1619_v13, %v1845_v33  ;;  %v616_v18 = vadd.f32 %v1845_v33, %v615_v14  ;;  %v743_v19 = vpop.f32.mrb[7].mxu1 }
  0xf3   : > { %v1487_v20 = vpack.c.bf16 %v857_v10, %v857_v10  ;;  %v887_v21 = vmax.f32 %v741_v11, 0.0  ;;  %v858_v22 = vmax.f32 %v624_v12, 0.0  ;;  %v744_v23 = vadd.f32 %v1845_v33, %v743_v19 }
  0xf4   : > { %v1519_v24 = vpack.c.bf16 %v889_v15, %v889_v15  ;;  %v1485_v25 = vpack.c.bf16 %v855_v16, %v855_v16  ;;  %v890_v26 = vmax.f32 %v752_v17, 0.0  ;;  %v856_v27 = vmax.f32 %v616_v18, 0.0 }
  0xf5   : > { %1178 = vst.msk [vmem:[%s1857_s27 + $0x18] sm:$0xf] %vm1171_vm1, %v1487_v20  ;;  %v1517_v28 = vpack.c.bf16 %v887_v21, %v887_v21  ;;  %v1488_v29 = vpack.c.bf16 %v858_v22, %v858_v22  ;;  %v888_v30 = vmax.f32 %v744_v23, 0.0 }
  0xf6   : > { %1210 = vst.msk [vmem:[%s1857_s27 + $0x98] sm:$0xf] %vm1171_vm1, %v1519_v24  ;;  %1176 = vst.msk [vmem:[%s1857_s27 + $0x10] sm:$0xf] %vm1171_vm1, %v1485_v25  ;;  %v1520_v31 = vpack.c.bf16 %v890_v26, %v890_v26  ;;  %v1486_v32 = vpack.c.bf16 %v856_v27, %v856_v27  ;;  %v1590_v34 = vpop.f32.mrb[8].mxu0 }
  0xf7   : > { %1208 = vst.msk [vmem:[%s1857_s27 + $0x90] sm:$0xf] %vm1171_vm1, %v1517_v28  ;;  %1179 = vst.msk [vmem:[%s1857_s27 + $0x1c] sm:$0xf] %vm1171_vm1, %v1488_v29  ;;  %v1518_v35 = vpack.c.bf16 %v888_v30, %v888_v30  ;;  %v637_v36 = vadd.f32 %v1590_v34, %v1845_v33  ;;  %v1622_v37 = vpop.f32.mrb[8].mxu1  ;;  %v628_v38 = vpop.f32.mrb[9].mxu0 }
  0xf8   : > { %1211 = vst.msk [vmem:[%s1857_s27 + $0x9c] sm:$0xf] %vm1171_vm1, %v1520_v31  ;;  %1177 = vst.msk [vmem:[%s1857_s27 + $0x14] sm:$0xf] %vm1171_vm1, %v1486_v32  ;;  %v765_v39 = vadd.f32 %v1622_v37, %v1845_v33  ;;  %v629_v40 = vadd.f32 %v1845_v33, %v628_v38  ;;  %v756_v41 = vpop.f32.mrb[9].mxu1  ;;  %v1591_v42 = vpop.f32.mrb[10].mxu0 }
  0xf9   : > { %1209 = vst.msk [vmem:[%s1857_s27 + $0x94] sm:$0xf] %vm1171_vm1, %v1518_v35  ;;  %v861_v43 = vmax.f32 %v637_v36, 0.0  ;;  %v757_v44 = vadd.f32 %v1845_v33, %v756_v41  ;;  %v640_v45 = vadd.f32 %v1591_v42, %v1845_v33  ;;  %v1623_v46 = vpop.f32.mrb[10].mxu1  ;;  %v631_v47 = vpop.f32.mrb[11].mxu0 }
  0xfa   : > { %v893_v48 = vmax.f32 %v765_v39, 0.0  ;;  %v859_v49 = vmax.f32 %v629_v40, 0.0  ;;  %v768_v50 = vadd.f32 %v1623_v46, %v1845_v33  ;;  %v632_v51 = vadd.f32 %v1845_v33, %v631_v47  ;;  %v759_v52 = vpop.f32.mrb[11].mxu1 }
  0xfb   : > { %v1491_v53 = vpack.c.bf16 %v861_v43, %v861_v43  ;;  %v891_v54 = vmax.f32 %v757_v44, 0.0  ;;  %v862_v55 = vmax.f32 %v640_v45, 0.0  ;;  %v760_v56 = vadd.f32 %v1845_v33, %v759_v52 }
  0xfc   : > { %v1523_v57 = vpack.c.bf16 %v893_v48, %v893_v48  ;;  %v1489_v58 = vpack.c.bf16 %v859_v49, %v859_v49  ;;  %v894_v59 = vmax.f32 %v768_v50, 0.0  ;;  %v860_v60 = vmax.f32 %v632_v51, 0.0 }
  0xfd   : > { %1182 = vst.msk [vmem:[%s1857_s27 + $0x28] sm:$0xf] %vm1171_vm1, %v1491_v53  ;;  %v1521_v61 = vpack.c.bf16 %v891_v54, %v891_v54  ;;  %v1492_v62 = vpack.c.bf16 %v862_v55, %v862_v55  ;;  %v892_v63 = vmax.f32 %v760_v56, 0.0 }
  0xfe   : > { %1214 = vst.msk [vmem:[%s1857_s27 + $0xa8] sm:$0xf] %vm1171_vm1, %v1523_v57  ;;  %1180 = vst.msk [vmem:[%s1857_s27 + $0x20] sm:$0xf] %vm1171_vm1, %v1489_v58  ;;  %v1524_v0 = vpack.c.bf16 %v894_v59, %v894_v59  ;;  %v1490_v1 = vpack.c.bf16 %v860_v60, %v860_v60  ;;  %v1594_v2 = vpop.f32.mrb[12].mxu0 }
  0xff   : > { %1212 = vst.msk [vmem:[%s1857_s27 + $0xa0] sm:$0xf] %vm1171_vm1, %v1521_v61  ;;  %1183 = vst.msk [vmem:[%s1857_s27 + $0x2c] sm:$0xf] %vm1171_vm1, %v1492_v62  ;;  %v1522_v3 = vpack.c.bf16 %v892_v63, %v892_v63  ;;  %v653_v4 = vadd.f32 %v1594_v2, %v1845_v33  ;;  %v1626_v5 = vpop.f32.mrb[12].mxu1  ;;  %v644_v6 = vpop.f32.mrb[13].mxu0 }
 0x100   : > { %1215 = vst.msk [vmem:[%s1857_s27 + $0xac] sm:$0xf] %vm1171_vm1, %v1524_v0  ;;  %1181 = vst.msk [vmem:[%s1857_s27 + $0x24] sm:$0xf] %vm1171_vm1, %v1490_v1  ;;  %v781_v7 = vadd.f32 %v1626_v5, %v1845_v33  ;;  %v645_v8 = vadd.f32 %v1845_v33, %v644_v6  ;;  %v772_v9 = vpop.f32.mrb[13].mxu1  ;;  %v1595_v10 = vpop.f32.mrb[14].mxu0 }
 0x101   : > { %1213 = vst.msk [vmem:[%s1857_s27 + $0xa4] sm:$0xf] %vm1171_vm1, %v1522_v3  ;;  %v865_v11 = vmax.f32 %v653_v4, 0.0  ;;  %v773_v12 = vadd.f32 %v1845_v33, %v772_v9  ;;  %v656_v13 = vadd.f32 %v1595_v10, %v1845_v33  ;;  %v1627_v14 = vpop.f32.mrb[14].mxu1  ;;  %v647_v15 = vpop.f32.mrb[15].mxu0 }
 0x102   : > { %v897_v16 = vmax.f32 %v781_v7, 0.0  ;;  %v863_v17 = vmax.f32 %v645_v8, 0.0  ;;  %v784_v18 = vadd.f32 %v1627_v14, %v1845_v33  ;;  %v648_v19 = vadd.f32 %v1845_v33, %v647_v15  ;;  %v775_v20 = vpop.f32.mrb[15].mxu1 }
 0x103   : > { %v1495_v21 = vpack.c.bf16 %v865_v11, %v865_v11  ;;  %v895_v22 = vmax.f32 %v773_v12, 0.0  ;;  %v866_v23 = vmax.f32 %v656_v13, 0.0  ;;  %v776_v24 = vadd.f32 %v1845_v33, %v775_v20 }
 0x104   : > { %v1527_v25 = vpack.c.bf16 %v897_v16, %v897_v16  ;;  %v1493_v26 = vpack.c.bf16 %v863_v17, %v863_v17  ;;  %v898_v27 = vmax.f32 %v784_v18, 0.0  ;;  %v864_v28 = vmax.f32 %v648_v19, 0.0 }
 0x105   : > { %1186 = vst.msk [vmem:[%s1857_s27 + $0x38] sm:$0xf] %vm1171_vm1, %v1495_v21  ;;  %v1525_v29 = vpack.c.bf16 %v895_v22, %v895_v22  ;;  %v1496_v30 = vpack.c.bf16 %v866_v23, %v866_v23  ;;  %v896_v31 = vmax.f32 %v776_v24, 0.0 }
 0x106   : > { %1218 = vst.msk [vmem:[%s1857_s27 + $0xb8] sm:$0xf] %vm1171_vm1, %v1527_v25  ;;  %1184 = vst.msk [vmem:[%s1857_s27 + $0x30] sm:$0xf] %vm1171_vm1, %v1493_v26  ;;  %v1528_v32 = vpack.c.bf16 %v898_v27, %v898_v27  ;;  %v1494_v34 = vpack.c.bf16 %v864_v28, %v864_v28  ;;  %v1598_v35 = vpop.f32.mrb[16].mxu0 }
 0x107   : > { %1216 = vst.msk [vmem:[%s1857_s27 + $0xb0] sm:$0xf] %vm1171_vm1, %v1525_v29  ;;  %1187 = vst.msk [vmem:[%s1857_s27 + $0x3c] sm:$0xf] %vm1171_vm1, %v1496_v30  ;;  %v1526_v36 = vpack.c.bf16 %v896_v31, %v896_v31  ;;  %v669_v37 = vadd.f32 %v1598_v35, %v1845_v33  ;;  %v1630_v38 = vpop.f32.mrb[16].mxu1  ;;  %v660_v39 = vpop.f32.mrb[17].mxu0 }
 0x108   : > { %1219 = vst.msk [vmem:[%s1857_s27 + $0xbc] sm:$0xf] %vm1171_vm1, %v1528_v32  ;;  %1185 = vst.msk [vmem:[%s1857_s27 + $0x34] sm:$0xf] %vm1171_vm1, %v1494_v34  ;;  %v797_v40 = vadd.f32 %v1630_v38, %v1845_v33  ;;  %v661_v41 = vadd.f32 %v1845_v33, %v660_v39  ;;  %v788_v42 = vpop.f32.mrb[17].mxu1  ;;  %v1599_v43 = vpop.f32.mrb[18].mxu0 }
 0x109   : > { %1217 = vst.msk [vmem:[%s1857_s27 + $0xb4] sm:$0xf] %vm1171_vm1, %v1526_v36  ;;  %v869_v44 = vmax.f32 %v669_v37, 0.0  ;;  %v789_v45 = vadd.f32 %v1845_v33, %v788_v42  ;;  %v672_v46 = vadd.f32 %v1599_v43, %v1845_v33  ;;  %v1631_v47 = vpop.f32.mrb[18].mxu1  ;;  %v663_v48 = vpop.f32.mrb[19].mxu0 }
 0x10a   : > { %v901_v49 = vmax.f32 %v797_v40, 0.0  ;;  %v867_v50 = vmax.f32 %v661_v41, 0.0  ;;  %v800_v51 = vadd.f32 %v1631_v47, %v1845_v33  ;;  %v664_v52 = vadd.f32 %v1845_v33, %v663_v48  ;;  %v791_v53 = vpop.f32.mrb[19].mxu1 }
 0x10b   : > { %v1499_v54 = vpack.c.bf16 %v869_v44, %v869_v44  ;;  %v899_v55 = vmax.f32 %v789_v45, 0.0  ;;  %v870_v56 = vmax.f32 %v672_v46, 0.0  ;;  %v792_v57 = vadd.f32 %v1845_v33, %v791_v53 }
 0x10c   : > { %v1531_v58 = vpack.c.bf16 %v901_v49, %v901_v49  ;;  %v1497_v59 = vpack.c.bf16 %v867_v50, %v867_v50  ;;  %v902_v60 = vmax.f32 %v800_v51, 0.0  ;;  %v868_v61 = vmax.f32 %v664_v52, 0.0 }
 0x10d   : > { %1190 = vst.msk [vmem:[%s1857_s27 + $0x48] sm:$0xf] %vm1171_vm1, %v1499_v54  ;;  %v1529_v62 = vpack.c.bf16 %v899_v55, %v899_v55  ;;  %v1500_v63 = vpack.c.bf16 %v870_v56, %v870_v56  ;;  %v900_v0 = vmax.f32 %v792_v57, 0.0 }
 0x10e   : > { %1222 = vst.msk [vmem:[%s1857_s27 + $0xc8] sm:$0xf] %vm1171_vm1, %v1531_v58  ;;  %1188 = vst.msk [vmem:[%s1857_s27 + $0x40] sm:$0xf] %vm1171_vm1, %v1497_v59  ;;  %v1532_v1 = vpack.c.bf16 %v902_v60, %v902_v60  ;;  %v1498_v2 = vpack.c.bf16 %v868_v61, %v868_v61  ;;  %v1602_v3 = vpop.f32.mrb[20].mxu0 }
 0x10f   : > { %1220 = vst.msk [vmem:[%s1857_s27 + $0xc0] sm:$0xf] %vm1171_vm1, %v1529_v62  ;;  %1191 = vst.msk [vmem:[%s1857_s27 + $0x4c] sm:$0xf] %vm1171_vm1, %v1500_v63  ;;  %v1530_v4 = vpack.c.bf16 %v900_v0, %v900_v0  ;;  %v685_v5 = vadd.f32 %v1602_v3, %v1845_v33  ;;  %v1634_v6 = vpop.f32.mrb[20].mxu1  ;;  %v676_v7 = vpop.f32.mrb[21].mxu0 }
 0x110   : > { %1223 = vst.msk [vmem:[%s1857_s27 + $0xcc] sm:$0xf] %vm1171_vm1, %v1532_v1  ;;  %1189 = vst.msk [vmem:[%s1857_s27 + $0x44] sm:$0xf] %vm1171_vm1, %v1498_v2  ;;  %v813_v8 = vadd.f32 %v1634_v6, %v1845_v33  ;;  %v677_v9 = vadd.f32 %v1845_v33, %v676_v7  ;;  %v804_v10 = vpop.f32.mrb[21].mxu1  ;;  %v1603_v11 = vpop.f32.mrb[22].mxu0 }
 0x111   : > { %1221 = vst.msk [vmem:[%s1857_s27 + $0xc4] sm:$0xf] %vm1171_vm1, %v1530_v4  ;;  %v873_v12 = vmax.f32 %v685_v5, 0.0  ;;  %v805_v13 = vadd.f32 %v1845_v33, %v804_v10  ;;  %v688_v14 = vadd.f32 %v1603_v11, %v1845_v33  ;;  %v1635_v15 = vpop.f32.mrb[22].mxu1  ;;  %v679_v16 = vpop.f32.mrb[23].mxu0 }
 0x112   : > { %v905_v17 = vmax.f32 %v813_v8, 0.0  ;;  %v871_v18 = vmax.f32 %v677_v9, 0.0  ;;  %v816_v19 = vadd.f32 %v1635_v15, %v1845_v33  ;;  %v680_v20 = vadd.f32 %v1845_v33, %v679_v16  ;;  %v807_v21 = vpop.f32.mrb[23].mxu1 }
 0x113   : > { %v1503_v22 = vpack.c.bf16 %v873_v12, %v873_v12  ;;  %v903_v23 = vmax.f32 %v805_v13, 0.0  ;;  %v874_v24 = vmax.f32 %v688_v14, 0.0  ;;  %v808_v25 = vadd.f32 %v1845_v33, %v807_v21 }
 0x114   : > { %v1535_v26 = vpack.c.bf16 %v905_v17, %v905_v17  ;;  %v1501_v27 = vpack.c.bf16 %v871_v18, %v871_v18  ;;  %v906_v28 = vmax.f32 %v816_v19, 0.0  ;;  %v872_v29 = vmax.f32 %v680_v20, 0.0 }
 0x115   : > { %1194 = vst.msk [vmem:[%s1857_s27 + $0x58] sm:$0xf] %vm1171_vm1, %v1503_v22  ;;  %v1533_v30 = vpack.c.bf16 %v903_v23, %v903_v23  ;;  %v1504_v31 = vpack.c.bf16 %v874_v24, %v874_v24  ;;  %v904_v32 = vmax.f32 %v808_v25, 0.0 }
 0x116   : > { %1226 = vst.msk [vmem:[%s1857_s27 + $0xd8] sm:$0xf] %vm1171_vm1, %v1535_v26  ;;  %1192 = vst.msk [vmem:[%s1857_s27 + $0x50] sm:$0xf] %vm1171_vm1, %v1501_v27  ;;  %v1536_v34 = vpack.c.bf16 %v906_v28, %v906_v28  ;;  %v1502_v35 = vpack.c.bf16 %v872_v29, %v872_v29  ;;  %v1606_v36 = vpop.f32.mrb[24].mxu0 }
 0x117   : > { %1224 = vst.msk [vmem:[%s1857_s27 + $0xd0] sm:$0xf] %vm1171_vm1, %v1533_v30  ;;  %1195 = vst.msk [vmem:[%s1857_s27 + $0x5c] sm:$0xf] %vm1171_vm1, %v1504_v31  ;;  %v1534_v37 = vpack.c.bf16 %v904_v32, %v904_v32  ;;  %v701_v38 = vadd.f32 %v1606_v36, %v1845_v33  ;;  %v1638_v39 = vpop.f32.mrb[24].mxu1  ;;  %v692_v40 = vpop.f32.mrb[25].mxu0 }
 0x118   : > { %1227 = vst.msk [vmem:[%s1857_s27 + $0xdc] sm:$0xf] %vm1171_vm1, %v1536_v34  ;;  %1193 = vst.msk [vmem:[%s1857_s27 + $0x54] sm:$0xf] %vm1171_vm1, %v1502_v35  ;;  %v829_v41 = vadd.f32 %v1638_v39, %v1845_v33  ;;  %v693_v42 = vadd.f32 %v1845_v33, %v692_v40  ;;  %v820_v43 = vpop.f32.mrb[25].mxu1  ;;  %v1607_v44 = vpop.f32.mrb[26].mxu0 }
 0x119   : > { %1225 = vst.msk [vmem:[%s1857_s27 + $0xd4] sm:$0xf] %vm1171_vm1, %v1534_v37  ;;  %v877_v45 = vmax.f32 %v701_v38, 0.0  ;;  %v821_v46 = vadd.f32 %v1845_v33, %v820_v43  ;;  %v704_v47 = vadd.f32 %v1607_v44, %v1845_v33  ;;  %v1639_v48 = vpop.f32.mrb[26].mxu1  ;;  %v695_v49 = vpop.f32.mrb[27].mxu0 }
 0x11a   : > { %v909_v50 = vmax.f32 %v829_v41, 0.0  ;;  %v875_v51 = vmax.f32 %v693_v42, 0.0  ;;  %v832_v52 = vadd.f32 %v1639_v48, %v1845_v33  ;;  %v696_v53 = vadd.f32 %v1845_v33, %v695_v49  ;;  %v823_v54 = vpop.f32.mrb[27].mxu1 }
 0x11b   : > { %v1507_v55 = vpack.c.bf16 %v877_v45, %v877_v45  ;;  %v907_v56 = vmax.f32 %v821_v46, 0.0  ;;  %v878_v57 = vmax.f32 %v704_v47, 0.0  ;;  %v824_v58 = vadd.f32 %v1845_v33, %v823_v54 }
 0x11c   : > { %v1539_v59 = vpack.c.bf16 %v909_v50, %v909_v50  ;;  %v1505_v60 = vpack.c.bf16 %v875_v51, %v875_v51  ;;  %v910_v61 = vmax.f32 %v832_v52, 0.0  ;;  %v876_v62 = vmax.f32 %v696_v53, 0.0 }
 0x11d   : > { %1198 = vst.msk [vmem:[%s1857_s27 + $0x68] sm:$0xf] %vm1171_vm1, %v1507_v55  ;;  %v1537_v63 = vpack.c.bf16 %v907_v56, %v907_v56  ;;  %v1508_v0 = vpack.c.bf16 %v878_v57, %v878_v57  ;;  %v908_v1 = vmax.f32 %v824_v58, 0.0 }
 0x11e   : > { %1230 = vst.msk [vmem:[%s1857_s27 + $0xe8] sm:$0xf] %vm1171_vm1, %v1539_v59  ;;  %1196 = vst.msk [vmem:[%s1857_s27 + $0x60] sm:$0xf] %vm1171_vm1, %v1505_v60  ;;  %v1540_v2 = vpack.c.bf16 %v910_v61, %v910_v61  ;;  %v1506_v3 = vpack.c.bf16 %v876_v62, %v876_v62  ;;  %v1610_v4 = vpop.f32.mrb[28].mxu0 }
 0x11f   : > { %1228 = vst.msk [vmem:[%s1857_s27 + $0xe0] sm:$0xf] %vm1171_vm1, %v1537_v63  ;;  %1199 = vst.msk [vmem:[%s1857_s27 + $0x6c] sm:$0xf] %vm1171_vm1, %v1508_v0  ;;  %v1538_v5 = vpack.c.bf16 %v908_v1, %v908_v1  ;;  %v717_v6 = vadd.f32 %v1610_v4, %v1845_v33  ;;  %v1642_v7 = vpop.f32.mrb[28].mxu1  ;;  %v708_v8 = vpop.f32.mrb[29].mxu0 }
 0x120   : > { %1231 = vst.msk [vmem:[%s1857_s27 + $0xec] sm:$0xf] %vm1171_vm1, %v1540_v2  ;;  %1197 = vst.msk [vmem:[%s1857_s27 + $0x64] sm:$0xf] %vm1171_vm1, %v1506_v3  ;;  %v845_v9 = vadd.f32 %v1642_v7, %v1845_v33  ;;  %v709_v10 = vadd.f32 %v1845_v33, %v708_v8  ;;  %v836_v11 = vpop.f32.mrb[29].mxu1  ;;  %v1611_v12 = vpop.f32.mrb[30].mxu0 }
 0x121   : > { %1229 = vst.msk [vmem:[%s1857_s27 + $0xe4] sm:$0xf] %vm1171_vm1, %v1538_v5  ;;  %v881_v13 = vmax.f32 %v717_v6, 0.0  ;;  %v837_v14 = vadd.f32 %v1845_v33, %v836_v11  ;;  %v720_v15 = vadd.f32 %v1611_v12, %v1845_v33  ;;  %v1643_v16 = vpop.f32.mrb[30].mxu1  ;;  %v711_v17 = vpop.f32.mrb[31].mxu0 }
 0x122   : > { %v913_v18 = vmax.f32 %v845_v9, 0.0  ;;  %v879_v19 = vmax.f32 %v709_v10, 0.0  ;;  %v848_v20 = vadd.f32 %v1643_v16, %v1845_v33  ;;  %v712_v21 = vadd.f32 %v1845_v33, %v711_v17  ;;  %v839_v22 = vpop.f32.mrb[31].mxu1 }
 0x123   : > { %v1511_v23 = vpack.c.bf16 %v881_v13, %v881_v13  ;;  %v911_v24 = vmax.f32 %v837_v14, 0.0  ;;  %v882_v25 = vmax.f32 %v720_v15, 0.0  ;;  %v840_v26 = vadd.f32 %v1845_v33, %v839_v22 }
 0x124   : > { %v1543_v27 = vpack.c.bf16 %v913_v18, %v913_v18  ;;  %v1509_v28 = vpack.c.bf16 %v879_v19, %v879_v19  ;;  %v914_v29 = vmax.f32 %v848_v20, 0.0  ;;  %v880_v30 = vmax.f32 %v712_v21, 0.0 }
 0x125   : > { %1202 = vst.msk [vmem:[%s1857_s27 + $0x78] sm:$0xf] %vm1171_vm1, %v1511_v23  ;;  %v1541_v31 = vpack.c.bf16 %v911_v24, %v911_v24  ;;  %v1512_v32 = vpack.c.bf16 %v882_v25, %v882_v25  ;;  %v912_v34 = vmax.f32 %v840_v26, 0.0 }
 0x126   : > { %1234 = vst.msk [vmem:[%s1857_s27 + $0xf8] sm:$0xf] %vm1171_vm1, %v1543_v27  ;;  %1200 = vst.msk [vmem:[%s1857_s27 + $0x70] sm:$0xf] %vm1171_vm1, %v1509_v28  ;;  %v1544_v35 = vpack.c.bf16 %v914_v29, %v914_v29  ;;  %v1510_v36 = vpack.c.bf16 %v880_v30, %v880_v30 }
 0x127   : > { %1232 = vst.msk [vmem:[%s1857_s27 + $0xf0] sm:$0xf] %vm1171_vm1, %v1541_v31  ;;  %1203 = vst.msk [vmem:[%s1857_s27 + $0x7c] sm:$0xf] %vm1171_vm1, %v1512_v32  ;;  %v1542_v33 = vpack.c.bf16 %v912_v34, %v912_v34 }
 0x128   : > { %1235 = vst.msk [vmem:[%s1857_s27 + $0xfc] sm:$0xf] %vm1171_vm1, %v1544_v35  ;;  %1201 = vst.msk [vmem:[%s1857_s27 + $0x74] sm:$0xf] %vm1171_vm1, %v1510_v36 }
 0x129   : > { %1233 = vst.msk [vmem:[%s1857_s27 + $0xf4] sm:$0xf] %vm1171_vm1, %v1542_v33 }
 0x12a PF: > { %s13_s14 = sadd.s32 1, %s1725_s14   ;;  %s2059_s12 = smov %s1721_s13 }
 0x12b   : > { %p10_p5 = scmp.ge.s32.totalorder %s13_s14, 66   ;;  %s2060_s13 = smov %s2062_s15 }
 0x12d   :  { %12 = sbr.rel (!%p10_p5) target bundleno = 2 (0x2), region = 68 }

// kernel: vae_encoder.6
= control target key start
LH: loop header
LB: loop body
LE: loop exit
PB: predicated region body
PF: predicated region fallthrough
CT: control target
= control target key end

     0   :  { %s3052_s12 = smov 0   ;;  %s3054_s13 = smov 0   ;;  %s3554_s0 = inlined_call_operand.vmem [shape: bf16[8192,512], index: 0, kind: input, shape index: {}]   ;;  %s3555_s1 = inlined_call_operand.vmem [shape: bf16[512,64], index: 1, kind: input, shape index: {}]   ;;  %s3556_s2 = inlined_call_operand.vmem [shape: f32[1,64], index: 2, kind: input, shape index: {}]   ;;  %s3557_s3 = inlined_call_operand.vmem [shape: bf16[8192,64], index: 3, kind: output, shape index: {}]  }
   0x1   :  { %s3056_s14 = smov 0  }
   0x2 LB: > { %s25_s15 = sadd.s32 1, %s3025_s13  ;;  %p2331_p0 = scmp.ge.s32.totalorder %s3029_s14, 1  ;;  %s3029_s14 = sphi %s3056_s14, %s13_s14   ;;  %s3025_s13 = sphi %s3054_s13, %s3559_s13   ;;  %s3021_s12 = sphi %s3052_s12, %s3558_s12  }
   0x3   : > { %p27_p1 = scmp.ge.s32.totalorder %s25_s15, 16  ;;  %p170_p2 = scmp.lt.s32.totalorder %s3029_s14, 17 }
   0x5   : > { %s3561_s15 = smov (%p27_p1, %s25_s15), 0  ;;  %p171_p3 = pnand %p2331_p0, %p170_p2 }
   0x6   : > { %v2782_v0 = vld [vmem:[%s3555_s1] sm:$0xff] (!%p171_p3)   ;;  %v3031_v1 = vmov (!%p171_p3), 0   ;;  %v2784_v3 = vld [vmem:[%s3555_s1 + $0x8] sm:$0xff] (!%p171_p3)   ;;  %v2786_v5 = vld [vmem:[%s3555_s1 + $0x10] sm:$0xff] (!%p171_p3)   ;;  %s2332_s9 = sshll.u32 (!%p171_p3), %s3021_s12, 6  ;;  %vm2158_vm0 = vcmask (!%p171_p3), 519168  }
   0x7   : > { %174 = sbr.rel (%p171_p3) target bundleno = 542 (0x21e), region = 32  ;;  %1260 = vmatprep.subr.bf16.mxu1 (!%p171_p3), %v3031_v1  ;;  %1549 = vmatprep.subr.bf16.mxu0 (!%p171_p3), %v3031_v1  ;;  %v2783_v2 = vld [vmem:[%s3555_s1 + $0x80] sm:$0xff] (!%p171_p3)   ;;  %v2785_v4 = vld [vmem:[%s3555_s1 + $0x88] sm:$0xff] (!%p171_p3)   ;;  %v2787_v6 = vld [vmem:[%s3555_s1 + $0x90] sm:$0xff] (!%p171_p3)   ;;  %p206_p4 = scmp.lt.s32.totalorder (!%p171_p3), %s2332_s9, 1023 }
   0x8   : > { %1261 = vmatpush1.bf16.msra.mxu1 (!%p171_p3), %v2782_v0  ;;  %1550 = vmatpush1.bf16.msra.mxu0 (!%p171_p3), %v2783_v2  ;;  %v2788_v7 = vld [vmem:[%s3555_s1 + $0x18] sm:$0xff] (!%p171_p3)   ;;  %v2790_v9 = vld [vmem:[%s3555_s1 + $0x20] sm:$0xff] (!%p171_p3)   ;;  %v2792_v11 = vld [vmem:[%s3555_s1 + $0x28] sm:$0xff] (!%p171_p3)  }
   0x9   : > { %1262 = vmatprep.subr.bf16.mxu1 (!%p171_p3), %v3031_v1  ;;  %1551 = vmatprep.subr.bf16.mxu0 (!%p171_p3), %v3031_v1  ;;  %v2789_v8 = vld [vmem:[%s3555_s1 + $0x98] sm:$0xff] (!%p171_p3)   ;;  %v2791_v10 = vld [vmem:[%s3555_s1 + $0xa0] sm:$0xff] (!%p171_p3)   ;;  %v2793_v12 = vld [vmem:[%s3555_s1 + $0xa8] sm:$0xff] (!%p171_p3)  }
   0xa   : > { %v2794_v13 = vld [vmem:[%s3555_s1 + $0x30] sm:$0xff] (!%p171_p3)   ;;  %v2796_v15 = vld [vmem:[%s3555_s1 + $0x38] sm:$0xff] (!%p171_p3)   ;;  %v2798_v17 = vld [vmem:[%s3555_s1 + $0x40] sm:$0xff] (!%p171_p3)  }
   0xb   : > { %v2795_v14 = vld [vmem:[%s3555_s1 + $0xb0] sm:$0xff] (!%p171_p3)   ;;  %v2797_v16 = vld [vmem:[%s3555_s1 + $0xb8] sm:$0xff] (!%p171_p3)   ;;  %v2799_v18 = vld [vmem:[%s3555_s1 + $0xc0] sm:$0xff] (!%p171_p3)  }
   0xc   : > { %1263 = vmatpush1.bf16.msra.mxu1 (!%p171_p3), %v2784_v3  ;;  %1552 = vmatpush1.bf16.msra.mxu0 (!%p171_p3), %v2785_v4  ;;  %v2800_v20 = vld [vmem:[%s3555_s1 + $0x48] sm:$0xff] (!%p171_p3)   ;;  %v2802_v23 = vld [vmem:[%s3555_s1 + $0x50] sm:$0xff] (!%p171_p3)   ;;  %v2804_v25 = vld [vmem:[%s3555_s1 + $0x58] sm:$0xff] (!%p171_p3)  }
   0xd   : > { %1264 = vmatprep.subr.bf16.mxu1 (!%p171_p3), %v3031_v1  ;;  %1553 = vmatprep.subr.bf16.mxu0 (!%p171_p3), %v3031_v1  ;;  %v2801_v22 = vld [vmem:[%s3555_s1 + $0xc8] sm:$0xff] (!%p171_p3)   ;;  %v2803_v24 = vld [vmem:[%s3555_s1 + $0xd0] sm:$0xff] (!%p171_p3)   ;;  %v2805_v26 = vld [vmem:[%s3555_s1 + $0xd8] sm:$0xff] (!%p171_p3)  }
   0xe   : > { %s3563_s9 = smov (!%p206_p4, %s2332_s9), 1023  ;;  %v2806_v27 = vld [vmem:[%s3555_s1 + $0x60] sm:$0xff]   ;;  %v2808_v29 = vld [vmem:[%s3555_s1 + $0x68] sm:$0xff]   ;;  %v2810_v31 = vld [vmem:[%s3555_s1 + $0x70] sm:$0xff]  }
   0xf   : > { %s2564_s25 = sshll.u32 %s3563_s9, 4  ;;  %v2807_v28 = vld [vmem:[%s3555_s1 + $0xe0] sm:$0xff]   ;;  %v2809_v30 = vld [vmem:[%s3555_s1 + $0xe8] sm:$0xff]   ;;  %v2811_v32 = vld [vmem:[%s3555_s1 + $0xf0] sm:$0xff]   ;;  %s2336_s19 = sshll.u32 %s3563_s9, 2 }
  0x10   : > { %1265 = vmatpush1.bf16.msra.mxu1 %v2786_v5  ;;  %1554 = vmatpush1.bf16.msra.mxu0 %v2787_v6  ;;  %s3146_s30 = scalar_lea.vmem %s3554_s0, %s2564_s25  ;;  %v2812_v33 = vld [vmem:[%s3555_s1 + $0x78] sm:$0xff]   ;;  %s3334_s21 = scalar_lea.vmem %s3557_s3, %s2336_s19 }
  0x11   : > { %1266 = vmatprep.subr.bf16.mxu1 %v3031_v1  ;;  %1555 = vmatprep.subr.bf16.mxu0 %v3031_v1  ;;  %v2816_v19 = vld [vmem:[%s3146_s30 + $0x4] ss:$16 sps:$4 sm:$0xff]   ;;  %v2819_v21 = vld [vmem:[%s3146_s30 + $0xc] ss:$16 sps:$4 sm:$0xff]   ;;  %v2814_v35 = vld [vmem:[%s3146_s30] ss:$16 sps:$4 sm:$0xff]  }
  0x12   : > { %1292 = vmatprep.mubr.bf16.mxu1 %v2816_v19  ;;  %1581 = vmatprep.mubr.bf16.mxu0 %v2819_v21  ;;  %v2813_v34 = vld [vmem:[%s3555_s1 + $0xf8] sm:$0xff]   ;;  %v2820_v37 = vld [vmem:[%s3146_s30 + $0x24] ss:$16 sps:$4 sm:$0xff]   ;;  %v2824_v39 = vld [vmem:[%s3146_s30 + $0x20] ss:$16 sps:$4 sm:$0xff]  }
  0x13   : > { %v2817_v36 = vld [vmem:[%s3146_s30 + $0x8] ss:$16 sps:$4 sm:$0xff]   ;;  %v2822_v38 = vld [vmem:[%s3146_s30 + $0x2c] ss:$16 sps:$4 sm:$0xff]   ;;  %v2826_v41 = vld [vmem:[%s3146_s30 + $0x44] ss:$16 sps:$4 sm:$0xff]  }
  0x14   : > { %1267 = vmatpush1.bf16.msra.mxu1 %v2788_v7  ;;  %1556 = vmatpush1.bf16.msra.mxu0 %v2789_v8  ;;  %v2825_v40 = vld [vmem:[%s3146_s30 + $0x28] ss:$16 sps:$4 sm:$0xff]   ;;  %v2828_v42 = vld [vmem:[%s3146_s30 + $0x4c] ss:$16 sps:$4 sm:$0xff]   ;;  %v2830_v43 = vld [vmem:[%s3146_s30 + $0x40] ss:$16 sps:$4 sm:$0xff]  }
  0x15   : > { %1268 = vmatprep.subr.bf16.mxu1 %v3031_v1  ;;  %1557 = vmatprep.subr.bf16.mxu0 %v3031_v1  ;;  %v2831_v44 = vld [vmem:[%s3146_s30 + $0x48] ss:$16 sps:$4 sm:$0xff]   ;;  %v2832_v45 = vld [vmem:[%s3146_s30 + $0x64] ss:$16 sps:$4 sm:$0xff]   ;;  %v2834_v46 = vld [vmem:[%s3146_s30 + $0x6c] ss:$16 sps:$4 sm:$0xff]  }
  0x16   : > { %v2836_v47 = vld [vmem:[%s3146_s30 + $0x60] ss:$16 sps:$4 sm:$0xff]   ;;  %v2837_v48 = vld [vmem:[%s3146_s30 + $0x68] ss:$16 sps:$4 sm:$0xff]   ;;  %v2838_v49 = vld [vmem:[%s3146_s30 + $0x84] ss:$16 sps:$4 sm:$0xff]  }
  0x17   : > { %v2840_v50 = vld [vmem:[%s3146_s30 + $0x8c] ss:$16 sps:$4 sm:$0xff]   ;;  %v2842_v51 = vld [vmem:[%s3146_s30 + $0x80] ss:$16 sps:$4 sm:$0xff]   ;;  %v2843_v52 = vld [vmem:[%s3146_s30 + $0x88] ss:$16 sps:$4 sm:$0xff]  }
  0x18   : > { %1269 = vmatpush1.bf16.msra.mxu1 %v2790_v9  ;;  %1558 = vmatpush1.bf16.msra.mxu0 %v2791_v10  ;;  %v2844_v53 = vld [vmem:[%s3146_s30 + $0xa4] ss:$16 sps:$4 sm:$0xff]   ;;  %v2846_v54 = vld [vmem:[%s3146_s30 + $0xac] ss:$16 sps:$4 sm:$0xff]   ;;  %v2848_v55 = vld [vmem:[%s3146_s30 + $0xa0] ss:$16 sps:$4 sm:$0xff]  }
  0x19   : > { %1270 = vmatprep.subr.bf16.mxu1 %v3031_v1  ;;  %1559 = vmatprep.subr.bf16.mxu0 %v3031_v1  ;;  %v2849_v56 = vld [vmem:[%s3146_s30 + $0xa8] ss:$16 sps:$4 sm:$0xff]   ;;  %v2850_v57 = vld [vmem:[%s3146_s30 + $0xc4] ss:$16 sps:$4 sm:$0xff]   ;;  %v2852_v58 = vld [vmem:[%s3146_s30 + $0xcc] ss:$16 sps:$4 sm:$0xff]  }
  0x1a   : > { %v2854_v59 = vld [vmem:[%s3146_s30 + $0xc0] ss:$16 sps:$4 sm:$0xff]   ;;  %v2855_v60 = vld [vmem:[%s3146_s30 + $0xc8] ss:$16 sps:$4 sm:$0xff]   ;;  %v2856_v61 = vld [vmem:[%s3146_s30 + $0xe4] ss:$16 sps:$4 sm:$0xff]  }
  0x1b   : > { %v2858_v62 = vld [vmem:[%s3146_s30 + $0xec] ss:$16 sps:$4 sm:$0xff]   ;;  %v2860_v63 = vld [vmem:[%s3146_s30 + $0xe0] ss:$16 sps:$4 sm:$0xff]   ;;  %v2861_v0 = vld [vmem:[%s3146_s30 + $0xe8] ss:$16 sps:$4 sm:$0xff]  }
  0x1c   : > { %1271 = vmatpush1.bf16.msra.mxu1 %v2792_v11  ;;  %1560 = vmatpush1.bf16.msra.mxu0 %v2793_v12  ;;  %v2864_v2 = vld [vmem:[%s3146_s30 + $0x10c] ss:$16 sps:$4 sm:$0xff]   ;;  %v2866_v3 = vld [vmem:[%s3146_s30 + $0x100] ss:$16 sps:$4 sm:$0xff]   ;;  %v2867_v4 = vld [vmem:[%s3146_s30 + $0x108] ss:$16 sps:$4 sm:$0xff]  }
  0x1d   : > { %1272 = vmatprep.subr.bf16.mxu1 %v3031_v1  ;;  %1561 = vmatprep.subr.bf16.mxu0 %v3031_v1  ;;  %v2868_v5 = vld [vmem:[%s3146_s30 + $0x124] ss:$16 sps:$4 sm:$0xff]   ;;  %v2870_v6 = vld [vmem:[%s3146_s30 + $0x12c] ss:$16 sps:$4 sm:$0xff]   ;;  %v2872_v7 = vld [vmem:[%s3146_s30 + $0x120] ss:$16 sps:$4 sm:$0xff]  }
  0x1e   : > { %v2873_v8 = vld [vmem:[%s3146_s30 + $0x128] ss:$16 sps:$4 sm:$0xff]   ;;  %v2874_v9 = vld [vmem:[%s3146_s30 + $0x144] ss:$16 sps:$4 sm:$0xff]   ;;  %v2876_v10 = vld [vmem:[%s3146_s30 + $0x14c] ss:$16 sps:$4 sm:$0xff]  }
  0x1f   : > { %v2878_v11 = vld [vmem:[%s3146_s30 + $0x140] ss:$16 sps:$4 sm:$0xff]   ;;  %v2879_v12 = vld [vmem:[%s3146_s30 + $0x148] ss:$16 sps:$4 sm:$0xff]   ;;  %v2892_v21 = vld [vmem:[%s3146_s30 + $0x1a4] ss:$16 sps:$4 sm:$0xff]  }
  0x20   : > { %1273 = vmatpush1.bf16.msra.mxu1 %v2794_v13  ;;  %1562 = vmatpush1.bf16.msra.mxu0 %v2795_v14  ;;  %v2880_v13 = vld [vmem:[%s3146_s30 + $0x164] ss:$16 sps:$4 sm:$0xff]   ;;  %v2882_v14 = vld [vmem:[%s3146_s30 + $0x16c] ss:$16 sps:$4 sm:$0xff]   ;;  %v2890_v19 = vld [vmem:[%s3146_s30 + $0x180] ss:$16 sps:$4 sm:$0xff]  }
  0x21   : > { %1274 = vmatprep.subr.bf16.mxu1 %v3031_v1  ;;  %1563 = vmatprep.subr.bf16.mxu0 %v3031_v1 }
  0x24   : > { %1275 = vmatpush1.bf16.msra.mxu1 %v2796_v15  ;;  %1564 = vmatpush1.bf16.msra.mxu0 %v2797_v16  ;;  %v2884_v15 = vld [vmem:[%s3146_s30 + $0x160] ss:$16 sps:$4 sm:$0xff]   ;;  %v2885_v16 = vld [vmem:[%s3146_s30 + $0x168] ss:$16 sps:$4 sm:$0xff]  }
  0x25   : > { %1276 = vmatprep.subr.bf16.mxu1 %v3031_v1  ;;  %1565 = vmatprep.subr.bf16.mxu0 %v3031_v1 }
  0x28   : > { %1277 = vmatpush1.bf16.msra.mxu1 %v2798_v17  ;;  %1566 = vmatpush1.bf16.msra.mxu0 %v2799_v18  ;;  %v2886_v17 = vld [vmem:[%s3146_s30 + $0x184] ss:$16 sps:$4 sm:$0xff]   ;;  %v2888_v18 = vld [vmem:[%s3146_s30 + $0x18c] ss:$16 sps:$4 sm:$0xff]  }
  0x29   : > { %1278 = vmatprep.subr.bf16.mxu1 %v3031_v1  ;;  %1567 = vmatprep.subr.bf16.mxu0 %v3031_v1 }
  0x2c   : > { %1279 = vmatpush1.bf16.msra.mxu1 %v2800_v20  ;;  %1568 = vmatpush1.bf16.msra.mxu0 %v2801_v22  ;;  %v2891_v20 = vld [vmem:[%s3146_s30 + $0x188] ss:$16 sps:$4 sm:$0xff]   ;;  %v2894_v22 = vld [vmem:[%s3146_s30 + $0x1ac] ss:$16 sps:$4 sm:$0xff]  }
  0x2d   : > { %1280 = vmatprep.subr.bf16.mxu1 %v3031_v1  ;;  %1569 = vmatprep.subr.bf16.mxu0 %v3031_v1 }
  0x30   : > { %1281 = vmatpush1.bf16.msra.mxu1 %v2802_v23  ;;  %1570 = vmatpush1.bf16.msra.mxu0 %v2803_v24  ;;  %v2896_v23 = vld [vmem:[%s3146_s30 + $0x1a0] ss:$16 sps:$4 sm:$0xff]   ;;  %v2897_v24 = vld [vmem:[%s3146_s30 + $0x1a8] ss:$16 sps:$4 sm:$0xff]  }
  0x31   : > { %1282 = vmatprep.subr.bf16.mxu1 %v3031_v1  ;;  %1571 = vmatprep.subr.bf16.mxu0 %v3031_v1 }
  0x34   : > { %1283 = vmatpush1.bf16.msra.mxu1 %v2804_v25  ;;  %1572 = vmatpush1.bf16.msra.mxu0 %v2805_v26  ;;  %v2898_v25 = vld [vmem:[%s3146_s30 + $0x1c4] ss:$16 sps:$4 sm:$0xff]   ;;  %v2900_v26 = vld [vmem:[%s3146_s30 + $0x1cc] ss:$16 sps:$4 sm:$0xff]  }
  0x35   : > { %1284 = vmatprep.subr.bf16.mxu1 %v3031_v1  ;;  %1573 = vmatprep.subr.bf16.mxu0 %v3031_v1 }
  0x38   : > { %1285 = vmatpush1.bf16.msra.mxu1 %v2806_v27  ;;  %1574 = vmatpush1.bf16.msra.mxu0 %v2807_v28  ;;  %v2902_v27 = vld [vmem:[%s3146_s30 + $0x1c0] ss:$16 sps:$4 sm:$0xff]   ;;  %v2903_v28 = vld [vmem:[%s3146_s30 + $0x1c8] ss:$16 sps:$4 sm:$0xff]  }
  0x39   : > { %1286 = vmatprep.subr.bf16.mxu1 %v3031_v1  ;;  %1575 = vmatprep.subr.bf16.mxu0 %v3031_v1 }
  0x3c   : > { %1287 = vmatpush1.bf16.msra.mxu1 %v2808_v29  ;;  %1576 = vmatpush1.bf16.msra.mxu0 %v2809_v30  ;;  %v2904_v29 = vld [vmem:[%s3146_s30 + $0x1e4] ss:$16 sps:$4 sm:$0xff]   ;;  %v2906_v30 = vld [vmem:[%s3146_s30 + $0x1ec] ss:$16 sps:$4 sm:$0xff]  }
  0x3d   : > { %1288 = vmatprep.subr.bf16.mxu1 %v3031_v1  ;;  %1577 = vmatprep.subr.bf16.mxu0 %v3031_v1 }
  0x40   : > { %1289 = vmatpush1.bf16.msra.mxu1 %v2810_v31  ;;  %1578 = vmatpush1.bf16.msra.mxu0 %v2811_v32  ;;  %v2908_v31 = vld [vmem:[%s3146_s30 + $0x1e0] ss:$16 sps:$4 sm:$0xff]   ;;  %v2909_v32 = vld [vmem:[%s3146_s30 + $0x1e8] ss:$16 sps:$4 sm:$0xff]  }
  0x41   : > { %1290 = vmatprep.subr.bf16.mxu1 %v3031_v1  ;;  %1579 = vmatprep.subr.bf16.mxu0 %v3031_v1  ;;  %v2862_v1 = vld [vmem:[%s3146_s30 + $0x104] ss:$16 sps:$4 sm:$0xff]  }
  0x44   : > { %1291 = vmatpush1.bf16.msra.mxu1 %v2812_v33  ;;  %1580 = vmatpush1.bf16.msra.mxu0 %v2813_v34  ;;  %v2910_v33 = vld [vmem:[%s3146_s30 + $0x204] ss:$16 sps:$4 sm:$0xff]   ;;  %v2912_v34 = vld [vmem:[%s3146_s30 + $0x20c] ss:$16 sps:$4 sm:$0xff]  }
  0x47   : > { %1293 = vmatmul.mubr.bf16.vlgmr.msra.gmra.mrb[0].mxu1 %v2814_v35  ;;  %1582 = vmatmul.mubr.bf16.vlgmr.msra.gmra.mrb[0].mxu0 %v2817_v36  ;;  %v2914_v35 = vld [vmem:[%s3146_s30 + $0x200] ss:$16 sps:$4 sm:$0xff]   ;;  %v2915_v36 = vld [vmem:[%s3146_s30 + $0x208] ss:$16 sps:$4 sm:$0xff]  }
  0x48   : > { %1300 = vmatprep.mubr.bf16.mxu1 %v2820_v37  ;;  %1589 = vmatprep.mubr.bf16.mxu0 %v2822_v38  ;;  %v2916_v37 = vld [vmem:[%s3146_s30 + $0x224] ss:$16 sps:$4 sm:$0xff]   ;;  %v2918_v38 = vld [vmem:[%s3146_s30 + $0x22c] ss:$16 sps:$4 sm:$0xff]  }
  0x4f   : > { %1301 = vmatmul.mubr.bf16.gmra.mrb[4].mxu1 %v2824_v39  ;;  %1590 = vmatmul.mubr.bf16.gmra.mrb[4].mxu0 %v2825_v40  ;;  %v2920_v39 = vld [vmem:[%s3146_s30 + $0x220] ss:$16 sps:$4 sm:$0xff]   ;;  %v2921_v40 = vld [vmem:[%s3146_s30 + $0x228] ss:$16 sps:$4 sm:$0xff]  }
  0x50   : > { %1308 = vmatprep.mubr.bf16.mxu1 %v2826_v41  ;;  %1597 = vmatprep.mubr.bf16.mxu0 %v2828_v42  ;;  %v2922_v41 = vld [vmem:[%s3146_s30 + $0x244] ss:$16 sps:$4 sm:$0xff]   ;;  %v2924_v42 = vld [vmem:[%s3146_s30 + $0x24c] ss:$16 sps:$4 sm:$0xff]  }
  0x57   : > { %1309 = vmatmul.mubr.bf16.gmra.mrb[8].mxu1 %v2830_v43  ;;  %1598 = vmatmul.mubr.bf16.gmra.mrb[8].mxu0 %v2831_v44  ;;  %v2926_v43 = vld [vmem:[%s3146_s30 + $0x240] ss:$16 sps:$4 sm:$0xff]   ;;  %v2927_v44 = vld [vmem:[%s3146_s30 + $0x248] ss:$16 sps:$4 sm:$0xff]  }
  0x58   : > { %1316 = vmatprep.mubr.bf16.mxu1 %v2832_v45  ;;  %1605 = vmatprep.mubr.bf16.mxu0 %v2834_v46  ;;  %v2928_v45 = vld [vmem:[%s3146_s30 + $0x264] ss:$16 sps:$4 sm:$0xff]   ;;  %v2930_v46 = vld [vmem:[%s3146_s30 + $0x26c] ss:$16 sps:$4 sm:$0xff]  }
  0x5f   : > { %1317 = vmatmul.mubr.bf16.gmra.mrb[12].mxu1 %v2836_v47  ;;  %1606 = vmatmul.mubr.bf16.gmra.mrb[12].mxu0 %v2837_v48  ;;  %v2932_v47 = vld [vmem:[%s3146_s30 + $0x260] ss:$16 sps:$4 sm:$0xff]   ;;  %v2933_v48 = vld [vmem:[%s3146_s30 + $0x268] ss:$16 sps:$4 sm:$0xff]  }
  0x60   : > { %1324 = vmatprep.mubr.bf16.mxu1 %v2838_v49  ;;  %1613 = vmatprep.mubr.bf16.mxu0 %v2840_v50  ;;  %v2934_v49 = vld [vmem:[%s3146_s30 + $0x284] ss:$16 sps:$4 sm:$0xff]   ;;  %v2936_v50 = vld [vmem:[%s3146_s30 + $0x28c] ss:$16 sps:$4 sm:$0xff]  }
  0x67   : > { %1325 = vmatmul.mubr.bf16.gmra.mrb[16].mxu1 %v2842_v51  ;;  %1614 = vmatmul.mubr.bf16.gmra.mrb[16].mxu0 %v2843_v52  ;;  %v2938_v51 = vld [vmem:[%s3146_s30 + $0x280] ss:$16 sps:$4 sm:$0xff]   ;;  %v2939_v52 = vld [vmem:[%s3146_s30 + $0x288] ss:$16 sps:$4 sm:$0xff]  }
  0x68   : > { %1332 = vmatprep.mubr.bf16.mxu1 %v2844_v53  ;;  %1621 = vmatprep.mubr.bf16.mxu0 %v2846_v54  ;;  %v2940_v53 = vld [vmem:[%s3146_s30 + $0x2a4] ss:$16 sps:$4 sm:$0xff]   ;;  %v2942_v54 = vld [vmem:[%s3146_s30 + $0x2ac] ss:$16 sps:$4 sm:$0xff]  }
  0x6f   : > { %1333 = vmatmul.mubr.bf16.gmra.mrb[20].mxu1 %v2848_v55  ;;  %1622 = vmatmul.mubr.bf16.gmra.mrb[20].mxu0 %v2849_v56  ;;  %v2944_v55 = vld [vmem:[%s3146_s30 + $0x2a0] ss:$16 sps:$4 sm:$0xff]   ;;  %v2945_v56 = vld [vmem:[%s3146_s30 + $0x2a8] ss:$16 sps:$4 sm:$0xff]  }
  0x70   : > { %1340 = vmatprep.mubr.bf16.mxu1 %v2850_v57  ;;  %1629 = vmatprep.mubr.bf16.mxu0 %v2852_v58  ;;  %v2946_v57 = vld [vmem:[%s3146_s30 + $0x2c4] ss:$16 sps:$4 sm:$0xff]   ;;  %v2948_v58 = vld [vmem:[%s3146_s30 + $0x2cc] ss:$16 sps:$4 sm:$0xff]  }
  0x77   : > { %1341 = vmatmul.mubr.bf16.gmra.mrb[24].mxu1 %v2854_v59  ;;  %1630 = vmatmul.mubr.bf16.gmra.mrb[24].mxu0 %v2855_v60  ;;  %v2950_v59 = vld [vmem:[%s3146_s30 + $0x2c0] ss:$16 sps:$4 sm:$0xff]   ;;  %v2951_v60 = vld [vmem:[%s3146_s30 + $0x2c8] ss:$16 sps:$4 sm:$0xff]  }
  0x78   : > { %1348 = vmatprep.mubr.bf16.mxu1 %v2856_v61  ;;  %1637 = vmatprep.mubr.bf16.mxu0 %v2858_v62  ;;  %v2952_v61 = vld [vmem:[%s3146_s30 + $0x2e4] ss:$16 sps:$4 sm:$0xff]   ;;  %v2954_v62 = vld [vmem:[%s3146_s30 + $0x2ec] ss:$16 sps:$4 sm:$0xff]  }
  0x7f   : > { %1349 = vmatmul.mubr.bf16.gmra.mrb[28].mxu1 %v2860_v63  ;;  %1638 = vmatmul.mubr.bf16.gmra.mrb[28].mxu0 %v2861_v0  ;;  %v2956_v63 = vld [vmem:[%s3146_s30 + $0x2e0] ss:$16 sps:$4 sm:$0xff]   ;;  %v2957_v0 = vld [vmem:[%s3146_s30 + $0x2e8] ss:$16 sps:$4 sm:$0xff]  }
  0x80   : > { %1356 = vmatprep.mubr.bf16.mxu1 %v2862_v1  ;;  %1645 = vmatprep.mubr.bf16.mxu0 %v2864_v2  ;;  %v2958_v1 = vld [vmem:[%s3146_s30 + $0x304] ss:$16 sps:$4 sm:$0xff]   ;;  %v2960_v2 = vld [vmem:[%s3146_s30 + $0x30c] ss:$16 sps:$4 sm:$0xff]  }
  0x87   : > { %1357 = vmatmul.mubr.bf16.gmra.mrb[32].mxu1 %v2866_v3  ;;  %1646 = vmatmul.mubr.bf16.gmra.mrb[32].mxu0 %v2867_v4  ;;  %v2962_v3 = vld [vmem:[%s3146_s30 + $0x300] ss:$16 sps:$4 sm:$0xff]   ;;  %v2963_v4 = vld [vmem:[%s3146_s30 + $0x308] ss:$16 sps:$4 sm:$0xff]  }
  0x88   : > { %1364 = vmatprep.mubr.bf16.mxu1 %v2868_v5  ;;  %1653 = vmatprep.mubr.bf16.mxu0 %v2870_v6  ;;  %v2964_v5 = vld [vmem:[%s3146_s30 + $0x324] ss:$16 sps:$4 sm:$0xff]   ;;  %v2966_v6 = vld [vmem:[%s3146_s30 + $0x32c] ss:$16 sps:$4 sm:$0xff]  }
  0x8f   : > { %1365 = vmatmul.mubr.bf16.gmra.mrb[36].mxu1 %v2872_v7  ;;  %1654 = vmatmul.mubr.bf16.gmra.mrb[36].mxu0 %v2873_v8  ;;  %v2968_v7 = vld [vmem:[%s3146_s30 + $0x320] ss:$16 sps:$4 sm:$0xff]   ;;  %v2969_v8 = vld [vmem:[%s3146_s30 + $0x328] ss:$16 sps:$4 sm:$0xff]  }
  0x90   : > { %1372 = vmatprep.mubr.bf16.mxu1 %v2874_v9  ;;  %1661 = vmatprep.mubr.bf16.mxu0 %v2876_v10  ;;  %v2970_v9 = vld [vmem:[%s3146_s30 + $0x344] ss:$16 sps:$4 sm:$0xff]   ;;  %v2972_v10 = vld [vmem:[%s3146_s30 + $0x34c] ss:$16 sps:$4 sm:$0xff]  }
  0x97   : > { %1373 = vmatmul.mubr.bf16.gmra.mrb[40].mxu1 %v2878_v11  ;;  %1662 = vmatmul.mubr.bf16.gmra.mrb[40].mxu0 %v2879_v12  ;;  %v2974_v11 = vld [vmem:[%s3146_s30 + $0x340] ss:$16 sps:$4 sm:$0xff]   ;;  %v2975_v12 = vld [vmem:[%s3146_s30 + $0x348] ss:$16 sps:$4 sm:$0xff]  }
  0x98   : > { %1380 = vmatprep.mubr.bf16.mxu1 %v2880_v13  ;;  %1669 = vmatprep.mubr.bf16.mxu0 %v2882_v14  ;;  %v2976_v13 = vld [vmem:[%s3146_s30 + $0x364] ss:$16 sps:$4 sm:$0xff]   ;;  %v2978_v14 = vld [vmem:[%s3146_s30 + $0x36c] ss:$16 sps:$4 sm:$0xff]  }
  0x9f   : > { %1381 = vmatmul.mubr.bf16.gmra.mrb[44].mxu1 %v2884_v15  ;;  %1670 = vmatmul.mubr.bf16.gmra.mrb[44].mxu0 %v2885_v16  ;;  %v3322_v15 = vld [vmem:[%s3556_s2] ss:$0 sm:$0xff] }
  0xa0   : > { %1388 = vmatprep.mubr.bf16.mxu1 %v2886_v17  ;;  %1677 = vmatprep.mubr.bf16.mxu0 %v2888_v18 }
  0xa7   : > { %1389 = vmatmul.mubr.bf16.gmra.mrb[48].mxu1 %v2890_v19  ;;  %1678 = vmatmul.mubr.bf16.gmra.mrb[48].mxu0 %v2891_v20  ;;  %v2980_v20 = vld [vmem:[%s3146_s30 + $0x360] ss:$16 sps:$4 sm:$0xff]  }
  0xa8   : > { %1396 = vmatprep.mubr.bf16.mxu1 %v2892_v21  ;;  %1685 = vmatprep.mubr.bf16.mxu0 %v2894_v22 }
  0xaf   : > { %1397 = vmatmul.mubr.bf16.gmra.mrb[52].mxu1 %v2896_v23  ;;  %1686 = vmatmul.mubr.bf16.gmra.mrb[52].mxu0 %v2897_v24  ;;  %v2981_v23 = vld [vmem:[%s3146_s30 + $0x368] ss:$16 sps:$4 sm:$0xff]   ;;  %v2982_v24 = vld [vmem:[%s3146_s30 + $0x384] ss:$16 sps:$4 sm:$0xff]  }
  0xb0   : > { %1404 = vmatprep.mubr.bf16.mxu1 %v2898_v25  ;;  %1693 = vmatprep.mubr.bf16.mxu0 %v2900_v26 }
  0xb7   : > { %1405 = vmatmul.mubr.bf16.gmra.mrb[56].mxu1 %v2902_v27  ;;  %1694 = vmatmul.mubr.bf16.gmra.mrb[56].mxu0 %v2903_v28 }
  0xb8   : > { %1412 = vmatprep.mubr.bf16.mxu1 %v2904_v29  ;;  %1701 = vmatprep.mubr.bf16.mxu0 %v2906_v30  ;;  %v2984_v29 = vld [vmem:[%s3146_s30 + $0x38c] ss:$16 sps:$4 sm:$0xff]  }
  0xbf   : > { %1413 = vmatmul.mubr.bf16.gmra.mrb[60].mxu1 %v2908_v31  ;;  %1702 = vmatmul.mubr.bf16.gmra.mrb[60].mxu0 %v2909_v32 }
  0xc0   : > { %1420 = vmatprep.mubr.bf16.mxu1 %v2910_v33  ;;  %1709 = vmatprep.mubr.bf16.mxu0 %v2912_v34 }
  0xc7   : > { %1421 = vmatmul.mubr.bf16.gmra.mrb[64].mxu1 %v2914_v35  ;;  %1710 = vmatmul.mubr.bf16.gmra.mrb[64].mxu0 %v2915_v36 }
  0xc8   : > { %1428 = vmatprep.mubr.bf16.mxu1 %v2916_v37  ;;  %1717 = vmatprep.mubr.bf16.mxu0 %v2918_v38 }
  0xcf   : > { %1429 = vmatmul.mubr.bf16.gmra.mrb[68].mxu1 %v2920_v39  ;;  %1718 = vmatmul.mubr.bf16.gmra.mrb[68].mxu0 %v2921_v40  ;;  %v2986_v40 = vld [vmem:[%s3146_s30 + $0x380] ss:$16 sps:$4 sm:$0xff]  }
  0xd0   : > { %1436 = vmatprep.mubr.bf16.mxu1 %v2922_v41  ;;  %1725 = vmatprep.mubr.bf16.mxu0 %v2924_v42 }
  0xd7   : > { %1437 = vmatmul.mubr.bf16.gmra.mrb[72].mxu1 %v2926_v43  ;;  %1726 = vmatmul.mubr.bf16.gmra.mrb[72].mxu0 %v2927_v44  ;;  %v2987_v43 = vld [vmem:[%s3146_s30 + $0x388] ss:$16 sps:$4 sm:$0xff]   ;;  %v2988_v44 = vld [vmem:[%s3146_s30 + $0x3a4] ss:$16 sps:$4 sm:$0xff]  }
  0xd8   : > { %1444 = vmatprep.mubr.bf16.mxu1 %v2928_v45  ;;  %1733 = vmatprep.mubr.bf16.mxu0 %v2930_v46 }
  0xdf   : > { %1445 = vmatmul.mubr.bf16.gmra.mrb[76].mxu1 %v2932_v47  ;;  %1734 = vmatmul.mubr.bf16.gmra.mrb[76].mxu0 %v2933_v48 }
  0xe0   : > { %1452 = vmatprep.mubr.bf16.mxu1 %v2934_v49  ;;  %1741 = vmatprep.mubr.bf16.mxu0 %v2936_v50  ;;  %v2990_v49 = vld [vmem:[%s3146_s30 + $0x3ac] ss:$16 sps:$4 sm:$0xff]  }
  0xe7   : > { %1453 = vmatmul.mubr.bf16.gmra.mrb[80].mxu1 %v2938_v51  ;;  %1742 = vmatmul.mubr.bf16.gmra.mrb[80].mxu0 %v2939_v52 }
  0xe8   : > { %1460 = vmatprep.mubr.bf16.mxu1 %v2940_v53  ;;  %1749 = vmatprep.mubr.bf16.mxu0 %v2942_v54 }
  0xef   : > { %1461 = vmatmul.mubr.bf16.gmra.mrb[84].mxu1 %v2944_v55  ;;  %1750 = vmatmul.mubr.bf16.gmra.mrb[84].mxu0 %v2945_v56 }
  0xf0   : > { %1468 = vmatprep.mubr.bf16.mxu1 %v2946_v57  ;;  %1757 = vmatprep.mubr.bf16.mxu0 %v2948_v58 }
  0xf7   : > { %1469 = vmatmul.mubr.bf16.gmra.mrb[88].mxu1 %v2950_v59  ;;  %1758 = vmatmul.mubr.bf16.gmra.mrb[88].mxu0 %v2951_v60  ;;  %v2992_v60 = vld [vmem:[%s3146_s30 + $0x3a0] ss:$16 sps:$4 sm:$0xff]  }
  0xf8   : > { %1476 = vmatprep.mubr.bf16.mxu1 %v2952_v61  ;;  %1765 = vmatprep.mubr.bf16.mxu0 %v2954_v62 }
  0xff   : > { %1477 = vmatmul.mubr.bf16.gmra.mrb[92].mxu1 %v2956_v63  ;;  %1766 = vmatmul.mubr.bf16.gmra.mrb[92].mxu0 %v2957_v0  ;;  %v2993_v63 = vld [vmem:[%s3146_s30 + $0x3a8] ss:$16 sps:$4 sm:$0xff]   ;;  %v2994_v0 = vld [vmem:[%s3146_s30 + $0x3c4] ss:$16 sps:$4 sm:$0xff]  }
 0x100   : > { %1484 = vmatprep.mubr.bf16.mxu1 %v2958_v1  ;;  %1773 = vmatprep.mubr.bf16.mxu0 %v2960_v2 }
 0x107   : > { %1485 = vmatmul.mubr.bf16.gmra.mrb[96].mxu1 %v2962_v3  ;;  %1774 = vmatmul.mubr.bf16.gmra.mrb[96].mxu0 %v2963_v4 }
 0x108   : > { %1492 = vmatprep.mubr.bf16.mxu1 %v2964_v5  ;;  %1781 = vmatprep.mubr.bf16.mxu0 %v2966_v6  ;;  %v2996_v5 = vld [vmem:[%s3146_s30 + $0x3cc] ss:$16 sps:$4 sm:$0xff]  }
 0x10f   : > { %1493 = vmatmul.mubr.bf16.gmra.mrb[100].mxu1 %v2968_v7  ;;  %1782 = vmatmul.mubr.bf16.gmra.mrb[100].mxu0 %v2969_v8 }
 0x110   : > { %1500 = vmatprep.mubr.bf16.mxu1 %v2970_v9  ;;  %1789 = vmatprep.mubr.bf16.mxu0 %v2972_v10 }
 0x117   : > { %1501 = vmatmul.mubr.bf16.gmra.mrb[104].mxu1 %v2974_v11  ;;  %1790 = vmatmul.mubr.bf16.gmra.mrb[104].mxu0 %v2975_v12 }
 0x118   : > { %1508 = vmatprep.mubr.bf16.mxu1 %v2976_v13  ;;  %1797 = vmatprep.mubr.bf16.mxu0 %v2978_v14 }
 0x11a   : > { %v1294_v16 = vpop.f32.mrb[0].mxu1  ;;  %v1583_v18 = vpop.f32.mrb[0].mxu0 }
 0x11b   : > { %v1295_v17 = vadd.f32 %v3322_v15, %v1294_v16  ;;  %v1296_v19 = vpop.f32.mrb[1].mxu1  ;;  %v1585_v21 = vpop.f32.mrb[1].mxu0 }
 0x11c   : > { %v1297_v22 = vpop.f32.mrb[2].mxu1  ;;  %v1586_v27 = vpop.f32.mrb[2].mxu0  ;;  %v3000_v21 = vld [vmem:[%s3146_s30 + $0x3e4] ss:$16 sps:$4 sm:$0xff]  }
 0x11d   : > { %v1584_v25 = vadd.f32 %v1583_v18, %v1295_v17  ;;  %v1298_v26 = vadd.f32 %v3322_v15, %v1297_v22  ;;  %v1299_v28 = vpop.f32.mrb[3].mxu1  ;;  %v1588_v30 = vpop.f32.mrb[3].mxu0  ;;  %v2998_v17 = vld [vmem:[%s3146_s30 + $0x3c0] ss:$16 sps:$4 sm:$0xff]  }
 0x11f   : > { %v1838_v31 = vmax.f32 %v1584_v25, 0.0  ;;  %v1587_v32 = vadd.f32 %v1586_v27, %v1298_v26  ;;  %1509 = vmatmul.mubr.bf16.gmra.mrb[108].mxu1 %v2980_v20  ;;  %1798 = vmatmul.mubr.bf16.gmra.mrb[108].mxu0 %v2981_v23  ;;  %v2999_v20 = vld [vmem:[%s3146_s30 + $0x3c8] ss:$16 sps:$4 sm:$0xff]   ;;  %v3002_v26 = vld [vmem:[%s3146_s30 + $0x3ec] ss:$16 sps:$4 sm:$0xff]  }
 0x120   : > { %1516 = vmatprep.mubr.bf16.mxu1 %v2982_v24  ;;  %1805 = vmatprep.mubr.bf16.mxu0 %v2984_v29 }
 0x121   : > { %v2565_v33 = vpack.c.bf16 %v1838_v31, %v1838_v31  ;;  %v1839_v34 = vmax.f32 %v1587_v32, 0.0 }
 0x122   : > { %v1302_v35 = vpop.f32.mrb[4].mxu1  ;;  %v1591_v38 = vpop.f32.mrb[4].mxu0 }
 0x123   : > { %2159 = vst.msk [vmem:[%s3334_s21] sm:$0xf] %vm2158_vm0, %v2565_v33  ;;  %v2566_v36 = vpack.c.bf16 %v1839_v34, %v1839_v34  ;;  %v1303_v37 = vadd.f32 %v3322_v15, %v1302_v35  ;;  %v1304_v39 = vpop.f32.mrb[5].mxu1  ;;  %v1593_v41 = vpop.f32.mrb[5].mxu0 }
 0x124   : > { %v1305_v42 = vpop.f32.mrb[6].mxu1  ;;  %v1594_v47 = vpop.f32.mrb[6].mxu0 }
 0x125   : > { %2160 = vst.msk [vmem:[%s3334_s21 + $0x4] sm:$0xf] %vm2158_vm0, %v2566_v36  ;;  %v1592_v45 = vadd.f32 %v1591_v38, %v1303_v37  ;;  %v1306_v46 = vadd.f32 %v3322_v15, %v1305_v42  ;;  %v1307_v48 = vpop.f32.mrb[7].mxu1  ;;  %v1596_v50 = vpop.f32.mrb[7].mxu0  ;;  %v3004_v37 = vld [vmem:[%s3146_s30 + $0x3e0] ss:$16 sps:$4 sm:$0xff]  }
 0x127   : > { %v1840_v51 = vmax.f32 %v1592_v45, 0.0  ;;  %v1595_v52 = vadd.f32 %v1594_v47, %v1306_v46  ;;  %1517 = vmatmul.mubr.bf16.gmra.mrb[112].mxu1 %v2986_v40  ;;  %1806 = vmatmul.mubr.bf16.gmra.mrb[112].mxu0 %v2987_v43  ;;  %v3005_v40 = vld [vmem:[%s3146_s30 + $0x3e8] ss:$16 sps:$4 sm:$0xff]  }
 0x128   : > { %1524 = vmatprep.mubr.bf16.mxu1 %v2988_v44  ;;  %1813 = vmatprep.mubr.bf16.mxu0 %v2990_v49 }
 0x129   : > { %v2567_v53 = vpack.c.bf16 %v1840_v51, %v1840_v51  ;;  %v1841_v54 = vmax.f32 %v1595_v52, 0.0 }
 0x12a   : > { %v1310_v55 = vpop.f32.mrb[8].mxu1  ;;  %v1599_v58 = vpop.f32.mrb[8].mxu0 }
 0x12b   : > { %2161 = vst.msk [vmem:[%s3334_s21 + $0x8] sm:$0xf] %vm2158_vm0, %v2567_v53  ;;  %v2568_v56 = vpack.c.bf16 %v1841_v54, %v1841_v54  ;;  %v1311_v57 = vadd.f32 %v3322_v15, %v1310_v55  ;;  %v1312_v59 = vpop.f32.mrb[9].mxu1  ;;  %v1601_v61 = vpop.f32.mrb[9].mxu0 }
 0x12c   : > { %v1313_v62 = vpop.f32.mrb[10].mxu1  ;;  %v1602_v3 = vpop.f32.mrb[10].mxu0 }
 0x12d   : > { %2162 = vst.msk [vmem:[%s3334_s21 + $0xc] sm:$0xf] %vm2158_vm0, %v2568_v56  ;;  %v1600_v1 = vadd.f32 %v1599_v58, %v1311_v57  ;;  %v1314_v2 = vadd.f32 %v3322_v15, %v1313_v62  ;;  %v1315_v4 = vpop.f32.mrb[11].mxu1  ;;  %v1604_v6 = vpop.f32.mrb[11].mxu0 }
 0x12f   : > { %v1842_v7 = vmax.f32 %v1600_v1, 0.0  ;;  %v1603_v8 = vadd.f32 %v1602_v3, %v1314_v2  ;;  %1525 = vmatmul.mubr.bf16.gmra.mrb[116].mxu1 %v2992_v60  ;;  %1814 = vmatmul.mubr.bf16.gmra.mrb[116].mxu0 %v2993_v63 }
 0x130   : > { %1532 = vmatprep.mubr.bf16.mxu1 %v2994_v0  ;;  %1821 = vmatprep.mubr.bf16.mxu0 %v2996_v5 }
 0x131   : > { %v2569_v9 = vpack.c.bf16 %v1842_v7, %v1842_v7  ;;  %v1843_v10 = vmax.f32 %v1603_v8, 0.0 }
 0x132   : > { %v1318_v11 = vpop.f32.mrb[12].mxu1  ;;  %v1607_v14 = vpop.f32.mrb[12].mxu0 }
 0x133   : > { %2163 = vst.msk [vmem:[%s3334_s21 + $0x10] sm:$0xf] %vm2158_vm0, %v2569_v9  ;;  %v2570_v12 = vpack.c.bf16 %v1843_v10, %v1843_v10  ;;  %v1319_v13 = vadd.f32 %v3322_v15, %v1318_v11  ;;  %v1320_v16 = vpop.f32.mrb[13].mxu1  ;;  %v1609_v18 = vpop.f32.mrb[13].mxu0 }
 0x134   : > { %v1321_v19 = vpop.f32.mrb[14].mxu1  ;;  %v1610_v24 = vpop.f32.mrb[14].mxu0 }
 0x135   : > { %2164 = vst.msk [vmem:[%s3334_s21 + $0x14] sm:$0xf] %vm2158_vm0, %v2570_v12  ;;  %v1608_v22 = vadd.f32 %v1607_v14, %v1319_v13  ;;  %v1322_v23 = vadd.f32 %v3322_v15, %v1321_v19  ;;  %v1323_v25 = vpop.f32.mrb[15].mxu1  ;;  %v1612_v27 = vpop.f32.mrb[15].mxu0 }
 0x137   : > { %v1844_v28 = vmax.f32 %v1608_v22, 0.0  ;;  %v1611_v29 = vadd.f32 %v1610_v24, %v1322_v23  ;;  %1533 = vmatmul.mubr.bf16.gmra.mrb[120].mxu1 %v2998_v17  ;;  %1822 = vmatmul.mubr.bf16.gmra.mrb[120].mxu0 %v2999_v20 }
 0x138   : > { %1540 = vmatprep.mubr.bf16.mxu1 %v3000_v21  ;;  %1829 = vmatprep.mubr.bf16.mxu0 %v3002_v26 }
 0x139   : > { %v2571_v30 = vpack.c.bf16 %v1844_v28, %v1844_v28  ;;  %v1845_v31 = vmax.f32 %v1611_v29, 0.0 }
 0x13a   : > { %v1326_v32 = vpop.f32.mrb[16].mxu1  ;;  %v1615_v35 = vpop.f32.mrb[16].mxu0 }
 0x13b   : > { %2165 = vst.msk [vmem:[%s3334_s21 + $0x18] sm:$0xf] %vm2158_vm0, %v2571_v30  ;;  %v2572_v33 = vpack.c.bf16 %v1845_v31, %v1845_v31  ;;  %v1327_v34 = vadd.f32 %v3322_v15, %v1326_v32  ;;  %v1328_v36 = vpop.f32.mrb[17].mxu1  ;;  %v1617_v38 = vpop.f32.mrb[17].mxu0 }
 0x13c   : > { %v1329_v39 = vpop.f32.mrb[18].mxu1  ;;  %v1618_v43 = vpop.f32.mrb[18].mxu0 }
 0x13d   : > { %2166 = vst.msk [vmem:[%s3334_s21 + $0x1c] sm:$0xf] %vm2158_vm0, %v2572_v33  ;;  %v1616_v41 = vadd.f32 %v1615_v35, %v1327_v34  ;;  %v1330_v42 = vadd.f32 %v3322_v15, %v1329_v39  ;;  %v1331_v44 = vpop.f32.mrb[19].mxu1  ;;  %v1620_v45 = vpop.f32.mrb[19].mxu0 }
 0x13f   : > { %v1846_v46 = vmax.f32 %v1616_v41, 0.0  ;;  %v1619_v47 = vadd.f32 %v1618_v43, %v1330_v42  ;;  %1541 = vmatmul.mubr.bf16.gmra.mrb[124].mxu1 %v3004_v37  ;;  %1830 = vmatmul.mubr.bf16.gmra.mrb[124].mxu0 %v3005_v40 }
 0x141   : > { %v2573_v48 = vpack.c.bf16 %v1846_v46, %v1846_v46  ;;  %v1847_v49 = vmax.f32 %v1619_v47, 0.0 }
 0x142   : > { %v1334_v50 = vpop.f32.mrb[20].mxu1  ;;  %v1623_v53 = vpop.f32.mrb[20].mxu0 }
 0x143   : > { %2167 = vst.msk [vmem:[%s3334_s21 + $0x20] sm:$0xf] %vm2158_vm0, %v2573_v48  ;;  %v2574_v51 = vpack.c.bf16 %v1847_v49, %v1847_v49  ;;  %v1335_v52 = vadd.f32 %v3322_v15, %v1334_v50  ;;  %v1336_v54 = vpop.f32.mrb[21].mxu1  ;;  %v1625_v55 = vpop.f32.mrb[21].mxu0 }
 0x144   : > { %v1337_v56 = vpop.f32.mrb[22].mxu1  ;;  %v1626_v59 = vpop.f32.mrb[22].mxu0 }
 0x145   : > { %2168 = vst.msk [vmem:[%s3334_s21 + $0x24] sm:$0xf] %vm2158_vm0, %v2574_v51  ;;  %v1624_v57 = vadd.f32 %v1623_v53, %v1335_v52  ;;  %v1338_v58 = vadd.f32 %v3322_v15, %v1337_v56  ;;  %v1339_v60 = vpop.f32.mrb[23].mxu1  ;;  %v1628_v61 = vpop.f32.mrb[23].mxu0 }
 0x147   : > { %v1848_v62 = vmax.f32 %v1624_v57, 0.0  ;;  %v1627_v63 = vadd.f32 %v1626_v59, %v1338_v58 }
 0x149   : > { %v2575_v0 = vpack.c.bf16 %v1848_v62, %v1848_v62  ;;  %v1849_v1 = vmax.f32 %v1627_v63, 0.0 }
 0x14a   : > { %v1342_v2 = vpop.f32.mrb[24].mxu1  ;;  %v1631_v5 = vpop.f32.mrb[24].mxu0 }
 0x14b   : > { %2169 = vst.msk [vmem:[%s3334_s21 + $0x28] sm:$0xf] %vm2158_vm0, %v2575_v0  ;;  %v2576_v3 = vpack.c.bf16 %v1849_v1, %v1849_v1  ;;  %v1343_v4 = vadd.f32 %v3322_v15, %v1342_v2  ;;  %v1344_v6 = vpop.f32.mrb[25].mxu1  ;;  %v1633_v7 = vpop.f32.mrb[25].mxu0 }
 0x14c   : > { %v1345_v8 = vpop.f32.mrb[26].mxu1  ;;  %v1634_v11 = vpop.f32.mrb[26].mxu0 }
 0x14d   : > { %2170 = vst.msk [vmem:[%s3334_s21 + $0x2c] sm:$0xf] %vm2158_vm0, %v2576_v3  ;;  %v1632_v9 = vadd.f32 %v1631_v5, %v1343_v4  ;;  %v1346_v10 = vadd.f32 %v3322_v15, %v1345_v8  ;;  %v1347_v12 = vpop.f32.mrb[27].mxu1  ;;  %v1636_v13 = vpop.f32.mrb[27].mxu0 }
 0x14f   : > { %v1850_v14 = vmax.f32 %v1632_v9, 0.0  ;;  %v1635_v16 = vadd.f32 %v1634_v11, %v1346_v10 }
 0x151   : > { %v2577_v17 = vpack.c.bf16 %v1850_v14, %v1850_v14  ;;  %v1851_v18 = vmax.f32 %v1635_v16, 0.0 }
 0x152   : > { %v1350_v19 = vpop.f32.mrb[28].mxu1  ;;  %v1639_v22 = vpop.f32.mrb[28].mxu0 }
 0x153   : > { %2171 = vst.msk [vmem:[%s3334_s21 + $0x30] sm:$0xf] %vm2158_vm0, %v2577_v17  ;;  %v2578_v20 = vpack.c.bf16 %v1851_v18, %v1851_v18  ;;  %v1351_v21 = vadd.f32 %v3322_v15, %v1350_v19  ;;  %v1352_v23 = vpop.f32.mrb[29].mxu1  ;;  %v1641_v24 = vpop.f32.mrb[29].mxu0 }
 0x154   : > { %v1353_v25 = vpop.f32.mrb[30].mxu1  ;;  %v1642_v28 = vpop.f32.mrb[30].mxu0 }
 0x155   : > { %2172 = vst.msk [vmem:[%s3334_s21 + $0x34] sm:$0xf] %vm2158_vm0, %v2578_v20  ;;  %v1640_v26 = vadd.f32 %v1639_v22, %v1351_v21  ;;  %v1354_v27 = vadd.f32 %v3322_v15, %v1353_v25  ;;  %v1355_v29 = vpop.f32.mrb[31].mxu1  ;;  %v1644_v30 = vpop.f32.mrb[31].mxu0 }
 0x157   : > { %v1852_v31 = vmax.f32 %v1640_v26, 0.0  ;;  %v1643_v32 = vadd.f32 %v1642_v28, %v1354_v27 }
 0x159   : > { %v2579_v33 = vpack.c.bf16 %v1852_v31, %v1852_v31  ;;  %v1853_v34 = vmax.f32 %v1643_v32, 0.0 }
 0x15a   : > { %v1358_v35 = vpop.f32.mrb[32].mxu1  ;;  %v1647_v38 = vpop.f32.mrb[32].mxu0 }
 0x15b   : > { %2173 = vst.msk [vmem:[%s3334_s21 + $0x38] sm:$0xf] %vm2158_vm0, %v2579_v33  ;;  %v2580_v36 = vpack.c.bf16 %v1853_v34, %v1853_v34  ;;  %v1359_v37 = vadd.f32 %v3322_v15, %v1358_v35  ;;  %v1360_v39 = vpop.f32.mrb[33].mxu1  ;;  %v1649_v40 = vpop.f32.mrb[33].mxu0 }
 0x15c   : > { %v1361_v41 = vpop.f32.mrb[34].mxu1  ;;  %v1650_v44 = vpop.f32.mrb[34].mxu0 }
 0x15d   : > { %2174 = vst.msk [vmem:[%s3334_s21 + $0x3c] sm:$0xf] %vm2158_vm0, %v2580_v36  ;;  %v1648_v42 = vadd.f32 %v1647_v38, %v1359_v37  ;;  %v1362_v43 = vadd.f32 %v3322_v15, %v1361_v41  ;;  %v1363_v45 = vpop.f32.mrb[35].mxu1  ;;  %v1652_v46 = vpop.f32.mrb[35].mxu0 }
 0x15f   : > { %v1854_v47 = vmax.f32 %v1648_v42, 0.0  ;;  %v1651_v48 = vadd.f32 %v1650_v44, %v1362_v43 }
 0x161   : > { %v2581_v49 = vpack.c.bf16 %v1854_v47, %v1854_v47  ;;  %v1855_v50 = vmax.f32 %v1651_v48, 0.0 }
 0x162   : > { %v1366_v51 = vpop.f32.mrb[36].mxu1  ;;  %v1655_v54 = vpop.f32.mrb[36].mxu0 }
 0x163   : > { %2175 = vst.msk [vmem:[%s3334_s21 + $0x40] sm:$0xf] %vm2158_vm0, %v2581_v49  ;;  %v2582_v52 = vpack.c.bf16 %v1855_v50, %v1855_v50  ;;  %v1367_v53 = vadd.f32 %v3322_v15, %v1366_v51  ;;  %v1368_v55 = vpop.f32.mrb[37].mxu1  ;;  %v1657_v56 = vpop.f32.mrb[37].mxu0 }
 0x164   : > { %v1369_v57 = vpop.f32.mrb[38].mxu1  ;;  %v1658_v60 = vpop.f32.mrb[38].mxu0 }
 0x165   : > { %2176 = vst.msk [vmem:[%s3334_s21 + $0x44] sm:$0xf] %vm2158_vm0, %v2582_v52  ;;  %v1656_v58 = vadd.f32 %v1655_v54, %v1367_v53  ;;  %v1370_v59 = vadd.f32 %v3322_v15, %v1369_v57  ;;  %v1371_v61 = vpop.f32.mrb[39].mxu1  ;;  %v1660_v62 = vpop.f32.mrb[39].mxu0 }
 0x167   : > { %v1856_v63 = vmax.f32 %v1656_v58, 0.0  ;;  %v1659_v0 = vadd.f32 %v1658_v60, %v1370_v59 }
 0x169   : > { %v2583_v1 = vpack.c.bf16 %v1856_v63, %v1856_v63  ;;  %v1857_v2 = vmax.f32 %v1659_v0, 0.0 }
 0x16a   : > { %v1374_v3 = vpop.f32.mrb[40].mxu1  ;;  %v1663_v6 = vpop.f32.mrb[40].mxu0 }
 0x16b   : > { %2177 = vst.msk [vmem:[%s3334_s21 + $0x48] sm:$0xf] %vm2158_vm0, %v2583_v1  ;;  %v2584_v4 = vpack.c.bf16 %v1857_v2, %v1857_v2  ;;  %v1375_v5 = vadd.f32 %v3322_v15, %v1374_v3  ;;  %v1376_v7 = vpop.f32.mrb[41].mxu1  ;;  %v1665_v8 = vpop.f32.mrb[41].mxu0 }
 0x16c   : > { %v1377_v9 = vpop.f32.mrb[42].mxu1  ;;  %v1666_v12 = vpop.f32.mrb[42].mxu0 }
 0x16d   : > { %2178 = vst.msk [vmem:[%s3334_s21 + $0x4c] sm:$0xf] %vm2158_vm0, %v2584_v4  ;;  %v1664_v10 = vadd.f32 %v1663_v6, %v1375_v5  ;;  %v1378_v11 = vadd.f32 %v3322_v15, %v1377_v9  ;;  %v1379_v13 = vpop.f32.mrb[43].mxu1  ;;  %v1668_v14 = vpop.f32.mrb[43].mxu0 }
 0x16f   : > { %v1858_v16 = vmax.f32 %v1664_v10, 0.0  ;;  %v1667_v17 = vadd.f32 %v1666_v12, %v1378_v11 }
 0x171   : > { %v2585_v18 = vpack.c.bf16 %v1858_v16, %v1858_v16  ;;  %v1859_v19 = vmax.f32 %v1667_v17, 0.0 }
 0x172   : > { %v1382_v20 = vpop.f32.mrb[44].mxu1  ;;  %v1671_v23 = vpop.f32.mrb[44].mxu0 }
 0x173   : > { %2179 = vst.msk [vmem:[%s3334_s21 + $0x50] sm:$0xf] %vm2158_vm0, %v2585_v18  ;;  %v2586_v21 = vpack.c.bf16 %v1859_v19, %v1859_v19  ;;  %v1383_v22 = vadd.f32 %v3322_v15, %v1382_v20  ;;  %v1384_v24 = vpop.f32.mrb[45].mxu1  ;;  %v1673_v25 = vpop.f32.mrb[45].mxu0 }
 0x174   : > { %v1385_v26 = vpop.f32.mrb[46].mxu1  ;;  %v1674_v29 = vpop.f32.mrb[46].mxu0 }
 0x175   : > { %2180 = vst.msk [vmem:[%s3334_s21 + $0x54] sm:$0xf] %vm2158_vm0, %v2586_v21  ;;  %v1672_v27 = vadd.f32 %v1671_v23, %v1383_v22  ;;  %v1386_v28 = vadd.f32 %v3322_v15, %v1385_v26  ;;  %v1387_v30 = vpop.f32.mrb[47].mxu1  ;;  %v1676_v31 = vpop.f32.mrb[47].mxu0 }
 0x177   : > { %v1860_v32 = vmax.f32 %v1672_v27, 0.0  ;;  %v1675_v33 = vadd.f32 %v1674_v29, %v1386_v28 }
 0x179   : > { %v2587_v34 = vpack.c.bf16 %v1860_v32, %v1860_v32  ;;  %v1861_v35 = vmax.f32 %v1675_v33, 0.0 }
 0x17a   : > { %v1390_v36 = vpop.f32.mrb[48].mxu1  ;;  %v1679_v39 = vpop.f32.mrb[48].mxu0 }
 0x17b   : > { %2181 = vst.msk [vmem:[%s3334_s21 + $0x58] sm:$0xf] %vm2158_vm0, %v2587_v34  ;;  %v2588_v37 = vpack.c.bf16 %v1861_v35, %v1861_v35  ;;  %v1391_v38 = vadd.f32 %v3322_v15, %v1390_v36  ;;  %v1392_v40 = vpop.f32.mrb[49].mxu1  ;;  %v1681_v41 = vpop.f32.mrb[49].mxu0 }
 0x17c   : > { %v1393_v42 = vpop.f32.mrb[50].mxu1  ;;  %v1682_v45 = vpop.f32.mrb[50].mxu0 }
 0x17d   : > { %2182 = vst.msk [vmem:[%s3334_s21 + $0x5c] sm:$0xf] %vm2158_vm0, %v2588_v37  ;;  %v1680_v43 = vadd.f32 %v1679_v39, %v1391_v38  ;;  %v1394_v44 = vadd.f32 %v3322_v15, %v1393_v42  ;;  %v1395_v46 = vpop.f32.mrb[51].mxu1  ;;  %v1684_v47 = vpop.f32.mrb[51].mxu0 }
 0x17f   : > { %v1862_v48 = vmax.f32 %v1680_v43, 0.0  ;;  %v1683_v49 = vadd.f32 %v1682_v45, %v1394_v44 }
 0x181   : > { %v2589_v50 = vpack.c.bf16 %v1862_v48, %v1862_v48  ;;  %v1863_v51 = vmax.f32 %v1683_v49, 0.0 }
 0x182   : > { %v1398_v52 = vpop.f32.mrb[52].mxu1  ;;  %v1687_v55 = vpop.f32.mrb[52].mxu0 }
 0x183   : > { %2183 = vst.msk [vmem:[%s3334_s21 + $0x60] sm:$0xf] %vm2158_vm0, %v2589_v50  ;;  %v2590_v53 = vpack.c.bf16 %v1863_v51, %v1863_v51  ;;  %v1399_v54 = vadd.f32 %v3322_v15, %v1398_v52  ;;  %v1400_v56 = vpop.f32.mrb[53].mxu1  ;;  %v1689_v57 = vpop.f32.mrb[53].mxu0 }
 0x184   : > { %v1401_v58 = vpop.f32.mrb[54].mxu1  ;;  %v1690_v61 = vpop.f32.mrb[54].mxu0 }
 0x185   : > { %2184 = vst.msk [vmem:[%s3334_s21 + $0x64] sm:$0xf] %vm2158_vm0, %v2590_v53  ;;  %v1688_v59 = vadd.f32 %v1687_v55, %v1399_v54  ;;  %v1402_v60 = vadd.f32 %v3322_v15, %v1401_v58  ;;  %v1403_v62 = vpop.f32.mrb[55].mxu1  ;;  %v1692_v63 = vpop.f32.mrb[55].mxu0 }
 0x187   : > { %v1864_v0 = vmax.f32 %v1688_v59, 0.0  ;;  %v1691_v1 = vadd.f32 %v1690_v61, %v1402_v60 }
 0x189   : > { %v2591_v2 = vpack.c.bf16 %v1864_v0, %v1864_v0  ;;  %v1865_v3 = vmax.f32 %v1691_v1, 0.0 }
 0x18a   : > { %v1406_v4 = vpop.f32.mrb[56].mxu1  ;;  %v1695_v7 = vpop.f32.mrb[56].mxu0 }
 0x18b   : > { %2185 = vst.msk [vmem:[%s3334_s21 + $0x68] sm:$0xf] %vm2158_vm0, %v2591_v2  ;;  %v2592_v5 = vpack.c.bf16 %v1865_v3, %v1865_v3  ;;  %v1407_v6 = vadd.f32 %v3322_v15, %v1406_v4  ;;  %v1408_v8 = vpop.f32.mrb[57].mxu1  ;;  %v1697_v9 = vpop.f32.mrb[57].mxu0 }
 0x18c   : > { %v1409_v10 = vpop.f32.mrb[58].mxu1  ;;  %v1698_v13 = vpop.f32.mrb[58].mxu0 }
 0x18d   : > { %2186 = vst.msk [vmem:[%s3334_s21 + $0x6c] sm:$0xf] %vm2158_vm0, %v2592_v5  ;;  %v1696_v11 = vadd.f32 %v1695_v7, %v1407_v6  ;;  %v1410_v12 = vadd.f32 %v3322_v15, %v1409_v10  ;;  %v1411_v14 = vpop.f32.mrb[59].mxu1  ;;  %v1700_v16 = vpop.f32.mrb[59].mxu0 }
 0x18f   : > { %v1866_v17 = vmax.f32 %v1696_v11, 0.0  ;;  %v1699_v18 = vadd.f32 %v1698_v13, %v1410_v12 }
 0x191   : > { %v2593_v19 = vpack.c.bf16 %v1866_v17, %v1866_v17  ;;  %v1867_v20 = vmax.f32 %v1699_v18, 0.0 }
 0x192   : > { %v1414_v21 = vpop.f32.mrb[60].mxu1  ;;  %v1703_v24 = vpop.f32.mrb[60].mxu0 }
 0x193   : > { %2187 = vst.msk [vmem:[%s3334_s21 + $0x70] sm:$0xf] %vm2158_vm0, %v2593_v19  ;;  %v2594_v22 = vpack.c.bf16 %v1867_v20, %v1867_v20  ;;  %v1415_v23 = vadd.f32 %v3322_v15, %v1414_v21  ;;  %v1416_v25 = vpop.f32.mrb[61].mxu1  ;;  %v1705_v26 = vpop.f32.mrb[61].mxu0 }
 0x194   : > { %v1417_v27 = vpop.f32.mrb[62].mxu1  ;;  %v1706_v30 = vpop.f32.mrb[62].mxu0 }
 0x195   : > { %2188 = vst.msk [vmem:[%s3334_s21 + $0x74] sm:$0xf] %vm2158_vm0, %v2594_v22  ;;  %v1704_v28 = vadd.f32 %v1703_v24, %v1415_v23  ;;  %v1418_v29 = vadd.f32 %v3322_v15, %v1417_v27  ;;  %v1419_v31 = vpop.f32.mrb[63].mxu1  ;;  %v1708_v32 = vpop.f32.mrb[63].mxu0 }
 0x197   : > { %v1868_v33 = vmax.f32 %v1704_v28, 0.0  ;;  %v1707_v34 = vadd.f32 %v1706_v30, %v1418_v29 }
 0x199   : > { %v2595_v35 = vpack.c.bf16 %v1868_v33, %v1868_v33  ;;  %v1869_v36 = vmax.f32 %v1707_v34, 0.0 }
 0x19a   : > { %v1422_v37 = vpop.f32.mrb[64].mxu1  ;;  %v1711_v40 = vpop.f32.mrb[64].mxu0 }
 0x19b   : > { %2189 = vst.msk [vmem:[%s3334_s21 + $0x78] sm:$0xf] %vm2158_vm0, %v2595_v35  ;;  %v2596_v38 = vpack.c.bf16 %v1869_v36, %v1869_v36  ;;  %v1423_v39 = vadd.f32 %v3322_v15, %v1422_v37  ;;  %v1424_v41 = vpop.f32.mrb[65].mxu1  ;;  %v1713_v42 = vpop.f32.mrb[65].mxu0 }
 0x19c   : > { %v1425_v43 = vpop.f32.mrb[66].mxu1  ;;  %v1714_v46 = vpop.f32.mrb[66].mxu0 }
 0x19d   : > { %2190 = vst.msk [vmem:[%s3334_s21 + $0x7c] sm:$0xf] %vm2158_vm0, %v2596_v38  ;;  %v1712_v44 = vadd.f32 %v1711_v40, %v1423_v39  ;;  %v1426_v45 = vadd.f32 %v3322_v15, %v1425_v43  ;;  %v1427_v47 = vpop.f32.mrb[67].mxu1  ;;  %v1716_v48 = vpop.f32.mrb[67].mxu0 }
 0x19f   : > { %v1870_v49 = vmax.f32 %v1712_v44, 0.0  ;;  %v1715_v50 = vadd.f32 %v1714_v46, %v1426_v45 }
 0x1a1   : > { %v2597_v51 = vpack.c.bf16 %v1870_v49, %v1870_v49  ;;  %v1871_v52 = vmax.f32 %v1715_v50, 0.0 }
 0x1a2   : > { %v1430_v53 = vpop.f32.mrb[68].mxu1  ;;  %v1719_v56 = vpop.f32.mrb[68].mxu0 }
 0x1a3   : > { %2191 = vst.msk [vmem:[%s3334_s21 + $0x80] sm:$0xf] %vm2158_vm0, %v2597_v51  ;;  %v2598_v54 = vpack.c.bf16 %v1871_v52, %v1871_v52  ;;  %v1431_v55 = vadd.f32 %v3322_v15, %v1430_v53  ;;  %v1432_v57 = vpop.f32.mrb[69].mxu1  ;;  %v1721_v58 = vpop.f32.mrb[69].mxu0 }
 0x1a4   : > { %v1433_v59 = vpop.f32.mrb[70].mxu1  ;;  %v1722_v62 = vpop.f32.mrb[70].mxu0 }
 0x1a5   : > { %2192 = vst.msk [vmem:[%s3334_s21 + $0x84] sm:$0xf] %vm2158_vm0, %v2598_v54  ;;  %v1720_v60 = vadd.f32 %v1719_v56, %v1431_v55  ;;  %v1434_v61 = vadd.f32 %v3322_v15, %v1433_v59  ;;  %v1435_v63 = vpop.f32.mrb[71].mxu1  ;;  %v1724_v0 = vpop.f32.mrb[71].mxu0 }
 0x1a7   : > { %v1872_v1 = vmax.f32 %v1720_v60, 0.0  ;;  %v1723_v2 = vadd.f32 %v1722_v62, %v1434_v61 }
 0x1a9   : > { %v2599_v3 = vpack.c.bf16 %v1872_v1, %v1872_v1  ;;  %v1873_v4 = vmax.f32 %v1723_v2, 0.0 }
 0x1aa   : > { %v1438_v5 = vpop.f32.mrb[72].mxu1  ;;  %v1727_v8 = vpop.f32.mrb[72].mxu0 }
 0x1ab   : > { %2193 = vst.msk [vmem:[%s3334_s21 + $0x88] sm:$0xf] %vm2158_vm0, %v2599_v3  ;;  %v2600_v6 = vpack.c.bf16 %v1873_v4, %v1873_v4  ;;  %v1439_v7 = vadd.f32 %v3322_v15, %v1438_v5  ;;  %v1440_v9 = vpop.f32.mrb[73].mxu1  ;;  %v1729_v10 = vpop.f32.mrb[73].mxu0 }
 0x1ac   : > { %v1441_v11 = vpop.f32.mrb[74].mxu1  ;;  %v1730_v14 = vpop.f32.mrb[74].mxu0 }
 0x1ad   : > { %2194 = vst.msk [vmem:[%s3334_s21 + $0x8c] sm:$0xf] %vm2158_vm0, %v2600_v6  ;;  %v1728_v12 = vadd.f32 %v1727_v8, %v1439_v7  ;;  %v1442_v13 = vadd.f32 %v3322_v15, %v1441_v11  ;;  %v1443_v16 = vpop.f32.mrb[75].mxu1  ;;  %v1732_v17 = vpop.f32.mrb[75].mxu0 }
 0x1af   : > { %v1874_v18 = vmax.f32 %v1728_v12, 0.0  ;;  %v1731_v19 = vadd.f32 %v1730_v14, %v1442_v13 }
 0x1b1   : > { %v2601_v20 = vpack.c.bf16 %v1874_v18, %v1874_v18  ;;  %v1875_v21 = vmax.f32 %v1731_v19, 0.0 }
 0x1b2   : > { %v1446_v22 = vpop.f32.mrb[76].mxu1  ;;  %v1735_v25 = vpop.f32.mrb[76].mxu0 }
 0x1b3   : > { %2195 = vst.msk [vmem:[%s3334_s21 + $0x90] sm:$0xf] %vm2158_vm0, %v2601_v20  ;;  %v2602_v23 = vpack.c.bf16 %v1875_v21, %v1875_v21  ;;  %v1447_v24 = vadd.f32 %v3322_v15, %v1446_v22  ;;  %v1448_v26 = vpop.f32.mrb[77].mxu1  ;;  %v1737_v27 = vpop.f32.mrb[77].mxu0 }
 0x1b4   : > { %v1449_v28 = vpop.f32.mrb[78].mxu1  ;;  %v1738_v31 = vpop.f32.mrb[78].mxu0 }
 0x1b5   : > { %2196 = vst.msk [vmem:[%s3334_s21 + $0x94] sm:$0xf] %vm2158_vm0, %v2602_v23  ;;  %v1736_v29 = vadd.f32 %v1735_v25, %v1447_v24  ;;  %v1450_v30 = vadd.f32 %v3322_v15, %v1449_v28  ;;  %v1451_v32 = vpop.f32.mrb[79].mxu1  ;;  %v1740_v33 = vpop.f32.mrb[79].mxu0 }
 0x1b7   : > { %v1876_v34 = vmax.f32 %v1736_v29, 0.0  ;;  %v1739_v35 = vadd.f32 %v1738_v31, %v1450_v30 }
 0x1b9   : > { %v2603_v36 = vpack.c.bf16 %v1876_v34, %v1876_v34  ;;  %v1877_v37 = vmax.f32 %v1739_v35, 0.0 }
 0x1ba   : > { %v1454_v38 = vpop.f32.mrb[80].mxu1  ;;  %v1743_v41 = vpop.f32.mrb[80].mxu0 }
 0x1bb   : > { %2197 = vst.msk [vmem:[%s3334_s21 + $0x98] sm:$0xf] %vm2158_vm0, %v2603_v36  ;;  %v2604_v39 = vpack.c.bf16 %v1877_v37, %v1877_v37  ;;  %v1455_v40 = vadd.f32 %v3322_v15, %v1454_v38  ;;  %v1456_v42 = vpop.f32.mrb[81].mxu1  ;;  %v1745_v43 = vpop.f32.mrb[81].mxu0 }
 0x1bc   : > { %v1457_v44 = vpop.f32.mrb[82].mxu1  ;;  %v1746_v47 = vpop.f32.mrb[82].mxu0 }
 0x1bd   : > { %2198 = vst.msk [vmem:[%s3334_s21 + $0x9c] sm:$0xf] %vm2158_vm0, %v2604_v39  ;;  %v1744_v45 = vadd.f32 %v1743_v41, %v1455_v40  ;;  %v1458_v46 = vadd.f32 %v3322_v15, %v1457_v44  ;;  %v1459_v48 = vpop.f32.mrb[83].mxu1  ;;  %v1748_v49 = vpop.f32.mrb[83].mxu0 }
 0x1bf   : > { %v1878_v50 = vmax.f32 %v1744_v45, 0.0  ;;  %v1747_v51 = vadd.f32 %v1746_v47, %v1458_v46 }
 0x1c1   : > { %v2605_v52 = vpack.c.bf16 %v1878_v50, %v1878_v50  ;;  %v1879_v53 = vmax.f32 %v1747_v51, 0.0 }
 0x1c2   : > { %v1462_v54 = vpop.f32.mrb[84].mxu1  ;;  %v1751_v57 = vpop.f32.mrb[84].mxu0 }
 0x1c3   : > { %2199 = vst.msk [vmem:[%s3334_s21 + $0xa0] sm:$0xf] %vm2158_vm0, %v2605_v52  ;;  %v2606_v55 = vpack.c.bf16 %v1879_v53, %v1879_v53  ;;  %v1463_v56 = vadd.f32 %v3322_v15, %v1462_v54  ;;  %v1464_v58 = vpop.f32.mrb[85].mxu1  ;;  %v1753_v59 = vpop.f32.mrb[85].mxu0 }
 0x1c4   : > { %v1465_v60 = vpop.f32.mrb[86].mxu1  ;;  %v1754_v63 = vpop.f32.mrb[86].mxu0 }
 0x1c5   : > { %2200 = vst.msk [vmem:[%s3334_s21 + $0xa4] sm:$0xf] %vm2158_vm0, %v2606_v55  ;;  %v1752_v61 = vadd.f32 %v1751_v57, %v1463_v56  ;;  %v1466_v62 = vadd.f32 %v3322_v15, %v1465_v60  ;;  %v1467_v0 = vpop.f32.mrb[87].mxu1  ;;  %v1756_v1 = vpop.f32.mrb[87].mxu0 }
 0x1c7   : > { %v1880_v2 = vmax.f32 %v1752_v61, 0.0  ;;  %v1755_v3 = vadd.f32 %v1754_v63, %v1466_v62 }
 0x1c9   : > { %v2607_v4 = vpack.c.bf16 %v1880_v2, %v1880_v2  ;;  %v1881_v5 = vmax.f32 %v1755_v3, 0.0 }
 0x1ca   : > { %v1470_v6 = vpop.f32.mrb[88].mxu1  ;;  %v1759_v9 = vpop.f32.mrb[88].mxu0 }
 0x1cb   : > { %2201 = vst.msk [vmem:[%s3334_s21 + $0xa8] sm:$0xf] %vm2158_vm0, %v2607_v4  ;;  %v2608_v7 = vpack.c.bf16 %v1881_v5, %v1881_v5  ;;  %v1471_v8 = vadd.f32 %v3322_v15, %v1470_v6  ;;  %v1472_v10 = vpop.f32.mrb[89].mxu1  ;;  %v1761_v11 = vpop.f32.mrb[89].mxu0 }
 0x1cc   : > { %v1473_v12 = vpop.f32.mrb[90].mxu1  ;;  %v1762_v16 = vpop.f32.mrb[90].mxu0 }
 0x1cd   : > { %2202 = vst.msk [vmem:[%s3334_s21 + $0xac] sm:$0xf] %vm2158_vm0, %v2608_v7  ;;  %v1760_v13 = vadd.f32 %v1759_v9, %v1471_v8  ;;  %v1474_v14 = vadd.f32 %v3322_v15, %v1473_v12  ;;  %v1475_v17 = vpop.f32.mrb[91].mxu1  ;;  %v1764_v18 = vpop.f32.mrb[91].mxu0 }
 0x1cf   : > { %v1882_v19 = vmax.f32 %v1760_v13, 0.0  ;;  %v1763_v20 = vadd.f32 %v1762_v16, %v1474_v14  ;;  %v3508_v16 = vld [vmem:[%s3556_s2] ss:$0 sm:$0xff] }
 0x1d1   : > { %v2609_v21 = vpack.c.bf16 %v1882_v19, %v1882_v19  ;;  %v1883_v22 = vmax.f32 %v1763_v20, 0.0 }
 0x1d2   : > { %v1478_v23 = vpop.f32.mrb[92].mxu1  ;;  %v1767_v26 = vpop.f32.mrb[92].mxu0 }
 0x1d3   : > { %2203 = vst.msk [vmem:[%s3334_s21 + $0xb0] sm:$0xf] %vm2158_vm0, %v2609_v21  ;;  %v2610_v24 = vpack.c.bf16 %v1883_v22, %v1883_v22  ;;  %v1479_v25 = vadd.f32 %v3322_v15, %v1478_v23  ;;  %v1480_v27 = vpop.f32.mrb[93].mxu1  ;;  %v1769_v28 = vpop.f32.mrb[93].mxu0 }
 0x1d4   : > { %v1481_v29 = vpop.f32.mrb[94].mxu1  ;;  %v1770_v32 = vpop.f32.mrb[94].mxu0 }
 0x1d5   : > { %2204 = vst.msk [vmem:[%s3334_s21 + $0xb4] sm:$0xf] %vm2158_vm0, %v2610_v24  ;;  %v1768_v30 = vadd.f32 %v1767_v26, %v1479_v25  ;;  %v1482_v31 = vadd.f32 %v3322_v15, %v1481_v29  ;;  %v1483_v33 = vpop.f32.mrb[95].mxu1  ;;  %v1772_v34 = vpop.f32.mrb[95].mxu0 }
 0x1d7   : > { %v1884_v35 = vmax.f32 %v1768_v30, 0.0  ;;  %v1771_v36 = vadd.f32 %v1770_v32, %v1482_v31 }
 0x1d9   : > { %v2611_v37 = vpack.c.bf16 %v1884_v35, %v1884_v35  ;;  %v1885_v38 = vmax.f32 %v1771_v36, 0.0 }
 0x1da   : > { %v1486_v39 = vpop.f32.mrb[96].mxu1  ;;  %v1775_v42 = vpop.f32.mrb[96].mxu0 }
 0x1db   : > { %2205 = vst.msk [vmem:[%s3334_s21 + $0xb8] sm:$0xf] %vm2158_vm0, %v2611_v37  ;;  %v2612_v40 = vpack.c.bf16 %v1885_v38, %v1885_v38  ;;  %v1487_v41 = vadd.f32 %v3322_v15, %v1486_v39  ;;  %v1488_v43 = vpop.f32.mrb[97].mxu1  ;;  %v1777_v44 = vpop.f32.mrb[97].mxu0 }
 0x1dc   : > { %v1489_v45 = vpop.f32.mrb[98].mxu1  ;;  %v1778_v48 = vpop.f32.mrb[98].mxu0 }
 0x1dd   : > { %2206 = vst.msk [vmem:[%s3334_s21 + $0xbc] sm:$0xf] %vm2158_vm0, %v2612_v40  ;;  %v1776_v46 = vadd.f32 %v1775_v42, %v1487_v41  ;;  %v1490_v47 = vadd.f32 %v3322_v15, %v1489_v45  ;;  %v1491_v49 = vpop.f32.mrb[99].mxu1  ;;  %v1780_v50 = vpop.f32.mrb[99].mxu0 }
 0x1df   : > { %v1886_v51 = vmax.f32 %v1776_v46, 0.0  ;;  %v1779_v52 = vadd.f32 %v1778_v48, %v1490_v47 }
 0x1e1   : > { %v2613_v53 = vpack.c.bf16 %v1886_v51, %v1886_v51  ;;  %v1887_v54 = vmax.f32 %v1779_v52, 0.0 }
 0x1e2   : > { %v1494_v55 = vpop.f32.mrb[100].mxu1  ;;  %v1783_v58 = vpop.f32.mrb[100].mxu0 }
 0x1e3   : > { %2207 = vst.msk [vmem:[%s3334_s21 + $0xc0] sm:$0xf] %vm2158_vm0, %v2613_v53  ;;  %v2614_v56 = vpack.c.bf16 %v1887_v54, %v1887_v54  ;;  %v1495_v57 = vadd.f32 %v3322_v15, %v1494_v55  ;;  %v1496_v59 = vpop.f32.mrb[101].mxu1  ;;  %v1785_v60 = vpop.f32.mrb[101].mxu0 }
 0x1e4   : > { %v1497_v61 = vpop.f32.mrb[102].mxu1  ;;  %v1786_v0 = vpop.f32.mrb[102].mxu0 }
 0x1e5   : > { %2208 = vst.msk [vmem:[%s3334_s21 + $0xc4] sm:$0xf] %vm2158_vm0, %v2614_v56  ;;  %v1784_v62 = vadd.f32 %v1783_v58, %v1495_v57  ;;  %v1498_v63 = vadd.f32 %v3322_v15, %v1497_v61  ;;  %v1499_v1 = vpop.f32.mrb[103].mxu1  ;;  %v1788_v2 = vpop.f32.mrb[103].mxu0 }
 0x1e7   : > { %v1888_v3 = vmax.f32 %v1784_v62, 0.0  ;;  %v1787_v4 = vadd.f32 %v1786_v0, %v1498_v63 }
 0x1e9   : > { %v2615_v5 = vpack.c.bf16 %v1888_v3, %v1888_v3  ;;  %v1889_v6 = vmax.f32 %v1787_v4, 0.0 }
 0x1ea   : > { %v1502_v7 = vpop.f32.mrb[104].mxu1  ;;  %v1791_v10 = vpop.f32.mrb[104].mxu0 }
 0x1eb   : > { %2209 = vst.msk [vmem:[%s3334_s21 + $0xc8] sm:$0xf] %vm2158_vm0, %v2615_v5  ;;  %v2616_v8 = vpack.c.bf16 %v1889_v6, %v1889_v6  ;;  %v1503_v9 = vadd.f32 %v3322_v15, %v1502_v7  ;;  %v1504_v11 = vpop.f32.mrb[105].mxu1  ;;  %v1793_v12 = vpop.f32.mrb[105].mxu0 }
 0x1ec   : > { %v1505_v13 = vpop.f32.mrb[106].mxu1  ;;  %v1794_v18 = vpop.f32.mrb[106].mxu0 }
 0x1ed   : > { %2210 = vst.msk [vmem:[%s3334_s21 + $0xcc] sm:$0xf] %vm2158_vm0, %v2616_v8  ;;  %v1792_v14 = vadd.f32 %v1791_v10, %v1503_v9  ;;  %v1506_v17 = vadd.f32 %v3508_v16, %v1505_v13  ;;  %v1507_v19 = vpop.f32.mrb[107].mxu1  ;;  %v1796_v20 = vpop.f32.mrb[107].mxu0 }
 0x1ef   : > { %v1890_v15 = vmax.f32 %v1792_v14, 0.0  ;;  %v1795_v21 = vadd.f32 %v1794_v18, %v1506_v17 }
 0x1f1   : > { %v2617_v22 = vpack.c.bf16 %v1890_v15, %v1890_v15  ;;  %v1891_v23 = vmax.f32 %v1795_v21, 0.0 }
 0x1f2   : > { %v1510_v24 = vpop.f32.mrb[108].mxu1  ;;  %v1799_v27 = vpop.f32.mrb[108].mxu0 }
 0x1f3   : > { %2211 = vst.msk [vmem:[%s3334_s21 + $0xd0] sm:$0xf] %vm2158_vm0, %v2617_v22  ;;  %v2618_v25 = vpack.c.bf16 %v1891_v23, %v1891_v23  ;;  %v1511_v26 = vadd.f32 %v3508_v16, %v1510_v24  ;;  %v1512_v28 = vpop.f32.mrb[109].mxu1  ;;  %v1801_v29 = vpop.f32.mrb[109].mxu0 }
 0x1f4   : > { %v1513_v30 = vpop.f32.mrb[110].mxu1  ;;  %v1802_v33 = vpop.f32.mrb[110].mxu0 }
 0x1f5   : > { %2212 = vst.msk [vmem:[%s3334_s21 + $0xd4] sm:$0xf] %vm2158_vm0, %v2618_v25  ;;  %v1800_v31 = vadd.f32 %v1799_v27, %v1511_v26  ;;  %v1514_v32 = vadd.f32 %v3508_v16, %v1513_v30  ;;  %v1515_v34 = vpop.f32.mrb[111].mxu1  ;;  %v1804_v35 = vpop.f32.mrb[111].mxu0 }
 0x1f7   : > { %v1892_v36 = vmax.f32 %v1800_v31, 0.0  ;;  %v1803_v37 = vadd.f32 %v1802_v33, %v1514_v32 }
 0x1f9   : > { %v2619_v38 = vpack.c.bf16 %v1892_v36, %v1892_v36  ;;  %v1893_v39 = vmax.f32 %v1803_v37, 0.0 }
 0x1fa   : > { %v1518_v40 = vpop.f32.mrb[112].mxu1  ;;  %v1807_v43 = vpop.f32.mrb[112].mxu0 }
 0x1fb   : > { %2213 = vst.msk [vmem:[%s3334_s21 + $0xd8] sm:$0xf] %vm2158_vm0, %v2619_v38  ;;  %v2620_v41 = vpack.c.bf16 %v1893_v39, %v1893_v39  ;;  %v1519_v42 = vadd.f32 %v3508_v16, %v1518_v40  ;;  %v1520_v44 = vpop.f32.mrb[113].mxu1  ;;  %v1809_v45 = vpop.f32.mrb[113].mxu0 }
 0x1fc   : > { %v1521_v46 = vpop.f32.mrb[114].mxu1  ;;  %v1810_v49 = vpop.f32.mrb[114].mxu0 }
 0x1fd   : > { %2214 = vst.msk [vmem:[%s3334_s21 + $0xdc] sm:$0xf] %vm2158_vm0, %v2620_v41  ;;  %v1808_v47 = vadd.f32 %v1807_v43, %v1519_v42  ;;  %v1522_v48 = vadd.f32 %v3508_v16, %v1521_v46  ;;  %v1523_v50 = vpop.f32.mrb[115].mxu1  ;;  %v1812_v51 = vpop.f32.mrb[115].mxu0 }
 0x1ff   : > { %v1894_v52 = vmax.f32 %v1808_v47, 0.0  ;;  %v1811_v53 = vadd.f32 %v1810_v49, %v1522_v48 }
 0x201   : > { %v2621_v54 = vpack.c.bf16 %v1894_v52, %v1894_v52  ;;  %v1895_v55 = vmax.f32 %v1811_v53, 0.0 }
 0x202   : > { %v1526_v56 = vpop.f32.mrb[116].mxu1  ;;  %v1815_v59 = vpop.f32.mrb[116].mxu0 }
 0x203   : > { %2215 = vst.msk [vmem:[%s3334_s21 + $0xe0] sm:$0xf] %vm2158_vm0, %v2621_v54  ;;  %v2622_v57 = vpack.c.bf16 %v1895_v55, %v1895_v55  ;;  %v1527_v58 = vadd.f32 %v3508_v16, %v1526_v56  ;;  %v1528_v60 = vpop.f32.mrb[117].mxu1  ;;  %v1817_v61 = vpop.f32.mrb[117].mxu0 }
 0x204   : > { %v1529_v62 = vpop.f32.mrb[118].mxu1  ;;  %v1818_v1 = vpop.f32.mrb[118].mxu0 }
 0x205   : > { %2216 = vst.msk [vmem:[%s3334_s21 + $0xe4] sm:$0xf] %vm2158_vm0, %v2622_v57  ;;  %v1816_v63 = vadd.f32 %v1815_v59, %v1527_v58  ;;  %v1530_v0 = vadd.f32 %v3508_v16, %v1529_v62  ;;  %v1531_v2 = vpop.f32.mrb[119].mxu1  ;;  %v1820_v3 = vpop.f32.mrb[119].mxu0 }
 0x207   : > { %v1896_v4 = vmax.f32 %v1816_v63, 0.0  ;;  %v1819_v5 = vadd.f32 %v1818_v1, %v1530_v0 }
 0x209   : > { %v2623_v6 = vpack.c.bf16 %v1896_v4, %v1896_v4  ;;  %v1897_v7 = vmax.f32 %v1819_v5, 0.0 }
 0x20a   : > { %v1534_v8 = vpop.f32.mrb[120].mxu1  ;;  %v1823_v11 = vpop.f32.mrb[120].mxu0 }
 0x20b   : > { %2217 = vst.msk [vmem:[%s3334_s21 + $0xe8] sm:$0xf] %vm2158_vm0, %v2623_v6  ;;  %v2624_v9 = vpack.c.bf16 %v1897_v7, %v1897_v7  ;;  %v1535_v10 = vadd.f32 %v3508_v16, %v1534_v8  ;;  %v1536_v12 = vpop.f32.mrb[121].mxu1  ;;  %v1825_v13 = vpop.f32.mrb[121].mxu0 }
 0x20c   : > { %v1537_v14 = vpop.f32.mrb[122].mxu1  ;;  %v1826_v19 = vpop.f32.mrb[122].mxu0 }
 0x20d   : > { %2218 = vst.msk [vmem:[%s3334_s21 + $0xec] sm:$0xf] %vm2158_vm0, %v2624_v9  ;;  %v1824_v17 = vadd.f32 %v1823_v11, %v1535_v10  ;;  %v1538_v18 = vadd.f32 %v3508_v16, %v1537_v14  ;;  %v1539_v20 = vpop.f32.mrb[123].mxu1  ;;  %v1828_v15 = vpop.f32.mrb[123].mxu0 }
 0x20f   : > { %v1898_v21 = vmax.f32 %v1824_v17, 0.0  ;;  %v1827_v22 = vadd.f32 %v1826_v19, %v1538_v18 }
 0x211   : > { %v2625_v23 = vpack.c.bf16 %v1898_v21, %v1898_v21  ;;  %v1899_v24 = vmax.f32 %v1827_v22, 0.0 }
 0x212   : > { %v1542_v25 = vpop.f32.mrb[124].mxu1  ;;  %v1831_v28 = vpop.f32.mrb[124].mxu0 }
 0x213   : > { %2219 = vst.msk [vmem:[%s3334_s21 + $0xf0] sm:$0xf] %vm2158_vm0, %v2625_v23  ;;  %v2626_v26 = vpack.c.bf16 %v1899_v24, %v1899_v24  ;;  %v1543_v27 = vadd.f32 %v3508_v16, %v1542_v25  ;;  %v1544_v29 = vpop.f32.mrb[125].mxu1  ;;  %v1833_v30 = vpop.f32.mrb[125].mxu0 }
 0x214   : > { %v1545_v31 = vpop.f32.mrb[126].mxu1  ;;  %v1834_v34 = vpop.f32.mrb[126].mxu0 }
 0x215   : > { %2220 = vst.msk [vmem:[%s3334_s21 + $0xf4] sm:$0xf] %vm2158_vm0, %v2626_v26  ;;  %v1832_v32 = vadd.f32 %v1831_v28, %v1543_v27  ;;  %v1546_v33 = vadd.f32 %v3508_v16, %v1545_v31  ;;  %v1547_v35 = vpop.f32.mrb[127].mxu1  ;;  %v1836_v36 = vpop.f32.mrb[127].mxu0 }
 0x217   : > { %v1900_v37 = vmax.f32 %v1832_v32, 0.0  ;;  %v1835_v38 = vadd.f32 %v1834_v34, %v1546_v33 }
 0x219   : > { %v2627_v39 = vpack.c.bf16 %v1900_v37, %v1900_v37  ;;  %v1901_v40 = vmax.f32 %v1835_v38, 0.0 }
 0x21b   : > { %2221 = vst.msk [vmem:[%s3334_s21 + $0xf8] sm:$0xf] %vm2158_vm0, %v2627_v39  ;;  %v2628_v41 = vpack.c.bf16 %v1901_v40, %v1901_v40 }
 0x21d   : > { %2222 = vst.msk [vmem:[%s3334_s21 + $0xfc] sm:$0xf] %vm2158_vm0, %v2628_v41 }
 0x21e PF: > { %s13_s14 = sadd.s32 1, %s3029_s14   ;;  %s3558_s12 = smov %s3025_s13 }
 0x21f   : > { %p10_p5 = scmp.ge.s32.totalorder %s13_s14, 18   ;;  %s3559_s13 = smov %s3561_s15 }
 0x221   :  { %12 = sbr.rel (!%p10_p5) target bundleno = 2 (0x2), region = 68 }

// kernel: vae_encoder.7
= control target key start
LH: loop header
LB: loop body
LE: loop exit
PB: predicated region body
PF: predicated region fallthrough
CT: control target
= control target key end

     0   :  { %s5100_s12 = smov 0   ;;  %s5102_s13 = smov 0   ;;  %s5769_s0 = inlined_call_operand.vmem [shape: bf16[2048,1024], index: 0, kind: input, shape index: {}]   ;;  %s5770_s1 = inlined_call_operand.vmem [shape: bf16[1024,128], index: 1, kind: input, shape index: {}]   ;;  %s5771_s2 = inlined_call_operand.vmem [shape: f32[1,128], index: 2, kind: input, shape index: {}]   ;;  %s5772_s3 = inlined_call_operand.vmem [shape: bf16[2048,128], index: 3, kind: output, shape index: {}]  }
   0x1   :  { %s5104_s14 = smov 0  }
   0x2 LB: > { %s25_s15 = sadd.s32 1, %s5073_s13  ;;  %p3932_p0 = scmp.ge.s32.totalorder %s5077_s14, 1  ;;  %s5077_s14 = sphi %s5104_s14, %s13_s14   ;;  %s5073_s13 = sphi %s5102_s13, %s5774_s13   ;;  %s5069_s12 = sphi %s5100_s12, %s5773_s12  }
   0x3   : > { %p27_p1 = scmp.ge.s32.totalorder %s25_s15, 4  ;;  %p170_p2 = scmp.lt.s32.totalorder %s5077_s14, 5 }
   0x5   : > { %s5776_s15 = smov (%p27_p1, %s25_s15), 0  ;;  %p171_p3 = pnand %p3932_p0, %p170_p2 }
   0x6   : > { %v4990_v0 = vld [vmem:[%s5770_s1] sm:$0xff] (!%p171_p3)   ;;  %v5079_v1 = vmov (!%p171_p3), 0   ;;  %v4992_v3 = vld [vmem:[%s5770_s1 + $0x8] sm:$0xff] (!%p171_p3)   ;;  %v4994_v5 = vld [vmem:[%s5770_s1 + $0x10] sm:$0xff] (!%p171_p3)   ;;  %s3933_s9 = sshll.u32 (!%p171_p3), %s5069_s12, 6 }
   0x7   : > { %174 = sbr.rel (%p171_p3) target bundleno = 798 (0x31e), region = 32  ;;  %2284 = vmatprep.subr.bf16.mxu1 (!%p171_p3), %v5079_v1  ;;  %2862 = vmatprep.subr.bf16.mxu0 (!%p171_p3), %v5079_v1  ;;  %v4991_v2 = vld [vmem:[%s5770_s1 + $0x100] sm:$0xff] (!%p171_p3)   ;;  %v4993_v4 = vld [vmem:[%s5770_s1 + $0x108] sm:$0xff] (!%p171_p3)   ;;  %v4995_v6 = vld [vmem:[%s5770_s1 + $0x110] sm:$0xff] (!%p171_p3)   ;;  %p206_p4 = scmp.lt.s32.totalorder (!%p171_p3), %s3933_s9, 255 }
   0x8   : > { %2285 = vmatpush1.bf16.msra.mxu1 (!%p171_p3), %v4990_v0  ;;  %2863 = vmatpush1.bf16.msra.mxu0 (!%p171_p3), %v4991_v2  ;;  %v4996_v7 = vld [vmem:[%s5770_s1 + $0x18] sm:$0xff] (!%p171_p3)   ;;  %v4998_v9 = vld [vmem:[%s5770_s1 + $0x20] sm:$0xff] (!%p171_p3)   ;;  %v5000_v11 = vld [vmem:[%s5770_s1 + $0x28] sm:$0xff] (!%p171_p3)  }
   0x9   : > { %2286 = vmatprep.subr.bf16.mxu1 (!%p171_p3), %v5079_v1  ;;  %2864 = vmatprep.subr.bf16.mxu0 (!%p171_p3), %v5079_v1  ;;  %v4997_v8 = vld [vmem:[%s5770_s1 + $0x118] sm:$0xff] (!%p171_p3)   ;;  %v4999_v10 = vld [vmem:[%s5770_s1 + $0x120] sm:$0xff] (!%p171_p3)   ;;  %v5001_v12 = vld [vmem:[%s5770_s1 + $0x128] sm:$0xff] (!%p171_p3)  }
   0xa   : > { %v5002_v13 = vld [vmem:[%s5770_s1 + $0x30] sm:$0xff] (!%p171_p3)   ;;  %v5004_v15 = vld [vmem:[%s5770_s1 + $0x38] sm:$0xff] (!%p171_p3)   ;;  %v5006_v17 = vld [vmem:[%s5770_s1 + $0x40] sm:$0xff] (!%p171_p3)  }
   0xb   : > { %v5003_v14 = vld [vmem:[%s5770_s1 + $0x130] sm:$0xff] (!%p171_p3)   ;;  %v5005_v16 = vld [vmem:[%s5770_s1 + $0x138] sm:$0xff] (!%p171_p3)   ;;  %v5007_v18 = vld [vmem:[%s5770_s1 + $0x140] sm:$0xff] (!%p171_p3)  }
   0xc   : > { %2287 = vmatpush1.bf16.msra.mxu1 (!%p171_p3), %v4992_v3  ;;  %2865 = vmatpush1.bf16.msra.mxu0 (!%p171_p3), %v4993_v4  ;;  %v5008_v24 = vld [vmem:[%s5770_s1 + $0x48] sm:$0xff] (!%p171_p3)   ;;  %v5010_v27 = vld [vmem:[%s5770_s1 + $0x50] sm:$0xff] (!%p171_p3)   ;;  %v5012_v29 = vld [vmem:[%s5770_s1 + $0x58] sm:$0xff] (!%p171_p3)  }
   0xd   : > { %2288 = vmatprep.subr.bf16.mxu1 (!%p171_p3), %v5079_v1  ;;  %2866 = vmatprep.subr.bf16.mxu0 (!%p171_p3), %v5079_v1  ;;  %v5009_v26 = vld [vmem:[%s5770_s1 + $0x148] sm:$0xff] (!%p171_p3)   ;;  %v5011_v28 = vld [vmem:[%s5770_s1 + $0x150] sm:$0xff] (!%p171_p3)   ;;  %v5013_v30 = vld [vmem:[%s5770_s1 + $0x158] sm:$0xff] (!%p171_p3)  }
   0xe   : > { %s5778_s9 = smov (!%p206_p4, %s3933_s9), 255  ;;  %v5014_v31 = vld [vmem:[%s5770_s1 + $0x60] sm:$0xff]   ;;  %v5016_v33 = vld [vmem:[%s5770_s1 + $0x68] sm:$0xff]   ;;  %v5018_v35 = vld [vmem:[%s5770_s1 + $0x70] sm:$0xff]  }
   0xf   : > { %s4325_s23 = sshll.u32 %s5778_s9, 5  ;;  %v5015_v32 = vld [vmem:[%s5770_s1 + $0x160] sm:$0xff]   ;;  %v5017_v34 = vld [vmem:[%s5770_s1 + $0x168] sm:$0xff]   ;;  %v5019_v36 = vld [vmem:[%s5770_s1 + $0x170] sm:$0xff]   ;;  %s3937_s17 = sshll.u32 %s5778_s9, 2 }
  0x10   : > { %2289 = vmatpush1.bf16.msra.mxu1 %v4994_v5  ;;  %2867 = vmatpush1.bf16.msra.mxu0 %v4995_v6  ;;  %s5191_s28 = scalar_lea.vmem %s5769_s0, %s4325_s23  ;;  %v5020_v37 = vld [vmem:[%s5770_s1 + $0x78] sm:$0xff]   ;;  %v5022_v45 = vld [vmem:[%s5770_s1 + $0x80] sm:$0xff]   ;;  %v5024_v51 = vld [vmem:[%s5770_s1 + $0x88] sm:$0xff]   ;;  %s5658_s19 = scalar_lea.vmem %s5772_s3, %s3937_s17 }
  0x11   : > { %2290 = vmatprep.subr.bf16.mxu1 %v5079_v1  ;;  %2868 = vmatprep.subr.bf16.mxu0 %v5079_v1  ;;  %v5202_v19 = vld [vmem:[%s5191_s28] sm:$0xff]  ;;  %v5208_v21 = vld [vmem:[%s5191_s28 + $0x10] sm:$0xff]  ;;  %v5021_v38 = vld [vmem:[%s5770_s1 + $0x178] sm:$0xff]  }
  0x12   : > { %v5205_v20 = vld [vmem:[%s5191_s28 + $0x20] sm:$0xff]  ;;  %v5213_v23 = vld [vmem:[%s5191_s28 + $0x30] sm:$0xff]  ;;  %v5025_v52 = vld [vmem:[%s5770_s1 + $0x188] sm:$0xff]  }
  0x13   : > { %v3940_v22 = vcombine.high %v5202_v19, %v5205_v20  ;;  %v3944_v25 = vcombine.high %v5208_v21, %v5213_v23  ;;  %v237_v39 = vld [vmem:[%s5191_s28 + $0x40] sm:$0xff]  ;;  %v239_v41 = vld [vmem:[%s5191_s28 + $0x50] sm:$0xff]  ;;  %v3939_v42 = vcombine.low %v5202_v19, %v5205_v20  ;;  %v3943_v44 = vcombine.low %v5208_v21, %v5213_v23  ;;  %v5028_v2 = vld [vmem:[%s5770_s1 + $0x98] sm:$0xff]  }
  0x14   : > { %2291 = vmatpush1.bf16.msra.mxu1 %v4996_v7  ;;  %2869 = vmatpush1.bf16.msra.mxu0 %v4997_v8  ;;  %v241_v40 = vld [vmem:[%s5191_s28 + $0x60] sm:$0xff]  ;;  %v243_v43 = vld [vmem:[%s5191_s28 + $0x70] sm:$0xff]  ;;  %v5029_v3 = vld [vmem:[%s5770_s1 + $0x198] sm:$0xff]  }
  0x15   : > { %2292 = vmatprep.subr.bf16.mxu1 %v5079_v1  ;;  %2870 = vmatprep.subr.bf16.mxu0 %v5079_v1  ;;  %v5023_v46 = vld [vmem:[%s5770_s1 + $0x180] sm:$0xff]   ;;  %v3948_v47 = vcombine.high %v237_v39, %v241_v40  ;;  %v3952_v48 = vcombine.high %v239_v41, %v243_v43  ;;  %v247_v53 = vld [vmem:[%s5191_s28 + $0x90] sm:$0xff]  ;;  %v3947_v55 = vcombine.low %v237_v39, %v241_v40  ;;  %v5041_v39 = vld [vmem:[%s5770_s1 + $0x1c8] sm:$0xff]  }
  0x16   : > { %2316 = vmatprep.mubr.bf16.mxu1 %v3940_v22  ;;  %2894 = vmatprep.mubr.bf16.mxu0 %v3944_v25  ;;  %v245_v49 = vld [vmem:[%s5191_s28 + $0x80] sm:$0xff]  ;;  %v251_v54 = vld [vmem:[%s5191_s28 + $0xb0] sm:$0xff]  ;;  %v3951_v56 = vcombine.low %v239_v41, %v243_v43 }
  0x17   : > { %v249_v50 = vld [vmem:[%s5191_s28 + $0xa0] sm:$0xff]  ;;  %v3960_v58 = vcombine.high %v247_v53, %v251_v54  ;;  %v5026_v59 = vld [vmem:[%s5770_s1 + $0x90] sm:$0xff]   ;;  %v3959_v6 = vcombine.low %v247_v53, %v251_v54  ;;  %v5044_v54 = vld [vmem:[%s5770_s1 + $0xd8] sm:$0xff]  }
  0x18   : > { %2293 = vmatpush1.bf16.msra.mxu1 %v4998_v9  ;;  %2871 = vmatpush1.bf16.msra.mxu0 %v4999_v10  ;;  %v3956_v57 = vcombine.high %v245_v49, %v249_v50  ;;  %v5027_v60 = vld [vmem:[%s5770_s1 + $0x190] sm:$0xff]   ;;  %v253_v61 = vld [vmem:[%s5191_s28 + $0xc0] sm:$0xff]  ;;  %v3955_v4 = vcombine.low %v245_v49, %v249_v50 }
  0x19   : > { %2294 = vmatprep.subr.bf16.mxu1 %v5079_v1  ;;  %2872 = vmatprep.subr.bf16.mxu0 %v5079_v1  ;;  %v257_v62 = vld [vmem:[%s5191_s28 + $0xe0] sm:$0xff]  ;;  %v255_v63 = vld [vmem:[%s5191_s28 + $0xd0] sm:$0xff] }
  0x1a   : > { %v259_v0 = vld [vmem:[%s5191_s28 + $0xf0] sm:$0xff]  ;;  %v5030_v5 = vld [vmem:[%s5770_s1 + $0xa0] sm:$0xff]   ;;  %v3964_v7 = vcombine.high %v253_v61, %v257_v62 }
  0x1b   : > { %v5031_v8 = vld [vmem:[%s5770_s1 + $0x1a0] sm:$0xff]   ;;  %v3968_v9 = vcombine.high %v255_v63, %v259_v0  ;;  %v5034_v20 = vld [vmem:[%s5770_s1 + $0xb0] sm:$0xff]  }
  0x1c   : > { %2295 = vmatpush1.bf16.msra.mxu1 %v5000_v11  ;;  %2873 = vmatpush1.bf16.msra.mxu0 %v5001_v12  ;;  %v261_v10 = vld [vmem:[%s5191_s28 + $0x100] sm:$0xff]  ;;  %v263_v12 = vld [vmem:[%s5191_s28 + $0x110] sm:$0xff] }
  0x1d   : > { %2296 = vmatprep.subr.bf16.mxu1 %v5079_v1  ;;  %2874 = vmatprep.subr.bf16.mxu0 %v5079_v1  ;;  %v265_v11 = vld [vmem:[%s5191_s28 + $0x120] sm:$0xff]  ;;  %v5035_v21 = vld [vmem:[%s5770_s1 + $0x1b0] sm:$0xff]  }
  0x1e   : > { %v269_v22 = vld [vmem:[%s5191_s28 + $0x140] sm:$0xff]  ;;  %v271_v25 = vld [vmem:[%s5191_s28 + $0x150] sm:$0xff] }
  0x1f   : > { %v273_v23 = vld [vmem:[%s5191_s28 + $0x160] sm:$0xff]  ;;  %v291_v49 = vld [vmem:[%s5191_s28 + $0x1f0] sm:$0xff] }
  0x20   : > { %2297 = vmatpush1.bf16.msra.mxu1 %v5002_v13  ;;  %2875 = vmatpush1.bf16.msra.mxu0 %v5003_v14  ;;  %v267_v13 = vld [vmem:[%s5191_s28 + $0x130] sm:$0xff]  ;;  %v5032_v14 = vld [vmem:[%s5770_s1 + $0xa8] sm:$0xff]   ;;  %v3979_v40 = vcombine.low %v269_v22, %v273_v23 }
  0x21   : > { %2298 = vmatprep.subr.bf16.mxu1 %v5079_v1  ;;  %2876 = vmatprep.subr.bf16.mxu0 %v5079_v1  ;;  %v3976_v19 = vcombine.high %v263_v12, %v267_v13 }
  0x24   : > { %2299 = vmatpush1.bf16.msra.mxu1 %v5004_v15  ;;  %2877 = vmatpush1.bf16.msra.mxu0 %v5005_v16  ;;  %v5033_v15 = vld [vmem:[%s5770_s1 + $0x1a8] sm:$0xff]   ;;  %v3963_v16 = vcombine.low %v253_v61, %v257_v62 }
  0x25   : > { %2300 = vmatprep.subr.bf16.mxu1 %v5079_v1  ;;  %2878 = vmatprep.subr.bf16.mxu0 %v5079_v1 }
  0x28   : > { %2301 = vmatpush1.bf16.msra.mxu1 %v5006_v17  ;;  %2879 = vmatpush1.bf16.msra.mxu0 %v5007_v18  ;;  %v3967_v17 = vcombine.low %v255_v63, %v259_v0  ;;  %v3972_v18 = vcombine.high %v261_v10, %v265_v11  ;;  %v301_v0 = vld [vmem:[%s5191_s28 + $0x240] sm:$0xff] }
  0x29   : > { %2302 = vmatprep.subr.bf16.mxu1 %v5079_v1  ;;  %2880 = vmatprep.subr.bf16.mxu0 %v5079_v1 }
  0x2c   : > { %2303 = vmatpush1.bf16.msra.mxu1 %v5008_v24  ;;  %2881 = vmatpush1.bf16.msra.mxu0 %v5009_v26  ;;  %v5036_v24 = vld [vmem:[%s5770_s1 + $0xb8] sm:$0xff]   ;;  %v275_v26 = vld [vmem:[%s5191_s28 + $0x170] sm:$0xff] }
  0x2d   : > { %2304 = vmatprep.subr.bf16.mxu1 %v5079_v1  ;;  %2882 = vmatprep.subr.bf16.mxu0 %v5079_v1  ;;  %v3983_v41 = vcombine.low %v271_v25, %v275_v26 }
  0x30   : > { %2305 = vmatpush1.bf16.msra.mxu1 %v5010_v27  ;;  %2883 = vmatpush1.bf16.msra.mxu0 %v5011_v28  ;;  %v5037_v27 = vld [vmem:[%s5770_s1 + $0x1b8] sm:$0xff]   ;;  %v3971_v28 = vcombine.low %v261_v10, %v265_v11  ;;  %v5047_v10 = vld [vmem:[%s5770_s1 + $0x1e0] sm:$0xff]  }
  0x31   : > { %2306 = vmatprep.subr.bf16.mxu1 %v5079_v1  ;;  %2884 = vmatprep.subr.bf16.mxu0 %v5079_v1  ;;  %v309_v11 = vld [vmem:[%s5191_s28 + $0x280] sm:$0xff] }
  0x34   : > { %2307 = vmatpush1.bf16.msra.mxu1 %v5012_v29  ;;  %2885 = vmatpush1.bf16.msra.mxu0 %v5013_v30  ;;  %v3975_v29 = vcombine.low %v263_v12, %v267_v13  ;;  %v3980_v30 = vcombine.high %v269_v22, %v273_v23  ;;  %v313_v12 = vld [vmem:[%s5191_s28 + $0x2a0] sm:$0xff]  ;;  %v311_v13 = vld [vmem:[%s5191_s28 + $0x290] sm:$0xff] }
  0x35   : > { %2308 = vmatprep.subr.bf16.mxu1 %v5079_v1  ;;  %2886 = vmatprep.subr.bf16.mxu0 %v5079_v1  ;;  %v323_v22 = vld [vmem:[%s5191_s28 + $0x2f0] sm:$0xff]  ;;  %v4019_v23 = vcombine.low %v309_v11, %v313_v12 }
  0x38   : > { %2309 = vmatpush1.bf16.msra.mxu1 %v5014_v31  ;;  %2887 = vmatpush1.bf16.msra.mxu0 %v5015_v32  ;;  %v3984_v31 = vcombine.high %v271_v25, %v275_v26  ;;  %v5038_v32 = vld [vmem:[%s5770_s1 + $0xc0] sm:$0xff]  }
  0x39   : > { %2310 = vmatprep.subr.bf16.mxu1 %v5079_v1  ;;  %2888 = vmatprep.subr.bf16.mxu0 %v5079_v1 }
  0x3c   : > { %2311 = vmatpush1.bf16.msra.mxu1 %v5016_v33  ;;  %2889 = vmatpush1.bf16.msra.mxu0 %v5017_v34  ;;  %v5039_v33 = vld [vmem:[%s5770_s1 + $0x1c0] sm:$0xff]  }
  0x3d   : > { %2312 = vmatprep.subr.bf16.mxu1 %v5079_v1  ;;  %2890 = vmatprep.subr.bf16.mxu0 %v5079_v1  ;;  %v277_v34 = vld [vmem:[%s5191_s28 + $0x180] sm:$0xff] }
  0x40   : > { %2313 = vmatpush1.bf16.msra.mxu1 %v5018_v35  ;;  %2891 = vmatpush1.bf16.msra.mxu0 %v5019_v36  ;;  %v281_v35 = vld [vmem:[%s5191_s28 + $0x1a0] sm:$0xff]  ;;  %v5040_v36 = vld [vmem:[%s5770_s1 + $0xc8] sm:$0xff]  }
  0x41   : > { %2314 = vmatprep.subr.bf16.mxu1 %v5079_v1  ;;  %2892 = vmatprep.subr.bf16.mxu0 %v5079_v1  ;;  %v3987_v50 = vcombine.low %v277_v34, %v281_v35 }
  0x44   : > { %2315 = vmatpush1.bf16.msra.mxu1 %v5020_v37  ;;  %2893 = vmatpush1.bf16.msra.mxu0 %v5021_v38  ;;  %v279_v37 = vld [vmem:[%s5191_s28 + $0x190] sm:$0xff] }
  0x45   : > { %2573 = vmatprep.subr.bf16.mxu1 %v5079_v1  ;;  %3151 = vmatprep.subr.bf16.mxu0 %v5079_v1  ;;  %v283_v38 = vld [vmem:[%s5191_s28 + $0x1b0] sm:$0xff] }
  0x46   : > { %v3992_v43 = vcombine.high %v279_v37, %v283_v38 }
  0x47   : > { %2317 = vmatmul.mubr.bf16.vlgmr.msra.gmra.mrb[0].mxu1 %v3939_v42  ;;  %2895 = vmatmul.mubr.bf16.vlgmr.msra.gmra.mrb[0].mxu0 %v3943_v44  ;;  %v3988_v42 = vcombine.high %v277_v34, %v281_v35  ;;  %v5042_v44 = vld [vmem:[%s5770_s1 + $0xd0] sm:$0xff]  }
  0x48   : > { %2574 = vmatpush1.bf16.msra.mxu1 %v5022_v45  ;;  %3152 = vmatpush1.bf16.msra.mxu0 %v5023_v46  ;;  %v5043_v45 = vld [vmem:[%s5770_s1 + $0x1d0] sm:$0xff]   ;;  %v285_v46 = vld [vmem:[%s5191_s28 + $0x1c0] sm:$0xff] }
  0x49   : > { %2324 = vmatprep.mubr.bf16.mxu1 %v3948_v47  ;;  %2902 = vmatprep.mubr.bf16.mxu0 %v3952_v48  ;;  %v289_v47 = vld [vmem:[%s5191_s28 + $0x1e0] sm:$0xff]  ;;  %v287_v48 = vld [vmem:[%s5191_s28 + $0x1d0] sm:$0xff] }
  0x4a   : > { %2575 = vmatprep.subr.bf16.mxu1 %v5079_v1  ;;  %3153 = vmatprep.subr.bf16.mxu0 %v5079_v1  ;;  %v4000_v53 = vcombine.high %v287_v48, %v291_v49  ;;  %v3999_v61 = vcombine.low %v287_v48, %v291_v49  ;;  %v345_v48 = vld [vmem:[%s5191_s28 + $0x3a0] sm:$0xff]  ;;  %v343_v49 = vld [vmem:[%s5191_s28 + $0x390] sm:$0xff] }
  0x4c   : > { %2576 = vmatpush1.bf16.msra.mxu1 %v5024_v51  ;;  %3154 = vmatpush1.bf16.msra.mxu0 %v5025_v52  ;;  %v3991_v51 = vcombine.low %v279_v37, %v283_v38  ;;  %v3996_v52 = vcombine.high %v285_v46, %v289_v47  ;;  %v333_v37 = vld [vmem:[%s5191_s28 + $0x340] sm:$0xff] }
  0x4d   : > { %2577 = vmatprep.subr.bf16.mxu1 %v5079_v1  ;;  %3155 = vmatprep.subr.bf16.mxu0 %v5079_v1  ;;  %v337_v38 = vld [vmem:[%s5191_s28 + $0x360] sm:$0xff] }
  0x4f   : > { %2325 = vmatmul.mubr.bf16.gmra.mrb[4].mxu1 %v3947_v55  ;;  %2903 = vmatmul.mubr.bf16.gmra.mrb[4].mxu0 %v3951_v56  ;;  %v5045_v55 = vld [vmem:[%s5770_s1 + $0x1d8] sm:$0xff]   ;;  %v293_v56 = vld [vmem:[%s5191_s28 + $0x200] sm:$0xff] }
  0x50   : > { %2332 = vmatprep.mubr.bf16.mxu1 %v3956_v57  ;;  %2910 = vmatprep.mubr.bf16.mxu0 %v3960_v58  ;;  %v297_v57 = vld [vmem:[%s5191_s28 + $0x220] sm:$0xff]  ;;  %v295_v58 = vld [vmem:[%s5191_s28 + $0x210] sm:$0xff] }
  0x51   : > { %2578 = vmatpush1.bf16.msra.mxu1 %v5026_v59  ;;  %3156 = vmatpush1.bf16.msra.mxu0 %v5027_v60  ;;  %v299_v59 = vld [vmem:[%s5191_s28 + $0x230] sm:$0xff]  ;;  %v3995_v60 = vcombine.low %v285_v46, %v289_v47  ;;  %v4004_v62 = vcombine.high %v293_v56, %v297_v57  ;;  %v341_v47 = vld [vmem:[%s5191_s28 + $0x380] sm:$0xff] }
  0x52   : > { %2579 = vmatprep.subr.bf16.mxu1 %v5079_v1  ;;  %3157 = vmatprep.subr.bf16.mxu0 %v5079_v1  ;;  %v4008_v63 = vcombine.high %v295_v58, %v299_v59  ;;  %v5051_v46 = vld [vmem:[%s5770_s1 + $0x1f0] sm:$0xff]  }
  0x55   : > { %2580 = vmatpush1.bf16.msra.mxu1 %v5028_v2  ;;  %3158 = vmatpush1.bf16.msra.mxu0 %v5029_v3  ;;  %v305_v2 = vld [vmem:[%s5191_s28 + $0x260] sm:$0xff]  ;;  %v303_v3 = vld [vmem:[%s5191_s28 + $0x250] sm:$0xff] }
  0x56   : > { %2581 = vmatprep.subr.bf16.mxu1 %v5079_v1  ;;  %3159 = vmatprep.subr.bf16.mxu0 %v5079_v1 }
  0x57   : > { %2333 = vmatmul.mubr.bf16.gmra.mrb[8].mxu1 %v3955_v4  ;;  %2911 = vmatmul.mubr.bf16.gmra.mrb[8].mxu0 %v3959_v6  ;;  %v307_v4 = vld [vmem:[%s5191_s28 + $0x270] sm:$0xff]  ;;  %v4007_v6 = vcombine.low %v295_v58, %v299_v59  ;;  %v4051_v59 = vcombine.low %v341_v47, %v345_v48 }
  0x58   : > { %2340 = vmatprep.mubr.bf16.mxu1 %v3964_v7  ;;  %2918 = vmatprep.mubr.bf16.mxu0 %v3968_v9  ;;  %v4012_v7 = vcombine.high %v301_v0, %v305_v2  ;;  %v5046_v9 = vld [vmem:[%s5770_s1 + $0xe0] sm:$0xff]   ;;  %v355_v58 = vld [vmem:[%s5191_s28 + $0x3f0] sm:$0xff] }
  0x59   : > { %2582 = vmatpush1.bf16.msra.mxu1 %v5030_v5  ;;  %3160 = vmatpush1.bf16.msra.mxu0 %v5031_v8  ;;  %v4003_v5 = vcombine.low %v293_v56, %v297_v57  ;;  %v4016_v8 = vcombine.high %v303_v3, %v307_v4  ;;  %v353_v56 = vld [vmem:[%s5191_s28 + $0x3e0] sm:$0xff]  ;;  %v351_v57 = vld [vmem:[%s5191_s28 + $0x3d0] sm:$0xff] }
  0x5a   : > { %2583 = vmatprep.subr.bf16.mxu1 %v5079_v1  ;;  %3161 = vmatprep.subr.bf16.mxu0 %v5079_v1 }
  0x5d   : > { %2584 = vmatpush1.bf16.msra.mxu1 %v5032_v14  ;;  %3162 = vmatpush1.bf16.msra.mxu0 %v5033_v15  ;;  %v315_v14 = vld [vmem:[%s5191_s28 + $0x2b0] sm:$0xff]  ;;  %v4011_v15 = vcombine.low %v301_v0, %v305_v2  ;;  %v357_v0 = vld [vmem:[%s5191_s28 + $0x400] sm:$0xff] }
  0x5e   : > { %2585 = vmatprep.subr.bf16.mxu1 %v5079_v1  ;;  %3163 = vmatprep.subr.bf16.mxu0 %v5079_v1  ;;  %v361_v2 = vld [vmem:[%s5191_s28 + $0x420] sm:$0xff] }
  0x5f   : > { %2341 = vmatmul.mubr.bf16.gmra.mrb[12].mxu1 %v3963_v16  ;;  %2919 = vmatmul.mubr.bf16.gmra.mrb[12].mxu0 %v3967_v17  ;;  %v4015_v16 = vcombine.low %v303_v3, %v307_v4  ;;  %v4020_v17 = vcombine.high %v309_v11, %v313_v12  ;;  %v359_v3 = vld [vmem:[%s5191_s28 + $0x410] sm:$0xff] }
  0x60   : > { %2348 = vmatprep.mubr.bf16.mxu1 %v3972_v18  ;;  %2926 = vmatprep.mubr.bf16.mxu0 %v3976_v19  ;;  %v4024_v18 = vcombine.high %v311_v13, %v315_v14  ;;  %v317_v19 = vld [vmem:[%s5191_s28 + $0x2c0] sm:$0xff]  ;;  %v363_v4 = vld [vmem:[%s5191_s28 + $0x430] sm:$0xff] }
  0x61   : > { %2586 = vmatpush1.bf16.msra.mxu1 %v5034_v20  ;;  %3164 = vmatpush1.bf16.msra.mxu0 %v5035_v21  ;;  %v321_v20 = vld [vmem:[%s5191_s28 + $0x2e0] sm:$0xff]  ;;  %v319_v21 = vld [vmem:[%s5191_s28 + $0x2d0] sm:$0xff] }
  0x62   : > { %2587 = vmatprep.subr.bf16.mxu1 %v5079_v1  ;;  %3165 = vmatprep.subr.bf16.mxu0 %v5079_v1  ;;  %v4028_v25 = vcombine.high %v317_v19, %v321_v20  ;;  %v4032_v26 = vcombine.high %v319_v21, %v323_v22  ;;  %v4031_v34 = vcombine.low %v319_v21, %v323_v22  ;;  %v367_v11 = vld [vmem:[%s5191_s28 + $0x450] sm:$0xff] }
  0x63   : > { %v371_v12 = vld [vmem:[%s5191_s28 + $0x470] sm:$0xff] }
  0x64   : > { %v4079_v22 = vcombine.low %v367_v11, %v371_v12 }
  0x65   : > { %2588 = vmatpush1.bf16.msra.mxu1 %v5036_v24  ;;  %3166 = vmatpush1.bf16.msra.mxu0 %v5037_v27  ;;  %v4023_v24 = vcombine.low %v311_v13, %v315_v14  ;;  %v5048_v27 = vld [vmem:[%s5770_s1 + $0xe8] sm:$0xff]   ;;  %v4067_v13 = vcombine.low %v357_v0, %v361_v2  ;;  %v4071_v14 = vcombine.low %v359_v3, %v363_v4 }
  0x66   : > { %2589 = vmatprep.subr.bf16.mxu1 %v5079_v1  ;;  %3167 = vmatprep.subr.bf16.mxu0 %v5079_v1 }
  0x67   : > { %2349 = vmatmul.mubr.bf16.gmra.mrb[16].mxu1 %v3971_v28  ;;  %2927 = vmatmul.mubr.bf16.gmra.mrb[16].mxu0 %v3975_v29  ;;  %v5049_v28 = vld [vmem:[%s5770_s1 + $0x1e8] sm:$0xff]   ;;  %v325_v29 = vld [vmem:[%s5191_s28 + $0x300] sm:$0xff] }
  0x68   : > { %2356 = vmatprep.mubr.bf16.mxu1 %v3980_v30  ;;  %2934 = vmatprep.mubr.bf16.mxu0 %v3984_v31  ;;  %v329_v30 = vld [vmem:[%s5191_s28 + $0x320] sm:$0xff]  ;;  %v327_v31 = vld [vmem:[%s5191_s28 + $0x310] sm:$0xff] }
  0x69   : > { %2590 = vmatpush1.bf16.msra.mxu1 %v5038_v32  ;;  %3168 = vmatpush1.bf16.msra.mxu0 %v5039_v33  ;;  %v331_v32 = vld [vmem:[%s5191_s28 + $0x330] sm:$0xff]  ;;  %v4027_v33 = vcombine.low %v317_v19, %v321_v20  ;;  %v4036_v35 = vcombine.high %v325_v29, %v329_v30 }
  0x6a   : > { %2591 = vmatprep.subr.bf16.mxu1 %v5079_v1  ;;  %3169 = vmatprep.subr.bf16.mxu0 %v5079_v1  ;;  %v375_v19 = vld [vmem:[%s5191_s28 + $0x490] sm:$0xff] }
  0x6b   : > { %v379_v20 = vld [vmem:[%s5191_s28 + $0x4b0] sm:$0xff] }
  0x6d   : > { %2592 = vmatpush1.bf16.msra.mxu1 %v5040_v36  ;;  %3170 = vmatpush1.bf16.msra.mxu0 %v5041_v39  ;;  %v4040_v36 = vcombine.high %v327_v31, %v331_v32  ;;  %v335_v39 = vld [vmem:[%s5191_s28 + $0x350] sm:$0xff] }
  0x6e   : > { %2593 = vmatprep.subr.bf16.mxu1 %v5079_v1  ;;  %3171 = vmatprep.subr.bf16.mxu0 %v5079_v1 }
  0x6f   : > { %2357 = vmatmul.mubr.bf16.gmra.mrb[20].mxu1 %v3979_v40  ;;  %2935 = vmatmul.mubr.bf16.gmra.mrb[20].mxu0 %v3983_v41  ;;  %v339_v40 = vld [vmem:[%s5191_s28 + $0x370] sm:$0xff]  ;;  %v4035_v41 = vcombine.low %v325_v29, %v329_v30  ;;  %v4087_v30 = vcombine.low %v375_v19, %v379_v20 }
  0x70   : > { %2364 = vmatprep.mubr.bf16.mxu1 %v3988_v42  ;;  %2942 = vmatprep.mubr.bf16.mxu0 %v3992_v43  ;;  %v4039_v42 = vcombine.low %v327_v31, %v331_v32  ;;  %v4044_v43 = vcombine.high %v333_v37, %v337_v38 }
  0x71   : > { %2594 = vmatpush1.bf16.msra.mxu1 %v5042_v44  ;;  %3172 = vmatpush1.bf16.msra.mxu0 %v5043_v45  ;;  %v4048_v44 = vcombine.high %v335_v39, %v339_v40  ;;  %v5050_v45 = vld [vmem:[%s5770_s1 + $0xf0] sm:$0xff]  }
  0x72   : > { %2595 = vmatprep.subr.bf16.mxu1 %v5079_v1  ;;  %3173 = vmatprep.subr.bf16.mxu0 %v5079_v1 }
  0x75   : > { %2596 = vmatpush1.bf16.msra.mxu1 %v5044_v54  ;;  %3174 = vmatpush1.bf16.msra.mxu0 %v5045_v55  ;;  %v349_v55 = vld [vmem:[%s5191_s28 + $0x3c0] sm:$0xff] }
  0x76   : > { %2597 = vmatprep.subr.bf16.mxu1 %v5079_v1  ;;  %3175 = vmatprep.subr.bf16.mxu0 %v5079_v1 }
  0x77   : > { %2365 = vmatmul.mubr.bf16.gmra.mrb[24].mxu1 %v3987_v50  ;;  %2943 = vmatmul.mubr.bf16.gmra.mrb[24].mxu0 %v3991_v51  ;;  %v347_v50 = vld [vmem:[%s5191_s28 + $0x3b0] sm:$0xff]  ;;  %v4043_v51 = vcombine.low %v333_v37, %v337_v38 }
  0x78   : > { %2372 = vmatprep.mubr.bf16.mxu1 %v3996_v52  ;;  %2950 = vmatprep.mubr.bf16.mxu0 %v4000_v53  ;;  %v4047_v52 = vcombine.low %v335_v39, %v339_v40  ;;  %v4052_v53 = vcombine.high %v341_v47, %v345_v48  ;;  %v4056_v54 = vcombine.high %v343_v49, %v347_v50 }
  0x79   : > { %2598 = vmatpush1.bf16.msra.mxu1 %v5046_v9  ;;  %3176 = vmatpush1.bf16.msra.mxu0 %v5047_v10  ;;  %v365_v9 = vld [vmem:[%s5191_s28 + $0x440] sm:$0xff] }
  0x7a   : > { %2599 = vmatprep.subr.bf16.mxu1 %v5079_v1  ;;  %3177 = vmatprep.subr.bf16.mxu0 %v5079_v1  ;;  %v369_v10 = vld [vmem:[%s5191_s28 + $0x460] sm:$0xff] }
  0x7b   : > { %v4075_v21 = vcombine.low %v365_v9, %v369_v10 }
  0x7d   : > { %2600 = vmatpush1.bf16.msra.mxu1 %v5048_v27  ;;  %3178 = vmatpush1.bf16.msra.mxu0 %v5049_v28  ;;  %v383_v27 = vld [vmem:[%s5191_s28 + $0x4d0] sm:$0xff] }
  0x7e   : > { %2601 = vmatprep.subr.bf16.mxu1 %v5079_v1  ;;  %3179 = vmatprep.subr.bf16.mxu0 %v5079_v1  ;;  %v387_v28 = vld [vmem:[%s5191_s28 + $0x4f0] sm:$0xff] }
  0x7f   : > { %2373 = vmatmul.mubr.bf16.gmra.mrb[28].mxu1 %v3995_v60  ;;  %2951 = vmatmul.mubr.bf16.gmra.mrb[28].mxu0 %v3999_v61  ;;  %v4055_v60 = vcombine.low %v343_v49, %v347_v50  ;;  %v4060_v61 = vcombine.high %v349_v55, %v353_v56  ;;  %v4096_v32 = vcombine.high %v383_v27, %v387_v28  ;;  %v405_v49 = vld [vmem:[%s5191_s28 + $0x580] sm:$0xff] }
  0x80   : > { %2380 = vmatprep.mubr.bf16.mxu1 %v4004_v62  ;;  %2958 = vmatprep.mubr.bf16.mxu0 %v4008_v63  ;;  %v4064_v62 = vcombine.high %v351_v57, %v355_v58  ;;  %v5053_v63 = vld [vmem:[%s5770_s1 + $0x1f8] sm:$0xff]   ;;  %v4095_v38 = vcombine.low %v383_v27, %v387_v28  ;;  %v409_v50 = vld [vmem:[%s5191_s28 + $0x5a0] sm:$0xff]  ;;  %v447_v27 = vld [vmem:[%s5191_s28 + $0x6d0] sm:$0xff] }
  0x81   : > { %2602 = vmatpush1.bf16.msra.mxu1 %v5050_v45  ;;  %3180 = vmatpush1.bf16.msra.mxu0 %v5051_v46  ;;  %v451_v28 = vld [vmem:[%s5191_s28 + $0x6f0] sm:$0xff] }
  0x82   : > { %2603 = vmatprep.subr.bf16.mxu1 %v5079_v1  ;;  %3181 = vmatprep.subr.bf16.mxu0 %v5079_v1  ;;  %v5052_v1 = vld [vmem:[%s5770_s1 + $0xf8] sm:$0xff]  }
  0x85   : > { %2604 = vmatpush1.bf16.msra.mxu1 %v5052_v1  ;;  %3182 = vmatpush1.bf16.msra.mxu0 %v5053_v63 }
  0x87   : > { %2381 = vmatmul.mubr.bf16.gmra.mrb[32].mxu1 %v4003_v5  ;;  %2959 = vmatmul.mubr.bf16.gmra.mrb[32].mxu0 %v4007_v6  ;;  %v4059_v5 = vcombine.low %v349_v55, %v353_v56  ;;  %v4063_v6 = vcombine.low %v351_v57, %v355_v58  ;;  %v4116_v55 = vcombine.high %v405_v49, %v409_v50  ;;  %v413_v57 = vld [vmem:[%s5191_s28 + $0x5c0] sm:$0xff] }
  0x88   : > { %2388 = vmatprep.mubr.bf16.mxu1 %v4012_v7  ;;  %2966 = vmatprep.mubr.bf16.mxu0 %v4016_v8  ;;  %v4068_v7 = vcombine.high %v357_v0, %v361_v2  ;;  %v4072_v8 = vcombine.high %v359_v3, %v363_v4  ;;  %v417_v58 = vld [vmem:[%s5191_s28 + $0x5e0] sm:$0xff]  ;;  %v423_v3 = vld [vmem:[%s5191_s28 + $0x610] sm:$0xff] }
  0x89   : > { %v4124_v1 = vcombine.high %v413_v57, %v417_v58  ;;  %v421_v0 = vld [vmem:[%s5191_s28 + $0x600] sm:$0xff]  ;;  %v427_v4 = vld [vmem:[%s5191_s28 + $0x630] sm:$0xff] }
  0x8a   : > { %v425_v2 = vld [vmem:[%s5191_s28 + $0x620] sm:$0xff] }
  0x8f   : > { %2389 = vmatmul.mubr.bf16.gmra.mrb[36].mxu1 %v4011_v15  ;;  %2967 = vmatmul.mubr.bf16.gmra.mrb[36].mxu0 %v4015_v16  ;;  %v4076_v15 = vcombine.high %v365_v9, %v369_v10  ;;  %v4080_v16 = vcombine.high %v367_v11, %v371_v12  ;;  %v429_v9 = vld [vmem:[%s5191_s28 + $0x640] sm:$0xff]  ;;  %v431_v11 = vld [vmem:[%s5191_s28 + $0x650] sm:$0xff] }
  0x90   : > { %2396 = vmatprep.mubr.bf16.mxu1 %v4020_v17  ;;  %2974 = vmatprep.mubr.bf16.mxu0 %v4024_v18  ;;  %v373_v17 = vld [vmem:[%s5191_s28 + $0x480] sm:$0xff]  ;;  %v435_v12 = vld [vmem:[%s5191_s28 + $0x670] sm:$0xff] }
  0x91   : > { %v377_v18 = vld [vmem:[%s5191_s28 + $0x4a0] sm:$0xff] }
  0x92   : > { %v4083_v29 = vcombine.low %v373_v17, %v377_v18  ;;  %v433_v10 = vld [vmem:[%s5191_s28 + $0x660] sm:$0xff] }
  0x97   : > { %2397 = vmatmul.mubr.bf16.gmra.mrb[40].mxu1 %v4019_v23  ;;  %2975 = vmatmul.mubr.bf16.gmra.mrb[40].mxu0 %v4023_v24  ;;  %v4084_v23 = vcombine.high %v373_v17, %v377_v18  ;;  %v4088_v24 = vcombine.high %v375_v19, %v379_v20  ;;  %v437_v17 = vld [vmem:[%s5191_s28 + $0x680] sm:$0xff]  ;;  %v439_v19 = vld [vmem:[%s5191_s28 + $0x690] sm:$0xff] }
  0x98   : > { %2404 = vmatprep.mubr.bf16.mxu1 %v4028_v25  ;;  %2982 = vmatprep.mubr.bf16.mxu0 %v4032_v26  ;;  %v381_v25 = vld [vmem:[%s5191_s28 + $0x4c0] sm:$0xff]  ;;  %v443_v20 = vld [vmem:[%s5191_s28 + $0x6b0] sm:$0xff] }
  0x99   : > { %v385_v26 = vld [vmem:[%s5191_s28 + $0x4e0] sm:$0xff] }
  0x9a   : > { %v4092_v31 = vcombine.high %v381_v25, %v385_v26  ;;  %v4091_v37 = vcombine.low %v381_v25, %v385_v26  ;;  %v441_v18 = vld [vmem:[%s5191_s28 + $0x6a0] sm:$0xff] }
  0x9b   : > { %v445_v25 = vld [vmem:[%s5191_s28 + $0x6c0] sm:$0xff] }
  0x9c   : > { %v449_v26 = vld [vmem:[%s5191_s28 + $0x6e0] sm:$0xff] }
  0x9f   : > { %2405 = vmatmul.mubr.bf16.gmra.mrb[44].mxu1 %v4027_v33  ;;  %2983 = vmatmul.mubr.bf16.gmra.mrb[44].mxu0 %v4031_v34  ;;  %v389_v33 = vld [vmem:[%s5191_s28 + $0x500] sm:$0xff] }
  0xa0   : > { %2412 = vmatprep.mubr.bf16.mxu1 %v4036_v35  ;;  %2990 = vmatprep.mubr.bf16.mxu0 %v4040_v36  ;;  %v393_v34 = vld [vmem:[%s5191_s28 + $0x520] sm:$0xff]  ;;  %v391_v35 = vld [vmem:[%s5191_s28 + $0x510] sm:$0xff] }
  0xa1   : > { %v395_v36 = vld [vmem:[%s5191_s28 + $0x530] sm:$0xff]  ;;  %v4100_v39 = vcombine.high %v389_v33, %v393_v34  ;;  %v4099_v45 = vcombine.low %v389_v33, %v393_v34  ;;  %v453_v33 = vld [vmem:[%s5191_s28 + $0x700] sm:$0xff] }
  0xa2   : > { %v4104_v40 = vcombine.high %v391_v35, %v395_v36  ;;  %v4103_v46 = vcombine.low %v391_v35, %v395_v36  ;;  %v457_v34 = vld [vmem:[%s5191_s28 + $0x720] sm:$0xff]  ;;  %v455_v35 = vld [vmem:[%s5191_s28 + $0x710] sm:$0xff] }
  0xa3   : > { %v459_v36 = vld [vmem:[%s5191_s28 + $0x730] sm:$0xff] }
  0xa7   : > { %2413 = vmatmul.mubr.bf16.gmra.mrb[48].mxu1 %v4035_v41  ;;  %2991 = vmatmul.mubr.bf16.gmra.mrb[48].mxu0 %v4039_v42  ;;  %v397_v41 = vld [vmem:[%s5191_s28 + $0x540] sm:$0xff] }
  0xa8   : > { %2420 = vmatprep.mubr.bf16.mxu1 %v4044_v43  ;;  %2998 = vmatprep.mubr.bf16.mxu0 %v4048_v44  ;;  %v401_v42 = vld [vmem:[%s5191_s28 + $0x560] sm:$0xff]  ;;  %v399_v43 = vld [vmem:[%s5191_s28 + $0x550] sm:$0xff] }
  0xa9   : > { %v403_v44 = vld [vmem:[%s5191_s28 + $0x570] sm:$0xff]  ;;  %v4108_v47 = vcombine.high %v397_v41, %v401_v42 }
  0xaa   : > { %v4112_v48 = vcombine.high %v399_v43, %v403_v44 }
  0xaf   : > { %2421 = vmatmul.mubr.bf16.gmra.mrb[52].mxu1 %v4043_v51  ;;  %2999 = vmatmul.mubr.bf16.gmra.mrb[52].mxu0 %v4047_v52  ;;  %v407_v51 = vld [vmem:[%s5191_s28 + $0x590] sm:$0xff] }
  0xb0   : > { %2428 = vmatprep.mubr.bf16.mxu1 %v4052_v53  ;;  %3006 = vmatprep.mubr.bf16.mxu0 %v4056_v54  ;;  %v411_v52 = vld [vmem:[%s5191_s28 + $0x5b0] sm:$0xff]  ;;  %v4107_v53 = vcombine.low %v397_v41, %v401_v42  ;;  %v4111_v54 = vcombine.low %v399_v43, %v403_v44  ;;  %v461_v41 = vld [vmem:[%s5191_s28 + $0x740] sm:$0xff] }
  0xb1   : > { %v4120_v56 = vcombine.high %v407_v51, %v411_v52  ;;  %v465_v42 = vld [vmem:[%s5191_s28 + $0x760] sm:$0xff]  ;;  %v463_v43 = vld [vmem:[%s5191_s28 + $0x750] sm:$0xff] }
  0xb2   : > { %v467_v44 = vld [vmem:[%s5191_s28 + $0x770] sm:$0xff] }
  0xb7   : > { %2429 = vmatmul.mubr.bf16.gmra.mrb[56].mxu1 %v4051_v59  ;;  %3007 = vmatmul.mubr.bf16.gmra.mrb[56].mxu0 %v4055_v60  ;;  %v415_v59 = vld [vmem:[%s5191_s28 + $0x5d0] sm:$0xff] }
  0xb8   : > { %2436 = vmatprep.mubr.bf16.mxu1 %v4060_v61  ;;  %3014 = vmatprep.mubr.bf16.mxu0 %v4064_v62  ;;  %v419_v60 = vld [vmem:[%s5191_s28 + $0x5f0] sm:$0xff]  ;;  %v4115_v61 = vcombine.low %v405_v49, %v409_v50  ;;  %v4119_v62 = vcombine.low %v407_v51, %v411_v52  ;;  %v469_v49 = vld [vmem:[%s5191_s28 + $0x780] sm:$0xff] }
  0xb9   : > { %v4128_v63 = vcombine.high %v415_v59, %v419_v60  ;;  %v473_v50 = vld [vmem:[%s5191_s28 + $0x7a0] sm:$0xff]  ;;  %v471_v51 = vld [vmem:[%s5191_s28 + $0x790] sm:$0xff] }
  0xba   : > { %v475_v52 = vld [vmem:[%s5191_s28 + $0x7b0] sm:$0xff] }
  0xbf   : > { %2437 = vmatmul.mubr.bf16.gmra.mrb[60].mxu1 %v4059_v5  ;;  %3015 = vmatmul.mubr.bf16.gmra.mrb[60].mxu0 %v4063_v6  ;;  %v4123_v5 = vcombine.low %v413_v57, %v417_v58  ;;  %v4127_v6 = vcombine.low %v415_v59, %v419_v60  ;;  %v477_v57 = vld [vmem:[%s5191_s28 + $0x7c0] sm:$0xff]  ;;  %v479_v59 = vld [vmem:[%s5191_s28 + $0x7d0] sm:$0xff] }
  0xc0   : > { %2444 = vmatprep.mubr.bf16.mxu1 %v4068_v7  ;;  %3022 = vmatprep.mubr.bf16.mxu0 %v4072_v8  ;;  %v4132_v7 = vcombine.high %v421_v0, %v425_v2  ;;  %v4136_v8 = vcombine.high %v423_v3, %v427_v4  ;;  %v481_v58 = vld [vmem:[%s5191_s28 + $0x7e0] sm:$0xff]  ;;  %v483_v60 = vld [vmem:[%s5191_s28 + $0x7f0] sm:$0xff] }
  0xc7   : > { %2445 = vmatmul.mubr.bf16.gmra.mrb[64].mxu1 %v4067_v13  ;;  %3023 = vmatmul.mubr.bf16.gmra.mrb[64].mxu0 %v4071_v14  ;;  %v4131_v13 = vcombine.low %v421_v0, %v425_v2  ;;  %v4135_v14 = vcombine.low %v423_v3, %v427_v4  ;;  %v230_v0 = vld [vmem:[%s5191_s28 + $0x8] sm:$0xff]  ;;  %v232_v3 = vld [vmem:[%s5191_s28 + $0x18] sm:$0xff] }
  0xc8   : > { %2452 = vmatprep.mubr.bf16.mxu1 %v4076_v15  ;;  %3030 = vmatprep.mubr.bf16.mxu0 %v4080_v16  ;;  %v4140_v15 = vcombine.high %v429_v9, %v433_v10  ;;  %v4144_v16 = vcombine.high %v431_v11, %v435_v12  ;;  %v234_v2 = vld [vmem:[%s5191_s28 + $0x28] sm:$0xff]  ;;  %v236_v4 = vld [vmem:[%s5191_s28 + $0x38] sm:$0xff] }
  0xcf   : > { %2453 = vmatmul.mubr.bf16.gmra.mrb[68].mxu1 %v4075_v21  ;;  %3031 = vmatmul.mubr.bf16.gmra.mrb[68].mxu0 %v4079_v22  ;;  %v4139_v21 = vcombine.low %v429_v9, %v433_v10  ;;  %v4143_v22 = vcombine.low %v431_v11, %v435_v12  ;;  %v238_v9 = vld [vmem:[%s5191_s28 + $0x48] sm:$0xff]  ;;  %v240_v11 = vld [vmem:[%s5191_s28 + $0x58] sm:$0xff] }
  0xd0   : > { %2460 = vmatprep.mubr.bf16.mxu1 %v4084_v23  ;;  %3038 = vmatprep.mubr.bf16.mxu0 %v4088_v24  ;;  %v4148_v23 = vcombine.high %v437_v17, %v441_v18  ;;  %v4152_v24 = vcombine.high %v439_v19, %v443_v20  ;;  %v242_v10 = vld [vmem:[%s5191_s28 + $0x68] sm:$0xff]  ;;  %v244_v12 = vld [vmem:[%s5191_s28 + $0x78] sm:$0xff] }
  0xd7   : > { %2461 = vmatmul.mubr.bf16.gmra.mrb[72].mxu1 %v4083_v29  ;;  %3039 = vmatmul.mubr.bf16.gmra.mrb[72].mxu0 %v4087_v30  ;;  %v4147_v29 = vcombine.low %v437_v17, %v441_v18  ;;  %v4151_v30 = vcombine.low %v439_v19, %v443_v20  ;;  %v246_v17 = vld [vmem:[%s5191_s28 + $0x88] sm:$0xff]  ;;  %v248_v19 = vld [vmem:[%s5191_s28 + $0x98] sm:$0xff] }
  0xd8   : > { %2468 = vmatprep.mubr.bf16.mxu1 %v4092_v31  ;;  %3046 = vmatprep.mubr.bf16.mxu0 %v4096_v32  ;;  %v4156_v31 = vcombine.high %v445_v25, %v449_v26  ;;  %v4160_v32 = vcombine.high %v447_v27, %v451_v28  ;;  %v250_v18 = vld [vmem:[%s5191_s28 + $0xa8] sm:$0xff]  ;;  %v252_v20 = vld [vmem:[%s5191_s28 + $0xb8] sm:$0xff] }
  0xdf   : > { %2469 = vmatmul.mubr.bf16.gmra.mrb[76].mxu1 %v4091_v37  ;;  %3047 = vmatmul.mubr.bf16.gmra.mrb[76].mxu0 %v4095_v38  ;;  %v4155_v37 = vcombine.low %v445_v25, %v449_v26  ;;  %v4159_v38 = vcombine.low %v447_v27, %v451_v28  ;;  %v254_v25 = vld [vmem:[%s5191_s28 + $0xc8] sm:$0xff]  ;;  %v256_v27 = vld [vmem:[%s5191_s28 + $0xd8] sm:$0xff] }
  0xe0   : > { %2476 = vmatprep.mubr.bf16.mxu1 %v4100_v39  ;;  %3054 = vmatprep.mubr.bf16.mxu0 %v4104_v40  ;;  %v4164_v39 = vcombine.high %v453_v33, %v457_v34  ;;  %v4168_v40 = vcombine.high %v455_v35, %v459_v36  ;;  %v258_v26 = vld [vmem:[%s5191_s28 + $0xe8] sm:$0xff]  ;;  %v260_v28 = vld [vmem:[%s5191_s28 + $0xf8] sm:$0xff] }
  0xe7   : > { %2477 = vmatmul.mubr.bf16.gmra.mrb[80].mxu1 %v4099_v45  ;;  %3055 = vmatmul.mubr.bf16.gmra.mrb[80].mxu0 %v4103_v46  ;;  %v4163_v45 = vcombine.low %v453_v33, %v457_v34  ;;  %v4167_v46 = vcombine.low %v455_v35, %v459_v36  ;;  %v262_v33 = vld [vmem:[%s5191_s28 + $0x108] sm:$0xff]  ;;  %v264_v35 = vld [vmem:[%s5191_s28 + $0x118] sm:$0xff] }
  0xe8   : > { %2484 = vmatprep.mubr.bf16.mxu1 %v4108_v47  ;;  %3062 = vmatprep.mubr.bf16.mxu0 %v4112_v48  ;;  %v4172_v47 = vcombine.high %v461_v41, %v465_v42  ;;  %v4176_v48 = vcombine.high %v463_v43, %v467_v44  ;;  %v266_v34 = vld [vmem:[%s5191_s28 + $0x128] sm:$0xff]  ;;  %v268_v36 = vld [vmem:[%s5191_s28 + $0x138] sm:$0xff] }
  0xef   : > { %2485 = vmatmul.mubr.bf16.gmra.mrb[84].mxu1 %v4107_v53  ;;  %3063 = vmatmul.mubr.bf16.gmra.mrb[84].mxu0 %v4111_v54  ;;  %v4171_v53 = vcombine.low %v461_v41, %v465_v42  ;;  %v4175_v54 = vcombine.low %v463_v43, %v467_v44  ;;  %v270_v41 = vld [vmem:[%s5191_s28 + $0x148] sm:$0xff]  ;;  %v272_v43 = vld [vmem:[%s5191_s28 + $0x158] sm:$0xff] }
  0xf0   : > { %2492 = vmatprep.mubr.bf16.mxu1 %v4116_v55  ;;  %3070 = vmatprep.mubr.bf16.mxu0 %v4120_v56  ;;  %v4180_v55 = vcombine.high %v469_v49, %v473_v50  ;;  %v4184_v56 = vcombine.high %v471_v51, %v475_v52  ;;  %v274_v42 = vld [vmem:[%s5191_s28 + $0x168] sm:$0xff]  ;;  %v276_v44 = vld [vmem:[%s5191_s28 + $0x178] sm:$0xff] }
  0xf7   : > { %2493 = vmatmul.mubr.bf16.gmra.mrb[88].mxu1 %v4115_v61  ;;  %3071 = vmatmul.mubr.bf16.gmra.mrb[88].mxu0 %v4119_v62  ;;  %v4179_v61 = vcombine.low %v469_v49, %v473_v50  ;;  %v4183_v62 = vcombine.low %v471_v51, %v475_v52  ;;  %v278_v49 = vld [vmem:[%s5191_s28 + $0x188] sm:$0xff]  ;;  %v280_v51 = vld [vmem:[%s5191_s28 + $0x198] sm:$0xff] }
  0xf8   : > { %2500 = vmatprep.mubr.bf16.mxu1 %v4124_v1  ;;  %3078 = vmatprep.mubr.bf16.mxu0 %v4128_v63  ;;  %v4188_v1 = vcombine.high %v477_v57, %v481_v58  ;;  %v4192_v63 = vcombine.high %v479_v59, %v483_v60  ;;  %v282_v50 = vld [vmem:[%s5191_s28 + $0x1a8] sm:$0xff]  ;;  %v284_v52 = vld [vmem:[%s5191_s28 + $0x1b8] sm:$0xff] }
  0xff   : > { %2501 = vmatmul.mubr.bf16.gmra.mrb[92].mxu1 %v4123_v5  ;;  %3079 = vmatmul.mubr.bf16.gmra.mrb[92].mxu0 %v4127_v6  ;;  %v4187_v5 = vcombine.low %v477_v57, %v481_v58  ;;  %v4191_v6 = vcombine.low %v479_v59, %v483_v60  ;;  %v286_v57 = vld [vmem:[%s5191_s28 + $0x1c8] sm:$0xff]  ;;  %v288_v59 = vld [vmem:[%s5191_s28 + $0x1d8] sm:$0xff] }
 0x100   : > { %2508 = vmatprep.mubr.bf16.mxu1 %v4132_v7  ;;  %3086 = vmatprep.mubr.bf16.mxu0 %v4136_v8  ;;  %v3942_v7 = vcombine.high %v230_v0, %v234_v2  ;;  %v3946_v8 = vcombine.high %v232_v3, %v236_v4  ;;  %v290_v58 = vld [vmem:[%s5191_s28 + $0x1e8] sm:$0xff]  ;;  %v292_v60 = vld [vmem:[%s5191_s28 + $0x1f8] sm:$0xff] }
 0x107   : > { %2509 = vmatmul.mubr.bf16.gmra.mrb[96].mxu1 %v4131_v13  ;;  %3087 = vmatmul.mubr.bf16.gmra.mrb[96].mxu0 %v4135_v14  ;;  %v3941_v13 = vcombine.low %v230_v0, %v234_v2  ;;  %v3945_v14 = vcombine.low %v232_v3, %v236_v4  ;;  %v294_v0 = vld [vmem:[%s5191_s28 + $0x208] sm:$0xff]  ;;  %v296_v3 = vld [vmem:[%s5191_s28 + $0x218] sm:$0xff] }
 0x108   : > { %2516 = vmatprep.mubr.bf16.mxu1 %v4140_v15  ;;  %3094 = vmatprep.mubr.bf16.mxu0 %v4144_v16  ;;  %v3950_v15 = vcombine.high %v238_v9, %v242_v10  ;;  %v3954_v16 = vcombine.high %v240_v11, %v244_v12  ;;  %v298_v2 = vld [vmem:[%s5191_s28 + $0x228] sm:$0xff]  ;;  %v300_v4 = vld [vmem:[%s5191_s28 + $0x238] sm:$0xff] }
 0x10f   : > { %2517 = vmatmul.mubr.bf16.gmra.mrb[100].mxu1 %v4139_v21  ;;  %3095 = vmatmul.mubr.bf16.gmra.mrb[100].mxu0 %v4143_v22  ;;  %v3949_v21 = vcombine.low %v238_v9, %v242_v10  ;;  %v3953_v22 = vcombine.low %v240_v11, %v244_v12  ;;  %v302_v9 = vld [vmem:[%s5191_s28 + $0x248] sm:$0xff]  ;;  %v304_v11 = vld [vmem:[%s5191_s28 + $0x258] sm:$0xff] }
 0x110   : > { %2524 = vmatprep.mubr.bf16.mxu1 %v4148_v23  ;;  %3102 = vmatprep.mubr.bf16.mxu0 %v4152_v24  ;;  %v3958_v23 = vcombine.high %v246_v17, %v250_v18  ;;  %v3962_v24 = vcombine.high %v248_v19, %v252_v20  ;;  %v306_v10 = vld [vmem:[%s5191_s28 + $0x268] sm:$0xff]  ;;  %v308_v12 = vld [vmem:[%s5191_s28 + $0x278] sm:$0xff] }
 0x117   : > { %2525 = vmatmul.mubr.bf16.gmra.mrb[104].mxu1 %v4147_v29  ;;  %3103 = vmatmul.mubr.bf16.gmra.mrb[104].mxu0 %v4151_v30  ;;  %v3957_v29 = vcombine.low %v246_v17, %v250_v18  ;;  %v3961_v30 = vcombine.low %v248_v19, %v252_v20  ;;  %v310_v17 = vld [vmem:[%s5191_s28 + $0x288] sm:$0xff]  ;;  %v312_v19 = vld [vmem:[%s5191_s28 + $0x298] sm:$0xff] }
 0x118   : > { %2532 = vmatprep.mubr.bf16.mxu1 %v4156_v31  ;;  %3110 = vmatprep.mubr.bf16.mxu0 %v4160_v32  ;;  %v3966_v31 = vcombine.high %v254_v25, %v258_v26  ;;  %v3970_v32 = vcombine.high %v256_v27, %v260_v28  ;;  %v314_v18 = vld [vmem:[%s5191_s28 + $0x2a8] sm:$0xff]  ;;  %v316_v20 = vld [vmem:[%s5191_s28 + $0x2b8] sm:$0xff] }
 0x11f   : > { %2533 = vmatmul.mubr.bf16.gmra.mrb[108].mxu1 %v4155_v37  ;;  %3111 = vmatmul.mubr.bf16.gmra.mrb[108].mxu0 %v4159_v38  ;;  %v3965_v37 = vcombine.low %v254_v25, %v258_v26  ;;  %v3969_v38 = vcombine.low %v256_v27, %v260_v28  ;;  %v318_v25 = vld [vmem:[%s5191_s28 + $0x2c8] sm:$0xff]  ;;  %v320_v27 = vld [vmem:[%s5191_s28 + $0x2d8] sm:$0xff] }
 0x120   : > { %2540 = vmatprep.mubr.bf16.mxu1 %v4164_v39  ;;  %3118 = vmatprep.mubr.bf16.mxu0 %v4168_v40  ;;  %v3974_v39 = vcombine.high %v262_v33, %v266_v34  ;;  %v3978_v40 = vcombine.high %v264_v35, %v268_v36  ;;  %v322_v26 = vld [vmem:[%s5191_s28 + $0x2e8] sm:$0xff]  ;;  %v324_v28 = vld [vmem:[%s5191_s28 + $0x2f8] sm:$0xff] }
 0x127   : > { %2541 = vmatmul.mubr.bf16.gmra.mrb[112].mxu1 %v4163_v45  ;;  %3119 = vmatmul.mubr.bf16.gmra.mrb[112].mxu0 %v4167_v46  ;;  %v3973_v45 = vcombine.low %v262_v33, %v266_v34  ;;  %v3977_v46 = vcombine.low %v264_v35, %v268_v36  ;;  %v326_v33 = vld [vmem:[%s5191_s28 + $0x308] sm:$0xff]  ;;  %v328_v35 = vld [vmem:[%s5191_s28 + $0x318] sm:$0xff] }
 0x128   : > { %2548 = vmatprep.mubr.bf16.mxu1 %v4172_v47  ;;  %3126 = vmatprep.mubr.bf16.mxu0 %v4176_v48  ;;  %v3982_v47 = vcombine.high %v270_v41, %v274_v42  ;;  %v3986_v48 = vcombine.high %v272_v43, %v276_v44  ;;  %v330_v34 = vld [vmem:[%s5191_s28 + $0x328] sm:$0xff]  ;;  %v332_v36 = vld [vmem:[%s5191_s28 + $0x338] sm:$0xff] }
 0x12f   : > { %2549 = vmatmul.mubr.bf16.gmra.mrb[116].mxu1 %v4171_v53  ;;  %3127 = vmatmul.mubr.bf16.gmra.mrb[116].mxu0 %v4175_v54  ;;  %v3981_v53 = vcombine.low %v270_v41, %v274_v42  ;;  %v3985_v54 = vcombine.low %v272_v43, %v276_v44  ;;  %v334_v41 = vld [vmem:[%s5191_s28 + $0x348] sm:$0xff]  ;;  %v336_v43 = vld [vmem:[%s5191_s28 + $0x358] sm:$0xff] }
 0x130   : > { %2556 = vmatprep.mubr.bf16.mxu1 %v4180_v55  ;;  %3134 = vmatprep.mubr.bf16.mxu0 %v4184_v56  ;;  %v3990_v55 = vcombine.high %v278_v49, %v282_v50  ;;  %v3994_v56 = vcombine.high %v280_v51, %v284_v52  ;;  %v338_v42 = vld [vmem:[%s5191_s28 + $0x368] sm:$0xff]  ;;  %v340_v44 = vld [vmem:[%s5191_s28 + $0x378] sm:$0xff] }
 0x137   : > { %2557 = vmatmul.mubr.bf16.gmra.mrb[120].mxu1 %v4179_v61  ;;  %3135 = vmatmul.mubr.bf16.gmra.mrb[120].mxu0 %v4183_v62  ;;  %v3989_v61 = vcombine.low %v278_v49, %v282_v50  ;;  %v3993_v62 = vcombine.low %v280_v51, %v284_v52  ;;  %v342_v49 = vld [vmem:[%s5191_s28 + $0x388] sm:$0xff]  ;;  %v344_v51 = vld [vmem:[%s5191_s28 + $0x398] sm:$0xff] }
 0x138   : > { %2564 = vmatprep.mubr.bf16.mxu1 %v4188_v1  ;;  %3142 = vmatprep.mubr.bf16.mxu0 %v4192_v63  ;;  %v3998_v1 = vcombine.high %v286_v57, %v290_v58  ;;  %v4002_v63 = vcombine.high %v288_v59, %v292_v60  ;;  %v346_v50 = vld [vmem:[%s5191_s28 + $0x3a8] sm:$0xff]  ;;  %v348_v52 = vld [vmem:[%s5191_s28 + $0x3b8] sm:$0xff] }
 0x13f   : > { %2565 = vmatmul.mubr.bf16.gmra.mrb[124].mxu1 %v4187_v5  ;;  %3143 = vmatmul.mubr.bf16.gmra.mrb[124].mxu0 %v4191_v6  ;;  %v3997_v5 = vcombine.low %v286_v57, %v290_v58  ;;  %v4001_v6 = vcombine.low %v288_v59, %v292_v60  ;;  %v350_v57 = vld [vmem:[%s5191_s28 + $0x3c8] sm:$0xff]  ;;  %v352_v59 = vld [vmem:[%s5191_s28 + $0x3d8] sm:$0xff] }
 0x140   : > { %2605 = vmatprep.mubr.bf16.mxu1 %v3942_v7  ;;  %3183 = vmatprep.mubr.bf16.mxu0 %v3946_v8  ;;  %v4006_v7 = vcombine.high %v294_v0, %v298_v2  ;;  %v4010_v8 = vcombine.high %v296_v3, %v300_v4  ;;  %v354_v58 = vld [vmem:[%s5191_s28 + $0x3e8] sm:$0xff]  ;;  %v356_v60 = vld [vmem:[%s5191_s28 + $0x3f8] sm:$0xff] }
 0x147   : > { %2606 = vmatmul.mubr.bf16.vlgmr.msra.gmra.mrb[0].mxu1 %v3941_v13  ;;  %3184 = vmatmul.mubr.bf16.vlgmr.msra.gmra.mrb[0].mxu0 %v3945_v14  ;;  %v4005_v13 = vcombine.low %v294_v0, %v298_v2  ;;  %v4009_v14 = vcombine.low %v296_v3, %v300_v4  ;;  %v358_v0 = vld [vmem:[%s5191_s28 + $0x408] sm:$0xff]  ;;  %v360_v3 = vld [vmem:[%s5191_s28 + $0x418] sm:$0xff] }
 0x148   : > { %2613 = vmatprep.mubr.bf16.mxu1 %v3950_v15  ;;  %3191 = vmatprep.mubr.bf16.mxu0 %v3954_v16  ;;  %v4014_v15 = vcombine.high %v302_v9, %v306_v10  ;;  %v4018_v16 = vcombine.high %v304_v11, %v308_v12  ;;  %v362_v2 = vld [vmem:[%s5191_s28 + $0x428] sm:$0xff]  ;;  %v364_v4 = vld [vmem:[%s5191_s28 + $0x438] sm:$0xff] }
 0x14f   : > { %2614 = vmatmul.mubr.bf16.gmra.mrb[4].mxu1 %v3949_v21  ;;  %3192 = vmatmul.mubr.bf16.gmra.mrb[4].mxu0 %v3953_v22  ;;  %v4013_v21 = vcombine.low %v302_v9, %v306_v10  ;;  %v4017_v22 = vcombine.low %v304_v11, %v308_v12  ;;  %v366_v9 = vld [vmem:[%s5191_s28 + $0x448] sm:$0xff]  ;;  %v368_v11 = vld [vmem:[%s5191_s28 + $0x458] sm:$0xff] }
 0x150   : > { %2621 = vmatprep.mubr.bf16.mxu1 %v3958_v23  ;;  %3199 = vmatprep.mubr.bf16.mxu0 %v3962_v24  ;;  %v4022_v23 = vcombine.high %v310_v17, %v314_v18  ;;  %v4026_v24 = vcombine.high %v312_v19, %v316_v20  ;;  %v370_v10 = vld [vmem:[%s5191_s28 + $0x468] sm:$0xff]  ;;  %v372_v12 = vld [vmem:[%s5191_s28 + $0x478] sm:$0xff] }
 0x157   : > { %2622 = vmatmul.mubr.bf16.gmra.mrb[8].mxu1 %v3957_v29  ;;  %3200 = vmatmul.mubr.bf16.gmra.mrb[8].mxu0 %v3961_v30  ;;  %v4021_v29 = vcombine.low %v310_v17, %v314_v18  ;;  %v4025_v30 = vcombine.low %v312_v19, %v316_v20  ;;  %v374_v17 = vld [vmem:[%s5191_s28 + $0x488] sm:$0xff]  ;;  %v376_v19 = vld [vmem:[%s5191_s28 + $0x498] sm:$0xff] }
 0x158   : > { %2629 = vmatprep.mubr.bf16.mxu1 %v3966_v31  ;;  %3207 = vmatprep.mubr.bf16.mxu0 %v3970_v32  ;;  %v4030_v31 = vcombine.high %v318_v25, %v322_v26  ;;  %v4034_v32 = vcombine.high %v320_v27, %v324_v28  ;;  %v378_v18 = vld [vmem:[%s5191_s28 + $0x4a8] sm:$0xff]  ;;  %v380_v20 = vld [vmem:[%s5191_s28 + $0x4b8] sm:$0xff] }
 0x15f   : > { %2630 = vmatmul.mubr.bf16.gmra.mrb[12].mxu1 %v3965_v37  ;;  %3208 = vmatmul.mubr.bf16.gmra.mrb[12].mxu0 %v3969_v38  ;;  %v4029_v37 = vcombine.low %v318_v25, %v322_v26  ;;  %v4033_v38 = vcombine.low %v320_v27, %v324_v28  ;;  %v382_v25 = vld [vmem:[%s5191_s28 + $0x4c8] sm:$0xff]  ;;  %v384_v27 = vld [vmem:[%s5191_s28 + $0x4d8] sm:$0xff] }
 0x160   : > { %2637 = vmatprep.mubr.bf16.mxu1 %v3974_v39  ;;  %3215 = vmatprep.mubr.bf16.mxu0 %v3978_v40  ;;  %v4038_v39 = vcombine.high %v326_v33, %v330_v34  ;;  %v4042_v40 = vcombine.high %v328_v35, %v332_v36  ;;  %v386_v26 = vld [vmem:[%s5191_s28 + $0x4e8] sm:$0xff]  ;;  %v388_v28 = vld [vmem:[%s5191_s28 + $0x4f8] sm:$0xff] }
 0x167   : > { %2638 = vmatmul.mubr.bf16.gmra.mrb[16].mxu1 %v3973_v45  ;;  %3216 = vmatmul.mubr.bf16.gmra.mrb[16].mxu0 %v3977_v46  ;;  %v4037_v45 = vcombine.low %v326_v33, %v330_v34  ;;  %v4041_v46 = vcombine.low %v328_v35, %v332_v36  ;;  %v390_v33 = vld [vmem:[%s5191_s28 + $0x508] sm:$0xff]  ;;  %v392_v35 = vld [vmem:[%s5191_s28 + $0x518] sm:$0xff] }
 0x168   : > { %2645 = vmatprep.mubr.bf16.mxu1 %v3982_v47  ;;  %3223 = vmatprep.mubr.bf16.mxu0 %v3986_v48  ;;  %v4046_v47 = vcombine.high %v334_v41, %v338_v42  ;;  %v4050_v48 = vcombine.high %v336_v43, %v340_v44  ;;  %v394_v34 = vld [vmem:[%s5191_s28 + $0x528] sm:$0xff]  ;;  %v396_v36 = vld [vmem:[%s5191_s28 + $0x538] sm:$0xff] }
 0x16f   : > { %2646 = vmatmul.mubr.bf16.gmra.mrb[20].mxu1 %v3981_v53  ;;  %3224 = vmatmul.mubr.bf16.gmra.mrb[20].mxu0 %v3985_v54  ;;  %v4045_v53 = vcombine.low %v334_v41, %v338_v42  ;;  %v4049_v54 = vcombine.low %v336_v43, %v340_v44  ;;  %v398_v41 = vld [vmem:[%s5191_s28 + $0x548] sm:$0xff]  ;;  %v400_v43 = vld [vmem:[%s5191_s28 + $0x558] sm:$0xff] }
 0x170   : > { %2653 = vmatprep.mubr.bf16.mxu1 %v3990_v55  ;;  %3231 = vmatprep.mubr.bf16.mxu0 %v3994_v56  ;;  %v4054_v55 = vcombine.high %v342_v49, %v346_v50  ;;  %v4058_v56 = vcombine.high %v344_v51, %v348_v52  ;;  %v402_v42 = vld [vmem:[%s5191_s28 + $0x568] sm:$0xff]  ;;  %v404_v44 = vld [vmem:[%s5191_s28 + $0x578] sm:$0xff] }
 0x177   : > { %2654 = vmatmul.mubr.bf16.gmra.mrb[24].mxu1 %v3989_v61  ;;  %3232 = vmatmul.mubr.bf16.gmra.mrb[24].mxu0 %v3993_v62  ;;  %v4053_v61 = vcombine.low %v342_v49, %v346_v50  ;;  %v4057_v62 = vcombine.low %v344_v51, %v348_v52  ;;  %v406_v49 = vld [vmem:[%s5191_s28 + $0x588] sm:$0xff]  ;;  %v408_v51 = vld [vmem:[%s5191_s28 + $0x598] sm:$0xff] }
 0x178   : > { %2661 = vmatprep.mubr.bf16.mxu1 %v3998_v1  ;;  %3239 = vmatprep.mubr.bf16.mxu0 %v4002_v63  ;;  %v4062_v1 = vcombine.high %v350_v57, %v354_v58  ;;  %v4066_v63 = vcombine.high %v352_v59, %v356_v60  ;;  %v410_v50 = vld [vmem:[%s5191_s28 + $0x5a8] sm:$0xff]  ;;  %v412_v52 = vld [vmem:[%s5191_s28 + $0x5b8] sm:$0xff] }
 0x17f   : > { %2662 = vmatmul.mubr.bf16.gmra.mrb[28].mxu1 %v3997_v5  ;;  %3240 = vmatmul.mubr.bf16.gmra.mrb[28].mxu0 %v4001_v6  ;;  %v4061_v5 = vcombine.low %v350_v57, %v354_v58  ;;  %v4065_v6 = vcombine.low %v352_v59, %v356_v60  ;;  %v414_v57 = vld [vmem:[%s5191_s28 + $0x5c8] sm:$0xff]  ;;  %v416_v59 = vld [vmem:[%s5191_s28 + $0x5d8] sm:$0xff] }
 0x180   : > { %2669 = vmatprep.mubr.bf16.mxu1 %v4006_v7  ;;  %3247 = vmatprep.mubr.bf16.mxu0 %v4010_v8  ;;  %v4070_v7 = vcombine.high %v358_v0, %v362_v2  ;;  %v4074_v8 = vcombine.high %v360_v3, %v364_v4  ;;  %v418_v58 = vld [vmem:[%s5191_s28 + $0x5e8] sm:$0xff]  ;;  %v420_v60 = vld [vmem:[%s5191_s28 + $0x5f8] sm:$0xff] }
 0x187   : > { %2670 = vmatmul.mubr.bf16.gmra.mrb[32].mxu1 %v4005_v13  ;;  %3248 = vmatmul.mubr.bf16.gmra.mrb[32].mxu0 %v4009_v14  ;;  %v4069_v13 = vcombine.low %v358_v0, %v362_v2  ;;  %v4073_v14 = vcombine.low %v360_v3, %v364_v4  ;;  %v422_v0 = vld [vmem:[%s5191_s28 + $0x608] sm:$0xff]  ;;  %v424_v3 = vld [vmem:[%s5191_s28 + $0x618] sm:$0xff] }
 0x188   : > { %2677 = vmatprep.mubr.bf16.mxu1 %v4014_v15  ;;  %3255 = vmatprep.mubr.bf16.mxu0 %v4018_v16  ;;  %v4078_v15 = vcombine.high %v366_v9, %v370_v10  ;;  %v4082_v16 = vcombine.high %v368_v11, %v372_v12  ;;  %v426_v2 = vld [vmem:[%s5191_s28 + $0x628] sm:$0xff]  ;;  %v428_v4 = vld [vmem:[%s5191_s28 + $0x638] sm:$0xff] }
 0x18f   : > { %2678 = vmatmul.mubr.bf16.gmra.mrb[36].mxu1 %v4013_v21  ;;  %3256 = vmatmul.mubr.bf16.gmra.mrb[36].mxu0 %v4017_v22  ;;  %v4077_v21 = vcombine.low %v366_v9, %v370_v10  ;;  %v4081_v22 = vcombine.low %v368_v11, %v372_v12  ;;  %v430_v9 = vld [vmem:[%s5191_s28 + $0x648] sm:$0xff]  ;;  %v432_v11 = vld [vmem:[%s5191_s28 + $0x658] sm:$0xff] }
 0x190   : > { %2685 = vmatprep.mubr.bf16.mxu1 %v4022_v23  ;;  %3263 = vmatprep.mubr.bf16.mxu0 %v4026_v24  ;;  %v4086_v23 = vcombine.high %v374_v17, %v378_v18  ;;  %v4090_v24 = vcombine.high %v376_v19, %v380_v20  ;;  %v434_v10 = vld [vmem:[%s5191_s28 + $0x668] sm:$0xff]  ;;  %v436_v12 = vld [vmem:[%s5191_s28 + $0x678] sm:$0xff] }
 0x197   : > { %2686 = vmatmul.mubr.bf16.gmra.mrb[40].mxu1 %v4021_v29  ;;  %3264 = vmatmul.mubr.bf16.gmra.mrb[40].mxu0 %v4025_v30  ;;  %v4085_v29 = vcombine.low %v374_v17, %v378_v18  ;;  %v4089_v30 = vcombine.low %v376_v19, %v380_v20  ;;  %v438_v17 = vld [vmem:[%s5191_s28 + $0x688] sm:$0xff]  ;;  %v440_v19 = vld [vmem:[%s5191_s28 + $0x698] sm:$0xff] }
 0x198   : > { %2693 = vmatprep.mubr.bf16.mxu1 %v4030_v31  ;;  %3271 = vmatprep.mubr.bf16.mxu0 %v4034_v32  ;;  %v4094_v31 = vcombine.high %v382_v25, %v386_v26  ;;  %v4098_v32 = vcombine.high %v384_v27, %v388_v28  ;;  %v442_v18 = vld [vmem:[%s5191_s28 + $0x6a8] sm:$0xff]  ;;  %v444_v20 = vld [vmem:[%s5191_s28 + $0x6b8] sm:$0xff] }
 0x19f   : > { %2694 = vmatmul.mubr.bf16.gmra.mrb[44].mxu1 %v4029_v37  ;;  %3272 = vmatmul.mubr.bf16.gmra.mrb[44].mxu0 %v4033_v38  ;;  %v4093_v37 = vcombine.low %v382_v25, %v386_v26  ;;  %v4097_v38 = vcombine.low %v384_v27, %v388_v28  ;;  %v446_v25 = vld [vmem:[%s5191_s28 + $0x6c8] sm:$0xff]  ;;  %v448_v27 = vld [vmem:[%s5191_s28 + $0x6d8] sm:$0xff] }
 0x1a0   : > { %2701 = vmatprep.mubr.bf16.mxu1 %v4038_v39  ;;  %3279 = vmatprep.mubr.bf16.mxu0 %v4042_v40  ;;  %v4102_v39 = vcombine.high %v390_v33, %v394_v34  ;;  %v4106_v40 = vcombine.high %v392_v35, %v396_v36  ;;  %v450_v26 = vld [vmem:[%s5191_s28 + $0x6e8] sm:$0xff]  ;;  %v452_v28 = vld [vmem:[%s5191_s28 + $0x6f8] sm:$0xff] }
 0x1a7   : > { %2702 = vmatmul.mubr.bf16.gmra.mrb[48].mxu1 %v4037_v45  ;;  %3280 = vmatmul.mubr.bf16.gmra.mrb[48].mxu0 %v4041_v46  ;;  %v4101_v45 = vcombine.low %v390_v33, %v394_v34  ;;  %v4105_v46 = vcombine.low %v392_v35, %v396_v36  ;;  %v5644_v33 = vld [vmem:[%s5771_s2] ss:$0 sm:$0xff]  ;;  %v454_v34 = vld [vmem:[%s5191_s28 + $0x708] sm:$0xff] }
 0x1a8   : > { %2709 = vmatprep.mubr.bf16.mxu1 %v4046_v47  ;;  %3287 = vmatprep.mubr.bf16.mxu0 %v4050_v48  ;;  %v4110_v47 = vcombine.high %v398_v41, %v402_v42  ;;  %v4114_v48 = vcombine.high %v400_v43, %v404_v44  ;;  %v458_v35 = vld [vmem:[%s5191_s28 + $0x728] sm:$0xff] }
 0x1af   : > { %2710 = vmatmul.mubr.bf16.gmra.mrb[52].mxu1 %v4045_v53  ;;  %3288 = vmatmul.mubr.bf16.gmra.mrb[52].mxu0 %v4049_v54  ;;  %v4109_v53 = vcombine.low %v398_v41, %v402_v42  ;;  %v4113_v54 = vcombine.low %v400_v43, %v404_v44  ;;  %v4157_v42 = vcombine.low %v446_v25, %v450_v26 }
 0x1b0   : > { %2717 = vmatprep.mubr.bf16.mxu1 %v4054_v55  ;;  %3295 = vmatprep.mubr.bf16.mxu0 %v4058_v56  ;;  %v4118_v55 = vcombine.high %v406_v49, %v410_v50  ;;  %v4122_v56 = vcombine.high %v408_v51, %v412_v52 }
 0x1b7   : > { %2718 = vmatmul.mubr.bf16.gmra.mrb[56].mxu1 %v4053_v61  ;;  %3296 = vmatmul.mubr.bf16.gmra.mrb[56].mxu0 %v4057_v62  ;;  %v4117_v61 = vcombine.low %v406_v49, %v410_v50  ;;  %v4121_v62 = vcombine.low %v408_v51, %v412_v52 }
 0x1b8   : > { %2725 = vmatprep.mubr.bf16.mxu1 %v4062_v1  ;;  %3303 = vmatprep.mubr.bf16.mxu0 %v4066_v63  ;;  %v4126_v1 = vcombine.high %v414_v57, %v418_v58  ;;  %v4130_v63 = vcombine.high %v416_v59, %v420_v60 }
 0x1bf   : > { %2726 = vmatmul.mubr.bf16.gmra.mrb[60].mxu1 %v4061_v5  ;;  %3304 = vmatmul.mubr.bf16.gmra.mrb[60].mxu0 %v4065_v6  ;;  %v4125_v5 = vcombine.low %v414_v57, %v418_v58  ;;  %v4129_v6 = vcombine.low %v416_v59, %v420_v60  ;;  %v466_v57 = vld [vmem:[%s5191_s28 + $0x768] sm:$0xff]  ;;  %v464_v59 = vld [vmem:[%s5191_s28 + $0x758] sm:$0xff] }
 0x1c0   : > { %2733 = vmatprep.mubr.bf16.mxu1 %v4070_v7  ;;  %3311 = vmatprep.mubr.bf16.mxu0 %v4074_v8  ;;  %v4134_v7 = vcombine.high %v422_v0, %v426_v2  ;;  %v4138_v8 = vcombine.high %v424_v3, %v428_v4  ;;  %v468_v60 = vld [vmem:[%s5191_s28 + $0x778] sm:$0xff] }
 0x1c7   : > { %2734 = vmatmul.mubr.bf16.gmra.mrb[64].mxu1 %v4069_v13  ;;  %3312 = vmatmul.mubr.bf16.gmra.mrb[64].mxu0 %v4073_v14  ;;  %v4133_v13 = vcombine.low %v422_v0, %v426_v2  ;;  %v4137_v14 = vcombine.low %v424_v3, %v428_v4  ;;  %v4165_v0 = vcombine.low %v454_v34, %v458_v35 }
 0x1c8   : > { %2741 = vmatprep.mubr.bf16.mxu1 %v4078_v15  ;;  %3319 = vmatprep.mubr.bf16.mxu0 %v4082_v16  ;;  %v4142_v15 = vcombine.high %v430_v9, %v434_v10  ;;  %v4146_v16 = vcombine.high %v432_v11, %v436_v12 }
 0x1cf   : > { %2742 = vmatmul.mubr.bf16.gmra.mrb[68].mxu1 %v4077_v21  ;;  %3320 = vmatmul.mubr.bf16.gmra.mrb[68].mxu0 %v4081_v22  ;;  %v4141_v21 = vcombine.low %v430_v9, %v434_v10  ;;  %v4145_v22 = vcombine.low %v432_v11, %v436_v12  ;;  %v4178_v10 = vcombine.high %v464_v59, %v468_v60 }
 0x1d0   : > { %2749 = vmatprep.mubr.bf16.mxu1 %v4086_v23  ;;  %3327 = vmatprep.mubr.bf16.mxu0 %v4090_v24  ;;  %v4150_v23 = vcombine.high %v438_v17, %v442_v18  ;;  %v4154_v24 = vcombine.high %v440_v19, %v444_v20 }
 0x1d7   : > { %2750 = vmatmul.mubr.bf16.gmra.mrb[72].mxu1 %v4085_v29  ;;  %3328 = vmatmul.mubr.bf16.gmra.mrb[72].mxu0 %v4089_v30  ;;  %v4149_v29 = vcombine.low %v438_v17, %v442_v18  ;;  %v4153_v30 = vcombine.low %v440_v19, %v444_v20  ;;  %v472_v18 = vld [vmem:[%s5191_s28 + $0x798] sm:$0xff] }
 0x1d8   : > { %2757 = vmatprep.mubr.bf16.mxu1 %v4094_v31  ;;  %3335 = vmatprep.mubr.bf16.mxu0 %v4098_v32  ;;  %v4158_v31 = vcombine.high %v446_v25, %v450_v26  ;;  %v4162_v32 = vcombine.high %v448_v27, %v452_v28  ;;  %v476_v19 = vld [vmem:[%s5191_s28 + $0x7b8] sm:$0xff] }
 0x1df   : > { %2758 = vmatmul.mubr.bf16.gmra.mrb[76].mxu1 %v4093_v37  ;;  %3336 = vmatmul.mubr.bf16.gmra.mrb[76].mxu0 %v4097_v38  ;;  %v456_v37 = vld [vmem:[%s5191_s28 + $0x718] sm:$0xff] }
 0x1e0   : > { %2765 = vmatprep.mubr.bf16.mxu1 %v4102_v39  ;;  %3343 = vmatprep.mubr.bf16.mxu0 %v4106_v40  ;;  %v460_v38 = vld [vmem:[%s5191_s28 + $0x738] sm:$0xff] }
 0x1e1   : > { %v4170_v51 = vcombine.high %v456_v37, %v460_v38  ;;  %v4169_v4 = vcombine.low %v456_v37, %v460_v38 }
 0x1e7   : > { %2766 = vmatmul.mubr.bf16.gmra.mrb[80].mxu1 %v4101_v45  ;;  %3344 = vmatmul.mubr.bf16.gmra.mrb[80].mxu0 %v4105_v46  ;;  %v4161_v45 = vcombine.low %v448_v27, %v452_v28  ;;  %v4166_v46 = vcombine.high %v454_v34, %v458_v35  ;;  %v4177_v27 = vcombine.low %v464_v59, %v468_v60 }
 0x1e8   : > { %2773 = vmatprep.mubr.bf16.mxu1 %v4110_v47  ;;  %3351 = vmatprep.mubr.bf16.mxu0 %v4114_v48  ;;  %v4186_v34 = vcombine.high %v472_v18, %v476_v19 }
 0x1ef   : > { %2774 = vmatmul.mubr.bf16.gmra.mrb[84].mxu1 %v4109_v53  ;;  %3352 = vmatmul.mubr.bf16.gmra.mrb[84].mxu0 %v4113_v54 }
 0x1f0   : > { %2781 = vmatprep.mubr.bf16.mxu1 %v4118_v55  ;;  %3359 = vmatprep.mubr.bf16.mxu0 %v4122_v56  ;;  %v462_v56 = vld [vmem:[%s5191_s28 + $0x748] sm:$0xff] }
 0x1f7   : > { %2782 = vmatmul.mubr.bf16.gmra.mrb[88].mxu1 %v4117_v61  ;;  %3360 = vmatmul.mubr.bf16.gmra.mrb[88].mxu0 %v4121_v62 }
 0x1f8   : > { %2789 = vmatprep.mubr.bf16.mxu1 %v4126_v1  ;;  %3367 = vmatprep.mubr.bf16.mxu0 %v4130_v63 }
 0x1ff   : > { %2790 = vmatmul.mubr.bf16.gmra.mrb[92].mxu1 %v4125_v5  ;;  %3368 = vmatmul.mubr.bf16.gmra.mrb[92].mxu0 %v4129_v6  ;;  %v4174_v5 = vcombine.high %v462_v56, %v466_v57 }
 0x200   : > { %2797 = vmatprep.mubr.bf16.mxu1 %v4134_v7  ;;  %3375 = vmatprep.mubr.bf16.mxu0 %v4138_v8 }
 0x207   : > { %2798 = vmatmul.mubr.bf16.gmra.mrb[96].mxu1 %v4133_v13  ;;  %3376 = vmatmul.mubr.bf16.gmra.mrb[96].mxu0 %v4137_v14 }
 0x208   : > { %2805 = vmatprep.mubr.bf16.mxu1 %v4142_v15  ;;  %3383 = vmatprep.mubr.bf16.mxu0 %v4146_v16  ;;  %v470_v15 = vld [vmem:[%s5191_s28 + $0x788] sm:$0xff] }
 0x209   : > { %v474_v16 = vld [vmem:[%s5191_s28 + $0x7a8] sm:$0xff] }
 0x20a   : > { %v4182_v28 = vcombine.high %v470_v15, %v474_v16 }
 0x20f   : > { %2806 = vmatmul.mubr.bf16.gmra.mrb[100].mxu1 %v4141_v21  ;;  %3384 = vmatmul.mubr.bf16.gmra.mrb[100].mxu0 %v4145_v22 }
 0x210   : > { %2813 = vmatprep.mubr.bf16.mxu1 %v4150_v23  ;;  %3391 = vmatprep.mubr.bf16.mxu0 %v4154_v24  ;;  %v4173_v24 = vcombine.low %v462_v56, %v466_v57 }
 0x217   : > { %2814 = vmatmul.mubr.bf16.gmra.mrb[104].mxu1 %v4149_v29  ;;  %3392 = vmatmul.mubr.bf16.gmra.mrb[104].mxu0 %v4153_v30 }
 0x218   : > { %2821 = vmatprep.mubr.bf16.mxu1 %v4158_v31  ;;  %3399 = vmatprep.mubr.bf16.mxu0 %v4162_v32 }
 0x21a   : > { %v2607_v36 = vpop.f32.mrb[0].mxu1  ;;  %v3185_v40 = vpop.f32.mrb[0].mxu0 }
 0x21b   : > { %v4581_v39 = vadd.f32 %v5644_v33, %v2607_v36  ;;  %v2609_v41 = vpop.f32.mrb[1].mxu1  ;;  %v3187_v43 = vpop.f32.mrb[1].mxu0 }
 0x21c   : > { %v2610_v44 = vpop.f32.mrb[2].mxu1  ;;  %v3188_v49 = vpop.f32.mrb[2].mxu0  ;;  %v484_v43 = vld [vmem:[%s5191_s28 + $0x7f8] sm:$0xff] }
 0x21d   : > { %v4582_v47 = vadd.f32 %v4581_v39, %v3185_v40  ;;  %v4583_v48 = vadd.f32 %v5644_v33, %v2610_v44  ;;  %v2612_v50 = vpop.f32.mrb[3].mxu1  ;;  %v3190_v52 = vpop.f32.mrb[3].mxu0  ;;  %v478_v39 = vld [vmem:[%s5191_s28 + $0x7c8] sm:$0xff] }
 0x21e   : > { %v482_v40 = vld [vmem:[%s5191_s28 + $0x7e8] sm:$0xff] }
 0x21f   : > { %v4584_v53 = vadd.f32 %v4583_v48, %v3188_v49  ;;  %2822 = vmatmul.mubr.bf16.gmra.mrb[108].mxu1 %v4157_v42  ;;  %3400 = vmatmul.mubr.bf16.gmra.mrb[108].mxu0 %v4161_v45  ;;  %v3440_v54 = vmax.f32 %v4582_v47, 0.0  ;;  %v480_v42 = vld [vmem:[%s5191_s28 + $0x7d8] sm:$0xff]  ;;  %v4181_v48 = vcombine.low %v470_v15, %v474_v16  ;;  %v4190_v52 = vcombine.high %v478_v39, %v482_v40 }
 0x220   : > { %2829 = vmatprep.mubr.bf16.mxu1 %v4166_v46  ;;  %3407 = vmatprep.mubr.bf16.mxu0 %v4170_v51  ;;  %v4185_v51 = vcombine.low %v472_v18, %v476_v19  ;;  %v4194_v57 = vcombine.high %v480_v42, %v484_v43 }
 0x221   : > { %v3441_v55 = vmax.f32 %v4584_v53, 0.0 }
 0x222   : > { %v2615_v58 = vpop.f32.mrb[4].mxu1  ;;  %v3193_v1 = vpop.f32.mrb[4].mxu0 }
 0x223   : > { %v4393_v61 = vpack.c.bf16 %v3441_v55, %v3440_v54  ;;  %v4585_v62 = vadd.f32 %v5644_v33, %v2615_v58  ;;  %v2617_v63 = vpop.f32.mrb[5].mxu1  ;;  %v3195_v2 = vpop.f32.mrb[5].mxu0 }
 0x224   : > { %v2618_v3 = vpop.f32.mrb[6].mxu1  ;;  %v3196_v8 = vpop.f32.mrb[6].mxu0 }
 0x225   : > { %4394 = vst [vmem:[%s5658_s19] sm:$0xff] %v4393_v61   ;;  %v4586_v6 = vadd.f32 %v4585_v62, %v3193_v1  ;;  %v4587_v7 = vadd.f32 %v5644_v33, %v2618_v3  ;;  %v2620_v9 = vpop.f32.mrb[7].mxu1  ;;  %v3198_v11 = vpop.f32.mrb[7].mxu0  ;;  %v4189_v3 = vcombine.low %v478_v39, %v482_v40 }
 0x227   : > { %v4588_v12 = vadd.f32 %v4587_v7, %v3196_v8  ;;  %2830 = vmatmul.mubr.bf16.gmra.mrb[112].mxu1 %v4165_v0  ;;  %3408 = vmatmul.mubr.bf16.gmra.mrb[112].mxu0 %v4169_v4  ;;  %v3442_v13 = vmax.f32 %v4586_v6, 0.0  ;;  %v4193_v6 = vcombine.low %v480_v42, %v484_v43 }
 0x228   : > { %2837 = vmatprep.mubr.bf16.mxu1 %v4174_v5  ;;  %3415 = vmatprep.mubr.bf16.mxu0 %v4178_v10 }
 0x229   : > { %v3443_v14 = vmax.f32 %v4588_v12, 0.0 }
 0x22a   : > { %v2623_v17 = vpop.f32.mrb[8].mxu1  ;;  %v3201_v22 = vpop.f32.mrb[8].mxu0 }
 0x22b   : > { %v4398_v20 = vpack.c.bf16 %v3443_v14, %v3442_v13  ;;  %v4589_v21 = vadd.f32 %v5644_v33, %v2623_v17  ;;  %v2625_v23 = vpop.f32.mrb[9].mxu1  ;;  %v3203_v25 = vpop.f32.mrb[9].mxu0 }
 0x22c   : > { %v2626_v26 = vpop.f32.mrb[10].mxu1  ;;  %v3204_v31 = vpop.f32.mrb[10].mxu0 }
 0x22d   : > { %4550 = vst [vmem:[%s5658_s19 + $0x8] sm:$0xff] %v4398_v20   ;;  %v4590_v29 = vadd.f32 %v4589_v21, %v3201_v22  ;;  %v4591_v30 = vadd.f32 %v5644_v33, %v2626_v26  ;;  %v2628_v32 = vpop.f32.mrb[11].mxu1  ;;  %v3206_v35 = vpop.f32.mrb[11].mxu0 }
 0x22f   : > { %v4592_v36 = vadd.f32 %v4591_v30, %v3204_v31  ;;  %2838 = vmatmul.mubr.bf16.gmra.mrb[116].mxu1 %v4173_v24  ;;  %3416 = vmatmul.mubr.bf16.gmra.mrb[116].mxu0 %v4177_v27  ;;  %v3444_v37 = vmax.f32 %v4590_v29, 0.0 }
 0x230   : > { %2845 = vmatprep.mubr.bf16.mxu1 %v4182_v28  ;;  %3423 = vmatprep.mubr.bf16.mxu0 %v4186_v34 }
 0x231   : > { %v3445_v38 = vmax.f32 %v4592_v36, 0.0 }
 0x232   : > { %v2631_v41 = vpop.f32.mrb[12].mxu1  ;;  %v3209_v46 = vpop.f32.mrb[12].mxu0 }
 0x233   : > { %v4403_v44 = vpack.c.bf16 %v3445_v38, %v3444_v37  ;;  %v4593_v45 = vadd.f32 %v5644_v33, %v2631_v41  ;;  %v2633_v47 = vpop.f32.mrb[13].mxu1  ;;  %v3211_v49 = vpop.f32.mrb[13].mxu0 }
 0x234   : > { %v2634_v50 = vpop.f32.mrb[14].mxu1  ;;  %v3212_v55 = vpop.f32.mrb[14].mxu0 }
 0x235   : > { %4551 = vst [vmem:[%s5658_s19 + $0x10] sm:$0xff] %v4403_v44   ;;  %v4594_v53 = vadd.f32 %v4593_v45, %v3209_v46  ;;  %v4595_v54 = vadd.f32 %v5644_v33, %v2634_v50  ;;  %v2636_v56 = vpop.f32.mrb[15].mxu1  ;;  %v3214_v58 = vpop.f32.mrb[15].mxu0 }
 0x237   : > { %v4596_v59 = vadd.f32 %v4595_v54, %v3212_v55  ;;  %2846 = vmatmul.mubr.bf16.gmra.mrb[120].mxu1 %v4181_v48  ;;  %3424 = vmatmul.mubr.bf16.gmra.mrb[120].mxu0 %v4185_v51  ;;  %v3446_v60 = vmax.f32 %v4594_v53, 0.0 }
 0x238   : > { %2853 = vmatprep.mubr.bf16.mxu1 %v4190_v52  ;;  %3431 = vmatprep.mubr.bf16.mxu0 %v4194_v57 }
 0x239   : > { %v3447_v61 = vmax.f32 %v4596_v59, 0.0 }
 0x23a   : > { %v2639_v62 = vpop.f32.mrb[16].mxu1  ;;  %v3217_v0 = vpop.f32.mrb[16].mxu0 }
 0x23b   : > { %v4408_v1 = vpack.c.bf16 %v3447_v61, %v3446_v60  ;;  %v4597_v63 = vadd.f32 %v5644_v33, %v2639_v62  ;;  %v2641_v2 = vpop.f32.mrb[17].mxu1  ;;  %v3219_v4 = vpop.f32.mrb[17].mxu0 }
 0x23c   : > { %v2642_v5 = vpop.f32.mrb[18].mxu1  ;;  %v3220_v9 = vpop.f32.mrb[18].mxu0 }
 0x23d   : > { %4552 = vst [vmem:[%s5658_s19 + $0x18] sm:$0xff] %v4408_v1   ;;  %v4598_v7 = vadd.f32 %v4597_v63, %v3217_v0  ;;  %v4599_v8 = vadd.f32 %v5644_v33, %v2642_v5  ;;  %v2644_v10 = vpop.f32.mrb[19].mxu1  ;;  %v3222_v11 = vpop.f32.mrb[19].mxu0 }
 0x23f   : > { %v4600_v12 = vadd.f32 %v4599_v8, %v3220_v9  ;;  %2854 = vmatmul.mubr.bf16.gmra.mrb[124].mxu1 %v4189_v3  ;;  %3432 = vmatmul.mubr.bf16.gmra.mrb[124].mxu0 %v4193_v6  ;;  %v3448_v13 = vmax.f32 %v4598_v7, 0.0 }
 0x241   : > { %v3449_v14 = vmax.f32 %v4600_v12, 0.0 }
 0x242   : > { %v2647_v15 = vpop.f32.mrb[20].mxu1  ;;  %v3225_v18 = vpop.f32.mrb[20].mxu0 }
 0x243   : > { %v4413_v16 = vpack.c.bf16 %v3449_v14, %v3448_v13  ;;  %v4601_v17 = vadd.f32 %v5644_v33, %v2647_v15  ;;  %v2649_v19 = vpop.f32.mrb[21].mxu1  ;;  %v3227_v20 = vpop.f32.mrb[21].mxu0 }
 0x244   : > { %v2650_v21 = vpop.f32.mrb[22].mxu1  ;;  %v3228_v24 = vpop.f32.mrb[22].mxu0 }
 0x245   : > { %4553 = vst [vmem:[%s5658_s19 + $0x20] sm:$0xff] %v4413_v16   ;;  %v4602_v22 = vadd.f32 %v4601_v17, %v3225_v18  ;;  %v4603_v23 = vadd.f32 %v5644_v33, %v2650_v21  ;;  %v2652_v25 = vpop.f32.mrb[23].mxu1  ;;  %v3230_v26 = vpop.f32.mrb[23].mxu0 }
 0x247   : > { %v4604_v27 = vadd.f32 %v4603_v23, %v3228_v24  ;;  %v3450_v28 = vmax.f32 %v4602_v22, 0.0 }
 0x249   : > { %v3451_v29 = vmax.f32 %v4604_v27, 0.0 }
 0x24a   : > { %v2655_v30 = vpop.f32.mrb[24].mxu1  ;;  %v3233_v34 = vpop.f32.mrb[24].mxu0 }
 0x24b   : > { %v4418_v31 = vpack.c.bf16 %v3451_v29, %v3450_v28  ;;  %v4605_v32 = vadd.f32 %v5644_v33, %v2655_v30  ;;  %v2657_v35 = vpop.f32.mrb[25].mxu1  ;;  %v3235_v36 = vpop.f32.mrb[25].mxu0 }
 0x24c   : > { %v2658_v37 = vpop.f32.mrb[26].mxu1  ;;  %v3236_v40 = vpop.f32.mrb[26].mxu0 }
 0x24d   : > { %4554 = vst [vmem:[%s5658_s19 + $0x28] sm:$0xff] %v4418_v31   ;;  %v4606_v38 = vadd.f32 %v4605_v32, %v3233_v34  ;;  %v4607_v39 = vadd.f32 %v5644_v33, %v2658_v37  ;;  %v2660_v41 = vpop.f32.mrb[27].mxu1  ;;  %v3238_v42 = vpop.f32.mrb[27].mxu0 }
 0x24f   : > { %v4608_v43 = vadd.f32 %v4607_v39, %v3236_v40  ;;  %v3452_v44 = vmax.f32 %v4606_v38, 0.0 }
 0x251   : > { %v3453_v45 = vmax.f32 %v4608_v43, 0.0 }
 0x252   : > { %v2663_v46 = vpop.f32.mrb[28].mxu1  ;;  %v3241_v49 = vpop.f32.mrb[28].mxu0 }
 0x253   : > { %v4423_v47 = vpack.c.bf16 %v3453_v45, %v3452_v44  ;;  %v4609_v48 = vadd.f32 %v5644_v33, %v2663_v46  ;;  %v2665_v50 = vpop.f32.mrb[29].mxu1  ;;  %v3243_v51 = vpop.f32.mrb[29].mxu0 }
 0x254   : > { %v2666_v52 = vpop.f32.mrb[30].mxu1  ;;  %v3244_v55 = vpop.f32.mrb[30].mxu0 }
 0x255   : > { %4555 = vst [vmem:[%s5658_s19 + $0x30] sm:$0xff] %v4423_v47   ;;  %v4610_v53 = vadd.f32 %v4609_v48, %v3241_v49  ;;  %v4611_v54 = vadd.f32 %v5644_v33, %v2666_v52  ;;  %v2668_v56 = vpop.f32.mrb[31].mxu1  ;;  %v3246_v57 = vpop.f32.mrb[31].mxu0 }
 0x257   : > { %v4612_v58 = vadd.f32 %v4611_v54, %v3244_v55  ;;  %v3454_v59 = vmax.f32 %v4610_v53, 0.0 }
 0x259   : > { %v3455_v60 = vmax.f32 %v4612_v58, 0.0 }
 0x25a   : > { %v2671_v61 = vpop.f32.mrb[32].mxu1  ;;  %v3249_v63 = vpop.f32.mrb[32].mxu0 }
 0x25b   : > { %v4428_v62 = vpack.c.bf16 %v3455_v60, %v3454_v59  ;;  %v4613_v1 = vadd.f32 %v5644_v33, %v2671_v61  ;;  %v2673_v0 = vpop.f32.mrb[33].mxu1  ;;  %v3251_v2 = vpop.f32.mrb[33].mxu0 }
 0x25c   : > { %v2674_v3 = vpop.f32.mrb[34].mxu1  ;;  %v3252_v6 = vpop.f32.mrb[34].mxu0 }
 0x25d   : > { %4556 = vst [vmem:[%s5658_s19 + $0x38] sm:$0xff] %v4428_v62   ;;  %v4614_v4 = vadd.f32 %v4613_v1, %v3249_v63  ;;  %v4615_v5 = vadd.f32 %v5644_v33, %v2674_v3  ;;  %v2676_v7 = vpop.f32.mrb[35].mxu1  ;;  %v3254_v8 = vpop.f32.mrb[35].mxu0 }
 0x25f   : > { %v4616_v9 = vadd.f32 %v4615_v5, %v3252_v6  ;;  %v3456_v10 = vmax.f32 %v4614_v4, 0.0 }
 0x261   : > { %v3457_v11 = vmax.f32 %v4616_v9, 0.0 }
 0x262   : > { %v2679_v12 = vpop.f32.mrb[36].mxu1  ;;  %v3257_v15 = vpop.f32.mrb[36].mxu0 }
 0x263   : > { %v4433_v13 = vpack.c.bf16 %v3457_v11, %v3456_v10  ;;  %v4617_v14 = vadd.f32 %v5644_v33, %v2679_v12  ;;  %v2681_v16 = vpop.f32.mrb[37].mxu1  ;;  %v3259_v17 = vpop.f32.mrb[37].mxu0 }
 0x264   : > { %v2682_v18 = vpop.f32.mrb[38].mxu1  ;;  %v3260_v21 = vpop.f32.mrb[38].mxu0 }
 0x265   : > { %4557 = vst [vmem:[%s5658_s19 + $0x40] sm:$0xff] %v4433_v13   ;;  %v4618_v19 = vadd.f32 %v4617_v14, %v3257_v15  ;;  %v4619_v20 = vadd.f32 %v5644_v33, %v2682_v18  ;;  %v2684_v22 = vpop.f32.mrb[39].mxu1  ;;  %v3262_v23 = vpop.f32.mrb[39].mxu0 }
 0x267   : > { %v4620_v24 = vadd.f32 %v4619_v20, %v3260_v21  ;;  %v3458_v25 = vmax.f32 %v4618_v19, 0.0 }
 0x269   : > { %v3459_v26 = vmax.f32 %v4620_v24, 0.0 }
 0x26a   : > { %v2687_v27 = vpop.f32.mrb[40].mxu1  ;;  %v3265_v30 = vpop.f32.mrb[40].mxu0 }
 0x26b   : > { %v4438_v28 = vpack.c.bf16 %v3459_v26, %v3458_v25  ;;  %v4621_v29 = vadd.f32 %v5644_v33, %v2687_v27  ;;  %v2689_v31 = vpop.f32.mrb[41].mxu1  ;;  %v3267_v32 = vpop.f32.mrb[41].mxu0 }
 0x26c   : > { %v2690_v34 = vpop.f32.mrb[42].mxu1  ;;  %v3268_v37 = vpop.f32.mrb[42].mxu0 }
 0x26d   : > { %4558 = vst [vmem:[%s5658_s19 + $0x48] sm:$0xff] %v4438_v28   ;;  %v4622_v35 = vadd.f32 %v4621_v29, %v3265_v30  ;;  %v4623_v36 = vadd.f32 %v5644_v33, %v2690_v34  ;;  %v2692_v38 = vpop.f32.mrb[43].mxu1  ;;  %v3270_v39 = vpop.f32.mrb[43].mxu0 }
 0x26f   : > { %v4624_v40 = vadd.f32 %v4623_v36, %v3268_v37  ;;  %v3460_v41 = vmax.f32 %v4622_v35, 0.0 }
 0x271   : > { %v3461_v42 = vmax.f32 %v4624_v40, 0.0 }
 0x272   : > { %v2695_v43 = vpop.f32.mrb[44].mxu1  ;;  %v3273_v46 = vpop.f32.mrb[44].mxu0 }
 0x273   : > { %v4443_v44 = vpack.c.bf16 %v3461_v42, %v3460_v41  ;;  %v4625_v45 = vadd.f32 %v5644_v33, %v2695_v43  ;;  %v2697_v47 = vpop.f32.mrb[45].mxu1  ;;  %v3275_v48 = vpop.f32.mrb[45].mxu0 }
 0x274   : > { %v2698_v49 = vpop.f32.mrb[46].mxu1  ;;  %v3276_v52 = vpop.f32.mrb[46].mxu0 }
 0x275   : > { %4559 = vst [vmem:[%s5658_s19 + $0x50] sm:$0xff] %v4443_v44   ;;  %v4626_v50 = vadd.f32 %v4625_v45, %v3273_v46  ;;  %v4627_v51 = vadd.f32 %v5644_v33, %v2698_v49  ;;  %v2700_v53 = vpop.f32.mrb[47].mxu1  ;;  %v3278_v54 = vpop.f32.mrb[47].mxu0 }
 0x277   : > { %v4628_v55 = vadd.f32 %v4627_v51, %v3276_v52  ;;  %v3462_v56 = vmax.f32 %v4626_v50, 0.0 }
 0x279   : > { %v3463_v57 = vmax.f32 %v4628_v55, 0.0 }
 0x27a   : > { %v2703_v58 = vpop.f32.mrb[48].mxu1  ;;  %v3281_v61 = vpop.f32.mrb[48].mxu0 }
 0x27b   : > { %v4448_v59 = vpack.c.bf16 %v3463_v57, %v3462_v56  ;;  %v4629_v60 = vadd.f32 %v5644_v33, %v2703_v58  ;;  %v2705_v62 = vpop.f32.mrb[49].mxu1  ;;  %v3283_v1 = vpop.f32.mrb[49].mxu0 }
 0x27c   : > { %v2706_v63 = vpop.f32.mrb[50].mxu1  ;;  %v3284_v3 = vpop.f32.mrb[50].mxu0 }
 0x27d   : > { %4560 = vst [vmem:[%s5658_s19 + $0x58] sm:$0xff] %v4448_v59   ;;  %v4630_v0 = vadd.f32 %v4629_v60, %v3281_v61  ;;  %v4631_v2 = vadd.f32 %v5644_v33, %v2706_v63  ;;  %v2708_v4 = vpop.f32.mrb[51].mxu1  ;;  %v3286_v5 = vpop.f32.mrb[51].mxu0 }
 0x27f   : > { %v4632_v6 = vadd.f32 %v4631_v2, %v3284_v3  ;;  %v3464_v7 = vmax.f32 %v4630_v0, 0.0 }
 0x281   : > { %v3465_v8 = vmax.f32 %v4632_v6, 0.0 }
 0x282   : > { %v2711_v9 = vpop.f32.mrb[52].mxu1  ;;  %v3289_v12 = vpop.f32.mrb[52].mxu0 }
 0x283   : > { %v4453_v10 = vpack.c.bf16 %v3465_v8, %v3464_v7  ;;  %v4633_v11 = vadd.f32 %v5644_v33, %v2711_v9  ;;  %v2713_v13 = vpop.f32.mrb[53].mxu1  ;;  %v3291_v14 = vpop.f32.mrb[53].mxu0 }
 0x284   : > { %v2714_v15 = vpop.f32.mrb[54].mxu1  ;;  %v3292_v18 = vpop.f32.mrb[54].mxu0 }
 0x285   : > { %4561 = vst [vmem:[%s5658_s19 + $0x60] sm:$0xff] %v4453_v10   ;;  %v4634_v16 = vadd.f32 %v4633_v11, %v3289_v12  ;;  %v4635_v17 = vadd.f32 %v5644_v33, %v2714_v15  ;;  %v2716_v19 = vpop.f32.mrb[55].mxu1  ;;  %v3294_v20 = vpop.f32.mrb[55].mxu0 }
 0x287   : > { %v4636_v21 = vadd.f32 %v4635_v17, %v3292_v18  ;;  %v3466_v22 = vmax.f32 %v4634_v16, 0.0 }
 0x289   : > { %v3467_v23 = vmax.f32 %v4636_v21, 0.0 }
 0x28a   : > { %v2719_v24 = vpop.f32.mrb[56].mxu1  ;;  %v3297_v27 = vpop.f32.mrb[56].mxu0 }
 0x28b   : > { %v4458_v25 = vpack.c.bf16 %v3467_v23, %v3466_v22  ;;  %v4637_v26 = vadd.f32 %v5644_v33, %v2719_v24  ;;  %v2721_v28 = vpop.f32.mrb[57].mxu1  ;;  %v3299_v29 = vpop.f32.mrb[57].mxu0 }
 0x28c   : > { %v2722_v30 = vpop.f32.mrb[58].mxu1  ;;  %v3300_v34 = vpop.f32.mrb[58].mxu0 }
 0x28d   : > { %4562 = vst [vmem:[%s5658_s19 + $0x68] sm:$0xff] %v4458_v25   ;;  %v4638_v31 = vadd.f32 %v4637_v26, %v3297_v27  ;;  %v4639_v32 = vadd.f32 %v5644_v33, %v2722_v30  ;;  %v2724_v35 = vpop.f32.mrb[59].mxu1  ;;  %v3302_v36 = vpop.f32.mrb[59].mxu0 }
 0x28f   : > { %v4640_v37 = vadd.f32 %v4639_v32, %v3300_v34  ;;  %v3468_v38 = vmax.f32 %v4638_v31, 0.0 }
 0x291   : > { %v3469_v39 = vmax.f32 %v4640_v37, 0.0 }
 0x292   : > { %v2727_v40 = vpop.f32.mrb[60].mxu1  ;;  %v3305_v43 = vpop.f32.mrb[60].mxu0 }
 0x293   : > { %v4463_v41 = vpack.c.bf16 %v3469_v39, %v3468_v38  ;;  %v4641_v42 = vadd.f32 %v5644_v33, %v2727_v40  ;;  %v2729_v44 = vpop.f32.mrb[61].mxu1  ;;  %v3307_v45 = vpop.f32.mrb[61].mxu0 }
 0x294   : > { %v2730_v46 = vpop.f32.mrb[62].mxu1  ;;  %v3308_v49 = vpop.f32.mrb[62].mxu0 }
 0x295   : > { %4563 = vst [vmem:[%s5658_s19 + $0x70] sm:$0xff] %v4463_v41   ;;  %v4642_v47 = vadd.f32 %v4641_v42, %v3305_v43  ;;  %v4643_v48 = vadd.f32 %v5644_v33, %v2730_v46  ;;  %v2732_v50 = vpop.f32.mrb[63].mxu1  ;;  %v3310_v51 = vpop.f32.mrb[63].mxu0 }
 0x297   : > { %v4644_v52 = vadd.f32 %v4643_v48, %v3308_v49  ;;  %v3470_v53 = vmax.f32 %v4642_v47, 0.0 }
 0x299   : > { %v3471_v54 = vmax.f32 %v4644_v52, 0.0 }
 0x29a   : > { %v2735_v55 = vpop.f32.mrb[64].mxu1  ;;  %v3313_v58 = vpop.f32.mrb[64].mxu0 }
 0x29b   : > { %v4468_v56 = vpack.c.bf16 %v3471_v54, %v3470_v53  ;;  %v4645_v57 = vadd.f32 %v5644_v33, %v2735_v55  ;;  %v2737_v59 = vpop.f32.mrb[65].mxu1  ;;  %v3315_v60 = vpop.f32.mrb[65].mxu0 }
 0x29c   : > { %v2738_v61 = vpop.f32.mrb[66].mxu1  ;;  %v3316_v63 = vpop.f32.mrb[66].mxu0 }
 0x29d   : > { %4564 = vst [vmem:[%s5658_s19 + $0x78] sm:$0xff] %v4468_v56   ;;  %v4646_v62 = vadd.f32 %v4645_v57, %v3313_v58  ;;  %v4647_v1 = vadd.f32 %v5644_v33, %v2738_v61  ;;  %v2740_v0 = vpop.f32.mrb[67].mxu1  ;;  %v3318_v2 = vpop.f32.mrb[67].mxu0 }
 0x29f   : > { %v4648_v3 = vadd.f32 %v4647_v1, %v3316_v63  ;;  %v3472_v4 = vmax.f32 %v4646_v62, 0.0 }
 0x2a1   : > { %v3473_v5 = vmax.f32 %v4648_v3, 0.0 }
 0x2a2   : > { %v2743_v6 = vpop.f32.mrb[68].mxu1  ;;  %v3321_v9 = vpop.f32.mrb[68].mxu0 }
 0x2a3   : > { %v4473_v7 = vpack.c.bf16 %v3473_v5, %v3472_v4  ;;  %v4649_v8 = vadd.f32 %v5644_v33, %v2743_v6  ;;  %v2745_v10 = vpop.f32.mrb[69].mxu1  ;;  %v3323_v11 = vpop.f32.mrb[69].mxu0 }
 0x2a4   : > { %v2746_v12 = vpop.f32.mrb[70].mxu1  ;;  %v3324_v15 = vpop.f32.mrb[70].mxu0 }
 0x2a5   : > { %4565 = vst [vmem:[%s5658_s19 + $0x80] sm:$0xff] %v4473_v7   ;;  %v4650_v13 = vadd.f32 %v4649_v8, %v3321_v9  ;;  %v4651_v14 = vadd.f32 %v5644_v33, %v2746_v12  ;;  %v2748_v16 = vpop.f32.mrb[71].mxu1  ;;  %v3326_v17 = vpop.f32.mrb[71].mxu0 }
 0x2a7   : > { %v4652_v18 = vadd.f32 %v4651_v14, %v3324_v15  ;;  %v3474_v19 = vmax.f32 %v4650_v13, 0.0 }
 0x2a9   : > { %v3475_v20 = vmax.f32 %v4652_v18, 0.0 }
 0x2aa   : > { %v2751_v21 = vpop.f32.mrb[72].mxu1  ;;  %v3329_v24 = vpop.f32.mrb[72].mxu0 }
 0x2ab   : > { %v4478_v22 = vpack.c.bf16 %v3475_v20, %v3474_v19  ;;  %v4653_v23 = vadd.f32 %v5644_v33, %v2751_v21  ;;  %v2753_v25 = vpop.f32.mrb[73].mxu1  ;;  %v3331_v26 = vpop.f32.mrb[73].mxu0 }
 0x2ac   : > { %v2754_v27 = vpop.f32.mrb[74].mxu1  ;;  %v3332_v30 = vpop.f32.mrb[74].mxu0 }
 0x2ad   : > { %4566 = vst [vmem:[%s5658_s19 + $0x88] sm:$0xff] %v4478_v22   ;;  %v4654_v28 = vadd.f32 %v4653_v23, %v3329_v24  ;;  %v4655_v29 = vadd.f32 %v5644_v33, %v2754_v27  ;;  %v2756_v31 = vpop.f32.mrb[75].mxu1  ;;  %v3334_v32 = vpop.f32.mrb[75].mxu0 }
 0x2af   : > { %v4656_v34 = vadd.f32 %v4655_v29, %v3332_v30  ;;  %v3476_v35 = vmax.f32 %v4654_v28, 0.0 }
 0x2b1   : > { %v3477_v36 = vmax.f32 %v4656_v34, 0.0 }
 0x2b2   : > { %v2759_v37 = vpop.f32.mrb[76].mxu1  ;;  %v3337_v40 = vpop.f32.mrb[76].mxu0 }
 0x2b3   : > { %v4483_v38 = vpack.c.bf16 %v3477_v36, %v3476_v35  ;;  %v4657_v39 = vadd.f32 %v5644_v33, %v2759_v37  ;;  %v2761_v41 = vpop.f32.mrb[77].mxu1  ;;  %v3339_v42 = vpop.f32.mrb[77].mxu0 }
 0x2b4   : > { %v2762_v43 = vpop.f32.mrb[78].mxu1  ;;  %v3340_v46 = vpop.f32.mrb[78].mxu0 }
 0x2b5   : > { %4567 = vst [vmem:[%s5658_s19 + $0x90] sm:$0xff] %v4483_v38   ;;  %v4658_v44 = vadd.f32 %v4657_v39, %v3337_v40  ;;  %v4659_v45 = vadd.f32 %v5644_v33, %v2762_v43  ;;  %v2764_v47 = vpop.f32.mrb[79].mxu1  ;;  %v3342_v48 = vpop.f32.mrb[79].mxu0 }
 0x2b7   : > { %v4660_v49 = vadd.f32 %v4659_v45, %v3340_v46  ;;  %v3478_v50 = vmax.f32 %v4658_v44, 0.0 }
 0x2b9   : > { %v3479_v51 = vmax.f32 %v4660_v49, 0.0 }
 0x2ba   : > { %v2767_v52 = vpop.f32.mrb[80].mxu1  ;;  %v3345_v55 = vpop.f32.mrb[80].mxu0 }
 0x2bb   : > { %v4488_v53 = vpack.c.bf16 %v3479_v51, %v3478_v50  ;;  %v4661_v54 = vadd.f32 %v5644_v33, %v2767_v52  ;;  %v2769_v56 = vpop.f32.mrb[81].mxu1  ;;  %v3347_v57 = vpop.f32.mrb[81].mxu0 }
 0x2bc   : > { %v2770_v58 = vpop.f32.mrb[82].mxu1  ;;  %v3348_v61 = vpop.f32.mrb[82].mxu0 }
 0x2bd   : > { %4568 = vst [vmem:[%s5658_s19 + $0x98] sm:$0xff] %v4488_v53   ;;  %v4662_v59 = vadd.f32 %v4661_v54, %v3345_v55  ;;  %v4663_v60 = vadd.f32 %v5644_v33, %v2770_v58  ;;  %v2772_v62 = vpop.f32.mrb[83].mxu1  ;;  %v3350_v1 = vpop.f32.mrb[83].mxu0 }
 0x2bf   : > { %v4664_v63 = vadd.f32 %v4663_v60, %v3348_v61  ;;  %v3480_v0 = vmax.f32 %v4662_v59, 0.0 }
 0x2c1   : > { %v3481_v2 = vmax.f32 %v4664_v63, 0.0 }
 0x2c2   : > { %v2775_v3 = vpop.f32.mrb[84].mxu1  ;;  %v3353_v6 = vpop.f32.mrb[84].mxu0 }
 0x2c3   : > { %v4493_v4 = vpack.c.bf16 %v3481_v2, %v3480_v0  ;;  %v4665_v5 = vadd.f32 %v5644_v33, %v2775_v3  ;;  %v2777_v7 = vpop.f32.mrb[85].mxu1  ;;  %v3355_v8 = vpop.f32.mrb[85].mxu0 }
 0x2c4   : > { %v2778_v9 = vpop.f32.mrb[86].mxu1  ;;  %v3356_v12 = vpop.f32.mrb[86].mxu0 }
 0x2c5   : > { %4569 = vst [vmem:[%s5658_s19 + $0xa0] sm:$0xff] %v4493_v4   ;;  %v4666_v10 = vadd.f32 %v4665_v5, %v3353_v6  ;;  %v4667_v11 = vadd.f32 %v5644_v33, %v2778_v9  ;;  %v2780_v13 = vpop.f32.mrb[87].mxu1  ;;  %v3358_v14 = vpop.f32.mrb[87].mxu0 }
 0x2c7   : > { %v4668_v15 = vadd.f32 %v4667_v11, %v3356_v12  ;;  %v3482_v16 = vmax.f32 %v4666_v10, 0.0 }
 0x2c9   : > { %v3483_v17 = vmax.f32 %v4668_v15, 0.0 }
 0x2ca   : > { %v2783_v18 = vpop.f32.mrb[88].mxu1  ;;  %v3361_v21 = vpop.f32.mrb[88].mxu0 }
 0x2cb   : > { %v4498_v19 = vpack.c.bf16 %v3483_v17, %v3482_v16  ;;  %v4669_v20 = vadd.f32 %v5644_v33, %v2783_v18  ;;  %v2785_v22 = vpop.f32.mrb[89].mxu1  ;;  %v3363_v23 = vpop.f32.mrb[89].mxu0 }
 0x2cc   : > { %v2786_v24 = vpop.f32.mrb[90].mxu1  ;;  %v3364_v27 = vpop.f32.mrb[90].mxu0 }
 0x2cd   : > { %4570 = vst [vmem:[%s5658_s19 + $0xa8] sm:$0xff] %v4498_v19   ;;  %v4670_v25 = vadd.f32 %v4669_v20, %v3361_v21  ;;  %v4671_v26 = vadd.f32 %v5644_v33, %v2786_v24  ;;  %v2788_v28 = vpop.f32.mrb[91].mxu1  ;;  %v3366_v29 = vpop.f32.mrb[91].mxu0 }
 0x2cf   : > { %v4672_v30 = vadd.f32 %v4671_v26, %v3364_v27  ;;  %v3484_v31 = vmax.f32 %v4670_v25, 0.0 }
 0x2d1   : > { %v3485_v32 = vmax.f32 %v4672_v30, 0.0 }
 0x2d2   : > { %v2791_v34 = vpop.f32.mrb[92].mxu1  ;;  %v3369_v37 = vpop.f32.mrb[92].mxu0 }
 0x2d3   : > { %v4503_v35 = vpack.c.bf16 %v3485_v32, %v3484_v31  ;;  %v4673_v36 = vadd.f32 %v5644_v33, %v2791_v34  ;;  %v2793_v38 = vpop.f32.mrb[93].mxu1  ;;  %v3371_v39 = vpop.f32.mrb[93].mxu0 }
 0x2d4   : > { %v2794_v40 = vpop.f32.mrb[94].mxu1  ;;  %v3372_v43 = vpop.f32.mrb[94].mxu0 }
 0x2d5   : > { %4571 = vst [vmem:[%s5658_s19 + $0xb0] sm:$0xff] %v4503_v35   ;;  %v4674_v41 = vadd.f32 %v4673_v36, %v3369_v37  ;;  %v4675_v42 = vadd.f32 %v5644_v33, %v2794_v40  ;;  %v2796_v44 = vpop.f32.mrb[95].mxu1  ;;  %v3374_v45 = vpop.f32.mrb[95].mxu0 }
 0x2d7   : > { %v4676_v46 = vadd.f32 %v4675_v42, %v3372_v43  ;;  %v3486_v47 = vmax.f32 %v4674_v41, 0.0 }
 0x2d9   : > { %v3487_v48 = vmax.f32 %v4676_v46, 0.0 }
 0x2da   : > { %v2799_v49 = vpop.f32.mrb[96].mxu1  ;;  %v3377_v52 = vpop.f32.mrb[96].mxu0 }
 0x2db   : > { %v4508_v50 = vpack.c.bf16 %v3487_v48, %v3486_v47  ;;  %v4677_v51 = vadd.f32 %v5644_v33, %v2799_v49  ;;  %v2801_v53 = vpop.f32.mrb[97].mxu1  ;;  %v3379_v54 = vpop.f32.mrb[97].mxu0 }
 0x2dc   : > { %v2802_v55 = vpop.f32.mrb[98].mxu1  ;;  %v3380_v58 = vpop.f32.mrb[98].mxu0  ;;  %v5054_v54 = vld [vmem:[%s5771_s2] ss:$0 sm:$0xff] }
 0x2dd   : > { %4572 = vst [vmem:[%s5658_s19 + $0xb8] sm:$0xff] %v4508_v50   ;;  %v4678_v56 = vadd.f32 %v4677_v51, %v3377_v52  ;;  %v4679_v57 = vadd.f32 %v5644_v33, %v2802_v55  ;;  %v2804_v59 = vpop.f32.mrb[99].mxu1  ;;  %v3382_v60 = vpop.f32.mrb[99].mxu0 }
 0x2df   : > { %v4680_v61 = vadd.f32 %v4679_v57, %v3380_v58  ;;  %v3488_v62 = vmax.f32 %v4678_v56, 0.0 }
 0x2e1   : > { %v3489_v1 = vmax.f32 %v4680_v61, 0.0 }
 0x2e2   : > { %v2807_v63 = vpop.f32.mrb[100].mxu1  ;;  %v3385_v3 = vpop.f32.mrb[100].mxu0 }
 0x2e3   : > { %v4513_v0 = vpack.c.bf16 %v3489_v1, %v3488_v62  ;;  %v4681_v2 = vadd.f32 %v5644_v33, %v2807_v63  ;;  %v2809_v4 = vpop.f32.mrb[101].mxu1  ;;  %v3387_v5 = vpop.f32.mrb[101].mxu0 }
 0x2e4   : > { %v2810_v6 = vpop.f32.mrb[102].mxu1  ;;  %v3388_v9 = vpop.f32.mrb[102].mxu0 }
 0x2e5   : > { %4573 = vst [vmem:[%s5658_s19 + $0xc0] sm:$0xff] %v4513_v0   ;;  %v4682_v7 = vadd.f32 %v4681_v2, %v3385_v3  ;;  %v4683_v8 = vadd.f32 %v5644_v33, %v2810_v6  ;;  %v2812_v10 = vpop.f32.mrb[103].mxu1  ;;  %v3390_v11 = vpop.f32.mrb[103].mxu0 }
 0x2e7   : > { %v4684_v12 = vadd.f32 %v4683_v8, %v3388_v9  ;;  %v3490_v13 = vmax.f32 %v4682_v7, 0.0 }
 0x2e9   : > { %v3491_v14 = vmax.f32 %v4684_v12, 0.0 }
 0x2ea   : > { %v2815_v15 = vpop.f32.mrb[104].mxu1  ;;  %v3393_v18 = vpop.f32.mrb[104].mxu0 }
 0x2eb   : > { %v4518_v16 = vpack.c.bf16 %v3491_v14, %v3490_v13  ;;  %v4685_v17 = vadd.f32 %v5644_v33, %v2815_v15  ;;  %v2817_v19 = vpop.f32.mrb[105].mxu1  ;;  %v3395_v20 = vpop.f32.mrb[105].mxu0 }
 0x2ec   : > { %v2818_v21 = vpop.f32.mrb[106].mxu1  ;;  %v3396_v24 = vpop.f32.mrb[106].mxu0 }
 0x2ed   : > { %4574 = vst [vmem:[%s5658_s19 + $0xc8] sm:$0xff] %v4518_v16   ;;  %v4686_v22 = vadd.f32 %v4685_v17, %v3393_v18  ;;  %v4687_v23 = vadd.f32 %v5644_v33, %v2818_v21  ;;  %v2820_v25 = vpop.f32.mrb[107].mxu1  ;;  %v3398_v26 = vpop.f32.mrb[107].mxu0 }
 0x2ef   : > { %v4688_v27 = vadd.f32 %v4687_v23, %v3396_v24  ;;  %v3492_v28 = vmax.f32 %v4686_v22, 0.0 }
 0x2f1   : > { %v3493_v29 = vmax.f32 %v4688_v27, 0.0 }
 0x2f2   : > { %v2823_v30 = vpop.f32.mrb[108].mxu1  ;;  %v3401_v34 = vpop.f32.mrb[108].mxu0 }
 0x2f3   : > { %v4523_v31 = vpack.c.bf16 %v3493_v29, %v3492_v28  ;;  %v4689_v32 = vadd.f32 %v5644_v33, %v2823_v30  ;;  %v2825_v35 = vpop.f32.mrb[109].mxu1  ;;  %v3403_v36 = vpop.f32.mrb[109].mxu0 }
 0x2f4   : > { %v2826_v37 = vpop.f32.mrb[110].mxu1  ;;  %v3404_v40 = vpop.f32.mrb[110].mxu0 }
 0x2f5   : > { %4575 = vst [vmem:[%s5658_s19 + $0xd0] sm:$0xff] %v4523_v31   ;;  %v4690_v38 = vadd.f32 %v4689_v32, %v3401_v34  ;;  %v4691_v39 = vadd.f32 %v5644_v33, %v2826_v37  ;;  %v2828_v41 = vpop.f32.mrb[111].mxu1  ;;  %v3406_v42 = vpop.f32.mrb[111].mxu0 }
 0x2f7   : > { %v4692_v43 = vadd.f32 %v4691_v39, %v3404_v40  ;;  %v3494_v44 = vmax.f32 %v4690_v38, 0.0 }
 0x2f9   : > { %v3495_v45 = vmax.f32 %v4692_v43, 0.0 }
 0x2fa   : > { %v2831_v46 = vpop.f32.mrb[112].mxu1  ;;  %v3409_v49 = vpop.f32.mrb[112].mxu0 }
 0x2fb   : > { %v4528_v47 = vpack.c.bf16 %v3495_v45, %v3494_v44  ;;  %v4693_v48 = vadd.f32 %v5644_v33, %v2831_v46  ;;  %v2833_v50 = vpop.f32.mrb[113].mxu1  ;;  %v3411_v51 = vpop.f32.mrb[113].mxu0 }
 0x2fc   : > { %v2834_v52 = vpop.f32.mrb[114].mxu1  ;;  %v3412_v56 = vpop.f32.mrb[114].mxu0 }
 0x2fd   : > { %4576 = vst [vmem:[%s5658_s19 + $0xd8] sm:$0xff] %v4528_v47   ;;  %v4694_v53 = vadd.f32 %v4693_v48, %v3409_v49  ;;  %v4695_v55 = vadd.f32 %v5054_v54, %v2834_v52  ;;  %v2836_v57 = vpop.f32.mrb[115].mxu1  ;;  %v3414_v58 = vpop.f32.mrb[115].mxu0 }
 0x2ff   : > { %v4696_v59 = vadd.f32 %v4695_v55, %v3412_v56  ;;  %v3496_v60 = vmax.f32 %v4694_v53, 0.0 }
 0x301   : > { %v3497_v61 = vmax.f32 %v4696_v59, 0.0 }
 0x302   : > { %v2839_v62 = vpop.f32.mrb[116].mxu1  ;;  %v3417_v63 = vpop.f32.mrb[116].mxu0 }
 0x303   : > { %v4533_v33 = vpack.c.bf16 %v3497_v61, %v3496_v60  ;;  %v4697_v1 = vadd.f32 %v5054_v54, %v2839_v62  ;;  %v2841_v0 = vpop.f32.mrb[117].mxu1  ;;  %v3419_v2 = vpop.f32.mrb[117].mxu0 }
 0x304   : > { %v2842_v3 = vpop.f32.mrb[118].mxu1  ;;  %v3420_v6 = vpop.f32.mrb[118].mxu0 }
 0x305   : > { %4577 = vst [vmem:[%s5658_s19 + $0xe0] sm:$0xff] %v4533_v33   ;;  %v4698_v4 = vadd.f32 %v4697_v1, %v3417_v63  ;;  %v4699_v5 = vadd.f32 %v5054_v54, %v2842_v3  ;;  %v2844_v7 = vpop.f32.mrb[119].mxu1  ;;  %v3422_v8 = vpop.f32.mrb[119].mxu0 }
 0x307   : > { %v4700_v9 = vadd.f32 %v4699_v5, %v3420_v6  ;;  %v3498_v10 = vmax.f32 %v4698_v4, 0.0 }
 0x309   : > { %v3499_v11 = vmax.f32 %v4700_v9, 0.0 }
 0x30a   : > { %v2847_v12 = vpop.f32.mrb[120].mxu1  ;;  %v3425_v15 = vpop.f32.mrb[120].mxu0 }
 0x30b   : > { %v4538_v13 = vpack.c.bf16 %v3499_v11, %v3498_v10  ;;  %v4701_v14 = vadd.f32 %v5054_v54, %v2847_v12  ;;  %v2849_v16 = vpop.f32.mrb[121].mxu1  ;;  %v3427_v17 = vpop.f32.mrb[121].mxu0 }
 0x30c   : > { %v2850_v18 = vpop.f32.mrb[122].mxu1  ;;  %v3428_v21 = vpop.f32.mrb[122].mxu0 }
 0x30d   : > { %4578 = vst [vmem:[%s5658_s19 + $0xe8] sm:$0xff] %v4538_v13   ;;  %v4702_v19 = vadd.f32 %v4701_v14, %v3425_v15  ;;  %v4703_v20 = vadd.f32 %v5054_v54, %v2850_v18  ;;  %v2852_v22 = vpop.f32.mrb[123].mxu1  ;;  %v3430_v23 = vpop.f32.mrb[123].mxu0 }
 0x30f   : > { %v4704_v24 = vadd.f32 %v4703_v20, %v3428_v21  ;;  %v3500_v25 = vmax.f32 %v4702_v19, 0.0 }
 0x311   : > { %v3501_v26 = vmax.f32 %v4704_v24, 0.0 }
 0x312   : > { %v2855_v27 = vpop.f32.mrb[124].mxu1  ;;  %v3433_v30 = vpop.f32.mrb[124].mxu0 }
 0x313   : > { %v4543_v28 = vpack.c.bf16 %v3501_v26, %v3500_v25  ;;  %v4705_v29 = vadd.f32 %v5054_v54, %v2855_v27  ;;  %v2857_v31 = vpop.f32.mrb[125].mxu1  ;;  %v3435_v32 = vpop.f32.mrb[125].mxu0 }
 0x314   : > { %v2858_v34 = vpop.f32.mrb[126].mxu1  ;;  %v3436_v37 = vpop.f32.mrb[126].mxu0 }
 0x315   : > { %4579 = vst [vmem:[%s5658_s19 + $0xf0] sm:$0xff] %v4543_v28   ;;  %v4706_v35 = vadd.f32 %v4705_v29, %v3433_v30  ;;  %v4707_v36 = vadd.f32 %v5054_v54, %v2858_v34  ;;  %v2860_v38 = vpop.f32.mrb[127].mxu1  ;;  %v3438_v39 = vpop.f32.mrb[127].mxu0 }
 0x317   : > { %v4708_v40 = vadd.f32 %v4707_v36, %v3436_v37  ;;  %v3502_v41 = vmax.f32 %v4706_v35, 0.0 }
 0x319   : > { %v3503_v42 = vmax.f32 %v4708_v40, 0.0 }
 0x31b   : > { %v4548_v43 = vpack.c.bf16 %v3503_v42, %v3502_v41 }
 0x31d   : > { %4580 = vst [vmem:[%s5658_s19 + $0xf8] sm:$0xff] %v4548_v43  }
 0x31e PF: > { %s13_s14 = sadd.s32 1, %s5077_s14   ;;  %s5773_s12 = smov %s5073_s13 }
 0x31f   : > { %p10_p5 = scmp.ge.s32.totalorder %s13_s14, 6   ;;  %s5774_s13 = smov %s5776_s15 }
 0x321   :  { %12 = sbr.rel (!%p10_p5) target bundleno = 2 (0x2), region = 68 }

// kernel: vae_encoder.8
= control target key start
LH: loop header
LB: loop body
LE: loop exit
PB: predicated region body
PF: predicated region fallthrough
CT: control target
= control target key end

     0   :  { %s13025_s1 = inlined_call_operand.vmem [shape: bf16[2048,256], index: 1, kind: input, shape index: {}]   ;;  %s13026_s0 = inlined_call_operand.vmem [shape: bf16[512,2048], index: 0, kind: input, shape index: {}]   ;;  %s13027_s2 = inlined_call_operand.vmem [shape: f32[1,256], index: 2, kind: input, shape index: {}]   ;;  %s13028_s3 = inlined_call_operand.vmem [shape: bf16[512,256], index: 3, kind: output, shape index: {}]  }
   0x1   :  { %v9958_v0 = vld [vmem:[%s13025_s1 + $0x4] ss:$8 sps:$4 sm:$0xff]   ;;  %v9962_v2 = vld [vmem:[%s13025_s1] ss:$8 sps:$4 sm:$0xff]   ;;  %v9964_v4 = vld [vmem:[%s13025_s1 + $0x14] ss:$8 sps:$4 sm:$0xff]  }
   0x2   :  { %v9960_v1 = vld [vmem:[%s13025_s1 + $0x404] ss:$8 sps:$4 sm:$0xff]   ;;  %4634 = vmatprep.subr.bf16.mxu1 %v9958_v0  ;;  %v9963_v3 = vld [vmem:[%s13025_s1 + $0x400] ss:$8 sps:$4 sm:$0xff]   ;;  %v9966_v5 = vld [vmem:[%s13025_s1 + $0x414] ss:$8 sps:$4 sm:$0xff]  }
   0x3   :  { %6046 = vmatprep.subr.bf16.mxu0 %v9960_v1  ;;  %4635 = vmatpush1.bf16.msra.mxu1 %v9962_v2  ;;  %v9968_v6 = vld [vmem:[%s13025_s1 + $0x10] ss:$8 sps:$4 sm:$0xff]   ;;  %v9970_v8 = vld [vmem:[%s13025_s1 + $0x24] ss:$8 sps:$4 sm:$0xff]   ;;  %v9974_v10 = vld [vmem:[%s13025_s1 + $0x20] ss:$8 sps:$4 sm:$0xff]  }
   0x4   :  { %6047 = vmatpush1.bf16.msra.mxu0 %v9963_v3  ;;  %4636 = vmatprep.subr.bf16.mxu1 %v9964_v4  ;;  %v9969_v7 = vld [vmem:[%s13025_s1 + $0x410] ss:$8 sps:$4 sm:$0xff]   ;;  %v9972_v9 = vld [vmem:[%s13025_s1 + $0x424] ss:$8 sps:$4 sm:$0xff]   ;;  %v9975_v11 = vld [vmem:[%s13025_s1 + $0x420] ss:$8 sps:$4 sm:$0xff]  }
   0x5   :  { %6048 = vmatprep.subr.bf16.mxu0 %v9966_v5  ;;  %v9976_v12 = vld [vmem:[%s13025_s1 + $0x34] ss:$8 sps:$4 sm:$0xff]   ;;  %v9980_v14 = vld [vmem:[%s13025_s1 + $0x30] ss:$8 sps:$4 sm:$0xff]   ;;  %v9982_v16 = vld [vmem:[%s13025_s1 + $0x44] ss:$8 sps:$4 sm:$0xff]  }
   0x6   :  { %v9978_v13 = vld [vmem:[%s13025_s1 + $0x434] ss:$8 sps:$4 sm:$0xff]   ;;  %v9981_v15 = vld [vmem:[%s13025_s1 + $0x430] ss:$8 sps:$4 sm:$0xff]   ;;  %v9984_v17 = vld [vmem:[%s13025_s1 + $0x444] ss:$8 sps:$4 sm:$0xff]  }
   0x7   :  { %4637 = vmatpush1.bf16.msra.mxu1 %v9968_v6  ;;  %v9986_v18 = vld [vmem:[%s13025_s1 + $0x40] ss:$8 sps:$4 sm:$0xff]   ;;  %v9988_v20 = vld [vmem:[%s13025_s1 + $0x54] ss:$8 sps:$4 sm:$0xff]   ;;  %v9992_v22 = vld [vmem:[%s13025_s1 + $0x50] ss:$8 sps:$4 sm:$0xff]  }
   0x8   :  { %6049 = vmatpush1.bf16.msra.mxu0 %v9969_v7  ;;  %4638 = vmatprep.subr.bf16.mxu1 %v9970_v8  ;;  %v9987_v19 = vld [vmem:[%s13025_s1 + $0x440] ss:$8 sps:$4 sm:$0xff]   ;;  %v9990_v21 = vld [vmem:[%s13025_s1 + $0x454] ss:$8 sps:$4 sm:$0xff]   ;;  %v9993_v23 = vld [vmem:[%s13025_s1 + $0x450] ss:$8 sps:$4 sm:$0xff]  }
   0x9   :  { %6050 = vmatprep.subr.bf16.mxu0 %v9972_v9  ;;  %v9994_v24 = vld [vmem:[%s13025_s1 + $0x64] ss:$8 sps:$4 sm:$0xff]   ;;  %v9998_v26 = vld [vmem:[%s13025_s1 + $0x60] ss:$8 sps:$4 sm:$0xff]   ;;  %v10000_v28 = vld [vmem:[%s13025_s1 + $0x74] ss:$8 sps:$4 sm:$0xff]  }
   0xa   :  { %v9996_v25 = vld [vmem:[%s13025_s1 + $0x464] ss:$8 sps:$4 sm:$0xff]   ;;  %v9999_v27 = vld [vmem:[%s13025_s1 + $0x460] ss:$8 sps:$4 sm:$0xff]   ;;  %v10002_v29 = vld [vmem:[%s13025_s1 + $0x474] ss:$8 sps:$4 sm:$0xff]  }
   0xb   :  { %4639 = vmatpush1.bf16.msra.mxu1 %v9974_v10  ;;  %v10004_v30 = vld [vmem:[%s13025_s1 + $0x70] ss:$8 sps:$4 sm:$0xff]   ;;  %v10006_v32 = vld [vmem:[%s13025_s1 + $0x84] ss:$8 sps:$4 sm:$0xff]   ;;  %v10010_v34 = vld [vmem:[%s13025_s1 + $0x80] ss:$8 sps:$4 sm:$0xff]  }
   0xc   :  { %6051 = vmatpush1.bf16.msra.mxu0 %v9975_v11  ;;  %4640 = vmatprep.subr.bf16.mxu1 %v9976_v12  ;;  %v10005_v31 = vld [vmem:[%s13025_s1 + $0x470] ss:$8 sps:$4 sm:$0xff]   ;;  %v10008_v33 = vld [vmem:[%s13025_s1 + $0x484] ss:$8 sps:$4 sm:$0xff]   ;;  %v10011_v35 = vld [vmem:[%s13025_s1 + $0x480] ss:$8 sps:$4 sm:$0xff]  }
   0xd   :  { %6052 = vmatprep.subr.bf16.mxu0 %v9978_v13  ;;  %v10012_v36 = vld [vmem:[%s13025_s1 + $0x94] ss:$8 sps:$4 sm:$0xff]   ;;  %v10016_v38 = vld [vmem:[%s13025_s1 + $0x90] ss:$8 sps:$4 sm:$0xff]   ;;  %v10018_v40 = vld [vmem:[%s13025_s1 + $0xa4] ss:$8 sps:$4 sm:$0xff]  }
   0xe   :  { %v10014_v37 = vld [vmem:[%s13025_s1 + $0x494] ss:$8 sps:$4 sm:$0xff]   ;;  %v10017_v39 = vld [vmem:[%s13025_s1 + $0x490] ss:$8 sps:$4 sm:$0xff]   ;;  %v10020_v41 = vld [vmem:[%s13025_s1 + $0x4a4] ss:$8 sps:$4 sm:$0xff]  }
   0xf   :  { %4641 = vmatpush1.bf16.msra.mxu1 %v9980_v14  ;;  %v10022_v42 = vld [vmem:[%s13025_s1 + $0xa0] ss:$8 sps:$4 sm:$0xff]   ;;  %v10024_v44 = vld [vmem:[%s13025_s1 + $0xb4] ss:$8 sps:$4 sm:$0xff]   ;;  %v10028_v46 = vld [vmem:[%s13025_s1 + $0xb0] ss:$8 sps:$4 sm:$0xff]  }
  0x10   :  { %6053 = vmatpush1.bf16.msra.mxu0 %v9981_v15  ;;  %4642 = vmatprep.subr.bf16.mxu1 %v9982_v16  ;;  %v10023_v43 = vld [vmem:[%s13025_s1 + $0x4a0] ss:$8 sps:$4 sm:$0xff]   ;;  %v10026_v45 = vld [vmem:[%s13025_s1 + $0x4b4] ss:$8 sps:$4 sm:$0xff]   ;;  %v10029_v47 = vld [vmem:[%s13025_s1 + $0x4b0] ss:$8 sps:$4 sm:$0xff]  }
  0x11   :  { %6054 = vmatprep.subr.bf16.mxu0 %v9984_v17  ;;  %v14_v48 = vld [vmem:[%s13026_s0] sm:$0xff]  ;;  %v10036_v58 = vld [vmem:[%s13025_s1 + $0xd4] ss:$8 sps:$4 sm:$0xff]   ;;  %v10040_v60 = vld [vmem:[%s13025_s1 + $0xd0] ss:$8 sps:$4 sm:$0xff]  }
  0x12   :  { %v22_v49 = vld [vmem:[%s13026_s0 + $0x40] sm:$0xff]  ;;  %v10038_v59 = vld [vmem:[%s13025_s1 + $0x4d4] ss:$8 sps:$4 sm:$0xff]   ;;  %v10041_v61 = vld [vmem:[%s13025_s1 + $0x4d0] ss:$8 sps:$4 sm:$0xff]  }
  0x13   :  { %4643 = vmatpush1.bf16.msra.mxu1 %v9986_v18  ;;  %v18_v50 = vld [vmem:[%s13026_s0 + $0x20] sm:$0xff]  ;;  %v8039_v53 = vcombine.high %v14_v48, %v22_v49  ;;  %v10048_v2 = vld [vmem:[%s13025_s1 + $0xf4] ss:$8 sps:$4 sm:$0xff]   ;;  %v10052_v4 = vld [vmem:[%s13025_s1 + $0xf0] ss:$8 sps:$4 sm:$0xff]   ;;  %v8038_v12 = vcombine.low %v14_v48, %v22_v49 }
  0x14   :  { %6055 = vmatpush1.bf16.msra.mxu0 %v9987_v19  ;;  %4644 = vmatprep.subr.bf16.mxu1 %v9988_v20  ;;  %v26_v51 = vld [vmem:[%s13026_s0 + $0x60] sm:$0xff]  ;;  %v10050_v3 = vld [vmem:[%s13025_s1 + $0x4f4] ss:$8 sps:$4 sm:$0xff]   ;;  %v10053_v5 = vld [vmem:[%s13025_s1 + $0x4f0] ss:$8 sps:$4 sm:$0xff]  }
  0x15   :  { %6056 = vmatprep.subr.bf16.mxu0 %v9990_v21  ;;  %v10030_v52 = vld [vmem:[%s13025_s1 + $0xc4] ss:$8 sps:$4 sm:$0xff]   ;;  %v8047_v55 = vcombine.high %v18_v50, %v26_v51  ;;  %4666 = vmatprep.mubr.bf16.mxu1 %v8039_v53  ;;  %v10034_v56 = vld [vmem:[%s13025_s1 + $0xc0] ss:$8 sps:$4 sm:$0xff]   ;;  %v8046_v13 = vcombine.low %v18_v50, %v26_v51  ;;  %v10062_v18 = vld [vmem:[%s13025_s1 + $0x114] ss:$8 sps:$4 sm:$0xff]  }
  0x16   :  { %v10032_v54 = vld [vmem:[%s13025_s1 + $0x4c4] ss:$8 sps:$4 sm:$0xff]   ;;  %v10035_v57 = vld [vmem:[%s13025_s1 + $0x4c0] ss:$8 sps:$4 sm:$0xff]   ;;  %v10065_v19 = vld [vmem:[%s13025_s1 + $0x514] ss:$8 sps:$4 sm:$0xff]  }
  0x17   :  { %4645 = vmatpush1.bf16.msra.mxu1 %v9992_v22  ;;  %6078 = vmatprep.mubr.bf16.mxu0 %v8047_v55  ;;  %v10042_v62 = vld [vmem:[%s13025_s1 + $0xe4] ss:$8 sps:$4 sm:$0xff]   ;;  %v10046_v0 = vld [vmem:[%s13025_s1 + $0xe0] ss:$8 sps:$4 sm:$0xff]   ;;  %v10086_v50 = vld [vmem:[%s13025_s1 + $0x154] ss:$8 sps:$4 sm:$0xff]  }
  0x18   :  { %6057 = vmatpush1.bf16.msra.mxu0 %v9993_v23  ;;  %4646 = vmatprep.subr.bf16.mxu1 %v9994_v24  ;;  %v10044_v63 = vld [vmem:[%s13025_s1 + $0x4e4] ss:$8 sps:$4 sm:$0xff]   ;;  %v10047_v1 = vld [vmem:[%s13025_s1 + $0x4e0] ss:$8 sps:$4 sm:$0xff]   ;;  %v10060_v23 = vld [vmem:[%s13025_s1 + $0x110] ss:$8 sps:$4 sm:$0xff]  }
  0x19   :  { %6058 = vmatprep.subr.bf16.mxu0 %v9996_v25  ;;  %v10056_v6 = vld [vmem:[%s13025_s1 + $0x104] ss:$8 sps:$4 sm:$0xff]   ;;  %v10054_v14 = vld [vmem:[%s13025_s1 + $0x100] ss:$8 sps:$4 sm:$0xff]   ;;  %v10063_v24 = vld [vmem:[%s13025_s1 + $0x510] ss:$8 sps:$4 sm:$0xff]  }
  0x1a   :  { %v10059_v7 = vld [vmem:[%s13025_s1 + $0x504] ss:$8 sps:$4 sm:$0xff]   ;;  %v10057_v15 = vld [vmem:[%s13025_s1 + $0x500] ss:$8 sps:$4 sm:$0xff]   ;;  %v10089_v51 = vld [vmem:[%s13025_s1 + $0x554] ss:$8 sps:$4 sm:$0xff]  }
  0x1b   :  { %4647 = vmatpush1.bf16.msra.mxu1 %v9998_v26  ;;  %v30_v8 = vld [vmem:[%s13026_s0 + $0x80] sm:$0xff] }
  0x1c   :  { %6059 = vmatpush1.bf16.msra.mxu0 %v9999_v27  ;;  %4648 = vmatprep.subr.bf16.mxu1 %v10000_v28  ;;  %v38_v9 = vld [vmem:[%s13026_s0 + $0xc0] sm:$0xff] }
  0x1d   :  { %6060 = vmatprep.subr.bf16.mxu0 %v10002_v29  ;;  %v34_v10 = vld [vmem:[%s13026_s0 + $0xa0] sm:$0xff]  ;;  %v8055_v16 = vcombine.high %v30_v8, %v38_v9  ;;  %v8054_v28 = vcombine.low %v30_v8, %v38_v9  ;;  %v10096_v8 = vld [vmem:[%s13025_s1 + $0x170] ss:$8 sps:$4 sm:$0xff]  }
  0x1e   :  { %v42_v11 = vld [vmem:[%s13026_s0 + $0xe0] sm:$0xff]  ;;  %v10099_v9 = vld [vmem:[%s13025_s1 + $0x570] ss:$8 sps:$4 sm:$0xff]  }
  0x1f   :  { %4649 = vmatpush1.bf16.msra.mxu1 %v10004_v30  ;;  %v8063_v17 = vcombine.high %v34_v10, %v42_v11  ;;  %v46_v20 = vld [vmem:[%s13026_s0 + $0x100] sm:$0xff]  ;;  %v8062_v29 = vcombine.low %v34_v10, %v42_v11 }
  0x20   :  { %6061 = vmatpush1.bf16.msra.mxu0 %v10005_v31  ;;  %4650 = vmatprep.subr.bf16.mxu1 %v10006_v32  ;;  %v54_v21 = vld [vmem:[%s13026_s0 + $0x140] sm:$0xff] }
  0x21   :  { %6062 = vmatprep.subr.bf16.mxu0 %v10008_v33  ;;  %v50_v22 = vld [vmem:[%s13026_s0 + $0x120] sm:$0xff]  ;;  %v8071_v30 = vcombine.high %v46_v20, %v54_v21 }
  0x22   :  { %v58_v25 = vld [vmem:[%s13026_s0 + $0x160] sm:$0xff] }
  0x23   :  { %4651 = vmatpush1.bf16.msra.mxu1 %v10010_v34  ;;  %v10068_v26 = vld [vmem:[%s13025_s1 + $0x124] ss:$8 sps:$4 sm:$0xff]   ;;  %v8079_v31 = vcombine.high %v50_v22, %v58_v25  ;;  %v10066_v32 = vld [vmem:[%s13025_s1 + $0x120] ss:$8 sps:$4 sm:$0xff]   ;;  %v10074_v34 = vld [vmem:[%s13025_s1 + $0x134] ss:$8 sps:$4 sm:$0xff]  }
  0x24   :  { %6063 = vmatpush1.bf16.msra.mxu0 %v10011_v35  ;;  %4652 = vmatprep.subr.bf16.mxu1 %v10012_v36  ;;  %v10071_v27 = vld [vmem:[%s13025_s1 + $0x524] ss:$8 sps:$4 sm:$0xff]   ;;  %v10069_v33 = vld [vmem:[%s13025_s1 + $0x520] ss:$8 sps:$4 sm:$0xff]   ;;  %v10077_v35 = vld [vmem:[%s13025_s1 + $0x534] ss:$8 sps:$4 sm:$0xff]  }
  0x25   :  { %6064 = vmatprep.subr.bf16.mxu0 %v10014_v37  ;;  %v62_v36 = vld [vmem:[%s13026_s0 + $0x180] sm:$0xff] }
  0x26   :  { %v70_v37 = vld [vmem:[%s13026_s0 + $0x1c0] sm:$0xff] }
  0x27   :  { %4653 = vmatpush1.bf16.msra.mxu1 %v10016_v38  ;;  %v66_v38 = vld [vmem:[%s13026_s0 + $0x1a0] sm:$0xff] }
  0x28   :  { %6065 = vmatpush1.bf16.msra.mxu0 %v10017_v39  ;;  %4654 = vmatprep.subr.bf16.mxu1 %v10018_v40  ;;  %v74_v39 = vld [vmem:[%s13026_s0 + $0x1e0] sm:$0xff]  ;;  %v10072_v40 = vld [vmem:[%s13025_s1 + $0x130] ss:$8 sps:$4 sm:$0xff]  }
  0x29   :  { %6066 = vmatprep.subr.bf16.mxu0 %v10020_v41  ;;  %v10075_v41 = vld [vmem:[%s13025_s1 + $0x530] ss:$8 sps:$4 sm:$0xff]   ;;  %v10078_v48 = vld [vmem:[%s13025_s1 + $0x140] ss:$8 sps:$4 sm:$0xff]   ;;  %v10104_v10 = vld [vmem:[%s13025_s1 + $0x184] ss:$8 sps:$4 sm:$0xff]  }
  0x2a   :  { %v10081_v49 = vld [vmem:[%s13025_s1 + $0x540] ss:$8 sps:$4 sm:$0xff]   ;;  %v10107_v11 = vld [vmem:[%s13025_s1 + $0x584] ss:$8 sps:$4 sm:$0xff]  }
  0x2b   :  { %4655 = vmatpush1.bf16.msra.mxu1 %v10022_v42  ;;  %v10080_v42 = vld [vmem:[%s13025_s1 + $0x144] ss:$8 sps:$4 sm:$0xff]  }
  0x2c   :  { %6067 = vmatpush1.bf16.msra.mxu0 %v10023_v43  ;;  %4656 = vmatprep.subr.bf16.mxu1 %v10024_v44  ;;  %v10083_v43 = vld [vmem:[%s13025_s1 + $0x544] ss:$8 sps:$4 sm:$0xff]   ;;  %v8070_v44 = vcombine.low %v46_v20, %v54_v21 }
  0x2d   :  { %6068 = vmatprep.subr.bf16.mxu0 %v10026_v45  ;;  %v8078_v45 = vcombine.low %v50_v22, %v58_v25  ;;  %v86_v53 = vld [vmem:[%s13026_s0 + $0x240] sm:$0xff]  ;;  %v10111_v25 = vld [vmem:[%s13025_s1 + $0x590] ss:$8 sps:$4 sm:$0xff]  }
  0x2e   :  { %v90_v55 = vld [vmem:[%s13026_s0 + $0x260] sm:$0xff] }
  0x2f   :  { %4657 = vmatpush1.bf16.msra.mxu1 %v10028_v46  ;;  %v8087_v46 = vcombine.high %v62_v36, %v70_v37  ;;  %v110_v20 = vld [vmem:[%s13026_s0 + $0x300] sm:$0xff] }
  0x30   :  { %6069 = vmatpush1.bf16.msra.mxu0 %v10029_v47  ;;  %4658 = vmatprep.subr.bf16.mxu1 %v10030_v52  ;;  %v8095_v47 = vcombine.high %v66_v38, %v74_v39  ;;  %v78_v52 = vld [vmem:[%s13026_s0 + $0x200] sm:$0xff] }
  0x31   :  { %6070 = vmatprep.subr.bf16.mxu0 %v10032_v54  ;;  %v82_v54 = vld [vmem:[%s13026_s0 + $0x220] sm:$0xff] }
  0x32   :  { %v118_v21 = vld [vmem:[%s13026_s0 + $0x340] sm:$0xff] }
  0x33   :  { %4659 = vmatpush1.bf16.msra.mxu1 %v10034_v56  ;;  %v10084_v56 = vld [vmem:[%s13025_s1 + $0x150] ss:$8 sps:$4 sm:$0xff]   ;;  %v114_v22 = vld [vmem:[%s13026_s0 + $0x320] sm:$0xff] }
  0x34   :  { %6071 = vmatpush1.bf16.msra.mxu0 %v10035_v57  ;;  %4660 = vmatprep.subr.bf16.mxu1 %v10036_v58  ;;  %v10087_v57 = vld [vmem:[%s13025_s1 + $0x550] ss:$8 sps:$4 sm:$0xff]   ;;  %v10092_v58 = vld [vmem:[%s13025_s1 + $0x164] ss:$8 sps:$4 sm:$0xff]  }
  0x35   :  { %6072 = vmatprep.subr.bf16.mxu0 %v10038_v59  ;;  %v10095_v59 = vld [vmem:[%s13025_s1 + $0x564] ss:$8 sps:$4 sm:$0xff]  }
  0x37   :  { %4661 = vmatpush1.bf16.msra.mxu1 %v10040_v60  ;;  %v8086_v60 = vcombine.low %v62_v36, %v70_v37  ;;  %v130_v36 = vld [vmem:[%s13026_s0 + $0x3a0] sm:$0xff] }
  0x38   :  { %6073 = vmatpush1.bf16.msra.mxu0 %v10041_v61  ;;  %4662 = vmatprep.subr.bf16.mxu1 %v10042_v62  ;;  %v8094_v61 = vcombine.low %v66_v38, %v74_v39  ;;  %v8103_v62 = vcombine.high %v78_v52, %v86_v53  ;;  %v138_v37 = vld [vmem:[%s13026_s0 + $0x3e0] sm:$0xff]  ;;  %v8134_v38 = vcombine.low %v110_v20, %v118_v21 }
  0x39   :  { %6074 = vmatprep.subr.bf16.mxu0 %v10044_v63  ;;  %v8111_v63 = vcombine.high %v82_v54, %v90_v55 }
  0x3b   :  { %4663 = vmatpush1.bf16.msra.mxu1 %v10046_v0  ;;  %v10090_v0 = vld [vmem:[%s13025_s1 + $0x160] ss:$8 sps:$4 sm:$0xff]  }
  0x3c   :  { %6075 = vmatpush1.bf16.msra.mxu0 %v10047_v1  ;;  %4664 = vmatprep.subr.bf16.mxu1 %v10048_v2  ;;  %v10093_v1 = vld [vmem:[%s13025_s1 + $0x560] ss:$8 sps:$4 sm:$0xff]   ;;  %v10098_v2 = vld [vmem:[%s13025_s1 + $0x174] ss:$8 sps:$4 sm:$0xff]  }
  0x3d   :  { %6076 = vmatprep.subr.bf16.mxu0 %v10050_v3  ;;  %v10101_v3 = vld [vmem:[%s13025_s1 + $0x574] ss:$8 sps:$4 sm:$0xff]  }
  0x3f   :  { %4665 = vmatpush1.bf16.msra.mxu1 %v10052_v4  ;;  %v94_v4 = vld [vmem:[%s13026_s0 + $0x280] sm:$0xff] }
  0x40   :  { %6077 = vmatpush1.bf16.msra.mxu0 %v10053_v5  ;;  %4987 = vmatprep.subr.bf16.mxu1 %v10056_v6  ;;  %v102_v5 = vld [vmem:[%s13026_s0 + $0x2c0] sm:$0xff] }
  0x41   :  { %6399 = vmatprep.subr.bf16.mxu0 %v10059_v7  ;;  %v98_v6 = vld [vmem:[%s13026_s0 + $0x2a0] sm:$0xff] }
  0x42   :  { %4667 = vmatmul.mubr.bf16.vlgmr.msra.gmra.mrb[0].mxu1 %v8038_v12  ;;  %v106_v7 = vld [vmem:[%s13026_s0 + $0x2e0] sm:$0xff]  ;;  %v8102_v12 = vcombine.low %v78_v52, %v86_v53 }
  0x43   :  { %6079 = vmatmul.mubr.bf16.vlgmr.msra.gmra.mrb[0].mxu0 %v8046_v13  ;;  %4988 = vmatpush1.bf16.msra.mxu1 %v10054_v14  ;;  %v8110_v13 = vcombine.low %v82_v54, %v90_v55  ;;  %v8119_v14 = vcombine.high %v94_v4, %v102_v5  ;;  %v158_v54 = vld [vmem:[%s13026_s0 + $0x480] sm:$0xff] }
  0x44   :  { %6400 = vmatpush1.bf16.msra.mxu0 %v10057_v15  ;;  %4676 = vmatprep.mubr.bf16.mxu1 %v8055_v16  ;;  %v8127_v15 = vcombine.high %v98_v6, %v106_v7  ;;  %v10102_v16 = vld [vmem:[%s13025_s1 + $0x180] ss:$8 sps:$4 sm:$0xff]  }
  0x45   :  { %6088 = vmatprep.mubr.bf16.mxu0 %v8063_v17  ;;  %4989 = vmatprep.subr.bf16.mxu1 %v10062_v18  ;;  %v10105_v17 = vld [vmem:[%s13025_s1 + $0x580] ss:$8 sps:$4 sm:$0xff]   ;;  %v10110_v18 = vld [vmem:[%s13025_s1 + $0x194] ss:$8 sps:$4 sm:$0xff]  }
  0x46   :  { %6401 = vmatprep.subr.bf16.mxu0 %v10065_v19  ;;  %v10113_v19 = vld [vmem:[%s13025_s1 + $0x594] ss:$8 sps:$4 sm:$0xff]   ;;  %v166_v55 = vld [vmem:[%s13026_s0 + $0x4c0] sm:$0xff] }
  0x47   :  { %4990 = vmatpush1.bf16.msra.mxu1 %v10060_v23  ;;  %v122_v23 = vld [vmem:[%s13026_s0 + $0x360] sm:$0xff] }
  0x48   :  { %6402 = vmatpush1.bf16.msra.mxu0 %v10063_v24  ;;  %4991 = vmatprep.subr.bf16.mxu1 %v10068_v26  ;;  %v10108_v24 = vld [vmem:[%s13025_s1 + $0x190] ss:$8 sps:$4 sm:$0xff]   ;;  %v10116_v26 = vld [vmem:[%s13025_s1 + $0x1a4] ss:$8 sps:$4 sm:$0xff]   ;;  %v8142_v39 = vcombine.low %v114_v22, %v122_v23 }
  0x49   :  { %6403 = vmatprep.subr.bf16.mxu0 %v10071_v27  ;;  %v10119_v27 = vld [vmem:[%s13025_s1 + $0x5a4] ss:$8 sps:$4 sm:$0xff]  }
  0x4a   :  { %4677 = vmatmul.mubr.bf16.gmra.mrb[4].mxu1 %v8054_v28  ;;  %v8118_v28 = vcombine.low %v94_v4, %v102_v5  ;;  %v178_v4 = vld [vmem:[%s13026_s0 + $0x520] sm:$0xff] }
  0x4b   :  { %6089 = vmatmul.mubr.bf16.gmra.mrb[4].mxu0 %v8062_v29  ;;  %4686 = vmatprep.mubr.bf16.mxu1 %v8071_v30  ;;  %v8126_v29 = vcombine.low %v98_v6, %v106_v7  ;;  %v10114_v30 = vld [vmem:[%s13025_s1 + $0x1a0] ss:$8 sps:$4 sm:$0xff]   ;;  %v8182_v6 = vcombine.low %v158_v54, %v166_v55 }
  0x4c   :  { %6098 = vmatprep.mubr.bf16.mxu0 %v8079_v31  ;;  %4992 = vmatpush1.bf16.msra.mxu1 %v10066_v32  ;;  %v10117_v31 = vld [vmem:[%s13025_s1 + $0x5a0] ss:$8 sps:$4 sm:$0xff]   ;;  %v8135_v32 = vcombine.high %v110_v20, %v118_v21  ;;  %v10135_v20 = vld [vmem:[%s13025_s1 + $0x5d0] ss:$8 sps:$4 sm:$0xff]  }
  0x4d   :  { %6404 = vmatpush1.bf16.msra.mxu0 %v10069_v33  ;;  %4993 = vmatprep.subr.bf16.mxu1 %v10074_v34  ;;  %v8143_v33 = vcombine.high %v114_v22, %v122_v23  ;;  %v126_v34 = vld [vmem:[%s13026_s0 + $0x380] sm:$0xff]  ;;  %v10137_v23 = vld [vmem:[%s13025_s1 + $0x5d4] ss:$8 sps:$4 sm:$0xff]  }
  0x4e   :  { %6405 = vmatprep.subr.bf16.mxu0 %v10077_v35  ;;  %v134_v35 = vld [vmem:[%s13026_s0 + $0x3c0] sm:$0xff] }
  0x4f   :  { %v186_v5 = vld [vmem:[%s13026_s0 + $0x560] sm:$0xff] }
  0x50   :  { %4994 = vmatpush1.bf16.msra.mxu1 %v10072_v40  ;;  %v8151_v40 = vcombine.high %v126_v34, %v134_v35  ;;  %v206_v21 = vld [vmem:[%s13026_s0 + $0x600] sm:$0xff] }
  0x51   :  { %6406 = vmatpush1.bf16.msra.mxu0 %v10075_v41  ;;  %4995 = vmatprep.subr.bf16.mxu1 %v10080_v42  ;;  %v8159_v41 = vcombine.high %v130_v36, %v138_v37  ;;  %v10120_v42 = vld [vmem:[%s13025_s1 + $0x1b0] ss:$8 sps:$4 sm:$0xff]   ;;  %v214_v22 = vld [vmem:[%s13026_s0 + $0x640] sm:$0xff] }
  0x52   :  { %6407 = vmatprep.subr.bf16.mxu0 %v10083_v43  ;;  %4687 = vmatmul.mubr.bf16.gmra.mrb[8].mxu1 %v8070_v44  ;;  %v10122_v43 = vld [vmem:[%s13025_s1 + $0x1b4] ss:$8 sps:$4 sm:$0xff]   ;;  %v10123_v44 = vld [vmem:[%s13025_s1 + $0x5b0] ss:$8 sps:$4 sm:$0xff]  }
  0x53   :  { %6099 = vmatmul.mubr.bf16.gmra.mrb[8].mxu0 %v8078_v45  ;;  %4696 = vmatprep.mubr.bf16.mxu1 %v8087_v46  ;;  %v142_v45 = vld [vmem:[%s13026_s0 + $0x400] sm:$0xff] }
  0x54   :  { %6108 = vmatprep.mubr.bf16.mxu0 %v8095_v47  ;;  %4996 = vmatpush1.bf16.msra.mxu1 %v10078_v48  ;;  %v150_v46 = vld [vmem:[%s13026_s0 + $0x440] sm:$0xff]  ;;  %v10125_v47 = vld [vmem:[%s13025_s1 + $0x5b4] ss:$8 sps:$4 sm:$0xff]  }
  0x55   :  { %6408 = vmatpush1.bf16.msra.mxu0 %v10081_v49  ;;  %4997 = vmatprep.subr.bf16.mxu1 %v10086_v50  ;;  %v146_v48 = vld [vmem:[%s13026_s0 + $0x420] sm:$0xff]  ;;  %v8150_v50 = vcombine.low %v126_v34, %v134_v35  ;;  %v8167_v52 = vcombine.high %v142_v45, %v150_v46  ;;  %v8230_v34 = vcombine.low %v206_v21, %v214_v22 }
  0x56   :  { %6409 = vmatprep.subr.bf16.mxu0 %v10089_v51  ;;  %v154_v49 = vld [vmem:[%s13026_s0 + $0x460] sm:$0xff]  ;;  %v8158_v51 = vcombine.low %v130_v36, %v138_v37 }
  0x57   :  { %v8175_v53 = vcombine.high %v146_v48, %v154_v49 }
  0x58   :  { %4998 = vmatpush1.bf16.msra.mxu1 %v10084_v56  ;;  %v162_v56 = vld [vmem:[%s13026_s0 + $0x4a0] sm:$0xff] }
  0x59   :  { %6410 = vmatpush1.bf16.msra.mxu0 %v10087_v57  ;;  %4999 = vmatprep.subr.bf16.mxu1 %v10092_v58  ;;  %v170_v57 = vld [vmem:[%s13026_s0 + $0x4e0] sm:$0xff]  ;;  %v8166_v58 = vcombine.low %v142_v45, %v150_v46 }
  0x5a   :  { %6411 = vmatprep.subr.bf16.mxu0 %v10095_v59  ;;  %4697 = vmatmul.mubr.bf16.gmra.mrb[12].mxu1 %v8086_v60  ;;  %v8174_v59 = vcombine.low %v146_v48, %v154_v49  ;;  %v8183_v60 = vcombine.high %v158_v54, %v166_v55  ;;  %v8190_v7 = vcombine.low %v162_v56, %v170_v57  ;;  %v250_v45 = vld [vmem:[%s13026_s0 + $0x760] sm:$0xff] }
  0x5b   :  { %6109 = vmatmul.mubr.bf16.gmra.mrb[12].mxu0 %v8094_v61  ;;  %4706 = vmatprep.mubr.bf16.mxu1 %v8103_v62  ;;  %v8191_v61 = vcombine.high %v162_v56, %v170_v57  ;;  %v10126_v62 = vld [vmem:[%s13025_s1 + $0x1c0] ss:$8 sps:$4 sm:$0xff]  }
  0x5c   :  { %6118 = vmatprep.mubr.bf16.mxu0 %v8111_v63  ;;  %5000 = vmatpush1.bf16.msra.mxu1 %v10090_v0  ;;  %v10128_v63 = vld [vmem:[%s13025_s1 + $0x1c4] ss:$8 sps:$4 sm:$0xff]   ;;  %v10129_v0 = vld [vmem:[%s13025_s1 + $0x5c0] ss:$8 sps:$4 sm:$0xff]  }
  0x5d   :  { %6412 = vmatpush1.bf16.msra.mxu0 %v10093_v1  ;;  %5001 = vmatprep.subr.bf16.mxu1 %v10098_v2  ;;  %v174_v1 = vld [vmem:[%s13026_s0 + $0x500] sm:$0xff] }
  0x5e   :  { %6413 = vmatprep.subr.bf16.mxu0 %v10101_v3  ;;  %v182_v2 = vld [vmem:[%s13026_s0 + $0x540] sm:$0xff] }
  0x5f   :  { %v10131_v3 = vld [vmem:[%s13025_s1 + $0x5c4] ss:$8 sps:$4 sm:$0xff]  }
  0x60   :  { %5002 = vmatpush1.bf16.msra.mxu1 %v10096_v8  ;;  %v8199_v8 = vcombine.high %v174_v1, %v182_v2 }
  0x61   :  { %6414 = vmatpush1.bf16.msra.mxu0 %v10099_v9  ;;  %5003 = vmatprep.subr.bf16.mxu1 %v10104_v10  ;;  %v8207_v9 = vcombine.high %v178_v4, %v186_v5  ;;  %v190_v10 = vld [vmem:[%s13026_s0 + $0x580] sm:$0xff] }
  0x62   :  { %6415 = vmatprep.subr.bf16.mxu0 %v10107_v11  ;;  %4707 = vmatmul.mubr.bf16.gmra.mrb[16].mxu1 %v8102_v12  ;;  %v198_v11 = vld [vmem:[%s13026_s0 + $0x5c0] sm:$0xff] }
  0x63   :  { %6119 = vmatmul.mubr.bf16.gmra.mrb[16].mxu0 %v8110_v13  ;;  %4716 = vmatprep.mubr.bf16.mxu1 %v8119_v14  ;;  %v194_v12 = vld [vmem:[%s13026_s0 + $0x5a0] sm:$0xff]  ;;  %v8198_v14 = vcombine.low %v174_v1, %v182_v2 }
  0x64   :  { %6128 = vmatprep.mubr.bf16.mxu0 %v8127_v15  ;;  %5004 = vmatpush1.bf16.msra.mxu1 %v10102_v16  ;;  %v202_v13 = vld [vmem:[%s13026_s0 + $0x5e0] sm:$0xff]  ;;  %v8206_v15 = vcombine.low %v178_v4, %v186_v5  ;;  %v8215_v16 = vcombine.high %v190_v10, %v198_v11 }
  0x65   :  { %6416 = vmatpush1.bf16.msra.mxu0 %v10105_v17  ;;  %5005 = vmatprep.subr.bf16.mxu1 %v10110_v18  ;;  %v8223_v17 = vcombine.high %v194_v12, %v202_v13  ;;  %v10132_v18 = vld [vmem:[%s13025_s1 + $0x1d0] ss:$8 sps:$4 sm:$0xff]   ;;  %v282_v1 = vld [vmem:[%s13026_s0 + $0x860] sm:$0xff] }
  0x66   :  { %6417 = vmatprep.subr.bf16.mxu0 %v10113_v19  ;;  %v10134_v19 = vld [vmem:[%s13025_s1 + $0x1d4] ss:$8 sps:$4 sm:$0xff]  }
  0x68   :  { %5006 = vmatpush1.bf16.msra.mxu1 %v10108_v24  ;;  %v210_v24 = vld [vmem:[%s13026_s0 + $0x620] sm:$0xff] }
  0x69   :  { %6418 = vmatpush1.bf16.msra.mxu0 %v10111_v25  ;;  %5007 = vmatprep.subr.bf16.mxu1 %v10116_v26  ;;  %v218_v25 = vld [vmem:[%s13026_s0 + $0x660] sm:$0xff]  ;;  %v8214_v26 = vcombine.low %v190_v10, %v198_v11 }
  0x6a   :  { %6419 = vmatprep.subr.bf16.mxu0 %v10119_v27  ;;  %4717 = vmatmul.mubr.bf16.gmra.mrb[20].mxu1 %v8118_v28  ;;  %v8222_v27 = vcombine.low %v194_v12, %v202_v13  ;;  %v8231_v28 = vcombine.high %v206_v21, %v214_v22  ;;  %v8238_v35 = vcombine.low %v210_v24, %v218_v25 }
  0x6b   :  { %6129 = vmatmul.mubr.bf16.gmra.mrb[20].mxu0 %v8126_v29  ;;  %4726 = vmatprep.mubr.bf16.mxu1 %v8135_v32  ;;  %v8239_v29 = vcombine.high %v210_v24, %v218_v25  ;;  %v226_v32 = vld [vmem:[%s13026_s0 + $0x6a0] sm:$0xff] }
  0x6c   :  { %6138 = vmatprep.mubr.bf16.mxu0 %v8143_v33  ;;  %5008 = vmatpush1.bf16.msra.mxu1 %v10114_v30  ;;  %v222_v30 = vld [vmem:[%s13026_s0 + $0x680] sm:$0xff] }
  0x6d   :  { %6420 = vmatpush1.bf16.msra.mxu0 %v10117_v31  ;;  %5009 = vmatprep.subr.bf16.mxu1 %v10122_v43  ;;  %v230_v31 = vld [vmem:[%s13026_s0 + $0x6c0] sm:$0xff] }
  0x6e   :  { %6421 = vmatprep.subr.bf16.mxu0 %v10125_v47  ;;  %v234_v33 = vld [vmem:[%s13026_s0 + $0x6e0] sm:$0xff]  ;;  %v8247_v36 = vcombine.high %v222_v30, %v230_v31  ;;  %v8246_v46 = vcombine.low %v222_v30, %v230_v31 }
  0x6f   :  { %v8255_v37 = vcombine.high %v226_v32, %v234_v33  ;;  %v10143_v43 = vld [vmem:[%s13025_s1 + $0x5e4] ss:$8 sps:$4 sm:$0xff]   ;;  %v8254_v47 = vcombine.low %v226_v32, %v234_v33 }
  0x70   :  { %5010 = vmatpush1.bf16.msra.mxu1 %v10120_v42  ;;  %v246_v42 = vld [vmem:[%s13026_s0 + $0x740] sm:$0xff] }
  0x71   :  { %6422 = vmatpush1.bf16.msra.mxu0 %v10123_v44  ;;  %5011 = vmatprep.subr.bf16.mxu1 %v10128_v63  ;;  %v242_v44 = vld [vmem:[%s13026_s0 + $0x720] sm:$0xff] }
  0x72   :  { %4727 = vmatmul.mubr.bf16.gmra.mrb[24].mxu1 %v8134_v38  ;;  %6423 = vmatprep.subr.bf16.mxu0 %v10131_v3  ;;  %v10138_v38 = vld [vmem:[%s13025_s1 + $0x1e0] ss:$8 sps:$4 sm:$0xff]   ;;  %v8271_v49 = vcombine.high %v242_v44, %v250_v45  ;;  %v8270_v55 = vcombine.low %v242_v44, %v250_v45 }
  0x73   :  { %6139 = vmatmul.mubr.bf16.gmra.mrb[24].mxu0 %v8142_v39  ;;  %4736 = vmatprep.mubr.bf16.mxu1 %v8151_v40  ;;  %v10140_v39 = vld [vmem:[%s13025_s1 + $0x1e4] ss:$8 sps:$4 sm:$0xff]   ;;  %v10141_v40 = vld [vmem:[%s13025_s1 + $0x5e0] ss:$8 sps:$4 sm:$0xff]  }
  0x74   :  { %6148 = vmatprep.mubr.bf16.mxu0 %v8159_v41  ;;  %5012 = vmatpush1.bf16.msra.mxu1 %v10126_v62  ;;  %v238_v41 = vld [vmem:[%s13026_s0 + $0x700] sm:$0xff]  ;;  %v10149_v62 = vld [vmem:[%s13025_s1 + $0x5f4] ss:$8 sps:$4 sm:$0xff]  }
  0x75   :  { %6424 = vmatpush1.bf16.msra.mxu0 %v10129_v0  ;;  %5013 = vmatprep.subr.bf16.mxu1 %v10134_v19  ;;  %v8263_v48 = vcombine.high %v238_v41, %v246_v42  ;;  %v8262_v54 = vcombine.low %v238_v41, %v246_v42  ;;  %v278_v63 = vld [vmem:[%s13026_s0 + $0x840] sm:$0xff] }
  0x76   :  { %6425 = vmatprep.subr.bf16.mxu0 %v10137_v23  ;;  %v274_v0 = vld [vmem:[%s13026_s0 + $0x820] sm:$0xff] }
  0x77   :  { %v8303_v5 = vcombine.high %v274_v0, %v282_v1  ;;  %v8302_v11 = vcombine.low %v274_v0, %v282_v1  ;;  %v314_v19 = vld [vmem:[%s13026_s0 + $0x960] sm:$0xff] }
  0x78   :  { %5014 = vmatpush1.bf16.msra.mxu1 %v10132_v18  ;;  %v306_v18 = vld [vmem:[%s13026_s0 + $0x920] sm:$0xff] }
  0x79   :  { %6426 = vmatpush1.bf16.msra.mxu0 %v10135_v20  ;;  %5015 = vmatprep.subr.bf16.mxu1 %v10140_v39  ;;  %v8335_v23 = vcombine.high %v306_v18, %v314_v19  ;;  %v318_v24 = vld [vmem:[%s13026_s0 + $0x980] sm:$0xff] }
  0x7a   :  { %4737 = vmatmul.mubr.bf16.gmra.mrb[28].mxu1 %v8150_v50  ;;  %6427 = vmatprep.subr.bf16.mxu0 %v10143_v43  ;;  %v254_v50 = vld [vmem:[%s13026_s0 + $0x780] sm:$0xff] }
  0x7b   :  { %6149 = vmatmul.mubr.bf16.gmra.mrb[28].mxu0 %v8158_v51  ;;  %4746 = vmatprep.mubr.bf16.mxu1 %v8167_v52  ;;  %v262_v51 = vld [vmem:[%s13026_s0 + $0x7c0] sm:$0xff] }
  0x7c   :  { %6158 = vmatprep.mubr.bf16.mxu0 %v8175_v53  ;;  %5016 = vmatpush1.bf16.msra.mxu1 %v10138_v38  ;;  %v258_v52 = vld [vmem:[%s13026_s0 + $0x7a0] sm:$0xff]  ;;  %v8279_v56 = vcombine.high %v254_v50, %v262_v51  ;;  %v8278_v2 = vcombine.low %v254_v50, %v262_v51 }
  0x7d   :  { %6428 = vmatpush1.bf16.msra.mxu0 %v10141_v40  ;;  %v266_v53 = vld [vmem:[%s13026_s0 + $0x7e0] sm:$0xff] }
  0x7e   :  { %v8287_v57 = vcombine.high %v258_v52, %v266_v53  ;;  %6429 = vmatprep.subr.bf16.mxu0 %v10149_v62  ;;  %v8286_v3 = vcombine.low %v258_v52, %v266_v53  ;;  %v326_v25 = vld [vmem:[%s13026_s0 + $0x9c0] sm:$0xff] }
  0x7f   :  { %v8343_v30 = vcombine.high %v318_v24, %v326_v25  ;;  %v334_v32 = vld [vmem:[%s13026_s0 + $0xa00] sm:$0xff] }
  0x80   :  { %v342_v33 = vld [vmem:[%s13026_s0 + $0xa40] sm:$0xff] }
  0x81   :  { %v8359_v38 = vcombine.high %v334_v32, %v342_v33  ;;  %v350_v40 = vld [vmem:[%s13026_s0 + $0xa80] sm:$0xff]  ;;  %v8358_v44 = vcombine.low %v334_v32, %v342_v33 }
  0x82   :  { %4747 = vmatmul.mubr.bf16.gmra.mrb[32].mxu1 %v8166_v58  ;;  %v10144_v58 = vld [vmem:[%s13025_s1 + $0x1f0] ss:$8 sps:$4 sm:$0xff]   ;;  %v358_v41 = vld [vmem:[%s13026_s0 + $0xac0] sm:$0xff] }
  0x83   :  { %6159 = vmatmul.mubr.bf16.gmra.mrb[32].mxu0 %v8174_v59  ;;  %4756 = vmatprep.mubr.bf16.mxu1 %v8183_v60  ;;  %v10146_v59 = vld [vmem:[%s13025_s1 + $0x1f4] ss:$8 sps:$4 sm:$0xff]   ;;  %v10147_v60 = vld [vmem:[%s13025_s1 + $0x5f0] ss:$8 sps:$4 sm:$0xff]   ;;  %v354_v42 = vld [vmem:[%s13026_s0 + $0xaa0] sm:$0xff]  ;;  %v8374_v52 = vcombine.low %v350_v40, %v358_v41 }
  0x84   :  { %6168 = vmatprep.mubr.bf16.mxu0 %v8191_v61  ;;  %v270_v61 = vld [vmem:[%s13026_s0 + $0x800] sm:$0xff]  ;;  %5017 = vmatprep.subr.bf16.mxu1 %v10146_v59 }
  0x85   :  { %5018 = vmatpush1.bf16.msra.mxu1 %v10144_v58  ;;  %6430 = vmatpush1.bf16.msra.mxu0 %v10147_v60  ;;  %v8295_v4 = vcombine.high %v270_v61, %v278_v63  ;;  %v8294_v10 = vcombine.low %v270_v61, %v278_v63  ;;  %v362_v43 = vld [vmem:[%s13026_s0 + $0xae0] sm:$0xff] }
  0x86   :  { %v370_v50 = vld [vmem:[%s13026_s0 + $0xb20] sm:$0xff]  ;;  %v8382_v53 = vcombine.low %v354_v42, %v362_v43 }
  0x87   :  { %v378_v51 = vld [vmem:[%s13026_s0 + $0xb60] sm:$0xff] }
  0x88   :  { %v386_v58 = vld [vmem:[%s13026_s0 + $0xba0] sm:$0xff]  ;;  %v8398_v61 = vcombine.low %v370_v50, %v378_v51 }
  0x89   :  { %v394_v59 = vld [vmem:[%s13026_s0 + $0xbe0] sm:$0xff] }
  0x8a   :  { %4757 = vmatmul.mubr.bf16.gmra.mrb[36].mxu1 %v8182_v6  ;;  %v286_v6 = vld [vmem:[%s13026_s0 + $0x880] sm:$0xff]  ;;  %v8415_v63 = vcombine.high %v386_v58, %v394_v59 }
  0x8b   :  { %6169 = vmatmul.mubr.bf16.gmra.mrb[36].mxu0 %v8190_v7  ;;  %4766 = vmatprep.mubr.bf16.mxu1 %v8199_v8  ;;  %v294_v7 = vld [vmem:[%s13026_s0 + $0x8c0] sm:$0xff] }
  0x8c   :  { %6178 = vmatprep.mubr.bf16.mxu0 %v8207_v9  ;;  %v290_v8 = vld [vmem:[%s13026_s0 + $0x8a0] sm:$0xff]  ;;  %v8311_v12 = vcombine.high %v286_v6, %v294_v7  ;;  %v8310_v20 = vcombine.low %v286_v6, %v294_v7 }
  0x8d   :  { %v298_v9 = vld [vmem:[%s13026_s0 + $0x8e0] sm:$0xff] }
  0x8e   :  { %v8319_v13 = vcombine.high %v290_v8, %v298_v9  ;;  %v8318_v21 = vcombine.low %v290_v8, %v298_v9  ;;  %v398_v0 = vld [vmem:[%s13026_s0 + $0xc00] sm:$0xff] }
  0x8f   :  { %v406_v1 = vld [vmem:[%s13026_s0 + $0xc40] sm:$0xff] }
  0x90   :  { %v8423_v6 = vcombine.high %v398_v0, %v406_v1  ;;  %v414_v8 = vld [vmem:[%s13026_s0 + $0xc80] sm:$0xff] }
  0x91   :  { %v422_v9 = vld [vmem:[%s13026_s0 + $0xcc0] sm:$0xff] }
  0x92   :  { %4767 = vmatmul.mubr.bf16.gmra.mrb[40].mxu1 %v8198_v14  ;;  %v10152_v14 = vld [vmem:[%s13025_s1 + $0x204] ss:$8 sps:$4 sm:$0xff]  }
  0x93   :  { %6179 = vmatmul.mubr.bf16.gmra.mrb[40].mxu0 %v8206_v15  ;;  %4776 = vmatprep.mubr.bf16.mxu1 %v8215_v16  ;;  %v302_v15 = vld [vmem:[%s13026_s0 + $0x900] sm:$0xff] }
  0x94   :  { %6188 = vmatprep.mubr.bf16.mxu0 %v8223_v17  ;;  %v10155_v16 = vld [vmem:[%s13025_s1 + $0x604] ss:$8 sps:$4 sm:$0xff]   ;;  %5340 = vmatprep.subr.bf16.mxu1 %v10152_v14  ;;  %v8439_v14 = vcombine.high %v414_v8, %v422_v9 }
  0x95   :  { %v310_v17 = vld [vmem:[%s13026_s0 + $0x940] sm:$0xff]  ;;  %6752 = vmatprep.subr.bf16.mxu0 %v10155_v16 }
  0x96   :  { %v8327_v22 = vcombine.high %v302_v15, %v310_v17  ;;  %v430_v16 = vld [vmem:[%s13026_s0 + $0xd00] sm:$0xff] }
  0x97   :  { %v462_v32 = vld [vmem:[%s13026_s0 + $0xe00] sm:$0xff] }
  0x98   :  { %v470_v33 = vld [vmem:[%s13026_s0 + $0xe40] sm:$0xff] }
  0x9a   :  { %4777 = vmatmul.mubr.bf16.gmra.mrb[44].mxu1 %v8214_v26  ;;  %v322_v26 = vld [vmem:[%s13026_s0 + $0x9a0] sm:$0xff] }
  0x9b   :  { %6189 = vmatmul.mubr.bf16.gmra.mrb[44].mxu0 %v8222_v27  ;;  %4786 = vmatprep.mubr.bf16.mxu1 %v8231_v28  ;;  %v330_v27 = vld [vmem:[%s13026_s0 + $0x9e0] sm:$0xff]  ;;  %v8326_v28 = vcombine.low %v302_v15, %v310_v17 }
  0x9c   :  { %6198 = vmatprep.mubr.bf16.mxu0 %v8239_v29  ;;  %v8334_v29 = vcombine.low %v306_v18, %v314_v19  ;;  %v8351_v31 = vcombine.high %v322_v26, %v330_v27  ;;  %v438_v17 = vld [vmem:[%s13026_s0 + $0xd40] sm:$0xff] }
  0x9d   :  { %v434_v18 = vld [vmem:[%s13026_s0 + $0xd20] sm:$0xff] }
  0x9e   :  { %v442_v19 = vld [vmem:[%s13026_s0 + $0xd60] sm:$0xff] }
  0xa2   :  { %4787 = vmatmul.mubr.bf16.gmra.mrb[48].mxu1 %v8230_v34  ;;  %v338_v34 = vld [vmem:[%s13026_s0 + $0xa20] sm:$0xff] }
  0xa3   :  { %6199 = vmatmul.mubr.bf16.gmra.mrb[48].mxu0 %v8238_v35  ;;  %4796 = vmatprep.mubr.bf16.mxu1 %v8247_v36  ;;  %v346_v35 = vld [vmem:[%s13026_s0 + $0xa60] sm:$0xff]  ;;  %v8342_v36 = vcombine.low %v318_v24, %v326_v25 }
  0xa4   :  { %6208 = vmatprep.mubr.bf16.mxu0 %v8255_v37  ;;  %v8350_v37 = vcombine.low %v322_v26, %v330_v27  ;;  %v8367_v39 = vcombine.high %v338_v34, %v346_v35  ;;  %v8366_v45 = vcombine.low %v338_v34, %v346_v35  ;;  %v446_v24 = vld [vmem:[%s13026_s0 + $0xd80] sm:$0xff] }
  0xa5   :  { %v454_v25 = vld [vmem:[%s13026_s0 + $0xdc0] sm:$0xff] }
  0xa6   :  { %v450_v26 = vld [vmem:[%s13026_s0 + $0xda0] sm:$0xff] }
  0xa7   :  { %v458_v27 = vld [vmem:[%s13026_s0 + $0xde0] sm:$0xff] }
  0xa8   :  { %v466_v34 = vld [vmem:[%s13026_s0 + $0xe20] sm:$0xff] }
  0xa9   :  { %v474_v35 = vld [vmem:[%s13026_s0 + $0xe60] sm:$0xff] }
  0xaa   :  { %4797 = vmatmul.mubr.bf16.gmra.mrb[52].mxu1 %v8246_v46  ;;  %v8375_v46 = vcombine.high %v350_v40, %v358_v41  ;;  %v478_v40 = vld [vmem:[%s13026_s0 + $0xe80] sm:$0xff] }
  0xab   :  { %6209 = vmatmul.mubr.bf16.gmra.mrb[52].mxu0 %v8254_v47  ;;  %4806 = vmatprep.mubr.bf16.mxu1 %v8263_v48  ;;  %v8383_v47 = vcombine.high %v354_v42, %v362_v43  ;;  %v366_v48 = vld [vmem:[%s13026_s0 + $0xb00] sm:$0xff] }
  0xac   :  { %6218 = vmatprep.mubr.bf16.mxu0 %v8271_v49  ;;  %v374_v49 = vld [vmem:[%s13026_s0 + $0xb40] sm:$0xff] }
  0xad   :  { %v8390_v60 = vcombine.low %v366_v48, %v374_v49  ;;  %v486_v41 = vld [vmem:[%s13026_s0 + $0xec0] sm:$0xff] }
  0xae   :  { %v482_v42 = vld [vmem:[%s13026_s0 + $0xea0] sm:$0xff] }
  0xaf   :  { %v490_v43 = vld [vmem:[%s13026_s0 + $0xee0] sm:$0xff] }
  0xb2   :  { %4807 = vmatmul.mubr.bf16.gmra.mrb[56].mxu1 %v8262_v54  ;;  %v8391_v54 = vcombine.high %v366_v48, %v374_v49  ;;  %v494_v48 = vld [vmem:[%s13026_s0 + $0xf00] sm:$0xff] }
  0xb3   :  { %6219 = vmatmul.mubr.bf16.gmra.mrb[56].mxu0 %v8270_v55  ;;  %4816 = vmatprep.mubr.bf16.mxu1 %v8279_v56  ;;  %v8399_v55 = vcombine.high %v370_v50, %v378_v51  ;;  %v382_v56 = vld [vmem:[%s13026_s0 + $0xb80] sm:$0xff] }
  0xb4   :  { %6228 = vmatprep.mubr.bf16.mxu0 %v8287_v57  ;;  %v390_v57 = vld [vmem:[%s13026_s0 + $0xbc0] sm:$0xff] }
  0xb5   :  { %v8407_v62 = vcombine.high %v382_v56, %v390_v57  ;;  %v502_v49 = vld [vmem:[%s13026_s0 + $0xf40] sm:$0xff] }
  0xb6   :  { %v498_v50 = vld [vmem:[%s13026_s0 + $0xf20] sm:$0xff] }
  0xb7   :  { %v506_v51 = vld [vmem:[%s13026_s0 + $0xf60] sm:$0xff] }
  0xba   :  { %4817 = vmatmul.mubr.bf16.gmra.mrb[60].mxu1 %v8278_v2  ;;  %v402_v2 = vld [vmem:[%s13026_s0 + $0xc20] sm:$0xff] }
  0xbb   :  { %6229 = vmatmul.mubr.bf16.gmra.mrb[60].mxu0 %v8286_v3  ;;  %4826 = vmatprep.mubr.bf16.mxu1 %v8295_v4  ;;  %v410_v3 = vld [vmem:[%s13026_s0 + $0xc60] sm:$0xff]  ;;  %v8406_v4 = vcombine.low %v382_v56, %v390_v57 }
  0xbc   :  { %6238 = vmatprep.mubr.bf16.mxu0 %v8303_v5  ;;  %v8414_v5 = vcombine.low %v386_v58, %v394_v59  ;;  %v8431_v7 = vcombine.high %v402_v2, %v410_v3  ;;  %v510_v56 = vld [vmem:[%s13026_s0 + $0xf80] sm:$0xff] }
  0xbd   :  { %v518_v57 = vld [vmem:[%s13026_s0 + $0xfc0] sm:$0xff] }
  0xbe   :  { %v514_v58 = vld [vmem:[%s13026_s0 + $0xfa0] sm:$0xff] }
  0xbf   :  { %v522_v59 = vld [vmem:[%s13026_s0 + $0xfe0] sm:$0xff] }
  0xc2   :  { %4827 = vmatmul.mubr.bf16.gmra.mrb[64].mxu1 %v8294_v10  ;;  %v418_v10 = vld [vmem:[%s13026_s0 + $0xca0] sm:$0xff] }
  0xc3   :  { %6239 = vmatmul.mubr.bf16.gmra.mrb[64].mxu0 %v8302_v11  ;;  %4836 = vmatprep.mubr.bf16.mxu1 %v8311_v12  ;;  %v426_v11 = vld [vmem:[%s13026_s0 + $0xce0] sm:$0xff]  ;;  %v8422_v12 = vcombine.low %v398_v0, %v406_v1  ;;  %v15_v0 = vld [vmem:[%s13026_s0 + $0x8] sm:$0xff] }
  0xc4   :  { %6248 = vmatprep.mubr.bf16.mxu0 %v8319_v13  ;;  %v8430_v13 = vcombine.low %v402_v2, %v410_v3  ;;  %v8447_v15 = vcombine.high %v418_v10, %v426_v11  ;;  %v23_v1 = vld [vmem:[%s13026_s0 + $0x48] sm:$0xff] }
  0xc5   :  { %v19_v2 = vld [vmem:[%s13026_s0 + $0x28] sm:$0xff] }
  0xc6   :  { %v27_v3 = vld [vmem:[%s13026_s0 + $0x68] sm:$0xff] }
  0xca   :  { %4837 = vmatmul.mubr.bf16.gmra.mrb[68].mxu1 %v8310_v20  ;;  %v8438_v20 = vcombine.low %v414_v8, %v422_v9  ;;  %v31_v8 = vld [vmem:[%s13026_s0 + $0x88] sm:$0xff] }
  0xcb   :  { %6249 = vmatmul.mubr.bf16.gmra.mrb[68].mxu0 %v8318_v21  ;;  %4846 = vmatprep.mubr.bf16.mxu1 %v8327_v22  ;;  %v8446_v21 = vcombine.low %v418_v10, %v426_v11  ;;  %v8455_v22 = vcombine.high %v430_v16, %v438_v17  ;;  %v39_v9 = vld [vmem:[%s13026_s0 + $0xc8] sm:$0xff] }
  0xcc   :  { %6258 = vmatprep.mubr.bf16.mxu0 %v8335_v23  ;;  %v8463_v23 = vcombine.high %v434_v18, %v442_v19  ;;  %v35_v10 = vld [vmem:[%s13026_s0 + $0xa8] sm:$0xff] }
  0xcd   :  { %v43_v11 = vld [vmem:[%s13026_s0 + $0xe8] sm:$0xff] }
  0xd2   :  { %4847 = vmatmul.mubr.bf16.gmra.mrb[72].mxu1 %v8326_v28  ;;  %v8454_v28 = vcombine.low %v430_v16, %v438_v17  ;;  %v8057_v16 = vcombine.high %v31_v8, %v39_v9  ;;  %v8065_v17 = vcombine.high %v35_v10, %v43_v11 }
  0xd3   :  { %6259 = vmatmul.mubr.bf16.gmra.mrb[72].mxu0 %v8334_v29  ;;  %4856 = vmatprep.mubr.bf16.mxu1 %v8343_v30  ;;  %v8462_v29 = vcombine.low %v434_v18, %v442_v19  ;;  %v8471_v30 = vcombine.high %v446_v24, %v454_v25  ;;  %v10158_v18 = vld [vmem:[%s13025_s1 + $0x214] ss:$8 sps:$4 sm:$0xff]  }
  0xd4   :  { %6268 = vmatprep.mubr.bf16.mxu0 %v8351_v31  ;;  %v8479_v31 = vcombine.high %v450_v26, %v458_v27  ;;  %v10161_v19 = vld [vmem:[%s13025_s1 + $0x614] ss:$8 sps:$4 sm:$0xff]  }
  0xda   :  { %4857 = vmatmul.mubr.bf16.gmra.mrb[76].mxu1 %v8342_v36  ;;  %v8470_v36 = vcombine.low %v446_v24, %v454_v25  ;;  %v10159_v24 = vld [vmem:[%s13025_s1 + $0x610] ss:$8 sps:$4 sm:$0xff]   ;;  %v59_v25 = vld [vmem:[%s13026_s0 + $0x168] sm:$0xff] }
  0xdb   :  { %6269 = vmatmul.mubr.bf16.gmra.mrb[76].mxu0 %v8350_v37  ;;  %4866 = vmatprep.mubr.bf16.mxu1 %v8359_v38  ;;  %v8478_v37 = vcombine.low %v450_v26, %v458_v27  ;;  %v8487_v38 = vcombine.high %v462_v32, %v470_v33  ;;  %v10164_v26 = vld [vmem:[%s13025_s1 + $0x224] ss:$8 sps:$4 sm:$0xff]  }
  0xdc   :  { %6278 = vmatprep.mubr.bf16.mxu0 %v8367_v39  ;;  %v8495_v39 = vcombine.high %v466_v34, %v474_v35  ;;  %v10167_v27 = vld [vmem:[%s13025_s1 + $0x624] ss:$8 sps:$4 sm:$0xff]  }
  0xe2   :  { %4867 = vmatmul.mubr.bf16.gmra.mrb[80].mxu1 %v8358_v44  ;;  %v8486_v44 = vcombine.low %v462_v32, %v470_v33  ;;  %v10162_v32 = vld [vmem:[%s13025_s1 + $0x220] ss:$8 sps:$4 sm:$0xff]  }
  0xe3   :  { %6279 = vmatmul.mubr.bf16.gmra.mrb[80].mxu0 %v8366_v45  ;;  %4876 = vmatprep.mubr.bf16.mxu1 %v8375_v46  ;;  %v8494_v45 = vcombine.low %v466_v34, %v474_v35  ;;  %v8503_v46 = vcombine.high %v478_v40, %v486_v41  ;;  %v10165_v33 = vld [vmem:[%s13025_s1 + $0x620] ss:$8 sps:$4 sm:$0xff]   ;;  %v10170_v34 = vld [vmem:[%s13025_s1 + $0x234] ss:$8 sps:$4 sm:$0xff]  }
  0xe4   :  { %6288 = vmatprep.mubr.bf16.mxu0 %v8383_v47  ;;  %v8511_v47 = vcombine.high %v482_v42, %v490_v43  ;;  %v10173_v35 = vld [vmem:[%s13025_s1 + $0x634] ss:$8 sps:$4 sm:$0xff]  }
  0xea   :  { %4877 = vmatmul.mubr.bf16.gmra.mrb[84].mxu1 %v8374_v52  ;;  %v8502_v52 = vcombine.low %v478_v40, %v486_v41  ;;  %v10168_v40 = vld [vmem:[%s13025_s1 + $0x230] ss:$8 sps:$4 sm:$0xff]  }
  0xeb   :  { %6289 = vmatmul.mubr.bf16.gmra.mrb[84].mxu0 %v8382_v53  ;;  %4886 = vmatprep.mubr.bf16.mxu1 %v8391_v54  ;;  %v8510_v53 = vcombine.low %v482_v42, %v490_v43  ;;  %v8519_v54 = vcombine.high %v494_v48, %v502_v49  ;;  %v10171_v41 = vld [vmem:[%s13025_s1 + $0x630] ss:$8 sps:$4 sm:$0xff]   ;;  %v10176_v42 = vld [vmem:[%s13025_s1 + $0x244] ss:$8 sps:$4 sm:$0xff]  }
  0xec   :  { %6298 = vmatprep.mubr.bf16.mxu0 %v8399_v55  ;;  %v8527_v55 = vcombine.high %v498_v50, %v506_v51  ;;  %v10179_v43 = vld [vmem:[%s13025_s1 + $0x644] ss:$8 sps:$4 sm:$0xff]  }
  0xf2   :  { %4887 = vmatmul.mubr.bf16.gmra.mrb[88].mxu1 %v8390_v60  ;;  %v8518_v60 = vcombine.low %v494_v48, %v502_v49  ;;  %v10174_v48 = vld [vmem:[%s13025_s1 + $0x240] ss:$8 sps:$4 sm:$0xff]  }
  0xf3   :  { %6299 = vmatmul.mubr.bf16.gmra.mrb[88].mxu0 %v8398_v61  ;;  %4896 = vmatprep.mubr.bf16.mxu1 %v8407_v62  ;;  %v8526_v61 = vcombine.low %v498_v50, %v506_v51  ;;  %v8535_v62 = vcombine.high %v510_v56, %v518_v57  ;;  %v10177_v49 = vld [vmem:[%s13025_s1 + $0x640] ss:$8 sps:$4 sm:$0xff]   ;;  %v10182_v50 = vld [vmem:[%s13025_s1 + $0x254] ss:$8 sps:$4 sm:$0xff]  }
  0xf4   :  { %6308 = vmatprep.mubr.bf16.mxu0 %v8415_v63  ;;  %v8543_v63 = vcombine.high %v514_v58, %v522_v59  ;;  %v10185_v51 = vld [vmem:[%s13025_s1 + $0x654] ss:$8 sps:$4 sm:$0xff]  }
  0xfa   :  { %4897 = vmatmul.mubr.bf16.gmra.mrb[92].mxu1 %v8406_v4  ;;  %v8534_v4 = vcombine.low %v510_v56, %v518_v57  ;;  %v10180_v56 = vld [vmem:[%s13025_s1 + $0x250] ss:$8 sps:$4 sm:$0xff]  }
  0xfb   :  { %6309 = vmatmul.mubr.bf16.gmra.mrb[92].mxu0 %v8414_v5  ;;  %4906 = vmatprep.mubr.bf16.mxu1 %v8423_v6  ;;  %v8542_v5 = vcombine.low %v514_v58, %v522_v59  ;;  %v8041_v6 = vcombine.high %v15_v0, %v23_v1  ;;  %v10183_v57 = vld [vmem:[%s13025_s1 + $0x650] ss:$8 sps:$4 sm:$0xff]   ;;  %v10188_v58 = vld [vmem:[%s13025_s1 + $0x264] ss:$8 sps:$4 sm:$0xff]  }
  0xfc   :  { %6318 = vmatprep.mubr.bf16.mxu0 %v8431_v7  ;;  %v8049_v7 = vcombine.high %v19_v2, %v27_v3  ;;  %v10191_v59 = vld [vmem:[%s13025_s1 + $0x664] ss:$8 sps:$4 sm:$0xff]  }
 0x102   :  { %4907 = vmatmul.mubr.bf16.gmra.mrb[96].mxu1 %v8422_v12  ;;  %v8040_v12 = vcombine.low %v15_v0, %v23_v1  ;;  %v10186_v0 = vld [vmem:[%s13025_s1 + $0x260] ss:$8 sps:$4 sm:$0xff]  }
 0x103   :  { %6319 = vmatmul.mubr.bf16.gmra.mrb[96].mxu0 %v8430_v13  ;;  %4916 = vmatprep.mubr.bf16.mxu1 %v8439_v14  ;;  %v8048_v13 = vcombine.low %v19_v2, %v27_v3  ;;  %v10150_v14 = vld [vmem:[%s13025_s1 + $0x200] ss:$8 sps:$4 sm:$0xff]   ;;  %v10194_v2 = vld [vmem:[%s13025_s1 + $0x274] ss:$8 sps:$4 sm:$0xff]  }
 0x104   :  { %6328 = vmatprep.mubr.bf16.mxu0 %v8447_v15  ;;  %v10153_v15 = vld [vmem:[%s13025_s1 + $0x600] ss:$8 sps:$4 sm:$0xff]   ;;  %v10197_v3 = vld [vmem:[%s13025_s1 + $0x674] ss:$8 sps:$4 sm:$0xff]  }
 0x105   :  { %v10189_v1 = vld [vmem:[%s13025_s1 + $0x660] ss:$8 sps:$4 sm:$0xff]  }
 0x10a   :  { %4917 = vmatmul.mubr.bf16.gmra.mrb[100].mxu1 %v8438_v20  ;;  %v47_v20 = vld [vmem:[%s13026_s0 + $0x108] sm:$0xff] }
 0x10b   :  { %6329 = vmatmul.mubr.bf16.gmra.mrb[100].mxu0 %v8446_v21  ;;  %4926 = vmatprep.mubr.bf16.mxu1 %v8455_v22  ;;  %v55_v21 = vld [vmem:[%s13026_s0 + $0x148] sm:$0xff] }
 0x10c   :  { %6338 = vmatprep.mubr.bf16.mxu0 %v8463_v23  ;;  %v51_v22 = vld [vmem:[%s13026_s0 + $0x128] sm:$0xff]  ;;  %v10156_v23 = vld [vmem:[%s13025_s1 + $0x210] ss:$8 sps:$4 sm:$0xff]  }
 0x112   :  { %4927 = vmatmul.mubr.bf16.gmra.mrb[104].mxu1 %v8454_v28  ;;  %v8056_v28 = vcombine.low %v31_v8, %v39_v9  ;;  %v10192_v8 = vld [vmem:[%s13025_s1 + $0x270] ss:$8 sps:$4 sm:$0xff]  }
 0x113   :  { %6339 = vmatmul.mubr.bf16.gmra.mrb[104].mxu0 %v8462_v29  ;;  %4936 = vmatprep.mubr.bf16.mxu1 %v8471_v30  ;;  %v8064_v29 = vcombine.low %v35_v10, %v43_v11  ;;  %v8073_v30 = vcombine.high %v47_v20, %v55_v21  ;;  %v10195_v9 = vld [vmem:[%s13025_s1 + $0x670] ss:$8 sps:$4 sm:$0xff]   ;;  %v10200_v10 = vld [vmem:[%s13025_s1 + $0x284] ss:$8 sps:$4 sm:$0xff]  }
 0x114   :  { %6348 = vmatprep.mubr.bf16.mxu0 %v8479_v31  ;;  %v8081_v31 = vcombine.high %v51_v22, %v59_v25  ;;  %v10203_v11 = vld [vmem:[%s13025_s1 + $0x684] ss:$8 sps:$4 sm:$0xff]  }
 0x11a   :  { %4937 = vmatmul.mubr.bf16.gmra.mrb[108].mxu1 %v8470_v36  ;;  %v63_v36 = vld [vmem:[%s13026_s0 + $0x188] sm:$0xff] }
 0x11b   :  { %6349 = vmatmul.mubr.bf16.gmra.mrb[108].mxu0 %v8478_v37  ;;  %4946 = vmatprep.mubr.bf16.mxu1 %v8487_v38  ;;  %v71_v37 = vld [vmem:[%s13026_s0 + $0x1c8] sm:$0xff] }
 0x11c   :  { %6358 = vmatprep.mubr.bf16.mxu0 %v8495_v39  ;;  %v67_v38 = vld [vmem:[%s13026_s0 + $0x1a8] sm:$0xff] }
 0x11d   :  { %v75_v39 = vld [vmem:[%s13026_s0 + $0x1e8] sm:$0xff] }
 0x122   :  { %4947 = vmatmul.mubr.bf16.gmra.mrb[112].mxu1 %v8486_v44  ;;  %v8072_v44 = vcombine.low %v47_v20, %v55_v21  ;;  %v111_v20 = vld [vmem:[%s13026_s0 + $0x308] sm:$0xff] }
 0x123   :  { %6359 = vmatmul.mubr.bf16.gmra.mrb[112].mxu0 %v8494_v45  ;;  %4956 = vmatprep.mubr.bf16.mxu1 %v8503_v46  ;;  %v8080_v45 = vcombine.low %v51_v22, %v59_v25  ;;  %v8089_v46 = vcombine.high %v63_v36, %v71_v37  ;;  %v119_v21 = vld [vmem:[%s13026_s0 + $0x348] sm:$0xff]  ;;  %v10207_v25 = vld [vmem:[%s13025_s1 + $0x690] ss:$8 sps:$4 sm:$0xff]  }
 0x124   :  { %6368 = vmatprep.mubr.bf16.mxu0 %v8511_v47  ;;  %v8097_v47 = vcombine.high %v67_v38, %v75_v39  ;;  %v115_v22 = vld [vmem:[%s13026_s0 + $0x328] sm:$0xff] }
 0x12a   :  { %4957 = vmatmul.mubr.bf16.gmra.mrb[116].mxu1 %v8502_v52  ;;  %v79_v52 = vld [vmem:[%s13026_s0 + $0x208] sm:$0xff] }
 0x12b   :  { %6369 = vmatmul.mubr.bf16.gmra.mrb[116].mxu0 %v8510_v53  ;;  %4966 = vmatprep.mubr.bf16.mxu1 %v8519_v54  ;;  %v87_v53 = vld [vmem:[%s13026_s0 + $0x248] sm:$0xff] }
 0x12c   :  { %6378 = vmatprep.mubr.bf16.mxu0 %v8527_v55  ;;  %v83_v54 = vld [vmem:[%s13026_s0 + $0x228] sm:$0xff] }
 0x12d   :  { %v91_v55 = vld [vmem:[%s13026_s0 + $0x268] sm:$0xff] }
 0x132   :  { %4967 = vmatmul.mubr.bf16.gmra.mrb[120].mxu1 %v8518_v60  ;;  %v8088_v60 = vcombine.low %v63_v36, %v71_v37  ;;  %v131_v36 = vld [vmem:[%s13026_s0 + $0x3a8] sm:$0xff] }
 0x133   :  { %6379 = vmatmul.mubr.bf16.gmra.mrb[120].mxu0 %v8526_v61  ;;  %4976 = vmatprep.mubr.bf16.mxu1 %v8535_v62  ;;  %v8096_v61 = vcombine.low %v67_v38, %v75_v39  ;;  %v8105_v62 = vcombine.high %v79_v52, %v87_v53  ;;  %v139_v37 = vld [vmem:[%s13026_s0 + $0x3e8] sm:$0xff]  ;;  %v8136_v38 = vcombine.low %v111_v20, %v119_v21 }
 0x134   :  { %6388 = vmatprep.mubr.bf16.mxu0 %v8543_v63  ;;  %v8113_v63 = vcombine.high %v83_v54, %v91_v55 }
 0x13a   :  { %4977 = vmatmul.mubr.bf16.gmra.mrb[124].mxu1 %v8534_v4  ;;  %v95_v4 = vld [vmem:[%s13026_s0 + $0x288] sm:$0xff] }
 0x13b   :  { %6389 = vmatmul.mubr.bf16.gmra.mrb[124].mxu0 %v8542_v5  ;;  %5019 = vmatprep.mubr.bf16.mxu1 %v8041_v6  ;;  %v103_v5 = vld [vmem:[%s13026_s0 + $0x2c8] sm:$0xff] }
 0x13c   :  { %6431 = vmatprep.mubr.bf16.mxu0 %v8049_v7  ;;  %v99_v6 = vld [vmem:[%s13026_s0 + $0x2a8] sm:$0xff] }
 0x13d   :  { %v107_v7 = vld [vmem:[%s13026_s0 + $0x2e8] sm:$0xff] }
 0x142   :  { %5020 = vmatmul.mubr.bf16.vlgmr.msra.gmra.mrb[0].mxu1 %v8040_v12  ;;  %v8104_v12 = vcombine.low %v79_v52, %v87_v53 }
 0x143   :  { %6432 = vmatmul.mubr.bf16.vlgmr.msra.gmra.mrb[0].mxu0 %v8048_v13  ;;  %5341 = vmatpush1.bf16.msra.mxu1 %v10150_v14  ;;  %v8112_v13 = vcombine.low %v83_v54, %v91_v55  ;;  %v8121_v14 = vcombine.high %v95_v4, %v103_v5  ;;  %v159_v54 = vld [vmem:[%s13026_s0 + $0x488] sm:$0xff] }
 0x144   :  { %6753 = vmatpush1.bf16.msra.mxu0 %v10153_v15  ;;  %5029 = vmatprep.mubr.bf16.mxu1 %v8057_v16  ;;  %v8129_v15 = vcombine.high %v99_v6, %v107_v7  ;;  %v10198_v16 = vld [vmem:[%s13025_s1 + $0x280] ss:$8 sps:$4 sm:$0xff]  }
 0x145   :  { %6441 = vmatprep.mubr.bf16.mxu0 %v8065_v17  ;;  %5342 = vmatprep.subr.bf16.mxu1 %v10158_v18  ;;  %v10201_v17 = vld [vmem:[%s13025_s1 + $0x680] ss:$8 sps:$4 sm:$0xff]   ;;  %v10206_v18 = vld [vmem:[%s13025_s1 + $0x294] ss:$8 sps:$4 sm:$0xff]  }
 0x146   :  { %6754 = vmatprep.subr.bf16.mxu0 %v10161_v19  ;;  %v10209_v19 = vld [vmem:[%s13025_s1 + $0x694] ss:$8 sps:$4 sm:$0xff]   ;;  %v167_v55 = vld [vmem:[%s13026_s0 + $0x4c8] sm:$0xff] }
 0x147   :  { %5343 = vmatpush1.bf16.msra.mxu1 %v10156_v23  ;;  %v123_v23 = vld [vmem:[%s13026_s0 + $0x368] sm:$0xff] }
 0x148   :  { %6755 = vmatpush1.bf16.msra.mxu0 %v10159_v24  ;;  %5344 = vmatprep.subr.bf16.mxu1 %v10164_v26  ;;  %v10204_v24 = vld [vmem:[%s13025_s1 + $0x290] ss:$8 sps:$4 sm:$0xff]   ;;  %v10212_v26 = vld [vmem:[%s13025_s1 + $0x2a4] ss:$8 sps:$4 sm:$0xff]   ;;  %v8144_v39 = vcombine.low %v115_v22, %v123_v23 }
 0x149   :  { %6756 = vmatprep.subr.bf16.mxu0 %v10167_v27  ;;  %v10215_v27 = vld [vmem:[%s13025_s1 + $0x6a4] ss:$8 sps:$4 sm:$0xff]  }
 0x14a   :  { %5030 = vmatmul.mubr.bf16.gmra.mrb[4].mxu1 %v8056_v28  ;;  %v8120_v28 = vcombine.low %v95_v4, %v103_v5  ;;  %v179_v4 = vld [vmem:[%s13026_s0 + $0x528] sm:$0xff] }
 0x14b   :  { %6442 = vmatmul.mubr.bf16.gmra.mrb[4].mxu0 %v8064_v29  ;;  %5039 = vmatprep.mubr.bf16.mxu1 %v8073_v30  ;;  %v8128_v29 = vcombine.low %v99_v6, %v107_v7  ;;  %v8137_v30 = vcombine.high %v111_v20, %v119_v21  ;;  %v187_v5 = vld [vmem:[%s13026_s0 + $0x568] sm:$0xff]  ;;  %v8184_v6 = vcombine.low %v159_v54, %v167_v55  ;;  %v10231_v20 = vld [vmem:[%s13025_s1 + $0x6d0] ss:$8 sps:$4 sm:$0xff]  }
 0x14c   :  { %6451 = vmatprep.mubr.bf16.mxu0 %v8081_v31  ;;  %5345 = vmatpush1.bf16.msra.mxu1 %v10162_v32  ;;  %v8145_v31 = vcombine.high %v115_v22, %v123_v23  ;;  %v10210_v32 = vld [vmem:[%s13025_s1 + $0x2a0] ss:$8 sps:$4 sm:$0xff]   ;;  %v10233_v22 = vld [vmem:[%s13025_s1 + $0x6d4] ss:$8 sps:$4 sm:$0xff]  }
 0x14d   :  { %6757 = vmatpush1.bf16.msra.mxu0 %v10165_v33  ;;  %5346 = vmatprep.subr.bf16.mxu1 %v10170_v34  ;;  %v10213_v33 = vld [vmem:[%s13025_s1 + $0x6a0] ss:$8 sps:$4 sm:$0xff]  }
 0x14e   :  { %6758 = vmatprep.subr.bf16.mxu0 %v10173_v35  ;;  %v127_v34 = vld [vmem:[%s13026_s0 + $0x388] sm:$0xff] }
 0x14f   :  { %v135_v35 = vld [vmem:[%s13026_s0 + $0x3c8] sm:$0xff] }
 0x150   :  { %5347 = vmatpush1.bf16.msra.mxu1 %v10168_v40  ;;  %v8153_v40 = vcombine.high %v127_v34, %v135_v35  ;;  %v207_v21 = vld [vmem:[%s13026_s0 + $0x608] sm:$0xff] }
 0x151   :  { %6759 = vmatpush1.bf16.msra.mxu0 %v10171_v41  ;;  %5348 = vmatprep.subr.bf16.mxu1 %v10176_v42  ;;  %v8161_v41 = vcombine.high %v131_v36, %v139_v37  ;;  %v10216_v42 = vld [vmem:[%s13025_s1 + $0x2b0] ss:$8 sps:$4 sm:$0xff]   ;;  %v215_v23 = vld [vmem:[%s13026_s0 + $0x648] sm:$0xff] }
 0x152   :  { %6760 = vmatprep.subr.bf16.mxu0 %v10179_v43  ;;  %5040 = vmatmul.mubr.bf16.gmra.mrb[8].mxu1 %v8072_v44  ;;  %v10218_v43 = vld [vmem:[%s13025_s1 + $0x2b4] ss:$8 sps:$4 sm:$0xff]   ;;  %v10219_v44 = vld [vmem:[%s13025_s1 + $0x6b0] ss:$8 sps:$4 sm:$0xff]  }
 0x153   :  { %6452 = vmatmul.mubr.bf16.gmra.mrb[8].mxu0 %v8080_v45  ;;  %5049 = vmatprep.mubr.bf16.mxu1 %v8089_v46  ;;  %v143_v45 = vld [vmem:[%s13026_s0 + $0x408] sm:$0xff]  ;;  %v10221_v46 = vld [vmem:[%s13025_s1 + $0x6b4] ss:$8 sps:$4 sm:$0xff]  }
 0x154   :  { %6461 = vmatprep.mubr.bf16.mxu0 %v8097_v47  ;;  %5349 = vmatpush1.bf16.msra.mxu1 %v10174_v48  ;;  %v151_v47 = vld [vmem:[%s13026_s0 + $0x448] sm:$0xff] }
 0x155   :  { %6761 = vmatpush1.bf16.msra.mxu0 %v10177_v49  ;;  %5350 = vmatprep.subr.bf16.mxu1 %v10182_v50  ;;  %v147_v48 = vld [vmem:[%s13026_s0 + $0x428] sm:$0xff]  ;;  %v8152_v50 = vcombine.low %v127_v34, %v135_v35  ;;  %v8169_v52 = vcombine.high %v143_v45, %v151_v47  ;;  %v8232_v34 = vcombine.low %v207_v21, %v215_v23 }
 0x156   :  { %6762 = vmatprep.subr.bf16.mxu0 %v10185_v51  ;;  %v155_v49 = vld [vmem:[%s13026_s0 + $0x468] sm:$0xff]  ;;  %v8160_v51 = vcombine.low %v131_v36, %v139_v37 }
 0x157   :  { %v8177_v53 = vcombine.high %v147_v48, %v155_v49 }
 0x158   :  { %5351 = vmatpush1.bf16.msra.mxu1 %v10180_v56  ;;  %v163_v56 = vld [vmem:[%s13026_s0 + $0x4a8] sm:$0xff] }
 0x159   :  { %6763 = vmatpush1.bf16.msra.mxu0 %v10183_v57  ;;  %5352 = vmatprep.subr.bf16.mxu1 %v10188_v58  ;;  %v171_v57 = vld [vmem:[%s13026_s0 + $0x4e8] sm:$0xff]  ;;  %v8168_v58 = vcombine.low %v143_v45, %v151_v47 }
 0x15a   :  { %6764 = vmatprep.subr.bf16.mxu0 %v10191_v59  ;;  %5050 = vmatmul.mubr.bf16.gmra.mrb[12].mxu1 %v8088_v60  ;;  %v8176_v59 = vcombine.low %v147_v48, %v155_v49  ;;  %v8185_v60 = vcombine.high %v159_v54, %v167_v55  ;;  %v8192_v7 = vcombine.low %v163_v56, %v171_v57  ;;  %v251_v45 = vld [vmem:[%s13026_s0 + $0x768] sm:$0xff] }
 0x15b   :  { %6462 = vmatmul.mubr.bf16.gmra.mrb[12].mxu0 %v8096_v61  ;;  %5059 = vmatprep.mubr.bf16.mxu1 %v8105_v62  ;;  %v8193_v61 = vcombine.high %v163_v56, %v171_v57  ;;  %v10222_v62 = vld [vmem:[%s13025_s1 + $0x2c0] ss:$8 sps:$4 sm:$0xff]  }
 0x15c   :  { %6471 = vmatprep.mubr.bf16.mxu0 %v8113_v63  ;;  %5353 = vmatpush1.bf16.msra.mxu1 %v10186_v0  ;;  %v10224_v63 = vld [vmem:[%s13025_s1 + $0x2c4] ss:$8 sps:$4 sm:$0xff]   ;;  %v10225_v0 = vld [vmem:[%s13025_s1 + $0x6c0] ss:$8 sps:$4 sm:$0xff]  }
 0x15d   :  { %6765 = vmatpush1.bf16.msra.mxu0 %v10189_v1  ;;  %5354 = vmatprep.subr.bf16.mxu1 %v10194_v2  ;;  %v175_v1 = vld [vmem:[%s13026_s0 + $0x508] sm:$0xff] }
 0x15e   :  { %6766 = vmatprep.subr.bf16.mxu0 %v10197_v3  ;;  %v10227_v2 = vld [vmem:[%s13025_s1 + $0x6c4] ss:$8 sps:$4 sm:$0xff]  }
 0x15f   :  { %v183_v3 = vld [vmem:[%s13026_s0 + $0x548] sm:$0xff] }
 0x160   :  { %5355 = vmatpush1.bf16.msra.mxu1 %v10192_v8  ;;  %v8201_v8 = vcombine.high %v175_v1, %v183_v3 }
 0x161   :  { %6767 = vmatpush1.bf16.msra.mxu0 %v10195_v9  ;;  %5356 = vmatprep.subr.bf16.mxu1 %v10200_v10  ;;  %v8209_v9 = vcombine.high %v179_v4, %v187_v5  ;;  %v191_v10 = vld [vmem:[%s13026_s0 + $0x588] sm:$0xff] }
 0x162   :  { %6768 = vmatprep.subr.bf16.mxu0 %v10203_v11  ;;  %5060 = vmatmul.mubr.bf16.gmra.mrb[16].mxu1 %v8104_v12  ;;  %v199_v11 = vld [vmem:[%s13026_s0 + $0x5c8] sm:$0xff] }
 0x163   :  { %6472 = vmatmul.mubr.bf16.gmra.mrb[16].mxu0 %v8112_v13  ;;  %5069 = vmatprep.mubr.bf16.mxu1 %v8121_v14  ;;  %v195_v12 = vld [vmem:[%s13026_s0 + $0x5a8] sm:$0xff]  ;;  %v8200_v14 = vcombine.low %v175_v1, %v183_v3 }
 0x164   :  { %6481 = vmatprep.mubr.bf16.mxu0 %v8129_v15  ;;  %5357 = vmatpush1.bf16.msra.mxu1 %v10198_v16  ;;  %v203_v13 = vld [vmem:[%s13026_s0 + $0x5e8] sm:$0xff]  ;;  %v8208_v15 = vcombine.low %v179_v4, %v187_v5  ;;  %v8217_v16 = vcombine.high %v191_v10, %v199_v11 }
 0x165   :  { %6769 = vmatpush1.bf16.msra.mxu0 %v10201_v17  ;;  %5358 = vmatprep.subr.bf16.mxu1 %v10206_v18  ;;  %v8225_v17 = vcombine.high %v195_v12, %v203_v13  ;;  %v10228_v18 = vld [vmem:[%s13025_s1 + $0x2d0] ss:$8 sps:$4 sm:$0xff]   ;;  %v283_v1 = vld [vmem:[%s13026_s0 + $0x868] sm:$0xff] }
 0x166   :  { %6770 = vmatprep.subr.bf16.mxu0 %v10209_v19  ;;  %v10230_v19 = vld [vmem:[%s13025_s1 + $0x2d4] ss:$8 sps:$4 sm:$0xff]  }
 0x168   :  { %5359 = vmatpush1.bf16.msra.mxu1 %v10204_v24  ;;  %v211_v24 = vld [vmem:[%s13026_s0 + $0x628] sm:$0xff] }
 0x169   :  { %6771 = vmatpush1.bf16.msra.mxu0 %v10207_v25  ;;  %5360 = vmatprep.subr.bf16.mxu1 %v10212_v26  ;;  %v219_v25 = vld [vmem:[%s13026_s0 + $0x668] sm:$0xff]  ;;  %v8216_v26 = vcombine.low %v191_v10, %v199_v11 }
 0x16a   :  { %6772 = vmatprep.subr.bf16.mxu0 %v10215_v27  ;;  %5070 = vmatmul.mubr.bf16.gmra.mrb[20].mxu1 %v8120_v28  ;;  %v8224_v27 = vcombine.low %v195_v12, %v203_v13  ;;  %v8233_v28 = vcombine.high %v207_v21, %v215_v23  ;;  %v8240_v35 = vcombine.low %v211_v24, %v219_v25 }
 0x16b   :  { %6482 = vmatmul.mubr.bf16.gmra.mrb[20].mxu0 %v8128_v29  ;;  %5079 = vmatprep.mubr.bf16.mxu1 %v8137_v30  ;;  %v8241_v29 = vcombine.high %v211_v24, %v219_v25  ;;  %v223_v30 = vld [vmem:[%s13026_s0 + $0x688] sm:$0xff] }
 0x16c   :  { %6491 = vmatprep.mubr.bf16.mxu0 %v8145_v31  ;;  %5361 = vmatpush1.bf16.msra.mxu1 %v10210_v32  ;;  %v231_v31 = vld [vmem:[%s13026_s0 + $0x6c8] sm:$0xff] }
 0x16d   :  { %6773 = vmatpush1.bf16.msra.mxu0 %v10213_v33  ;;  %5362 = vmatprep.subr.bf16.mxu1 %v10218_v43  ;;  %v227_v32 = vld [vmem:[%s13026_s0 + $0x6a8] sm:$0xff]  ;;  %v8249_v36 = vcombine.high %v223_v30, %v231_v31 }
 0x16e   :  { %6774 = vmatprep.subr.bf16.mxu0 %v10221_v46  ;;  %v235_v33 = vld [vmem:[%s13026_s0 + $0x6e8] sm:$0xff]  ;;  %v8248_v46 = vcombine.low %v223_v30, %v231_v31 }
 0x16f   :  { %v8257_v37 = vcombine.high %v227_v32, %v235_v33  ;;  %v247_v43 = vld [vmem:[%s13026_s0 + $0x748] sm:$0xff]  ;;  %v8256_v47 = vcombine.low %v227_v32, %v235_v33 }
 0x170   :  { %5363 = vmatpush1.bf16.msra.mxu1 %v10216_v42  ;;  %v10239_v42 = vld [vmem:[%s13025_s1 + $0x6e4] ss:$8 sps:$4 sm:$0xff]  }
 0x171   :  { %6775 = vmatpush1.bf16.msra.mxu0 %v10219_v44  ;;  %5364 = vmatprep.subr.bf16.mxu1 %v10224_v63  ;;  %v243_v44 = vld [vmem:[%s13026_s0 + $0x728] sm:$0xff] }
 0x172   :  { %5080 = vmatmul.mubr.bf16.gmra.mrb[24].mxu1 %v8136_v38  ;;  %6776 = vmatprep.subr.bf16.mxu0 %v10227_v2  ;;  %v10234_v38 = vld [vmem:[%s13025_s1 + $0x2e0] ss:$8 sps:$4 sm:$0xff]   ;;  %v8273_v49 = vcombine.high %v243_v44, %v251_v45  ;;  %v8272_v55 = vcombine.low %v243_v44, %v251_v45 }
 0x173   :  { %6492 = vmatmul.mubr.bf16.gmra.mrb[24].mxu0 %v8144_v39  ;;  %5089 = vmatprep.mubr.bf16.mxu1 %v8153_v40  ;;  %v10236_v39 = vld [vmem:[%s13025_s1 + $0x2e4] ss:$8 sps:$4 sm:$0xff]   ;;  %v10237_v40 = vld [vmem:[%s13025_s1 + $0x6e0] ss:$8 sps:$4 sm:$0xff]  }
 0x174   :  { %6501 = vmatprep.mubr.bf16.mxu0 %v8161_v41  ;;  %5365 = vmatpush1.bf16.msra.mxu1 %v10222_v62  ;;  %v239_v41 = vld [vmem:[%s13026_s0 + $0x708] sm:$0xff]  ;;  %v10245_v62 = vld [vmem:[%s13025_s1 + $0x6f4] ss:$8 sps:$4 sm:$0xff]  }
 0x175   :  { %6777 = vmatpush1.bf16.msra.mxu0 %v10225_v0  ;;  %5366 = vmatprep.subr.bf16.mxu1 %v10230_v19  ;;  %v8265_v48 = vcombine.high %v239_v41, %v247_v43  ;;  %v8264_v54 = vcombine.low %v239_v41, %v247_v43  ;;  %v279_v63 = vld [vmem:[%s13026_s0 + $0x848] sm:$0xff] }
 0x176   :  { %6778 = vmatprep.subr.bf16.mxu0 %v10233_v22  ;;  %v275_v0 = vld [vmem:[%s13026_s0 + $0x828] sm:$0xff] }
 0x177   :  { %v8305_v5 = vcombine.high %v275_v0, %v283_v1  ;;  %v8304_v11 = vcombine.low %v275_v0, %v283_v1  ;;  %v315_v19 = vld [vmem:[%s13026_s0 + $0x968] sm:$0xff] }
 0x178   :  { %5367 = vmatpush1.bf16.msra.mxu1 %v10228_v18  ;;  %v307_v18 = vld [vmem:[%s13026_s0 + $0x928] sm:$0xff] }
 0x179   :  { %6779 = vmatpush1.bf16.msra.mxu0 %v10231_v20  ;;  %5368 = vmatprep.subr.bf16.mxu1 %v10236_v39  ;;  %v8337_v23 = vcombine.high %v307_v18, %v315_v19  ;;  %v319_v24 = vld [vmem:[%s13026_s0 + $0x988] sm:$0xff] }
 0x17a   :  { %5090 = vmatmul.mubr.bf16.gmra.mrb[28].mxu1 %v8152_v50  ;;  %6780 = vmatprep.subr.bf16.mxu0 %v10239_v42  ;;  %v255_v50 = vld [vmem:[%s13026_s0 + $0x788] sm:$0xff] }
 0x17b   :  { %6502 = vmatmul.mubr.bf16.gmra.mrb[28].mxu0 %v8160_v51  ;;  %5099 = vmatprep.mubr.bf16.mxu1 %v8169_v52  ;;  %v263_v51 = vld [vmem:[%s13026_s0 + $0x7c8] sm:$0xff] }
 0x17c   :  { %6511 = vmatprep.mubr.bf16.mxu0 %v8177_v53  ;;  %5369 = vmatpush1.bf16.msra.mxu1 %v10234_v38  ;;  %v259_v52 = vld [vmem:[%s13026_s0 + $0x7a8] sm:$0xff]  ;;  %v8281_v56 = vcombine.high %v255_v50, %v263_v51  ;;  %v8280_v2 = vcombine.low %v255_v50, %v263_v51 }
 0x17d   :  { %6781 = vmatpush1.bf16.msra.mxu0 %v10237_v40  ;;  %v267_v53 = vld [vmem:[%s13026_s0 + $0x7e8] sm:$0xff] }
 0x17e   :  { %v8289_v57 = vcombine.high %v259_v52, %v267_v53  ;;  %6782 = vmatprep.subr.bf16.mxu0 %v10245_v62  ;;  %v8288_v3 = vcombine.low %v259_v52, %v267_v53  ;;  %v327_v25 = vld [vmem:[%s13026_s0 + $0x9c8] sm:$0xff] }
 0x17f   :  { %v8345_v30 = vcombine.high %v319_v24, %v327_v25  ;;  %v335_v32 = vld [vmem:[%s13026_s0 + $0xa08] sm:$0xff] }
 0x180   :  { %v343_v33 = vld [vmem:[%s13026_s0 + $0xa48] sm:$0xff] }
 0x181   :  { %v8361_v38 = vcombine.high %v335_v32, %v343_v33  ;;  %v351_v40 = vld [vmem:[%s13026_s0 + $0xa88] sm:$0xff]  ;;  %v8360_v44 = vcombine.low %v335_v32, %v343_v33 }
 0x182   :  { %5100 = vmatmul.mubr.bf16.gmra.mrb[32].mxu1 %v8168_v58  ;;  %v10240_v58 = vld [vmem:[%s13025_s1 + $0x2f0] ss:$8 sps:$4 sm:$0xff]   ;;  %v359_v41 = vld [vmem:[%s13026_s0 + $0xac8] sm:$0xff] }
 0x183   :  { %6512 = vmatmul.mubr.bf16.gmra.mrb[32].mxu0 %v8176_v59  ;;  %5109 = vmatprep.mubr.bf16.mxu1 %v8185_v60  ;;  %v10242_v59 = vld [vmem:[%s13025_s1 + $0x2f4] ss:$8 sps:$4 sm:$0xff]   ;;  %v10243_v60 = vld [vmem:[%s13025_s1 + $0x6f0] ss:$8 sps:$4 sm:$0xff]   ;;  %v355_v42 = vld [vmem:[%s13026_s0 + $0xaa8] sm:$0xff]  ;;  %v8376_v52 = vcombine.low %v351_v40, %v359_v41 }
 0x184   :  { %6521 = vmatprep.mubr.bf16.mxu0 %v8193_v61  ;;  %v271_v61 = vld [vmem:[%s13026_s0 + $0x808] sm:$0xff]  ;;  %5370 = vmatprep.subr.bf16.mxu1 %v10242_v59 }
 0x185   :  { %5371 = vmatpush1.bf16.msra.mxu1 %v10240_v58  ;;  %6783 = vmatpush1.bf16.msra.mxu0 %v10243_v60  ;;  %v8297_v4 = vcombine.high %v271_v61, %v279_v63  ;;  %v8296_v10 = vcombine.low %v271_v61, %v279_v63  ;;  %v363_v43 = vld [vmem:[%s13026_s0 + $0xae8] sm:$0xff] }
 0x186   :  { %v371_v50 = vld [vmem:[%s13026_s0 + $0xb28] sm:$0xff]  ;;  %v8384_v53 = vcombine.low %v355_v42, %v363_v43 }
 0x187   :  { %v379_v51 = vld [vmem:[%s13026_s0 + $0xb68] sm:$0xff] }
 0x188   :  { %v387_v58 = vld [vmem:[%s13026_s0 + $0xba8] sm:$0xff]  ;;  %v8400_v61 = vcombine.low %v371_v50, %v379_v51 }
 0x189   :  { %v395_v59 = vld [vmem:[%s13026_s0 + $0xbe8] sm:$0xff] }
 0x18a   :  { %5110 = vmatmul.mubr.bf16.gmra.mrb[36].mxu1 %v8184_v6  ;;  %v287_v6 = vld [vmem:[%s13026_s0 + $0x888] sm:$0xff]  ;;  %v8417_v63 = vcombine.high %v387_v58, %v395_v59 }
 0x18b   :  { %6522 = vmatmul.mubr.bf16.gmra.mrb[36].mxu0 %v8192_v7  ;;  %5119 = vmatprep.mubr.bf16.mxu1 %v8201_v8  ;;  %v295_v7 = vld [vmem:[%s13026_s0 + $0x8c8] sm:$0xff] }
 0x18c   :  { %6531 = vmatprep.mubr.bf16.mxu0 %v8209_v9  ;;  %v291_v8 = vld [vmem:[%s13026_s0 + $0x8a8] sm:$0xff]  ;;  %v8313_v12 = vcombine.high %v287_v6, %v295_v7  ;;  %v8312_v20 = vcombine.low %v287_v6, %v295_v7 }
 0x18d   :  { %v299_v9 = vld [vmem:[%s13026_s0 + $0x8e8] sm:$0xff] }
 0x18e   :  { %v8321_v13 = vcombine.high %v291_v8, %v299_v9  ;;  %v8320_v21 = vcombine.low %v291_v8, %v299_v9  ;;  %v399_v0 = vld [vmem:[%s13026_s0 + $0xc08] sm:$0xff] }
 0x18f   :  { %v407_v1 = vld [vmem:[%s13026_s0 + $0xc48] sm:$0xff] }
 0x190   :  { %v8425_v6 = vcombine.high %v399_v0, %v407_v1  ;;  %v415_v8 = vld [vmem:[%s13026_s0 + $0xc88] sm:$0xff] }
 0x191   :  { %v423_v9 = vld [vmem:[%s13026_s0 + $0xcc8] sm:$0xff] }
 0x192   :  { %5120 = vmatmul.mubr.bf16.gmra.mrb[40].mxu1 %v8200_v14  ;;  %v10248_v14 = vld [vmem:[%s13025_s1 + $0x304] ss:$8 sps:$4 sm:$0xff]  }
 0x193   :  { %6532 = vmatmul.mubr.bf16.gmra.mrb[40].mxu0 %v8208_v15  ;;  %5129 = vmatprep.mubr.bf16.mxu1 %v8217_v16  ;;  %v303_v15 = vld [vmem:[%s13026_s0 + $0x908] sm:$0xff] }
 0x194   :  { %6541 = vmatprep.mubr.bf16.mxu0 %v8225_v17  ;;  %v10251_v16 = vld [vmem:[%s13025_s1 + $0x704] ss:$8 sps:$4 sm:$0xff]   ;;  %5693 = vmatprep.subr.bf16.mxu1 %v10248_v14  ;;  %v8441_v14 = vcombine.high %v415_v8, %v423_v9 }
 0x195   :  { %v311_v17 = vld [vmem:[%s13026_s0 + $0x948] sm:$0xff]  ;;  %7105 = vmatprep.subr.bf16.mxu0 %v10251_v16 }
 0x196   :  { %v8329_v22 = vcombine.high %v303_v15, %v311_v17  ;;  %v431_v16 = vld [vmem:[%s13026_s0 + $0xd08] sm:$0xff] }
 0x197   :  { %v463_v32 = vld [vmem:[%s13026_s0 + $0xe08] sm:$0xff] }
 0x198   :  { %v471_v33 = vld [vmem:[%s13026_s0 + $0xe48] sm:$0xff] }
 0x19a   :  { %5130 = vmatmul.mubr.bf16.gmra.mrb[44].mxu1 %v8216_v26  ;;  %v323_v26 = vld [vmem:[%s13026_s0 + $0x9a8] sm:$0xff] }
 0x19b   :  { %6542 = vmatmul.mubr.bf16.gmra.mrb[44].mxu0 %v8224_v27  ;;  %5139 = vmatprep.mubr.bf16.mxu1 %v8233_v28  ;;  %v331_v27 = vld [vmem:[%s13026_s0 + $0x9e8] sm:$0xff]  ;;  %v8328_v28 = vcombine.low %v303_v15, %v311_v17 }
 0x19c   :  { %6551 = vmatprep.mubr.bf16.mxu0 %v8241_v29  ;;  %v8336_v29 = vcombine.low %v307_v18, %v315_v19  ;;  %v8353_v31 = vcombine.high %v323_v26, %v331_v27  ;;  %v439_v17 = vld [vmem:[%s13026_s0 + $0xd48] sm:$0xff] }
 0x19d   :  { %v435_v18 = vld [vmem:[%s13026_s0 + $0xd28] sm:$0xff] }
 0x19e   :  { %v443_v19 = vld [vmem:[%s13026_s0 + $0xd68] sm:$0xff] }
 0x1a2   :  { %5140 = vmatmul.mubr.bf16.gmra.mrb[48].mxu1 %v8232_v34  ;;  %v339_v34 = vld [vmem:[%s13026_s0 + $0xa28] sm:$0xff] }
 0x1a3   :  { %6552 = vmatmul.mubr.bf16.gmra.mrb[48].mxu0 %v8240_v35  ;;  %5149 = vmatprep.mubr.bf16.mxu1 %v8249_v36  ;;  %v347_v35 = vld [vmem:[%s13026_s0 + $0xa68] sm:$0xff]  ;;  %v8344_v36 = vcombine.low %v319_v24, %v327_v25 }
 0x1a4   :  { %6561 = vmatprep.mubr.bf16.mxu0 %v8257_v37  ;;  %v8352_v37 = vcombine.low %v323_v26, %v331_v27  ;;  %v8369_v39 = vcombine.high %v339_v34, %v347_v35  ;;  %v8368_v45 = vcombine.low %v339_v34, %v347_v35  ;;  %v447_v24 = vld [vmem:[%s13026_s0 + $0xd88] sm:$0xff] }
 0x1a5   :  { %v455_v25 = vld [vmem:[%s13026_s0 + $0xdc8] sm:$0xff] }
 0x1a6   :  { %v451_v26 = vld [vmem:[%s13026_s0 + $0xda8] sm:$0xff] }
 0x1a7   :  { %v459_v27 = vld [vmem:[%s13026_s0 + $0xde8] sm:$0xff] }
 0x1a8   :  { %v467_v34 = vld [vmem:[%s13026_s0 + $0xe28] sm:$0xff] }
 0x1a9   :  { %v475_v35 = vld [vmem:[%s13026_s0 + $0xe68] sm:$0xff] }
 0x1aa   :  { %5150 = vmatmul.mubr.bf16.gmra.mrb[52].mxu1 %v8248_v46  ;;  %v8377_v46 = vcombine.high %v351_v40, %v359_v41  ;;  %v479_v40 = vld [vmem:[%s13026_s0 + $0xe88] sm:$0xff] }
 0x1ab   :  { %6562 = vmatmul.mubr.bf16.gmra.mrb[52].mxu0 %v8256_v47  ;;  %5159 = vmatprep.mubr.bf16.mxu1 %v8265_v48  ;;  %v8385_v47 = vcombine.high %v355_v42, %v363_v43  ;;  %v367_v48 = vld [vmem:[%s13026_s0 + $0xb08] sm:$0xff] }
 0x1ac   :  { %6571 = vmatprep.mubr.bf16.mxu0 %v8273_v49  ;;  %v375_v49 = vld [vmem:[%s13026_s0 + $0xb48] sm:$0xff] }
 0x1ad   :  { %v8392_v60 = vcombine.low %v367_v48, %v375_v49  ;;  %v487_v41 = vld [vmem:[%s13026_s0 + $0xec8] sm:$0xff] }
 0x1ae   :  { %v483_v42 = vld [vmem:[%s13026_s0 + $0xea8] sm:$0xff] }
 0x1af   :  { %v491_v43 = vld [vmem:[%s13026_s0 + $0xee8] sm:$0xff] }
 0x1b2   :  { %5160 = vmatmul.mubr.bf16.gmra.mrb[56].mxu1 %v8264_v54  ;;  %v8393_v54 = vcombine.high %v367_v48, %v375_v49  ;;  %v495_v48 = vld [vmem:[%s13026_s0 + $0xf08] sm:$0xff] }
 0x1b3   :  { %6572 = vmatmul.mubr.bf16.gmra.mrb[56].mxu0 %v8272_v55  ;;  %5169 = vmatprep.mubr.bf16.mxu1 %v8281_v56  ;;  %v8401_v55 = vcombine.high %v371_v50, %v379_v51  ;;  %v383_v56 = vld [vmem:[%s13026_s0 + $0xb88] sm:$0xff] }
 0x1b4   :  { %6581 = vmatprep.mubr.bf16.mxu0 %v8289_v57  ;;  %v391_v57 = vld [vmem:[%s13026_s0 + $0xbc8] sm:$0xff] }
 0x1b5   :  { %v8409_v62 = vcombine.high %v383_v56, %v391_v57  ;;  %v503_v49 = vld [vmem:[%s13026_s0 + $0xf48] sm:$0xff] }
 0x1b6   :  { %v499_v50 = vld [vmem:[%s13026_s0 + $0xf28] sm:$0xff] }
 0x1b7   :  { %v507_v51 = vld [vmem:[%s13026_s0 + $0xf68] sm:$0xff] }
 0x1ba   :  { %5170 = vmatmul.mubr.bf16.gmra.mrb[60].mxu1 %v8280_v2  ;;  %v403_v2 = vld [vmem:[%s13026_s0 + $0xc28] sm:$0xff] }
 0x1bb   :  { %6582 = vmatmul.mubr.bf16.gmra.mrb[60].mxu0 %v8288_v3  ;;  %5179 = vmatprep.mubr.bf16.mxu1 %v8297_v4  ;;  %v411_v3 = vld [vmem:[%s13026_s0 + $0xc68] sm:$0xff]  ;;  %v8408_v4 = vcombine.low %v383_v56, %v391_v57 }
 0x1bc   :  { %6591 = vmatprep.mubr.bf16.mxu0 %v8305_v5  ;;  %v8416_v5 = vcombine.low %v387_v58, %v395_v59  ;;  %v8433_v7 = vcombine.high %v403_v2, %v411_v3  ;;  %v511_v56 = vld [vmem:[%s13026_s0 + $0xf88] sm:$0xff] }
 0x1bd   :  { %v519_v57 = vld [vmem:[%s13026_s0 + $0xfc8] sm:$0xff] }
 0x1be   :  { %v515_v58 = vld [vmem:[%s13026_s0 + $0xfa8] sm:$0xff] }
 0x1bf   :  { %v523_v59 = vld [vmem:[%s13026_s0 + $0xfe8] sm:$0xff] }
 0x1c2   :  { %5180 = vmatmul.mubr.bf16.gmra.mrb[64].mxu1 %v8296_v10  ;;  %v419_v10 = vld [vmem:[%s13026_s0 + $0xca8] sm:$0xff] }
 0x1c3   :  { %6592 = vmatmul.mubr.bf16.gmra.mrb[64].mxu0 %v8304_v11  ;;  %5189 = vmatprep.mubr.bf16.mxu1 %v8313_v12  ;;  %v427_v11 = vld [vmem:[%s13026_s0 + $0xce8] sm:$0xff]  ;;  %v8424_v12 = vcombine.low %v399_v0, %v407_v1  ;;  %v16_v0 = vld [vmem:[%s13026_s0 + $0x10] sm:$0xff] }
 0x1c4   :  { %6601 = vmatprep.mubr.bf16.mxu0 %v8321_v13  ;;  %v8432_v13 = vcombine.low %v403_v2, %v411_v3  ;;  %v8449_v15 = vcombine.high %v419_v10, %v427_v11  ;;  %v24_v1 = vld [vmem:[%s13026_s0 + $0x50] sm:$0xff] }
 0x1c5   :  { %v20_v2 = vld [vmem:[%s13026_s0 + $0x30] sm:$0xff] }
 0x1c6   :  { %v28_v3 = vld [vmem:[%s13026_s0 + $0x70] sm:$0xff] }
 0x1ca   :  { %5190 = vmatmul.mubr.bf16.gmra.mrb[68].mxu1 %v8312_v20  ;;  %v8440_v20 = vcombine.low %v415_v8, %v423_v9  ;;  %v32_v8 = vld [vmem:[%s13026_s0 + $0x90] sm:$0xff] }
 0x1cb   :  { %6602 = vmatmul.mubr.bf16.gmra.mrb[68].mxu0 %v8320_v21  ;;  %5199 = vmatprep.mubr.bf16.mxu1 %v8329_v22  ;;  %v8448_v21 = vcombine.low %v419_v10, %v427_v11  ;;  %v8457_v22 = vcombine.high %v431_v16, %v439_v17  ;;  %v40_v9 = vld [vmem:[%s13026_s0 + $0xd0] sm:$0xff] }
 0x1cc   :  { %6611 = vmatprep.mubr.bf16.mxu0 %v8337_v23  ;;  %v8465_v23 = vcombine.high %v435_v18, %v443_v19  ;;  %v36_v10 = vld [vmem:[%s13026_s0 + $0xb0] sm:$0xff] }
 0x1cd   :  { %v44_v11 = vld [vmem:[%s13026_s0 + $0xf0] sm:$0xff] }
 0x1d2   :  { %5200 = vmatmul.mubr.bf16.gmra.mrb[72].mxu1 %v8328_v28  ;;  %v8456_v28 = vcombine.low %v431_v16, %v439_v17  ;;  %v8059_v16 = vcombine.high %v32_v8, %v40_v9  ;;  %v8067_v17 = vcombine.high %v36_v10, %v44_v11 }
 0x1d3   :  { %6612 = vmatmul.mubr.bf16.gmra.mrb[72].mxu0 %v8336_v29  ;;  %5209 = vmatprep.mubr.bf16.mxu1 %v8345_v30  ;;  %v8464_v29 = vcombine.low %v435_v18, %v443_v19  ;;  %v8473_v30 = vcombine.high %v447_v24, %v455_v25  ;;  %v10254_v18 = vld [vmem:[%s13025_s1 + $0x314] ss:$8 sps:$4 sm:$0xff]  }
 0x1d4   :  { %6621 = vmatprep.mubr.bf16.mxu0 %v8353_v31  ;;  %v8481_v31 = vcombine.high %v451_v26, %v459_v27  ;;  %v10257_v19 = vld [vmem:[%s13025_s1 + $0x714] ss:$8 sps:$4 sm:$0xff]  }
 0x1da   :  { %5210 = vmatmul.mubr.bf16.gmra.mrb[76].mxu1 %v8344_v36  ;;  %v8472_v36 = vcombine.low %v447_v24, %v455_v25  ;;  %v10255_v24 = vld [vmem:[%s13025_s1 + $0x710] ss:$8 sps:$4 sm:$0xff]  }
 0x1db   :  { %6622 = vmatmul.mubr.bf16.gmra.mrb[76].mxu0 %v8352_v37  ;;  %5219 = vmatprep.mubr.bf16.mxu1 %v8361_v38  ;;  %v8480_v37 = vcombine.low %v451_v26, %v459_v27  ;;  %v8489_v38 = vcombine.high %v463_v32, %v471_v33  ;;  %v60_v25 = vld [vmem:[%s13026_s0 + $0x170] sm:$0xff]  ;;  %v10260_v26 = vld [vmem:[%s13025_s1 + $0x324] ss:$8 sps:$4 sm:$0xff]  }
 0x1dc   :  { %6631 = vmatprep.mubr.bf16.mxu0 %v8369_v39  ;;  %v8497_v39 = vcombine.high %v467_v34, %v475_v35  ;;  %v10263_v27 = vld [vmem:[%s13025_s1 + $0x724] ss:$8 sps:$4 sm:$0xff]  }
 0x1e2   :  { %5220 = vmatmul.mubr.bf16.gmra.mrb[80].mxu1 %v8360_v44  ;;  %v8488_v44 = vcombine.low %v463_v32, %v471_v33  ;;  %v10258_v32 = vld [vmem:[%s13025_s1 + $0x320] ss:$8 sps:$4 sm:$0xff]  }
 0x1e3   :  { %6632 = vmatmul.mubr.bf16.gmra.mrb[80].mxu0 %v8368_v45  ;;  %5229 = vmatprep.mubr.bf16.mxu1 %v8377_v46  ;;  %v8496_v45 = vcombine.low %v467_v34, %v475_v35  ;;  %v8505_v46 = vcombine.high %v479_v40, %v487_v41  ;;  %v10261_v33 = vld [vmem:[%s13025_s1 + $0x720] ss:$8 sps:$4 sm:$0xff]   ;;  %v10266_v34 = vld [vmem:[%s13025_s1 + $0x334] ss:$8 sps:$4 sm:$0xff]  }
 0x1e4   :  { %6641 = vmatprep.mubr.bf16.mxu0 %v8385_v47  ;;  %v8513_v47 = vcombine.high %v483_v42, %v491_v43  ;;  %v10269_v35 = vld [vmem:[%s13025_s1 + $0x734] ss:$8 sps:$4 sm:$0xff]  }
 0x1ea   :  { %5230 = vmatmul.mubr.bf16.gmra.mrb[84].mxu1 %v8376_v52  ;;  %v8504_v52 = vcombine.low %v479_v40, %v487_v41  ;;  %v10264_v40 = vld [vmem:[%s13025_s1 + $0x330] ss:$8 sps:$4 sm:$0xff]  }
 0x1eb   :  { %6642 = vmatmul.mubr.bf16.gmra.mrb[84].mxu0 %v8384_v53  ;;  %5239 = vmatprep.mubr.bf16.mxu1 %v8393_v54  ;;  %v8512_v53 = vcombine.low %v483_v42, %v491_v43  ;;  %v8521_v54 = vcombine.high %v495_v48, %v503_v49  ;;  %v10267_v41 = vld [vmem:[%s13025_s1 + $0x730] ss:$8 sps:$4 sm:$0xff]   ;;  %v10272_v42 = vld [vmem:[%s13025_s1 + $0x344] ss:$8 sps:$4 sm:$0xff]  }
 0x1ec   :  { %6651 = vmatprep.mubr.bf16.mxu0 %v8401_v55  ;;  %v8529_v55 = vcombine.high %v499_v50, %v507_v51  ;;  %v10275_v43 = vld [vmem:[%s13025_s1 + $0x744] ss:$8 sps:$4 sm:$0xff]  }
 0x1f2   :  { %5240 = vmatmul.mubr.bf16.gmra.mrb[88].mxu1 %v8392_v60  ;;  %v8520_v60 = vcombine.low %v495_v48, %v503_v49  ;;  %v10270_v48 = vld [vmem:[%s13025_s1 + $0x340] ss:$8 sps:$4 sm:$0xff]  }
 0x1f3   :  { %6652 = vmatmul.mubr.bf16.gmra.mrb[88].mxu0 %v8400_v61  ;;  %5249 = vmatprep.mubr.bf16.mxu1 %v8409_v62  ;;  %v8528_v61 = vcombine.low %v499_v50, %v507_v51  ;;  %v8537_v62 = vcombine.high %v511_v56, %v519_v57  ;;  %v10273_v49 = vld [vmem:[%s13025_s1 + $0x740] ss:$8 sps:$4 sm:$0xff]   ;;  %v10278_v50 = vld [vmem:[%s13025_s1 + $0x354] ss:$8 sps:$4 sm:$0xff]  }
 0x1f4   :  { %6661 = vmatprep.mubr.bf16.mxu0 %v8417_v63  ;;  %v8545_v63 = vcombine.high %v515_v58, %v523_v59  ;;  %v10281_v51 = vld [vmem:[%s13025_s1 + $0x754] ss:$8 sps:$4 sm:$0xff]  }
 0x1fa   :  { %5250 = vmatmul.mubr.bf16.gmra.mrb[92].mxu1 %v8408_v4  ;;  %v8536_v4 = vcombine.low %v511_v56, %v519_v57  ;;  %v10276_v56 = vld [vmem:[%s13025_s1 + $0x350] ss:$8 sps:$4 sm:$0xff]  }
 0x1fb   :  { %6662 = vmatmul.mubr.bf16.gmra.mrb[92].mxu0 %v8416_v5  ;;  %5259 = vmatprep.mubr.bf16.mxu1 %v8425_v6  ;;  %v8544_v5 = vcombine.low %v515_v58, %v523_v59  ;;  %v8043_v6 = vcombine.high %v16_v0, %v24_v1  ;;  %v10279_v57 = vld [vmem:[%s13025_s1 + $0x750] ss:$8 sps:$4 sm:$0xff]   ;;  %v10284_v58 = vld [vmem:[%s13025_s1 + $0x364] ss:$8 sps:$4 sm:$0xff]  }
 0x1fc   :  { %6671 = vmatprep.mubr.bf16.mxu0 %v8433_v7  ;;  %v8051_v7 = vcombine.high %v20_v2, %v28_v3  ;;  %v10287_v59 = vld [vmem:[%s13025_s1 + $0x764] ss:$8 sps:$4 sm:$0xff]  }
 0x202   :  { %5260 = vmatmul.mubr.bf16.gmra.mrb[96].mxu1 %v8424_v12  ;;  %v8042_v12 = vcombine.low %v16_v0, %v24_v1  ;;  %v10282_v0 = vld [vmem:[%s13025_s1 + $0x360] ss:$8 sps:$4 sm:$0xff]  }
 0x203   :  { %6672 = vmatmul.mubr.bf16.gmra.mrb[96].mxu0 %v8432_v13  ;;  %5269 = vmatprep.mubr.bf16.mxu1 %v8441_v14  ;;  %v8050_v13 = vcombine.low %v20_v2, %v28_v3  ;;  %v10246_v14 = vld [vmem:[%s13025_s1 + $0x300] ss:$8 sps:$4 sm:$0xff]   ;;  %v10290_v2 = vld [vmem:[%s13025_s1 + $0x374] ss:$8 sps:$4 sm:$0xff]  }
 0x204   :  { %6681 = vmatprep.mubr.bf16.mxu0 %v8449_v15  ;;  %v10249_v15 = vld [vmem:[%s13025_s1 + $0x700] ss:$8 sps:$4 sm:$0xff]   ;;  %v10293_v3 = vld [vmem:[%s13025_s1 + $0x774] ss:$8 sps:$4 sm:$0xff]  }
 0x205   :  { %v10285_v1 = vld [vmem:[%s13025_s1 + $0x760] ss:$8 sps:$4 sm:$0xff]  }
 0x20a   :  { %5270 = vmatmul.mubr.bf16.gmra.mrb[100].mxu1 %v8440_v20  ;;  %v48_v20 = vld [vmem:[%s13026_s0 + $0x110] sm:$0xff] }
 0x20b   :  { %6682 = vmatmul.mubr.bf16.gmra.mrb[100].mxu0 %v8448_v21  ;;  %5279 = vmatprep.mubr.bf16.mxu1 %v8457_v22  ;;  %v56_v21 = vld [vmem:[%s13026_s0 + $0x150] sm:$0xff] }
 0x20c   :  { %6691 = vmatprep.mubr.bf16.mxu0 %v8465_v23  ;;  %v52_v22 = vld [vmem:[%s13026_s0 + $0x130] sm:$0xff] }
 0x20d   :  { %v10252_v23 = vld [vmem:[%s13025_s1 + $0x310] ss:$8 sps:$4 sm:$0xff]  }
 0x212   :  { %5280 = vmatmul.mubr.bf16.gmra.mrb[104].mxu1 %v8456_v28  ;;  %v8058_v28 = vcombine.low %v32_v8, %v40_v9  ;;  %v10288_v8 = vld [vmem:[%s13025_s1 + $0x370] ss:$8 sps:$4 sm:$0xff]  }
 0x213   :  { %6692 = vmatmul.mubr.bf16.gmra.mrb[104].mxu0 %v8464_v29  ;;  %5289 = vmatprep.mubr.bf16.mxu1 %v8473_v30  ;;  %v8066_v29 = vcombine.low %v36_v10, %v44_v11  ;;  %v8075_v30 = vcombine.high %v48_v20, %v56_v21  ;;  %v10291_v9 = vld [vmem:[%s13025_s1 + $0x770] ss:$8 sps:$4 sm:$0xff]   ;;  %v10296_v10 = vld [vmem:[%s13025_s1 + $0x384] ss:$8 sps:$4 sm:$0xff]  }
 0x214   :  { %6701 = vmatprep.mubr.bf16.mxu0 %v8481_v31  ;;  %v8083_v31 = vcombine.high %v52_v22, %v60_v25  ;;  %v10299_v11 = vld [vmem:[%s13025_s1 + $0x784] ss:$8 sps:$4 sm:$0xff]  }
 0x21a   :  { %5290 = vmatmul.mubr.bf16.gmra.mrb[108].mxu1 %v8472_v36  ;;  %v64_v36 = vld [vmem:[%s13026_s0 + $0x190] sm:$0xff] }
 0x21b   :  { %6702 = vmatmul.mubr.bf16.gmra.mrb[108].mxu0 %v8480_v37  ;;  %5299 = vmatprep.mubr.bf16.mxu1 %v8489_v38  ;;  %v72_v37 = vld [vmem:[%s13026_s0 + $0x1d0] sm:$0xff] }
 0x21c   :  { %6711 = vmatprep.mubr.bf16.mxu0 %v8497_v39  ;;  %v68_v38 = vld [vmem:[%s13026_s0 + $0x1b0] sm:$0xff] }
 0x21d   :  { %v76_v39 = vld [vmem:[%s13026_s0 + $0x1f0] sm:$0xff] }
 0x222   :  { %5300 = vmatmul.mubr.bf16.gmra.mrb[112].mxu1 %v8488_v44  ;;  %v8074_v44 = vcombine.low %v48_v20, %v56_v21  ;;  %v112_v20 = vld [vmem:[%s13026_s0 + $0x310] sm:$0xff] }
 0x223   :  { %6712 = vmatmul.mubr.bf16.gmra.mrb[112].mxu0 %v8496_v45  ;;  %5309 = vmatprep.mubr.bf16.mxu1 %v8505_v46  ;;  %v8082_v45 = vcombine.low %v52_v22, %v60_v25  ;;  %v8091_v46 = vcombine.high %v64_v36, %v72_v37  ;;  %v120_v21 = vld [vmem:[%s13026_s0 + $0x350] sm:$0xff] }
 0x224   :  { %6721 = vmatprep.mubr.bf16.mxu0 %v8513_v47  ;;  %v8099_v47 = vcombine.high %v68_v38, %v76_v39  ;;  %v116_v22 = vld [vmem:[%s13026_s0 + $0x330] sm:$0xff] }
 0x225   :  { %v10303_v25 = vld [vmem:[%s13025_s1 + $0x790] ss:$8 sps:$4 sm:$0xff]  }
 0x22a   :  { %5310 = vmatmul.mubr.bf16.gmra.mrb[116].mxu1 %v8504_v52  ;;  %v80_v52 = vld [vmem:[%s13026_s0 + $0x210] sm:$0xff] }
 0x22b   :  { %6722 = vmatmul.mubr.bf16.gmra.mrb[116].mxu0 %v8512_v53  ;;  %5319 = vmatprep.mubr.bf16.mxu1 %v8521_v54  ;;  %v88_v53 = vld [vmem:[%s13026_s0 + $0x250] sm:$0xff] }
 0x22c   :  { %6731 = vmatprep.mubr.bf16.mxu0 %v8529_v55  ;;  %v84_v54 = vld [vmem:[%s13026_s0 + $0x230] sm:$0xff] }
 0x22d   :  { %v92_v55 = vld [vmem:[%s13026_s0 + $0x270] sm:$0xff] }
 0x232   :  { %5320 = vmatmul.mubr.bf16.gmra.mrb[120].mxu1 %v8520_v60  ;;  %v8090_v60 = vcombine.low %v64_v36, %v72_v37  ;;  %v132_v36 = vld [vmem:[%s13026_s0 + $0x3b0] sm:$0xff] }
 0x233   :  { %6732 = vmatmul.mubr.bf16.gmra.mrb[120].mxu0 %v8528_v61  ;;  %5329 = vmatprep.mubr.bf16.mxu1 %v8537_v62  ;;  %v8098_v61 = vcombine.low %v68_v38, %v76_v39  ;;  %v8107_v62 = vcombine.high %v80_v52, %v88_v53  ;;  %v140_v37 = vld [vmem:[%s13026_s0 + $0x3f0] sm:$0xff]  ;;  %v8138_v38 = vcombine.low %v112_v20, %v120_v21 }
 0x234   :  { %6741 = vmatprep.mubr.bf16.mxu0 %v8545_v63  ;;  %v8115_v63 = vcombine.high %v84_v54, %v92_v55 }
 0x23a   :  { %5330 = vmatmul.mubr.bf16.gmra.mrb[124].mxu1 %v8536_v4  ;;  %v96_v4 = vld [vmem:[%s13026_s0 + $0x290] sm:$0xff] }
 0x23b   :  { %6742 = vmatmul.mubr.bf16.gmra.mrb[124].mxu0 %v8544_v5  ;;  %5372 = vmatprep.mubr.bf16.mxu1 %v8043_v6  ;;  %v104_v5 = vld [vmem:[%s13026_s0 + $0x2d0] sm:$0xff] }
 0x23c   :  { %6784 = vmatprep.mubr.bf16.mxu0 %v8051_v7  ;;  %v100_v6 = vld [vmem:[%s13026_s0 + $0x2b0] sm:$0xff] }
 0x23d   :  { %v108_v7 = vld [vmem:[%s13026_s0 + $0x2f0] sm:$0xff] }
 0x242   :  { %5373 = vmatmul.mubr.bf16.vlgmr.msra.gmra.mrb[0].mxu1 %v8042_v12  ;;  %v8106_v12 = vcombine.low %v80_v52, %v88_v53 }
 0x243   :  { %6785 = vmatmul.mubr.bf16.vlgmr.msra.gmra.mrb[0].mxu0 %v8050_v13  ;;  %5694 = vmatpush1.bf16.msra.mxu1 %v10246_v14  ;;  %v8114_v13 = vcombine.low %v84_v54, %v92_v55  ;;  %v8123_v14 = vcombine.high %v96_v4, %v104_v5  ;;  %v160_v54 = vld [vmem:[%s13026_s0 + $0x490] sm:$0xff] }
 0x244   :  { %7106 = vmatpush1.bf16.msra.mxu0 %v10249_v15  ;;  %5382 = vmatprep.mubr.bf16.mxu1 %v8059_v16  ;;  %v8131_v15 = vcombine.high %v100_v6, %v108_v7  ;;  %v10294_v16 = vld [vmem:[%s13025_s1 + $0x380] ss:$8 sps:$4 sm:$0xff]   ;;  %v168_v55 = vld [vmem:[%s13026_s0 + $0x4d0] sm:$0xff] }
 0x245   :  { %6794 = vmatprep.mubr.bf16.mxu0 %v8067_v17  ;;  %5695 = vmatprep.subr.bf16.mxu1 %v10254_v18  ;;  %v10297_v17 = vld [vmem:[%s13025_s1 + $0x780] ss:$8 sps:$4 sm:$0xff]   ;;  %v10302_v18 = vld [vmem:[%s13025_s1 + $0x394] ss:$8 sps:$4 sm:$0xff]  }
 0x246   :  { %7107 = vmatprep.subr.bf16.mxu0 %v10257_v19  ;;  %v10305_v19 = vld [vmem:[%s13025_s1 + $0x794] ss:$8 sps:$4 sm:$0xff]  }
 0x247   :  { %5696 = vmatpush1.bf16.msra.mxu1 %v10252_v23  ;;  %v124_v23 = vld [vmem:[%s13026_s0 + $0x370] sm:$0xff] }
 0x248   :  { %7108 = vmatpush1.bf16.msra.mxu0 %v10255_v24  ;;  %5697 = vmatprep.subr.bf16.mxu1 %v10260_v26  ;;  %v10300_v24 = vld [vmem:[%s13025_s1 + $0x390] ss:$8 sps:$4 sm:$0xff]   ;;  %v10308_v26 = vld [vmem:[%s13025_s1 + $0x3a4] ss:$8 sps:$4 sm:$0xff]   ;;  %v8146_v39 = vcombine.low %v116_v22, %v124_v23 }
 0x249   :  { %7109 = vmatprep.subr.bf16.mxu0 %v10263_v27  ;;  %v10311_v27 = vld [vmem:[%s13025_s1 + $0x7a4] ss:$8 sps:$4 sm:$0xff]  }
 0x24a   :  { %5383 = vmatmul.mubr.bf16.gmra.mrb[4].mxu1 %v8058_v28  ;;  %v8122_v28 = vcombine.low %v96_v4, %v104_v5  ;;  %v180_v4 = vld [vmem:[%s13026_s0 + $0x530] sm:$0xff] }
 0x24b   :  { %6795 = vmatmul.mubr.bf16.gmra.mrb[4].mxu0 %v8066_v29  ;;  %5392 = vmatprep.mubr.bf16.mxu1 %v8075_v30  ;;  %v8130_v29 = vcombine.low %v100_v6, %v108_v7  ;;  %v8139_v30 = vcombine.high %v112_v20, %v120_v21  ;;  %v188_v5 = vld [vmem:[%s13026_s0 + $0x570] sm:$0xff]  ;;  %v8186_v6 = vcombine.low %v160_v54, %v168_v55 }
 0x24c   :  { %6804 = vmatprep.mubr.bf16.mxu0 %v8083_v31  ;;  %5698 = vmatpush1.bf16.msra.mxu1 %v10258_v32  ;;  %v8147_v31 = vcombine.high %v116_v22, %v124_v23  ;;  %v10306_v32 = vld [vmem:[%s13025_s1 + $0x3a0] ss:$8 sps:$4 sm:$0xff]   ;;  %v10327_v20 = vld [vmem:[%s13025_s1 + $0x7d0] ss:$8 sps:$4 sm:$0xff]   ;;  %v10329_v22 = vld [vmem:[%s13025_s1 + $0x7d4] ss:$8 sps:$4 sm:$0xff]  }
 0x24d   :  { %7110 = vmatpush1.bf16.msra.mxu0 %v10261_v33  ;;  %5699 = vmatprep.subr.bf16.mxu1 %v10266_v34  ;;  %v10309_v33 = vld [vmem:[%s13025_s1 + $0x7a0] ss:$8 sps:$4 sm:$0xff]   ;;  %v128_v34 = vld [vmem:[%s13026_s0 + $0x390] sm:$0xff] }
 0x24e   :  { %7111 = vmatprep.subr.bf16.mxu0 %v10269_v35  ;;  %v136_v35 = vld [vmem:[%s13026_s0 + $0x3d0] sm:$0xff] }
 0x24f   :  { %v208_v21 = vld [vmem:[%s13026_s0 + $0x610] sm:$0xff] }
 0x250   :  { %5700 = vmatpush1.bf16.msra.mxu1 %v10264_v40  ;;  %v8155_v40 = vcombine.high %v128_v34, %v136_v35  ;;  %v216_v23 = vld [vmem:[%s13026_s0 + $0x650] sm:$0xff] }
 0x251   :  { %7112 = vmatpush1.bf16.msra.mxu0 %v10267_v41  ;;  %5701 = vmatprep.subr.bf16.mxu1 %v10272_v42  ;;  %v8163_v41 = vcombine.high %v132_v36, %v140_v37  ;;  %v10312_v42 = vld [vmem:[%s13025_s1 + $0x3b0] ss:$8 sps:$4 sm:$0xff]  }
 0x252   :  { %7113 = vmatprep.subr.bf16.mxu0 %v10275_v43  ;;  %5393 = vmatmul.mubr.bf16.gmra.mrb[8].mxu1 %v8074_v44  ;;  %v10314_v43 = vld [vmem:[%s13025_s1 + $0x3b4] ss:$8 sps:$4 sm:$0xff]   ;;  %v10315_v44 = vld [vmem:[%s13025_s1 + $0x7b0] ss:$8 sps:$4 sm:$0xff]  }
 0x253   :  { %6805 = vmatmul.mubr.bf16.gmra.mrb[8].mxu0 %v8082_v45  ;;  %5402 = vmatprep.mubr.bf16.mxu1 %v8091_v46  ;;  %v144_v45 = vld [vmem:[%s13026_s0 + $0x410] sm:$0xff] }
 0x254   :  { %6814 = vmatprep.mubr.bf16.mxu0 %v8099_v47  ;;  %5702 = vmatpush1.bf16.msra.mxu1 %v10270_v48  ;;  %v10317_v46 = vld [vmem:[%s13025_s1 + $0x7b4] ss:$8 sps:$4 sm:$0xff]  }
 0x255   :  { %7114 = vmatpush1.bf16.msra.mxu0 %v10273_v49  ;;  %5703 = vmatprep.subr.bf16.mxu1 %v10278_v50  ;;  %v152_v47 = vld [vmem:[%s13026_s0 + $0x450] sm:$0xff]  ;;  %v8154_v50 = vcombine.low %v128_v34, %v136_v35  ;;  %v8234_v34 = vcombine.low %v208_v21, %v216_v23 }
 0x256   :  { %7115 = vmatprep.subr.bf16.mxu0 %v10281_v51  ;;  %v148_v48 = vld [vmem:[%s13026_s0 + $0x430] sm:$0xff]  ;;  %v8162_v51 = vcombine.low %v132_v36, %v140_v37  ;;  %v8171_v52 = vcombine.high %v144_v45, %v152_v47 }
 0x257   :  { %v156_v49 = vld [vmem:[%s13026_s0 + $0x470] sm:$0xff] }
 0x258   :  { %5704 = vmatpush1.bf16.msra.mxu1 %v10276_v56  ;;  %v8179_v53 = vcombine.high %v148_v48, %v156_v49  ;;  %v164_v56 = vld [vmem:[%s13026_s0 + $0x4b0] sm:$0xff] }
 0x259   :  { %7116 = vmatpush1.bf16.msra.mxu0 %v10279_v57  ;;  %5705 = vmatprep.subr.bf16.mxu1 %v10284_v58  ;;  %v172_v57 = vld [vmem:[%s13026_s0 + $0x4f0] sm:$0xff]  ;;  %v8170_v58 = vcombine.low %v144_v45, %v152_v47 }
 0x25a   :  { %7117 = vmatprep.subr.bf16.mxu0 %v10287_v59  ;;  %5403 = vmatmul.mubr.bf16.gmra.mrb[12].mxu1 %v8090_v60  ;;  %v8178_v59 = vcombine.low %v148_v48, %v156_v49  ;;  %v8187_v60 = vcombine.high %v160_v54, %v168_v55  ;;  %v8194_v7 = vcombine.low %v164_v56, %v172_v57  ;;  %v252_v45 = vld [vmem:[%s13026_s0 + $0x770] sm:$0xff] }
 0x25b   :  { %6815 = vmatmul.mubr.bf16.gmra.mrb[12].mxu0 %v8098_v61  ;;  %5412 = vmatprep.mubr.bf16.mxu1 %v8107_v62  ;;  %v8195_v61 = vcombine.high %v164_v56, %v172_v57  ;;  %v10318_v62 = vld [vmem:[%s13025_s1 + $0x3c0] ss:$8 sps:$4 sm:$0xff]  }
 0x25c   :  { %6824 = vmatprep.mubr.bf16.mxu0 %v8115_v63  ;;  %5706 = vmatpush1.bf16.msra.mxu1 %v10282_v0  ;;  %v10320_v63 = vld [vmem:[%s13025_s1 + $0x3c4] ss:$8 sps:$4 sm:$0xff]   ;;  %v10321_v0 = vld [vmem:[%s13025_s1 + $0x7c0] ss:$8 sps:$4 sm:$0xff]  }
 0x25d   :  { %7118 = vmatpush1.bf16.msra.mxu0 %v10285_v1  ;;  %5707 = vmatprep.subr.bf16.mxu1 %v10290_v2  ;;  %v176_v1 = vld [vmem:[%s13026_s0 + $0x510] sm:$0xff]  ;;  %v10323_v2 = vld [vmem:[%s13025_s1 + $0x7c4] ss:$8 sps:$4 sm:$0xff]  }
 0x25e   :  { %7119 = vmatprep.subr.bf16.mxu0 %v10293_v3  ;;  %v184_v3 = vld [vmem:[%s13026_s0 + $0x550] sm:$0xff] }
 0x260   :  { %5708 = vmatpush1.bf16.msra.mxu1 %v10288_v8  ;;  %v8203_v8 = vcombine.high %v176_v1, %v184_v3 }
 0x261   :  { %7120 = vmatpush1.bf16.msra.mxu0 %v10291_v9  ;;  %5709 = vmatprep.subr.bf16.mxu1 %v10296_v10  ;;  %v8211_v9 = vcombine.high %v180_v4, %v188_v5  ;;  %v192_v10 = vld [vmem:[%s13026_s0 + $0x590] sm:$0xff] }
 0x262   :  { %7121 = vmatprep.subr.bf16.mxu0 %v10299_v11  ;;  %5413 = vmatmul.mubr.bf16.gmra.mrb[16].mxu1 %v8106_v12  ;;  %v200_v11 = vld [vmem:[%s13026_s0 + $0x5d0] sm:$0xff] }
 0x263   :  { %6825 = vmatmul.mubr.bf16.gmra.mrb[16].mxu0 %v8114_v13  ;;  %5422 = vmatprep.mubr.bf16.mxu1 %v8123_v14  ;;  %v196_v12 = vld [vmem:[%s13026_s0 + $0x5b0] sm:$0xff]  ;;  %v8202_v14 = vcombine.low %v176_v1, %v184_v3 }
 0x264   :  { %6834 = vmatprep.mubr.bf16.mxu0 %v8131_v15  ;;  %5710 = vmatpush1.bf16.msra.mxu1 %v10294_v16  ;;  %v204_v13 = vld [vmem:[%s13026_s0 + $0x5f0] sm:$0xff]  ;;  %v8210_v15 = vcombine.low %v180_v4, %v188_v5  ;;  %v8219_v16 = vcombine.high %v192_v10, %v200_v11 }
 0x265   :  { %7122 = vmatpush1.bf16.msra.mxu0 %v10297_v17  ;;  %5711 = vmatprep.subr.bf16.mxu1 %v10302_v18  ;;  %v8227_v17 = vcombine.high %v196_v12, %v204_v13  ;;  %v10324_v18 = vld [vmem:[%s13025_s1 + $0x3d0] ss:$8 sps:$4 sm:$0xff]  }
 0x266   :  { %7123 = vmatprep.subr.bf16.mxu0 %v10305_v19  ;;  %v10326_v19 = vld [vmem:[%s13025_s1 + $0x3d4] ss:$8 sps:$4 sm:$0xff]  }
 0x267   :  { %v284_v1 = vld [vmem:[%s13026_s0 + $0x870] sm:$0xff] }
 0x268   :  { %5712 = vmatpush1.bf16.msra.mxu1 %v10300_v24  ;;  %v212_v24 = vld [vmem:[%s13026_s0 + $0x630] sm:$0xff] }
 0x269   :  { %7124 = vmatpush1.bf16.msra.mxu0 %v10303_v25  ;;  %5713 = vmatprep.subr.bf16.mxu1 %v10308_v26  ;;  %v220_v25 = vld [vmem:[%s13026_s0 + $0x670] sm:$0xff]  ;;  %v8218_v26 = vcombine.low %v192_v10, %v200_v11 }
 0x26a   :  { %7125 = vmatprep.subr.bf16.mxu0 %v10311_v27  ;;  %5423 = vmatmul.mubr.bf16.gmra.mrb[20].mxu1 %v8122_v28  ;;  %v8226_v27 = vcombine.low %v196_v12, %v204_v13  ;;  %v8235_v28 = vcombine.high %v208_v21, %v216_v23  ;;  %v8242_v35 = vcombine.low %v212_v24, %v220_v25  ;;  %v328_v23 = vld [vmem:[%s13026_s0 + $0x9d0] sm:$0xff] }
 0x26b   :  { %6835 = vmatmul.mubr.bf16.gmra.mrb[20].mxu0 %v8130_v29  ;;  %5432 = vmatprep.mubr.bf16.mxu1 %v8139_v30  ;;  %v8243_v29 = vcombine.high %v212_v24, %v220_v25  ;;  %v224_v30 = vld [vmem:[%s13026_s0 + $0x690] sm:$0xff] }
 0x26c   :  { %6844 = vmatprep.mubr.bf16.mxu0 %v8147_v31  ;;  %5714 = vmatpush1.bf16.msra.mxu1 %v10306_v32  ;;  %v232_v31 = vld [vmem:[%s13026_s0 + $0x6d0] sm:$0xff] }
 0x26d   :  { %7126 = vmatpush1.bf16.msra.mxu0 %v10309_v33  ;;  %5715 = vmatprep.subr.bf16.mxu1 %v10314_v43  ;;  %v228_v32 = vld [vmem:[%s13026_s0 + $0x6b0] sm:$0xff]  ;;  %v8251_v36 = vcombine.high %v224_v30, %v232_v31 }
 0x26e   :  { %7127 = vmatprep.subr.bf16.mxu0 %v10317_v46  ;;  %v236_v33 = vld [vmem:[%s13026_s0 + $0x6f0] sm:$0xff]  ;;  %v8250_v46 = vcombine.low %v224_v30, %v232_v31 }
 0x26f   :  { %v8259_v37 = vcombine.high %v228_v32, %v236_v33  ;;  %v248_v43 = vld [vmem:[%s13026_s0 + $0x750] sm:$0xff]  ;;  %v8258_v47 = vcombine.low %v228_v32, %v236_v33 }
 0x270   :  { %5716 = vmatpush1.bf16.msra.mxu1 %v10312_v42  ;;  %v10335_v42 = vld [vmem:[%s13025_s1 + $0x7e4] ss:$8 sps:$4 sm:$0xff]   ;;  %v324_v24 = vld [vmem:[%s13026_s0 + $0x9b0] sm:$0xff] }
 0x271   :  { %7128 = vmatpush1.bf16.msra.mxu0 %v10315_v44  ;;  %5717 = vmatprep.subr.bf16.mxu1 %v10320_v63  ;;  %v244_v44 = vld [vmem:[%s13026_s0 + $0x730] sm:$0xff] }
 0x272   :  { %5433 = vmatmul.mubr.bf16.gmra.mrb[24].mxu1 %v8138_v38  ;;  %7129 = vmatprep.subr.bf16.mxu0 %v10323_v2  ;;  %v10330_v38 = vld [vmem:[%s13025_s1 + $0x3e0] ss:$8 sps:$4 sm:$0xff]   ;;  %v8275_v49 = vcombine.high %v244_v44, %v252_v45  ;;  %v8274_v55 = vcombine.low %v244_v44, %v252_v45  ;;  %v280_v63 = vld [vmem:[%s13026_s0 + $0x850] sm:$0xff] }
 0x273   :  { %6845 = vmatmul.mubr.bf16.gmra.mrb[24].mxu0 %v8146_v39  ;;  %5442 = vmatprep.mubr.bf16.mxu1 %v8155_v40  ;;  %v10332_v39 = vld [vmem:[%s13025_s1 + $0x3e4] ss:$8 sps:$4 sm:$0xff]   ;;  %v10333_v40 = vld [vmem:[%s13025_s1 + $0x7e0] ss:$8 sps:$4 sm:$0xff]   ;;  %v332_v25 = vld [vmem:[%s13026_s0 + $0x9f0] sm:$0xff] }
 0x274   :  { %6854 = vmatprep.mubr.bf16.mxu0 %v8163_v41  ;;  %5718 = vmatpush1.bf16.msra.mxu1 %v10318_v62  ;;  %v240_v41 = vld [vmem:[%s13026_s0 + $0x710] sm:$0xff] }
 0x275   :  { %7130 = vmatpush1.bf16.msra.mxu0 %v10321_v0  ;;  %5719 = vmatprep.subr.bf16.mxu1 %v10326_v19  ;;  %v8267_v48 = vcombine.high %v240_v41, %v248_v43  ;;  %v8266_v54 = vcombine.low %v240_v41, %v248_v43  ;;  %v10341_v62 = vld [vmem:[%s13025_s1 + $0x7f4] ss:$8 sps:$4 sm:$0xff]  }
 0x276   :  { %7131 = vmatprep.subr.bf16.mxu0 %v10329_v22  ;;  %v276_v0 = vld [vmem:[%s13026_s0 + $0x830] sm:$0xff] }
 0x277   :  { %v8307_v5 = vcombine.high %v276_v0, %v284_v1  ;;  %v8306_v11 = vcombine.low %v276_v0, %v284_v1  ;;  %v320_v22 = vld [vmem:[%s13026_s0 + $0x990] sm:$0xff] }
 0x278   :  { %5720 = vmatpush1.bf16.msra.mxu1 %v10324_v18  ;;  %v336_v30 = vld [vmem:[%s13026_s0 + $0xa10] sm:$0xff] }
 0x279   :  { %7132 = vmatpush1.bf16.msra.mxu0 %v10327_v20  ;;  %5721 = vmatprep.subr.bf16.mxu1 %v10332_v39  ;;  %v344_v31 = vld [vmem:[%s13026_s0 + $0xa50] sm:$0xff] }
 0x27a   :  { %5443 = vmatmul.mubr.bf16.gmra.mrb[28].mxu1 %v8154_v50  ;;  %7133 = vmatprep.subr.bf16.mxu0 %v10335_v42  ;;  %v256_v50 = vld [vmem:[%s13026_s0 + $0x790] sm:$0xff]  ;;  %v8362_v42 = vcombine.low %v336_v30, %v344_v31 }
 0x27b   :  { %6855 = vmatmul.mubr.bf16.gmra.mrb[28].mxu0 %v8162_v51  ;;  %5452 = vmatprep.mubr.bf16.mxu1 %v8171_v52  ;;  %v264_v51 = vld [vmem:[%s13026_s0 + $0x7d0] sm:$0xff] }
 0x27c   :  { %6864 = vmatprep.mubr.bf16.mxu0 %v8179_v53  ;;  %5722 = vmatpush1.bf16.msra.mxu1 %v10330_v38  ;;  %v260_v52 = vld [vmem:[%s13026_s0 + $0x7b0] sm:$0xff]  ;;  %v8283_v56 = vcombine.high %v256_v50, %v264_v51  ;;  %v8282_v2 = vcombine.low %v256_v50, %v264_v51 }
 0x27d   :  { %7134 = vmatpush1.bf16.msra.mxu0 %v10333_v40  ;;  %v268_v53 = vld [vmem:[%s13026_s0 + $0x7f0] sm:$0xff] }
 0x27e   :  { %v8291_v57 = vcombine.high %v260_v52, %v268_v53  ;;  %7135 = vmatprep.subr.bf16.mxu0 %v10341_v62  ;;  %v8290_v3 = vcombine.low %v260_v52, %v268_v53  ;;  %v340_v32 = vld [vmem:[%s13026_s0 + $0xa30] sm:$0xff] }
 0x27f   :  { %v348_v33 = vld [vmem:[%s13026_s0 + $0xa70] sm:$0xff] }
 0x280   :  { %v352_v38 = vld [vmem:[%s13026_s0 + $0xa90] sm:$0xff]  ;;  %v8370_v43 = vcombine.low %v340_v32, %v348_v33 }
 0x281   :  { %v360_v39 = vld [vmem:[%s13026_s0 + $0xad0] sm:$0xff] }
 0x282   :  { %5453 = vmatmul.mubr.bf16.gmra.mrb[32].mxu1 %v8170_v58  ;;  %v10336_v58 = vld [vmem:[%s13025_s1 + $0x3f0] ss:$8 sps:$4 sm:$0xff]   ;;  %v8379_v44 = vcombine.high %v352_v38, %v360_v39  ;;  %v8378_v50 = vcombine.low %v352_v38, %v360_v39 }
 0x283   :  { %6865 = vmatmul.mubr.bf16.gmra.mrb[32].mxu0 %v8178_v59  ;;  %5462 = vmatprep.mubr.bf16.mxu1 %v8187_v60  ;;  %v10338_v59 = vld [vmem:[%s13025_s1 + $0x3f4] ss:$8 sps:$4 sm:$0xff]   ;;  %v10339_v60 = vld [vmem:[%s13025_s1 + $0x7f0] ss:$8 sps:$4 sm:$0xff]  }
 0x284   :  { %6874 = vmatprep.mubr.bf16.mxu0 %v8195_v61  ;;  %v272_v61 = vld [vmem:[%s13026_s0 + $0x810] sm:$0xff]  ;;  %5723 = vmatprep.subr.bf16.mxu1 %v10338_v59 }
 0x285   :  { %5724 = vmatpush1.bf16.msra.mxu1 %v10336_v58  ;;  %7136 = vmatpush1.bf16.msra.mxu0 %v10339_v60  ;;  %v8299_v4 = vcombine.high %v272_v61, %v280_v63  ;;  %v8298_v10 = vcombine.low %v272_v61, %v280_v63  ;;  %v356_v40 = vld [vmem:[%s13026_s0 + $0xab0] sm:$0xff] }
 0x286   :  { %v364_v41 = vld [vmem:[%s13026_s0 + $0xaf0] sm:$0xff] }
 0x287   :  { %v8387_v45 = vcombine.high %v356_v40, %v364_v41  ;;  %v8386_v51 = vcombine.low %v356_v40, %v364_v41  ;;  %v400_v62 = vld [vmem:[%s13026_s0 + $0xc10] sm:$0xff] }
 0x288   :  { %v408_v63 = vld [vmem:[%s13026_s0 + $0xc50] sm:$0xff] }
 0x289   :  { %v404_v0 = vld [vmem:[%s13026_s0 + $0xc30] sm:$0xff] }
 0x28a   :  { %5463 = vmatmul.mubr.bf16.gmra.mrb[36].mxu1 %v8186_v6  ;;  %v288_v6 = vld [vmem:[%s13026_s0 + $0x890] sm:$0xff] }
 0x28b   :  { %6875 = vmatmul.mubr.bf16.gmra.mrb[36].mxu0 %v8194_v7  ;;  %5472 = vmatprep.mubr.bf16.mxu1 %v8203_v8  ;;  %v296_v7 = vld [vmem:[%s13026_s0 + $0x8d0] sm:$0xff] }
 0x28c   :  { %6884 = vmatprep.mubr.bf16.mxu0 %v8211_v9  ;;  %v292_v8 = vld [vmem:[%s13026_s0 + $0x8b0] sm:$0xff]  ;;  %v8315_v12 = vcombine.high %v288_v6, %v296_v7  ;;  %v8314_v18 = vcombine.low %v288_v6, %v296_v7 }
 0x28d   :  { %v300_v9 = vld [vmem:[%s13026_s0 + $0x8f0] sm:$0xff] }
 0x28e   :  { %v8323_v13 = vcombine.high %v292_v8, %v300_v9  ;;  %v8322_v19 = vcombine.low %v292_v8, %v300_v9  ;;  %v412_v1 = vld [vmem:[%s13026_s0 + $0xc70] sm:$0xff] }
 0x28f   :  { %v416_v6 = vld [vmem:[%s13026_s0 + $0xc90] sm:$0xff] }
 0x290   :  { %v424_v7 = vld [vmem:[%s13026_s0 + $0xcd0] sm:$0xff] }
 0x291   :  { %v420_v8 = vld [vmem:[%s13026_s0 + $0xcb0] sm:$0xff] }
 0x292   :  { %5473 = vmatmul.mubr.bf16.gmra.mrb[40].mxu1 %v8202_v14  ;;  %v304_v14 = vld [vmem:[%s13026_s0 + $0x910] sm:$0xff] }
 0x293   :  { %6885 = vmatmul.mubr.bf16.gmra.mrb[40].mxu0 %v8210_v15  ;;  %5482 = vmatprep.mubr.bf16.mxu1 %v8219_v16  ;;  %v312_v15 = vld [vmem:[%s13026_s0 + $0x950] sm:$0xff] }
 0x294   :  { %6894 = vmatprep.mubr.bf16.mxu0 %v8227_v17  ;;  %v308_v16 = vld [vmem:[%s13026_s0 + $0x930] sm:$0xff]  ;;  %v8331_v20 = vcombine.high %v304_v14, %v312_v15 }
 0x295   :  { %v316_v17 = vld [vmem:[%s13026_s0 + $0x970] sm:$0xff] }
 0x296   :  { %v8339_v21 = vcombine.high %v308_v16, %v316_v17  ;;  %v428_v9 = vld [vmem:[%s13026_s0 + $0xcf0] sm:$0xff] }
 0x297   :  { %v480_v38 = vld [vmem:[%s13026_s0 + $0xe90] sm:$0xff] }
 0x298   :  { %v488_v39 = vld [vmem:[%s13026_s0 + $0xed0] sm:$0xff] }
 0x299   :  { %v484_v40 = vld [vmem:[%s13026_s0 + $0xeb0] sm:$0xff] }
 0x29a   :  { %5483 = vmatmul.mubr.bf16.gmra.mrb[44].mxu1 %v8218_v26  ;;  %v8330_v26 = vcombine.low %v304_v14, %v312_v15  ;;  %v432_v14 = vld [vmem:[%s13026_s0 + $0xd10] sm:$0xff] }
 0x29b   :  { %6895 = vmatmul.mubr.bf16.gmra.mrb[44].mxu0 %v8226_v27  ;;  %5492 = vmatprep.mubr.bf16.mxu1 %v8235_v28  ;;  %v8338_v27 = vcombine.low %v308_v16, %v316_v17  ;;  %v8347_v28 = vcombine.high %v320_v22, %v328_v23  ;;  %v440_v15 = vld [vmem:[%s13026_s0 + $0xd50] sm:$0xff] }
 0x29c   :  { %6904 = vmatprep.mubr.bf16.mxu0 %v8243_v29  ;;  %v8355_v29 = vcombine.high %v324_v24, %v332_v25  ;;  %v436_v16 = vld [vmem:[%s13026_s0 + $0xd30] sm:$0xff] }
 0x29d   :  { %v444_v17 = vld [vmem:[%s13026_s0 + $0xd70] sm:$0xff] }
 0x29e   :  { %v492_v41 = vld [vmem:[%s13026_s0 + $0xef0] sm:$0xff] }
 0x2a2   :  { %5493 = vmatmul.mubr.bf16.gmra.mrb[48].mxu1 %v8234_v34  ;;  %v8346_v34 = vcombine.low %v320_v22, %v328_v23  ;;  %v448_v22 = vld [vmem:[%s13026_s0 + $0xd90] sm:$0xff] }
 0x2a3   :  { %6905 = vmatmul.mubr.bf16.gmra.mrb[48].mxu0 %v8242_v35  ;;  %5502 = vmatprep.mubr.bf16.mxu1 %v8251_v36  ;;  %v8354_v35 = vcombine.low %v324_v24, %v332_v25  ;;  %v8363_v36 = vcombine.high %v336_v30, %v344_v31  ;;  %v456_v23 = vld [vmem:[%s13026_s0 + $0xdd0] sm:$0xff] }
 0x2a4   :  { %6914 = vmatprep.mubr.bf16.mxu0 %v8259_v37  ;;  %v8371_v37 = vcombine.high %v340_v32, %v348_v33  ;;  %v452_v24 = vld [vmem:[%s13026_s0 + $0xdb0] sm:$0xff] }
 0x2a5   :  { %v460_v25 = vld [vmem:[%s13026_s0 + $0xdf0] sm:$0xff] }
 0x2a6   :  { %v464_v30 = vld [vmem:[%s13026_s0 + $0xe10] sm:$0xff] }
 0x2a7   :  { %v472_v31 = vld [vmem:[%s13026_s0 + $0xe50] sm:$0xff] }
 0x2a8   :  { %v468_v32 = vld [vmem:[%s13026_s0 + $0xe30] sm:$0xff] }
 0x2a9   :  { %v476_v33 = vld [vmem:[%s13026_s0 + $0xe70] sm:$0xff] }
 0x2aa   :  { %5503 = vmatmul.mubr.bf16.gmra.mrb[52].mxu1 %v8250_v46  ;;  %v368_v46 = vld [vmem:[%s13026_s0 + $0xb10] sm:$0xff] }
 0x2ab   :  { %6915 = vmatmul.mubr.bf16.gmra.mrb[52].mxu0 %v8258_v47  ;;  %5512 = vmatprep.mubr.bf16.mxu1 %v8267_v48  ;;  %v376_v47 = vld [vmem:[%s13026_s0 + $0xb50] sm:$0xff] }
 0x2ac   :  { %6924 = vmatprep.mubr.bf16.mxu0 %v8275_v49  ;;  %v372_v48 = vld [vmem:[%s13026_s0 + $0xb30] sm:$0xff]  ;;  %v8395_v52 = vcombine.high %v368_v46, %v376_v47  ;;  %v8394_v58 = vcombine.low %v368_v46, %v376_v47 }
 0x2ad   :  { %v380_v49 = vld [vmem:[%s13026_s0 + $0xb70] sm:$0xff] }
 0x2ae   :  { %v8403_v53 = vcombine.high %v372_v48, %v380_v49  ;;  %v8402_v59 = vcombine.low %v372_v48, %v380_v49  ;;  %v496_v46 = vld [vmem:[%s13026_s0 + $0xf10] sm:$0xff] }
 0x2af   :  { %v504_v47 = vld [vmem:[%s13026_s0 + $0xf50] sm:$0xff] }
 0x2b0   :  { %v500_v48 = vld [vmem:[%s13026_s0 + $0xf30] sm:$0xff] }
 0x2b1   :  { %v508_v49 = vld [vmem:[%s13026_s0 + $0xf70] sm:$0xff] }
 0x2b2   :  { %5513 = vmatmul.mubr.bf16.gmra.mrb[56].mxu1 %v8266_v54  ;;  %v384_v54 = vld [vmem:[%s13026_s0 + $0xb90] sm:$0xff] }
 0x2b3   :  { %6925 = vmatmul.mubr.bf16.gmra.mrb[56].mxu0 %v8274_v55  ;;  %5522 = vmatprep.mubr.bf16.mxu1 %v8283_v56  ;;  %v392_v55 = vld [vmem:[%s13026_s0 + $0xbd0] sm:$0xff] }
 0x2b4   :  { %6934 = vmatprep.mubr.bf16.mxu0 %v8291_v57  ;;  %v388_v56 = vld [vmem:[%s13026_s0 + $0xbb0] sm:$0xff]  ;;  %v8411_v60 = vcombine.high %v384_v54, %v392_v55 }
 0x2b5   :  { %v396_v57 = vld [vmem:[%s13026_s0 + $0xbf0] sm:$0xff] }
 0x2b6   :  { %v8419_v61 = vcombine.high %v388_v56, %v396_v57 }
 0x2ba   :  { %5523 = vmatmul.mubr.bf16.gmra.mrb[60].mxu1 %v8282_v2  ;;  %v8410_v2 = vcombine.low %v384_v54, %v392_v55  ;;  %v512_v54 = vld [vmem:[%s13026_s0 + $0xf90] sm:$0xff] }
 0x2bb   :  { %6935 = vmatmul.mubr.bf16.gmra.mrb[60].mxu0 %v8290_v3  ;;  %5532 = vmatprep.mubr.bf16.mxu1 %v8299_v4  ;;  %v8418_v3 = vcombine.low %v388_v56, %v396_v57  ;;  %v8427_v4 = vcombine.high %v400_v62, %v408_v63  ;;  %v520_v55 = vld [vmem:[%s13026_s0 + $0xfd0] sm:$0xff] }
 0x2bc   :  { %6944 = vmatprep.mubr.bf16.mxu0 %v8307_v5  ;;  %v8435_v5 = vcombine.high %v404_v0, %v412_v1  ;;  %v516_v56 = vld [vmem:[%s13026_s0 + $0xfb0] sm:$0xff] }
 0x2bd   :  { %v524_v57 = vld [vmem:[%s13026_s0 + $0xff0] sm:$0xff] }
 0x2c2   :  { %5533 = vmatmul.mubr.bf16.gmra.mrb[64].mxu1 %v8298_v10  ;;  %v8426_v10 = vcombine.low %v400_v62, %v408_v63  ;;  %v17_v62 = vld [vmem:[%s13026_s0 + $0x18] sm:$0xff] }
 0x2c3   :  { %6945 = vmatmul.mubr.bf16.gmra.mrb[64].mxu0 %v8306_v11  ;;  %5542 = vmatprep.mubr.bf16.mxu1 %v8315_v12  ;;  %v8434_v11 = vcombine.low %v404_v0, %v412_v1  ;;  %v8443_v12 = vcombine.high %v416_v6, %v424_v7  ;;  %v25_v63 = vld [vmem:[%s13026_s0 + $0x58] sm:$0xff] }
 0x2c4   :  { %6954 = vmatprep.mubr.bf16.mxu0 %v8323_v13  ;;  %v8451_v13 = vcombine.high %v420_v8, %v428_v9  ;;  %v21_v0 = vld [vmem:[%s13026_s0 + $0x38] sm:$0xff] }
 0x2c5   :  { %v29_v1 = vld [vmem:[%s13026_s0 + $0x78] sm:$0xff] }
 0x2ca   :  { %5543 = vmatmul.mubr.bf16.gmra.mrb[68].mxu1 %v8314_v18  ;;  %v8442_v18 = vcombine.low %v416_v6, %v424_v7  ;;  %v33_v6 = vld [vmem:[%s13026_s0 + $0x98] sm:$0xff] }
 0x2cb   :  { %6955 = vmatmul.mubr.bf16.gmra.mrb[68].mxu0 %v8322_v19  ;;  %5552 = vmatprep.mubr.bf16.mxu1 %v8331_v20  ;;  %v8450_v19 = vcombine.low %v420_v8, %v428_v9  ;;  %v8459_v20 = vcombine.high %v432_v14, %v440_v15  ;;  %v41_v7 = vld [vmem:[%s13026_s0 + $0xd8] sm:$0xff] }
 0x2cc   :  { %6964 = vmatprep.mubr.bf16.mxu0 %v8339_v21  ;;  %v8467_v21 = vcombine.high %v436_v16, %v444_v17  ;;  %v37_v8 = vld [vmem:[%s13026_s0 + $0xb8] sm:$0xff] }
 0x2cd   :  { %v45_v9 = vld [vmem:[%s13026_s0 + $0xf8] sm:$0xff] }
 0x2d2   :  { %5553 = vmatmul.mubr.bf16.gmra.mrb[72].mxu1 %v8330_v26  ;;  %v8458_v26 = vcombine.low %v432_v14, %v440_v15  ;;  %v49_v14 = vld [vmem:[%s13026_s0 + $0x118] sm:$0xff] }
 0x2d3   :  { %6965 = vmatmul.mubr.bf16.gmra.mrb[72].mxu0 %v8338_v27  ;;  %5562 = vmatprep.mubr.bf16.mxu1 %v8347_v28  ;;  %v8466_v27 = vcombine.low %v436_v16, %v444_v17  ;;  %v8475_v28 = vcombine.high %v448_v22, %v456_v23  ;;  %v57_v15 = vld [vmem:[%s13026_s0 + $0x158] sm:$0xff] }
 0x2d4   :  { %6974 = vmatprep.mubr.bf16.mxu0 %v8355_v29  ;;  %v8483_v29 = vcombine.high %v452_v24, %v460_v25  ;;  %v53_v16 = vld [vmem:[%s13026_s0 + $0x138] sm:$0xff] }
 0x2d5   :  { %v61_v17 = vld [vmem:[%s13026_s0 + $0x178] sm:$0xff] }
 0x2da   :  { %5563 = vmatmul.mubr.bf16.gmra.mrb[76].mxu1 %v8346_v34  ;;  %v8474_v34 = vcombine.low %v448_v22, %v456_v23  ;;  %v65_v22 = vld [vmem:[%s13026_s0 + $0x198] sm:$0xff] }
 0x2db   :  { %6975 = vmatmul.mubr.bf16.gmra.mrb[76].mxu0 %v8354_v35  ;;  %5572 = vmatprep.mubr.bf16.mxu1 %v8363_v36  ;;  %v8482_v35 = vcombine.low %v452_v24, %v460_v25  ;;  %v8491_v36 = vcombine.high %v464_v30, %v472_v31  ;;  %v73_v23 = vld [vmem:[%s13026_s0 + $0x1d8] sm:$0xff] }
 0x2dc   :  { %6984 = vmatprep.mubr.bf16.mxu0 %v8371_v37  ;;  %v8499_v37 = vcombine.high %v468_v32, %v476_v33  ;;  %v69_v24 = vld [vmem:[%s13026_s0 + $0x1b8] sm:$0xff] }
 0x2dd   :  { %v77_v25 = vld [vmem:[%s13026_s0 + $0x1f8] sm:$0xff] }
 0x2e2   :  { %5573 = vmatmul.mubr.bf16.gmra.mrb[80].mxu1 %v8362_v42  ;;  %v8490_v42 = vcombine.low %v464_v30, %v472_v31  ;;  %v81_v30 = vld [vmem:[%s13026_s0 + $0x218] sm:$0xff] }
 0x2e3   :  { %6985 = vmatmul.mubr.bf16.gmra.mrb[80].mxu0 %v8370_v43  ;;  %5582 = vmatprep.mubr.bf16.mxu1 %v8379_v44  ;;  %v8498_v43 = vcombine.low %v468_v32, %v476_v33  ;;  %v8507_v44 = vcombine.high %v480_v38, %v488_v39  ;;  %v89_v31 = vld [vmem:[%s13026_s0 + $0x258] sm:$0xff] }
 0x2e4   :  { %6994 = vmatprep.mubr.bf16.mxu0 %v8387_v45  ;;  %v8515_v45 = vcombine.high %v484_v40, %v492_v41  ;;  %v85_v32 = vld [vmem:[%s13026_s0 + $0x238] sm:$0xff] }
 0x2e5   :  { %v93_v33 = vld [vmem:[%s13026_s0 + $0x278] sm:$0xff] }
 0x2ea   :  { %5583 = vmatmul.mubr.bf16.gmra.mrb[84].mxu1 %v8378_v50  ;;  %v8506_v50 = vcombine.low %v480_v38, %v488_v39  ;;  %v97_v38 = vld [vmem:[%s13026_s0 + $0x298] sm:$0xff] }
 0x2eb   :  { %6995 = vmatmul.mubr.bf16.gmra.mrb[84].mxu0 %v8386_v51  ;;  %5592 = vmatprep.mubr.bf16.mxu1 %v8395_v52  ;;  %v8514_v51 = vcombine.low %v484_v40, %v492_v41  ;;  %v8523_v52 = vcombine.high %v496_v46, %v504_v47  ;;  %v105_v39 = vld [vmem:[%s13026_s0 + $0x2d8] sm:$0xff] }
 0x2ec   :  { %7004 = vmatprep.mubr.bf16.mxu0 %v8403_v53  ;;  %v8531_v53 = vcombine.high %v500_v48, %v508_v49  ;;  %v101_v40 = vld [vmem:[%s13026_s0 + $0x2b8] sm:$0xff] }
 0x2ed   :  { %v109_v41 = vld [vmem:[%s13026_s0 + $0x2f8] sm:$0xff] }
 0x2f2   :  { %5593 = vmatmul.mubr.bf16.gmra.mrb[88].mxu1 %v8394_v58  ;;  %v8522_v58 = vcombine.low %v496_v46, %v504_v47  ;;  %v113_v46 = vld [vmem:[%s13026_s0 + $0x318] sm:$0xff] }
 0x2f3   :  { %7005 = vmatmul.mubr.bf16.gmra.mrb[88].mxu0 %v8402_v59  ;;  %5602 = vmatprep.mubr.bf16.mxu1 %v8411_v60  ;;  %v8530_v59 = vcombine.low %v500_v48, %v508_v49  ;;  %v8539_v60 = vcombine.high %v512_v54, %v520_v55  ;;  %v121_v47 = vld [vmem:[%s13026_s0 + $0x358] sm:$0xff] }
 0x2f4   :  { %7014 = vmatprep.mubr.bf16.mxu0 %v8419_v61  ;;  %v8547_v61 = vcombine.high %v516_v56, %v524_v57  ;;  %v117_v48 = vld [vmem:[%s13026_s0 + $0x338] sm:$0xff] }
 0x2f5   :  { %v125_v49 = vld [vmem:[%s13026_s0 + $0x378] sm:$0xff] }
 0x2fa   :  { %5603 = vmatmul.mubr.bf16.gmra.mrb[92].mxu1 %v8410_v2  ;;  %v8538_v2 = vcombine.low %v512_v54, %v520_v55  ;;  %v129_v54 = vld [vmem:[%s13026_s0 + $0x398] sm:$0xff] }
 0x2fb   :  { %7015 = vmatmul.mubr.bf16.gmra.mrb[92].mxu0 %v8418_v3  ;;  %5612 = vmatprep.mubr.bf16.mxu1 %v8427_v4  ;;  %v8546_v3 = vcombine.low %v516_v56, %v524_v57  ;;  %v8045_v4 = vcombine.high %v17_v62, %v25_v63  ;;  %v137_v55 = vld [vmem:[%s13026_s0 + $0x3d8] sm:$0xff] }
 0x2fc   :  { %7024 = vmatprep.mubr.bf16.mxu0 %v8435_v5  ;;  %v8053_v5 = vcombine.high %v21_v0, %v29_v1  ;;  %v133_v56 = vld [vmem:[%s13026_s0 + $0x3b8] sm:$0xff] }
 0x2fd   :  { %v141_v57 = vld [vmem:[%s13026_s0 + $0x3f8] sm:$0xff] }
 0x302   :  { %5613 = vmatmul.mubr.bf16.gmra.mrb[96].mxu1 %v8426_v10  ;;  %v8044_v10 = vcombine.low %v17_v62, %v25_v63  ;;  %v145_v62 = vld [vmem:[%s13026_s0 + $0x418] sm:$0xff] }
 0x303   :  { %7025 = vmatmul.mubr.bf16.gmra.mrb[96].mxu0 %v8434_v11  ;;  %5622 = vmatprep.mubr.bf16.mxu1 %v8443_v12  ;;  %v8052_v11 = vcombine.low %v21_v0, %v29_v1  ;;  %v8061_v12 = vcombine.high %v33_v6, %v41_v7  ;;  %v153_v63 = vld [vmem:[%s13026_s0 + $0x458] sm:$0xff] }
 0x304   :  { %7034 = vmatprep.mubr.bf16.mxu0 %v8451_v13  ;;  %v8069_v13 = vcombine.high %v37_v8, %v45_v9  ;;  %v149_v0 = vld [vmem:[%s13026_s0 + $0x438] sm:$0xff] }
 0x305   :  { %v157_v1 = vld [vmem:[%s13026_s0 + $0x478] sm:$0xff] }
 0x30a   :  { %5623 = vmatmul.mubr.bf16.gmra.mrb[100].mxu1 %v8442_v18  ;;  %v8060_v18 = vcombine.low %v33_v6, %v41_v7  ;;  %v161_v6 = vld [vmem:[%s13026_s0 + $0x498] sm:$0xff] }
 0x30b   :  { %7035 = vmatmul.mubr.bf16.gmra.mrb[100].mxu0 %v8450_v19  ;;  %5632 = vmatprep.mubr.bf16.mxu1 %v8459_v20  ;;  %v8068_v19 = vcombine.low %v37_v8, %v45_v9  ;;  %v8077_v20 = vcombine.high %v49_v14, %v57_v15  ;;  %v169_v7 = vld [vmem:[%s13026_s0 + $0x4d8] sm:$0xff] }
 0x30c   :  { %7044 = vmatprep.mubr.bf16.mxu0 %v8467_v21  ;;  %v8085_v21 = vcombine.high %v53_v16, %v61_v17  ;;  %v165_v8 = vld [vmem:[%s13026_s0 + $0x4b8] sm:$0xff] }
 0x30d   :  { %v173_v9 = vld [vmem:[%s13026_s0 + $0x4f8] sm:$0xff] }
 0x312   :  { %5633 = vmatmul.mubr.bf16.gmra.mrb[104].mxu1 %v8458_v26  ;;  %v8076_v26 = vcombine.low %v49_v14, %v57_v15  ;;  %v177_v14 = vld [vmem:[%s13026_s0 + $0x518] sm:$0xff] }
 0x313   :  { %7045 = vmatmul.mubr.bf16.gmra.mrb[104].mxu0 %v8466_v27  ;;  %5642 = vmatprep.mubr.bf16.mxu1 %v8475_v28  ;;  %v8084_v27 = vcombine.low %v53_v16, %v61_v17  ;;  %v8093_v28 = vcombine.high %v65_v22, %v73_v23  ;;  %v185_v15 = vld [vmem:[%s13026_s0 + $0x558] sm:$0xff] }
 0x314   :  { %7054 = vmatprep.mubr.bf16.mxu0 %v8483_v29  ;;  %v8101_v29 = vcombine.high %v69_v24, %v77_v25  ;;  %v181_v16 = vld [vmem:[%s13026_s0 + $0x538] sm:$0xff] }
 0x315   :  { %v189_v17 = vld [vmem:[%s13026_s0 + $0x578] sm:$0xff] }
 0x31a   :  { %5643 = vmatmul.mubr.bf16.gmra.mrb[108].mxu1 %v8474_v34  ;;  %v8092_v34 = vcombine.low %v65_v22, %v73_v23  ;;  %v193_v22 = vld [vmem:[%s13026_s0 + $0x598] sm:$0xff] }
 0x31b   :  { %7055 = vmatmul.mubr.bf16.gmra.mrb[108].mxu0 %v8482_v35  ;;  %5652 = vmatprep.mubr.bf16.mxu1 %v8491_v36  ;;  %v8100_v35 = vcombine.low %v69_v24, %v77_v25  ;;  %v8109_v36 = vcombine.high %v81_v30, %v89_v31  ;;  %v201_v23 = vld [vmem:[%s13026_s0 + $0x5d8] sm:$0xff] }
 0x31c   :  { %7064 = vmatprep.mubr.bf16.mxu0 %v8499_v37  ;;  %v8117_v37 = vcombine.high %v85_v32, %v93_v33  ;;  %v197_v24 = vld [vmem:[%s13026_s0 + $0x5b8] sm:$0xff] }
 0x31d   :  { %v205_v25 = vld [vmem:[%s13026_s0 + $0x5f8] sm:$0xff] }
 0x322   :  { %5653 = vmatmul.mubr.bf16.gmra.mrb[112].mxu1 %v8490_v42  ;;  %v8108_v42 = vcombine.low %v81_v30, %v89_v31  ;;  %v209_v30 = vld [vmem:[%s13026_s0 + $0x618] sm:$0xff] }
 0x323   :  { %7065 = vmatmul.mubr.bf16.gmra.mrb[112].mxu0 %v8498_v43  ;;  %5662 = vmatprep.mubr.bf16.mxu1 %v8507_v44  ;;  %v8116_v43 = vcombine.low %v85_v32, %v93_v33  ;;  %v8125_v44 = vcombine.high %v97_v38, %v105_v39  ;;  %v217_v31 = vld [vmem:[%s13026_s0 + $0x658] sm:$0xff] }
 0x324   :  { %7074 = vmatprep.mubr.bf16.mxu0 %v8515_v45  ;;  %v8133_v45 = vcombine.high %v101_v40, %v109_v41  ;;  %v213_v32 = vld [vmem:[%s13026_s0 + $0x638] sm:$0xff] }
 0x325   :  { %v221_v33 = vld [vmem:[%s13026_s0 + $0x678] sm:$0xff] }
 0x32a   :  { %5663 = vmatmul.mubr.bf16.gmra.mrb[116].mxu1 %v8506_v50  ;;  %v8124_v50 = vcombine.low %v97_v38, %v105_v39  ;;  %v225_v38 = vld [vmem:[%s13026_s0 + $0x698] sm:$0xff] }
 0x32b   :  { %7075 = vmatmul.mubr.bf16.gmra.mrb[116].mxu0 %v8514_v51  ;;  %5672 = vmatprep.mubr.bf16.mxu1 %v8523_v52  ;;  %v8132_v51 = vcombine.low %v101_v40, %v109_v41  ;;  %v8141_v52 = vcombine.high %v113_v46, %v121_v47  ;;  %v233_v39 = vld [vmem:[%s13026_s0 + $0x6d8] sm:$0xff] }
 0x32c   :  { %7084 = vmatprep.mubr.bf16.mxu0 %v8531_v53  ;;  %v8149_v53 = vcombine.high %v117_v48, %v125_v49  ;;  %v229_v40 = vld [vmem:[%s13026_s0 + $0x6b8] sm:$0xff] }
 0x32d   :  { %v237_v41 = vld [vmem:[%s13026_s0 + $0x6f8] sm:$0xff] }
 0x332   :  { %5673 = vmatmul.mubr.bf16.gmra.mrb[120].mxu1 %v8522_v58  ;;  %v8140_v58 = vcombine.low %v113_v46, %v121_v47  ;;  %v241_v46 = vld [vmem:[%s13026_s0 + $0x718] sm:$0xff] }
 0x333   :  { %7085 = vmatmul.mubr.bf16.gmra.mrb[120].mxu0 %v8530_v59  ;;  %5682 = vmatprep.mubr.bf16.mxu1 %v8539_v60  ;;  %v8148_v59 = vcombine.low %v117_v48, %v125_v49  ;;  %v8157_v60 = vcombine.high %v129_v54, %v137_v55  ;;  %v249_v47 = vld [vmem:[%s13026_s0 + $0x758] sm:$0xff] }
 0x334   :  { %7094 = vmatprep.mubr.bf16.mxu0 %v8547_v61  ;;  %v8165_v61 = vcombine.high %v133_v56, %v141_v57  ;;  %v245_v48 = vld [vmem:[%s13026_s0 + $0x738] sm:$0xff] }
 0x335   :  { %v253_v49 = vld [vmem:[%s13026_s0 + $0x778] sm:$0xff] }
 0x33a   :  { %5683 = vmatmul.mubr.bf16.gmra.mrb[124].mxu1 %v8538_v2  ;;  %v8156_v2 = vcombine.low %v129_v54, %v137_v55  ;;  %v257_v54 = vld [vmem:[%s13026_s0 + $0x798] sm:$0xff] }
 0x33b   :  { %7095 = vmatmul.mubr.bf16.gmra.mrb[124].mxu0 %v8546_v3  ;;  %5725 = vmatprep.mubr.bf16.mxu1 %v8045_v4  ;;  %v8164_v3 = vcombine.low %v133_v56, %v141_v57  ;;  %v8173_v4 = vcombine.high %v145_v62, %v153_v63  ;;  %v265_v55 = vld [vmem:[%s13026_s0 + $0x7d8] sm:$0xff] }
 0x33c   :  { %7137 = vmatprep.mubr.bf16.mxu0 %v8053_v5  ;;  %v8181_v5 = vcombine.high %v149_v0, %v157_v1  ;;  %v261_v56 = vld [vmem:[%s13026_s0 + $0x7b8] sm:$0xff] }
 0x33d   :  { %v269_v57 = vld [vmem:[%s13026_s0 + $0x7f8] sm:$0xff] }
 0x342   :  { %5726 = vmatmul.mubr.bf16.vlgmr.msra.gmra.mrb[0].mxu1 %v8044_v10  ;;  %v8172_v10 = vcombine.low %v145_v62, %v153_v63  ;;  %v273_v62 = vld [vmem:[%s13026_s0 + $0x818] sm:$0xff] }
 0x343   :  { %7138 = vmatmul.mubr.bf16.vlgmr.msra.gmra.mrb[0].mxu0 %v8052_v11  ;;  %5735 = vmatprep.mubr.bf16.mxu1 %v8061_v12  ;;  %v8180_v11 = vcombine.low %v149_v0, %v157_v1  ;;  %v8189_v12 = vcombine.high %v161_v6, %v169_v7  ;;  %v281_v63 = vld [vmem:[%s13026_s0 + $0x858] sm:$0xff] }
 0x344   :  { %7147 = vmatprep.mubr.bf16.mxu0 %v8069_v13  ;;  %v8197_v13 = vcombine.high %v165_v8, %v173_v9  ;;  %v277_v0 = vld [vmem:[%s13026_s0 + $0x838] sm:$0xff] }
 0x345   :  { %v285_v1 = vld [vmem:[%s13026_s0 + $0x878] sm:$0xff] }
 0x34a   :  { %5736 = vmatmul.mubr.bf16.gmra.mrb[4].mxu1 %v8060_v18  ;;  %v8188_v18 = vcombine.low %v161_v6, %v169_v7  ;;  %v289_v6 = vld [vmem:[%s13026_s0 + $0x898] sm:$0xff] }
 0x34b   :  { %7148 = vmatmul.mubr.bf16.gmra.mrb[4].mxu0 %v8068_v19  ;;  %5745 = vmatprep.mubr.bf16.mxu1 %v8077_v20  ;;  %v8196_v19 = vcombine.low %v165_v8, %v173_v9  ;;  %v8205_v20 = vcombine.high %v177_v14, %v185_v15  ;;  %v297_v7 = vld [vmem:[%s13026_s0 + $0x8d8] sm:$0xff] }
 0x34c   :  { %7157 = vmatprep.mubr.bf16.mxu0 %v8085_v21  ;;  %v8213_v21 = vcombine.high %v181_v16, %v189_v17  ;;  %v293_v8 = vld [vmem:[%s13026_s0 + $0x8b8] sm:$0xff] }
 0x34d   :  { %v301_v9 = vld [vmem:[%s13026_s0 + $0x8f8] sm:$0xff] }
 0x352   :  { %5746 = vmatmul.mubr.bf16.gmra.mrb[8].mxu1 %v8076_v26  ;;  %v8204_v26 = vcombine.low %v177_v14, %v185_v15  ;;  %v305_v14 = vld [vmem:[%s13026_s0 + $0x918] sm:$0xff] }
 0x353   :  { %7158 = vmatmul.mubr.bf16.gmra.mrb[8].mxu0 %v8084_v27  ;;  %5755 = vmatprep.mubr.bf16.mxu1 %v8093_v28  ;;  %v8212_v27 = vcombine.low %v181_v16, %v189_v17  ;;  %v8221_v28 = vcombine.high %v193_v22, %v201_v23  ;;  %v313_v15 = vld [vmem:[%s13026_s0 + $0x958] sm:$0xff] }
 0x354   :  { %7167 = vmatprep.mubr.bf16.mxu0 %v8101_v29  ;;  %v8229_v29 = vcombine.high %v197_v24, %v205_v25  ;;  %v309_v16 = vld [vmem:[%s13026_s0 + $0x938] sm:$0xff] }
 0x355   :  { %v317_v17 = vld [vmem:[%s13026_s0 + $0x978] sm:$0xff] }
 0x35a   :  { %5756 = vmatmul.mubr.bf16.gmra.mrb[12].mxu1 %v8092_v34  ;;  %v8220_v34 = vcombine.low %v193_v22, %v201_v23  ;;  %v321_v22 = vld [vmem:[%s13026_s0 + $0x998] sm:$0xff] }
 0x35b   :  { %7168 = vmatmul.mubr.bf16.gmra.mrb[12].mxu0 %v8100_v35  ;;  %5765 = vmatprep.mubr.bf16.mxu1 %v8109_v36  ;;  %v8228_v35 = vcombine.low %v197_v24, %v205_v25  ;;  %v8237_v36 = vcombine.high %v209_v30, %v217_v31  ;;  %v329_v23 = vld [vmem:[%s13026_s0 + $0x9d8] sm:$0xff] }
 0x35c   :  { %7177 = vmatprep.mubr.bf16.mxu0 %v8117_v37  ;;  %v8245_v37 = vcombine.high %v213_v32, %v221_v33  ;;  %v325_v24 = vld [vmem:[%s13026_s0 + $0x9b8] sm:$0xff] }
 0x35d   :  { %v333_v25 = vld [vmem:[%s13026_s0 + $0x9f8] sm:$0xff] }
 0x362   :  { %5766 = vmatmul.mubr.bf16.gmra.mrb[16].mxu1 %v8108_v42  ;;  %v8236_v42 = vcombine.low %v209_v30, %v217_v31  ;;  %v337_v30 = vld [vmem:[%s13026_s0 + $0xa18] sm:$0xff] }
 0x363   :  { %7178 = vmatmul.mubr.bf16.gmra.mrb[16].mxu0 %v8116_v43  ;;  %5775 = vmatprep.mubr.bf16.mxu1 %v8125_v44  ;;  %v8244_v43 = vcombine.low %v213_v32, %v221_v33  ;;  %v8253_v44 = vcombine.high %v225_v38, %v233_v39  ;;  %v345_v31 = vld [vmem:[%s13026_s0 + $0xa58] sm:$0xff] }
 0x364   :  { %7187 = vmatprep.mubr.bf16.mxu0 %v8133_v45  ;;  %v8261_v45 = vcombine.high %v229_v40, %v237_v41  ;;  %v341_v32 = vld [vmem:[%s13026_s0 + $0xa38] sm:$0xff] }
 0x365   :  { %v349_v33 = vld [vmem:[%s13026_s0 + $0xa78] sm:$0xff] }
 0x36a   :  { %5776 = vmatmul.mubr.bf16.gmra.mrb[20].mxu1 %v8124_v50  ;;  %v8252_v50 = vcombine.low %v225_v38, %v233_v39  ;;  %v353_v38 = vld [vmem:[%s13026_s0 + $0xa98] sm:$0xff] }
 0x36b   :  { %7188 = vmatmul.mubr.bf16.gmra.mrb[20].mxu0 %v8132_v51  ;;  %5785 = vmatprep.mubr.bf16.mxu1 %v8141_v52  ;;  %v8260_v51 = vcombine.low %v229_v40, %v237_v41  ;;  %v8269_v52 = vcombine.high %v241_v46, %v249_v47  ;;  %v361_v39 = vld [vmem:[%s13026_s0 + $0xad8] sm:$0xff] }
 0x36c   :  { %7197 = vmatprep.mubr.bf16.mxu0 %v8149_v53  ;;  %v8277_v53 = vcombine.high %v245_v48, %v253_v49  ;;  %v357_v40 = vld [vmem:[%s13026_s0 + $0xab8] sm:$0xff] }
 0x36d   :  { %v365_v41 = vld [vmem:[%s13026_s0 + $0xaf8] sm:$0xff] }
 0x372   :  { %5786 = vmatmul.mubr.bf16.gmra.mrb[24].mxu1 %v8140_v58  ;;  %v8268_v58 = vcombine.low %v241_v46, %v249_v47  ;;  %v369_v46 = vld [vmem:[%s13026_s0 + $0xb18] sm:$0xff] }
 0x373   :  { %7198 = vmatmul.mubr.bf16.gmra.mrb[24].mxu0 %v8148_v59  ;;  %5795 = vmatprep.mubr.bf16.mxu1 %v8157_v60  ;;  %v8276_v59 = vcombine.low %v245_v48, %v253_v49  ;;  %v8285_v60 = vcombine.high %v257_v54, %v265_v55  ;;  %v377_v47 = vld [vmem:[%s13026_s0 + $0xb58] sm:$0xff] }
 0x374   :  { %7207 = vmatprep.mubr.bf16.mxu0 %v8165_v61  ;;  %v8293_v61 = vcombine.high %v261_v56, %v269_v57  ;;  %v373_v48 = vld [vmem:[%s13026_s0 + $0xb38] sm:$0xff] }
 0x375   :  { %v381_v49 = vld [vmem:[%s13026_s0 + $0xb78] sm:$0xff] }
 0x37a   :  { %5796 = vmatmul.mubr.bf16.gmra.mrb[28].mxu1 %v8156_v2  ;;  %v8284_v2 = vcombine.low %v257_v54, %v265_v55  ;;  %v385_v54 = vld [vmem:[%s13026_s0 + $0xb98] sm:$0xff] }
 0x37b   :  { %7208 = vmatmul.mubr.bf16.gmra.mrb[28].mxu0 %v8164_v3  ;;  %5805 = vmatprep.mubr.bf16.mxu1 %v8173_v4  ;;  %v8292_v3 = vcombine.low %v261_v56, %v269_v57  ;;  %v8301_v4 = vcombine.high %v273_v62, %v281_v63  ;;  %v393_v55 = vld [vmem:[%s13026_s0 + $0xbd8] sm:$0xff] }
 0x37c   :  { %7217 = vmatprep.mubr.bf16.mxu0 %v8181_v5  ;;  %v8309_v5 = vcombine.high %v277_v0, %v285_v1  ;;  %v389_v56 = vld [vmem:[%s13026_s0 + $0xbb8] sm:$0xff] }
 0x37d   :  { %v397_v57 = vld [vmem:[%s13026_s0 + $0xbf8] sm:$0xff] }
 0x382   :  { %5806 = vmatmul.mubr.bf16.gmra.mrb[32].mxu1 %v8172_v10  ;;  %v8300_v10 = vcombine.low %v273_v62, %v281_v63  ;;  %v401_v62 = vld [vmem:[%s13026_s0 + $0xc18] sm:$0xff] }
 0x383   :  { %7218 = vmatmul.mubr.bf16.gmra.mrb[32].mxu0 %v8180_v11  ;;  %5815 = vmatprep.mubr.bf16.mxu1 %v8189_v12  ;;  %v8308_v11 = vcombine.low %v277_v0, %v285_v1  ;;  %v8317_v12 = vcombine.high %v289_v6, %v297_v7  ;;  %v409_v63 = vld [vmem:[%s13026_s0 + $0xc58] sm:$0xff] }
 0x384   :  { %7227 = vmatprep.mubr.bf16.mxu0 %v8197_v13  ;;  %v8325_v13 = vcombine.high %v293_v8, %v301_v9  ;;  %v405_v0 = vld [vmem:[%s13026_s0 + $0xc38] sm:$0xff] }
 0x385   :  { %v413_v1 = vld [vmem:[%s13026_s0 + $0xc78] sm:$0xff] }
 0x38a   :  { %5816 = vmatmul.mubr.bf16.gmra.mrb[36].mxu1 %v8188_v18  ;;  %v8316_v18 = vcombine.low %v289_v6, %v297_v7  ;;  %v417_v6 = vld [vmem:[%s13026_s0 + $0xc98] sm:$0xff] }
 0x38b   :  { %7228 = vmatmul.mubr.bf16.gmra.mrb[36].mxu0 %v8196_v19  ;;  %5825 = vmatprep.mubr.bf16.mxu1 %v8205_v20  ;;  %v8324_v19 = vcombine.low %v293_v8, %v301_v9  ;;  %v8333_v20 = vcombine.high %v305_v14, %v313_v15  ;;  %v425_v7 = vld [vmem:[%s13026_s0 + $0xcd8] sm:$0xff] }
 0x38c   :  { %7237 = vmatprep.mubr.bf16.mxu0 %v8213_v21  ;;  %v8341_v21 = vcombine.high %v309_v16, %v317_v17  ;;  %v421_v8 = vld [vmem:[%s13026_s0 + $0xcb8] sm:$0xff] }
 0x38d   :  { %v429_v9 = vld [vmem:[%s13026_s0 + $0xcf8] sm:$0xff] }
 0x392   :  { %5826 = vmatmul.mubr.bf16.gmra.mrb[40].mxu1 %v8204_v26  ;;  %v8332_v26 = vcombine.low %v305_v14, %v313_v15  ;;  %v433_v14 = vld [vmem:[%s13026_s0 + $0xd18] sm:$0xff] }
 0x393   :  { %7238 = vmatmul.mubr.bf16.gmra.mrb[40].mxu0 %v8212_v27  ;;  %5835 = vmatprep.mubr.bf16.mxu1 %v8221_v28  ;;  %v8340_v27 = vcombine.low %v309_v16, %v317_v17  ;;  %v8349_v28 = vcombine.high %v321_v22, %v329_v23  ;;  %v441_v15 = vld [vmem:[%s13026_s0 + $0xd58] sm:$0xff] }
 0x394   :  { %7247 = vmatprep.mubr.bf16.mxu0 %v8229_v29  ;;  %v8357_v29 = vcombine.high %v325_v24, %v333_v25  ;;  %v437_v16 = vld [vmem:[%s13026_s0 + $0xd38] sm:$0xff] }
 0x395   :  { %v445_v17 = vld [vmem:[%s13026_s0 + $0xd78] sm:$0xff] }
 0x39a   :  { %5836 = vmatmul.mubr.bf16.gmra.mrb[44].mxu1 %v8220_v34  ;;  %v8348_v34 = vcombine.low %v321_v22, %v329_v23  ;;  %v8469_v22 = vcombine.high %v437_v16, %v445_v17 }
 0x39b   :  { %7248 = vmatmul.mubr.bf16.gmra.mrb[44].mxu0 %v8228_v35  ;;  %5845 = vmatprep.mubr.bf16.mxu1 %v8237_v36  ;;  %v8356_v35 = vcombine.low %v325_v24, %v333_v25  ;;  %v8365_v36 = vcombine.high %v337_v30, %v345_v31  ;;  %v449_v24 = vld [vmem:[%s13026_s0 + $0xd98] sm:$0xff] }
 0x39c   :  { %7257 = vmatprep.mubr.bf16.mxu0 %v8245_v37  ;;  %v8373_v37 = vcombine.high %v341_v32, %v349_v33  ;;  %v457_v25 = vld [vmem:[%s13026_s0 + $0xdd8] sm:$0xff] }
 0x3a2   :  { %5846 = vmatmul.mubr.bf16.gmra.mrb[48].mxu1 %v8236_v42  ;;  %v8364_v42 = vcombine.low %v337_v30, %v345_v31  ;;  %v782_v31 = vld [vmem:[%s13027_s2] sm:$0x3] }
 0x3a3   :  { %7258 = vmatmul.mubr.bf16.gmra.mrb[48].mxu0 %v8244_v43  ;;  %5855 = vmatprep.mubr.bf16.mxu1 %v8253_v44  ;;  %v8372_v43 = vcombine.low %v341_v32, %v349_v33  ;;  %v8381_v44 = vcombine.high %v353_v38, %v361_v39  ;;  %v8477_v33 = vcombine.high %v449_v24, %v457_v25 }
 0x3a4   :  { %7267 = vmatprep.mubr.bf16.mxu0 %v8261_v45  ;;  %v8389_v45 = vcombine.high %v357_v40, %v365_v41 }
 0x3aa   :  { %5856 = vmatmul.mubr.bf16.gmra.mrb[52].mxu1 %v8252_v50  ;;  %v8380_v50 = vcombine.low %v353_v38, %v361_v39  ;;  %v473_v38 = vld [vmem:[%s13026_s0 + $0xe58] sm:$0xff] }
 0x3ab   :  { %7268 = vmatmul.mubr.bf16.gmra.mrb[52].mxu0 %v8260_v51  ;;  %5865 = vmatprep.mubr.bf16.mxu1 %v8269_v52  ;;  %v8388_v51 = vcombine.low %v357_v40, %v365_v41  ;;  %v8397_v52 = vcombine.high %v369_v46, %v377_v47  ;;  %v469_v39 = vld [vmem:[%s13026_s0 + $0xe38] sm:$0xff] }
 0x3ac   :  { %7277 = vmatprep.mubr.bf16.mxu0 %v8277_v53  ;;  %v8405_v53 = vcombine.high %v373_v48, %v381_v49  ;;  %v477_v40 = vld [vmem:[%s13026_s0 + $0xe78] sm:$0xff] }
 0x3b2   :  { %5866 = vmatmul.mubr.bf16.gmra.mrb[56].mxu1 %v8268_v58  ;;  %v8396_v58 = vcombine.low %v369_v46, %v377_v47  ;;  %v8476_v46 = vcombine.low %v449_v24, %v457_v25 }
 0x3b3   :  { %7278 = vmatmul.mubr.bf16.gmra.mrb[56].mxu0 %v8276_v59  ;;  %5875 = vmatprep.mubr.bf16.mxu1 %v8285_v60  ;;  %v8404_v59 = vcombine.low %v373_v48, %v381_v49  ;;  %v8413_v60 = vcombine.high %v385_v54, %v393_v55 }
 0x3b4   :  { %7287 = vmatprep.mubr.bf16.mxu0 %v8293_v61  ;;  %v8421_v61 = vcombine.high %v389_v56, %v397_v57 }
 0x3ba   :  { %5876 = vmatmul.mubr.bf16.gmra.mrb[60].mxu1 %v8284_v2  ;;  %v8412_v2 = vcombine.low %v385_v54, %v393_v55 }
 0x3bb   :  { %7288 = vmatmul.mubr.bf16.gmra.mrb[60].mxu0 %v8292_v3  ;;  %5885 = vmatprep.mubr.bf16.mxu1 %v8301_v4  ;;  %v8420_v3 = vcombine.low %v389_v56, %v397_v57  ;;  %v8429_v4 = vcombine.high %v401_v62, %v409_v63 }
 0x3bc   :  { %7297 = vmatprep.mubr.bf16.mxu0 %v8309_v5  ;;  %v8437_v5 = vcombine.high %v405_v0, %v413_v1 }
 0x3c2   :  { %5886 = vmatmul.mubr.bf16.gmra.mrb[64].mxu1 %v8300_v10  ;;  %v8428_v10 = vcombine.low %v401_v62, %v409_v63  ;;  %v12644_v63 = vld [vmem:[%s13026_s0 + $0xe98] sm:$0xff] }
 0x3c3   :  { %7298 = vmatmul.mubr.bf16.gmra.mrb[64].mxu0 %v8308_v11  ;;  %5895 = vmatprep.mubr.bf16.mxu1 %v8317_v12  ;;  %v8436_v11 = vcombine.low %v405_v0, %v413_v1  ;;  %v8445_v12 = vcombine.high %v417_v6, %v425_v7  ;;  %v12649_v1 = vld [vmem:[%s13026_s0 + $0xed8] sm:$0xff] }
 0x3c4   :  { %7307 = vmatprep.mubr.bf16.mxu0 %v8325_v13  ;;  %v8453_v13 = vcombine.high %v421_v8, %v429_v9 }
 0x3ca   :  { %5896 = vmatmul.mubr.bf16.gmra.mrb[68].mxu1 %v8316_v18  ;;  %v8444_v18 = vcombine.low %v417_v6, %v425_v7 }
 0x3cb   :  { %7308 = vmatmul.mubr.bf16.gmra.mrb[68].mxu0 %v8324_v19  ;;  %5905 = vmatprep.mubr.bf16.mxu1 %v8333_v20  ;;  %v8452_v19 = vcombine.low %v421_v8, %v429_v9  ;;  %v784_v20 = vlaneseq }
 0x3cc   :  { %7317 = vmatprep.mubr.bf16.mxu0 %v8341_v21  ;;  %v8461_v21 = vcombine.high %v433_v14, %v441_v15 }
 0x3cd   :  { %v785_v23 = vshrl.u32 %v784_v20, 7 }
 0x3cf   :  { %v786_v30 = vsub.s32 0, %v785_v23  ;;  %v790_v32 = vsub.s32 1, %v785_v23 }
 0x3d2   :  { %5906 = vmatmul.mubr.bf16.gmra.mrb[72].mxu1 %v8332_v26  ;;  %v453_v26 = vld [vmem:[%s13026_s0 + $0xdb8] sm:$0xff] }
 0x3d3   :  { %7318 = vmatmul.mubr.bf16.gmra.mrb[72].mxu0 %v8340_v27  ;;  %5915 = vmatprep.mubr.bf16.mxu1 %v8349_v28  ;;  %v461_v27 = vld [vmem:[%s13026_s0 + $0xdf8] sm:$0xff]  ;;  %v8460_v28 = vcombine.low %v433_v14, %v441_v15 }
 0x3d4   :  { %7327 = vmatprep.mubr.bf16.mxu0 %v8357_v29  ;;  %v8468_v29 = vcombine.low %v437_v16, %v445_v17  ;;  %v8484_v47 = vcombine.low %v453_v26, %v461_v27  ;;  %v8509_v17 = vcombine.high %v12644_v63, %v12649_v1 }
 0x3da   :  { %5916 = vmatmul.mubr.bf16.gmra.mrb[76].mxu1 %v8348_v34  ;;  %v8485_v34 = vcombine.high %v453_v26, %v461_v27 }
 0x3db   :  { %7328 = vmatmul.mubr.bf16.gmra.mrb[76].mxu0 %v8356_v35  ;;  %5925 = vmatprep.mubr.bf16.mxu1 %v8365_v36  ;;  %v12621_v35 = vrot.slane %v782_v31, %v786_v30  ;;  %v12623_v36 = vrot.slane %v782_v31, %v790_v32  ;;  %v12683_v31 = vld [vmem:[%s13026_s0 + $0xf58] sm:$0xff] }
 0x3dc   :  { %7337 = vmatprep.mubr.bf16.mxu0 %v8373_v37  ;;  %v465_v37 = vld [vmem:[%s13026_s0 + $0xe18] sm:$0xff] }
 0x3dd   :  { %v12688_v32 = vld [vmem:[%s13026_s0 + $0xf38] sm:$0xff] }
 0x3e2   :  { %5926 = vmatmul.mubr.bf16.gmra.mrb[80].mxu1 %v8364_v42 }
 0x3e3   :  { %7338 = vmatmul.mubr.bf16.gmra.mrb[80].mxu0 %v8372_v43  ;;  %5935 = vmatprep.mubr.bf16.mxu1 %v8381_v44 }
 0x3e4   :  { %7347 = vmatprep.mubr.bf16.mxu0 %v8389_v45 }
 0x3ea   :  { %5936 = vmatmul.mubr.bf16.gmra.mrb[84].mxu1 %v8380_v50 }
 0x3eb   :  { %7348 = vmatmul.mubr.bf16.gmra.mrb[84].mxu0 %v8388_v51  ;;  %5945 = vmatprep.mubr.bf16.mxu1 %v8397_v52  ;;  %v8493_v51 = vcombine.high %v465_v37, %v473_v38  ;;  %v8501_v52 = vcombine.high %v469_v39, %v477_v40 }
 0x3ec   :  { %7357 = vmatprep.mubr.bf16.mxu0 %v8405_v53 }
 0x3f2   :  { %5946 = vmatmul.mubr.bf16.gmra.mrb[88].mxu1 %v8396_v58 }
 0x3f3   :  { %7358 = vmatmul.mubr.bf16.gmra.mrb[88].mxu0 %v8404_v59  ;;  %5955 = vmatprep.mubr.bf16.mxu1 %v8413_v60 }
 0x3f4   :  { %7367 = vmatprep.mubr.bf16.mxu0 %v8421_v61 }
 0x3fa   :  { %5956 = vmatmul.mubr.bf16.gmra.mrb[92].mxu1 %v8412_v2  ;;  %v12654_v2 = vld [vmem:[%s13026_s0 + $0xeb8] sm:$0xff] }
 0x3fb   :  { %7368 = vmatmul.mubr.bf16.gmra.mrb[92].mxu0 %v8420_v3  ;;  %5965 = vmatprep.mubr.bf16.mxu1 %v8429_v4  ;;  %v12659_v3 = vld [vmem:[%s13026_s0 + $0xef8] sm:$0xff] }
 0x3fc   :  { %7377 = vmatprep.mubr.bf16.mxu0 %v8437_v5 }
 0x402   :  { %5966 = vmatmul.mubr.bf16.gmra.mrb[96].mxu1 %v8428_v10 }
 0x403   :  { %7378 = vmatmul.mubr.bf16.gmra.mrb[96].mxu0 %v8436_v11  ;;  %5975 = vmatprep.mubr.bf16.mxu1 %v8445_v12  ;;  %v8492_v11 = vcombine.low %v465_v37, %v473_v38  ;;  %v8500_v12 = vcombine.low %v469_v39, %v477_v40 }
 0x404   :  { %7387 = vmatprep.mubr.bf16.mxu0 %v8453_v13 }
 0x40a   :  { %5976 = vmatmul.mubr.bf16.gmra.mrb[100].mxu1 %v8444_v18  ;;  %v8517_v18 = vcombine.high %v12654_v2, %v12659_v3 }
 0x40b   :  { %7388 = vmatmul.mubr.bf16.gmra.mrb[100].mxu0 %v8452_v19  ;;  %5985 = vmatprep.mubr.bf16.mxu1 %v8461_v21 }
 0x40c   :  { %7397 = vmatprep.mubr.bf16.mxu0 %v8469_v22 }
 0x412   :  { %5986 = vmatmul.mubr.bf16.gmra.mrb[104].mxu1 %v8460_v28 }
 0x413   :  { %7398 = vmatmul.mubr.bf16.gmra.mrb[104].mxu0 %v8468_v29  ;;  %5995 = vmatprep.mubr.bf16.mxu1 %v8477_v33  ;;  %v12678_v29 = vld [vmem:[%s13026_s0 + $0xf18] sm:$0xff] }
 0x414   :  { %7407 = vmatprep.mubr.bf16.mxu0 %v8485_v34  ;;  %v12693_v33 = vld [vmem:[%s13026_s0 + $0xf78] sm:$0xff] }
 0x415   :  { %v5727_v41 = vpop.f32.mrb[0].mxu1 }
 0x416   :  { %v7139_v42 = vpop.f32.mrb[0].mxu0  ;;  %v8934_v43 = vadd.f32 %v5727_v41, %v12621_v35  ;;  %v5729_v44 = vpop.f32.mrb[1].mxu1 }
 0x417   :  { %v7141_v45 = vpop.f32.mrb[1].mxu0  ;;  %v8936_v48 = vadd.f32 %v5729_v44, %v12623_v36  ;;  %v5731_v49 = vpop.f32.mrb[2].mxu1  ;;  %v8516_v44 = vcombine.low %v12654_v2, %v12659_v3 }
 0x418   :  { %v7143_v50 = vpop.f32.mrb[2].mxu0  ;;  %v8935_v53 = vadd.f32 %v8934_v43, %v7139_v42  ;;  %v8938_v54 = vadd.f32 %v5731_v49, %v12621_v35  ;;  %v5733_v55 = vpop.f32.mrb[3].mxu1  ;;  %v8508_v43 = vcombine.low %v12644_v63, %v12649_v1  ;;  %v8525_v49 = vcombine.high %v12678_v29, %v12683_v31  ;;  %v521_v63 = vld [vmem:[%s13026_s0 + $0xfd8] sm:$0xff] }
 0x419   :  { %v7145_v56 = vpop.f32.mrb[3].mxu0  ;;  %v8937_v57 = vadd.f32 %v8936_v48, %v7141_v45  ;;  %v8940_v58 = vadd.f32 %v5733_v55, %v12623_v36  ;;  %v525_v1 = vld [vmem:[%s13026_s0 + $0xff8] sm:$0xff] }
 0x41a   :  { %v7458_v59 = vmax.f32 %v8935_v53, 0.0  ;;  %v8939_v60 = vadd.f32 %v8938_v54, %v7143_v50  ;;  %5996 = vmatmul.mubr.bf16.gmra.mrb[108].mxu1 %v8476_v46  ;;  %v8533_v50 = vcombine.high %v12688_v32, %v12693_v33 }
 0x41b   :  { %7408 = vmatmul.mubr.bf16.gmra.mrb[108].mxu0 %v8484_v47  ;;  %v7459_v61 = vmax.f32 %v8937_v57, 0.0  ;;  %v8941_v62 = vadd.f32 %v8940_v58, %v7145_v56  ;;  %6005 = vmatprep.mubr.bf16.mxu1 %v8493_v51 }
 0x41c   :  { %7417 = vmatprep.mubr.bf16.mxu0 %v8501_v52  ;;  %v7460_v0 = vmax.f32 %v8939_v60, 0.0 }
 0x41d   :  { %v8870_v4 = vpack.c.bf16 %v7459_v61, %v7458_v59  ;;  %v7461_v5 = vmax.f32 %v8941_v62, 0.0  ;;  %v5737_v6 = vpop.f32.mrb[4].mxu1  ;;  %v513_v61 = vld [vmem:[%s13026_s0 + $0xf98] sm:$0xff] }
 0x41e   :  { %v7149_v7 = vpop.f32.mrb[4].mxu0  ;;  %v8942_v8 = vadd.f32 %v5737_v6, %v12621_v35  ;;  %v5739_v9 = vpop.f32.mrb[5].mxu1 }
 0x41f   :  { %v7151_v10 = vpop.f32.mrb[5].mxu0  ;;  %7970 = vst [vmem:[%s13028_s3] sm:$0xff] %v8870_v4  ;;  %v8871_v13 = vpack.c.bf16 %v7461_v5, %v7460_v0  ;;  %v8944_v14 = vadd.f32 %v5739_v9, %v12623_v36  ;;  %v5741_v15 = vpop.f32.mrb[6].mxu1  ;;  %v517_v0 = vld [vmem:[%s13026_s0 + $0xfb8] sm:$0xff]  ;;  %v8524_v9 = vcombine.low %v12678_v29, %v12683_v31 }
 0x420   :  { %v7153_v16 = vpop.f32.mrb[6].mxu0  ;;  %v8943_v19 = vadd.f32 %v8942_v8, %v7149_v7  ;;  %v8946_v20 = vadd.f32 %v5741_v15, %v12621_v35  ;;  %v5743_v21 = vpop.f32.mrb[7].mxu1  ;;  %v8541_v15 = vcombine.high %v513_v61, %v521_v63 }
 0x421   :  { %v7155_v22 = vpop.f32.mrb[7].mxu0  ;;  %7971 = vst [vmem:[%s13028_s3 + $0x8] sm:$0xff] %v8871_v13  ;;  %v8945_v23 = vadd.f32 %v8944_v14, %v7151_v10  ;;  %v8948_v24 = vadd.f32 %v5743_v21, %v12623_v36  ;;  %v8532_v10 = vcombine.low %v12688_v32, %v12693_v33 }
 0x422   :  { %v7462_v25 = vmax.f32 %v8943_v19, 0.0  ;;  %v8947_v26 = vadd.f32 %v8946_v20, %v7153_v16  ;;  %6006 = vmatmul.mubr.bf16.gmra.mrb[112].mxu1 %v8492_v11  ;;  %v8549_v16 = vcombine.high %v517_v0, %v525_v1 }
 0x423   :  { %7418 = vmatmul.mubr.bf16.gmra.mrb[112].mxu0 %v8500_v12  ;;  %v7463_v27 = vmax.f32 %v8945_v23, 0.0  ;;  %v8949_v28 = vadd.f32 %v8948_v24, %v7155_v22  ;;  %6015 = vmatprep.mubr.bf16.mxu1 %v8509_v17 }
 0x424   :  { %7427 = vmatprep.mubr.bf16.mxu0 %v8517_v18  ;;  %v7464_v30 = vmax.f32 %v8947_v26, 0.0 }
 0x425   :  { %v8872_v34 = vpack.c.bf16 %v7463_v27, %v7462_v25  ;;  %v7465_v37 = vmax.f32 %v8949_v28, 0.0  ;;  %v5747_v38 = vpop.f32.mrb[8].mxu1 }
 0x426   :  { %v7159_v39 = vpop.f32.mrb[8].mxu0  ;;  %v8950_v40 = vadd.f32 %v5747_v38, %v12621_v35  ;;  %v5749_v41 = vpop.f32.mrb[9].mxu1  ;;  %v8548_v38 = vcombine.low %v517_v0, %v525_v1 }
 0x427   :  { %v7161_v42 = vpop.f32.mrb[9].mxu0  ;;  %7972 = vst [vmem:[%s13028_s3 + $0x10] sm:$0xff] %v8872_v34  ;;  %v8873_v45 = vpack.c.bf16 %v7465_v37, %v7464_v30  ;;  %v8952_v46 = vadd.f32 %v5749_v41, %v12623_v36  ;;  %v5751_v47 = vpop.f32.mrb[10].mxu1  ;;  %v8540_v37 = vcombine.low %v513_v61, %v521_v63 }
 0x428   :  { %v7163_v48 = vpop.f32.mrb[10].mxu0  ;;  %v8951_v51 = vadd.f32 %v8950_v40, %v7159_v39  ;;  %v8954_v52 = vadd.f32 %v5751_v47, %v12621_v35  ;;  %v5753_v53 = vpop.f32.mrb[11].mxu1 }
 0x429   :  { %v7165_v54 = vpop.f32.mrb[11].mxu0  ;;  %7973 = vst [vmem:[%s13028_s3 + $0x18] sm:$0xff] %v8873_v45  ;;  %v8953_v55 = vadd.f32 %v8952_v46, %v7161_v42  ;;  %v8956_v56 = vadd.f32 %v5753_v53, %v12623_v36 }
 0x42a   :  { %v7466_v57 = vmax.f32 %v8951_v51, 0.0  ;;  %v8955_v58 = vadd.f32 %v8954_v52, %v7163_v48  ;;  %6016 = vmatmul.mubr.bf16.gmra.mrb[116].mxu1 %v8508_v43 }
 0x42b   :  { %7428 = vmatmul.mubr.bf16.gmra.mrb[116].mxu0 %v8516_v44  ;;  %v7467_v59 = vmax.f32 %v8953_v55, 0.0  ;;  %v8957_v60 = vadd.f32 %v8956_v56, %v7165_v54  ;;  %6025 = vmatprep.mubr.bf16.mxu1 %v8525_v49 }
 0x42c   :  { %7437 = vmatprep.mubr.bf16.mxu0 %v8533_v50  ;;  %v7468_v62 = vmax.f32 %v8955_v58, 0.0 }
 0x42d   :  { %v8874_v2 = vpack.c.bf16 %v7467_v59, %v7466_v57  ;;  %v7469_v3 = vmax.f32 %v8957_v60, 0.0  ;;  %v5757_v4 = vpop.f32.mrb[12].mxu1 }
 0x42e   :  { %v7169_v5 = vpop.f32.mrb[12].mxu0  ;;  %v8958_v6 = vadd.f32 %v5757_v4, %v12621_v35  ;;  %v5759_v7 = vpop.f32.mrb[13].mxu1 }
 0x42f   :  { %v7171_v8 = vpop.f32.mrb[13].mxu0  ;;  %7974 = vst [vmem:[%s13028_s3 + $0x20] sm:$0xff] %v8874_v2  ;;  %v8875_v11 = vpack.c.bf16 %v7469_v3, %v7468_v62  ;;  %v8960_v12 = vadd.f32 %v5759_v7, %v12623_v36  ;;  %v5761_v13 = vpop.f32.mrb[14].mxu1 }
 0x430   :  { %v7173_v14 = vpop.f32.mrb[14].mxu0  ;;  %v8959_v17 = vadd.f32 %v8958_v6, %v7169_v5  ;;  %v8962_v18 = vadd.f32 %v5761_v13, %v12621_v35  ;;  %v5763_v19 = vpop.f32.mrb[15].mxu1 }
 0x431   :  { %v7175_v20 = vpop.f32.mrb[15].mxu0  ;;  %7975 = vst [vmem:[%s13028_s3 + $0x28] sm:$0xff] %v8875_v11  ;;  %v8961_v21 = vadd.f32 %v8960_v12, %v7171_v8  ;;  %v8964_v22 = vadd.f32 %v5763_v19, %v12623_v36 }
 0x432   :  { %v7470_v23 = vmax.f32 %v8959_v17, 0.0  ;;  %v8963_v24 = vadd.f32 %v8962_v18, %v7173_v14  ;;  %6026 = vmatmul.mubr.bf16.gmra.mrb[120].mxu1 %v8524_v9 }
 0x433   :  { %7438 = vmatmul.mubr.bf16.gmra.mrb[120].mxu0 %v8532_v10  ;;  %v7471_v25 = vmax.f32 %v8961_v21, 0.0  ;;  %v8965_v26 = vadd.f32 %v8964_v22, %v7175_v20  ;;  %6035 = vmatprep.mubr.bf16.mxu1 %v8541_v15 }
 0x434   :  { %7447 = vmatprep.mubr.bf16.mxu0 %v8549_v16  ;;  %v7472_v27 = vmax.f32 %v8963_v24, 0.0 }
 0x435   :  { %v8876_v28 = vpack.c.bf16 %v7471_v25, %v7470_v23  ;;  %v7473_v29 = vmax.f32 %v8965_v26, 0.0  ;;  %v5767_v30 = vpop.f32.mrb[16].mxu1 }
 0x436   :  { %v7179_v31 = vpop.f32.mrb[16].mxu0  ;;  %v8966_v32 = vadd.f32 %v5767_v30, %v12621_v35  ;;  %v5769_v33 = vpop.f32.mrb[17].mxu1 }
 0x437   :  { %v7181_v34 = vpop.f32.mrb[17].mxu0  ;;  %7976 = vst [vmem:[%s13028_s3 + $0x30] sm:$0xff] %v8876_v28  ;;  %v8877_v39 = vpack.c.bf16 %v7473_v29, %v7472_v27  ;;  %v8968_v40 = vadd.f32 %v5769_v33, %v12623_v36  ;;  %v5771_v41 = vpop.f32.mrb[18].mxu1 }
 0x438   :  { %v7183_v42 = vpop.f32.mrb[18].mxu0  ;;  %v8967_v43 = vadd.f32 %v8966_v32, %v7179_v31  ;;  %v8970_v44 = vadd.f32 %v5771_v41, %v12621_v35  ;;  %v5773_v45 = vpop.f32.mrb[19].mxu1 }
 0x439   :  { %v7185_v46 = vpop.f32.mrb[19].mxu0  ;;  %7977 = vst [vmem:[%s13028_s3 + $0x38] sm:$0xff] %v8877_v39  ;;  %v8969_v47 = vadd.f32 %v8968_v40, %v7181_v34  ;;  %v8972_v48 = vadd.f32 %v5773_v45, %v12623_v36 }
 0x43a   :  { %v7474_v49 = vmax.f32 %v8967_v43, 0.0  ;;  %v8971_v50 = vadd.f32 %v8970_v44, %v7183_v42  ;;  %6036 = vmatmul.mubr.bf16.gmra.mrb[124].mxu1 %v8540_v37 }
 0x43b   :  { %7448 = vmatmul.mubr.bf16.gmra.mrb[124].mxu0 %v8548_v38  ;;  %v7475_v51 = vmax.f32 %v8969_v47, 0.0  ;;  %v8973_v52 = vadd.f32 %v8972_v48, %v7185_v46 }
 0x43c   :  { %v7476_v53 = vmax.f32 %v8971_v50, 0.0 }
 0x43d   :  { %v8878_v54 = vpack.c.bf16 %v7475_v51, %v7474_v49  ;;  %v7477_v55 = vmax.f32 %v8973_v52, 0.0  ;;  %v5777_v56 = vpop.f32.mrb[20].mxu1 }
 0x43e   :  { %v7189_v57 = vpop.f32.mrb[20].mxu0  ;;  %v8974_v58 = vadd.f32 %v5777_v56, %v12621_v35  ;;  %v5779_v59 = vpop.f32.mrb[21].mxu1 }
 0x43f   :  { %v7191_v60 = vpop.f32.mrb[21].mxu0  ;;  %7978 = vst [vmem:[%s13028_s3 + $0x40] sm:$0xff] %v8878_v54  ;;  %v8879_v61 = vpack.c.bf16 %v7477_v55, %v7476_v53  ;;  %v8976_v62 = vadd.f32 %v5779_v59, %v12623_v36  ;;  %v5781_v63 = vpop.f32.mrb[22].mxu1 }
 0x440   :  { %v7193_v0 = vpop.f32.mrb[22].mxu0  ;;  %v8975_v1 = vadd.f32 %v8974_v58, %v7189_v57  ;;  %v8978_v2 = vadd.f32 %v5781_v63, %v12621_v35  ;;  %v5783_v3 = vpop.f32.mrb[23].mxu1 }
 0x441   :  { %v7195_v4 = vpop.f32.mrb[23].mxu0  ;;  %7979 = vst [vmem:[%s13028_s3 + $0x48] sm:$0xff] %v8879_v61  ;;  %v8977_v5 = vadd.f32 %v8976_v62, %v7191_v60  ;;  %v8980_v6 = vadd.f32 %v5783_v3, %v12623_v36 }
 0x442   :  { %v7478_v7 = vmax.f32 %v8975_v1, 0.0  ;;  %v8979_v8 = vadd.f32 %v8978_v2, %v7193_v0 }
 0x443   :  { %v7479_v9 = vmax.f32 %v8977_v5, 0.0  ;;  %v8981_v10 = vadd.f32 %v8980_v6, %v7195_v4 }
 0x444   :  { %v7480_v11 = vmax.f32 %v8979_v8, 0.0 }
 0x445   :  { %v8880_v12 = vpack.c.bf16 %v7479_v9, %v7478_v7  ;;  %v7481_v13 = vmax.f32 %v8981_v10, 0.0  ;;  %v5787_v14 = vpop.f32.mrb[24].mxu1 }
 0x446   :  { %v7199_v15 = vpop.f32.mrb[24].mxu0  ;;  %v8982_v16 = vadd.f32 %v5787_v14, %v12621_v35  ;;  %v5789_v17 = vpop.f32.mrb[25].mxu1 }
 0x447   :  { %v7201_v18 = vpop.f32.mrb[25].mxu0  ;;  %7980 = vst [vmem:[%s13028_s3 + $0x50] sm:$0xff] %v8880_v12  ;;  %v8881_v19 = vpack.c.bf16 %v7481_v13, %v7480_v11  ;;  %v8984_v20 = vadd.f32 %v5789_v17, %v12623_v36  ;;  %v5791_v21 = vpop.f32.mrb[26].mxu1 }
 0x448   :  { %v7203_v22 = vpop.f32.mrb[26].mxu0  ;;  %v8983_v23 = vadd.f32 %v8982_v16, %v7199_v15  ;;  %v8986_v24 = vadd.f32 %v5791_v21, %v12621_v35  ;;  %v5793_v25 = vpop.f32.mrb[27].mxu1 }
 0x449   :  { %v7205_v26 = vpop.f32.mrb[27].mxu0  ;;  %7981 = vst [vmem:[%s13028_s3 + $0x58] sm:$0xff] %v8881_v19  ;;  %v8985_v27 = vadd.f32 %v8984_v20, %v7201_v18  ;;  %v8988_v28 = vadd.f32 %v5793_v25, %v12623_v36 }
 0x44a   :  { %v7482_v29 = vmax.f32 %v8983_v23, 0.0  ;;  %v8987_v30 = vadd.f32 %v8986_v24, %v7203_v22 }
 0x44b   :  { %v7483_v31 = vmax.f32 %v8985_v27, 0.0  ;;  %v8989_v32 = vadd.f32 %v8988_v28, %v7205_v26 }
 0x44c   :  { %v7484_v33 = vmax.f32 %v8987_v30, 0.0 }
 0x44d   :  { %v8882_v34 = vpack.c.bf16 %v7483_v31, %v7482_v29  ;;  %v7485_v37 = vmax.f32 %v8989_v32, 0.0  ;;  %v5797_v38 = vpop.f32.mrb[28].mxu1 }
 0x44e   :  { %v7209_v39 = vpop.f32.mrb[28].mxu0  ;;  %v8990_v40 = vadd.f32 %v5797_v38, %v12621_v35  ;;  %v5799_v41 = vpop.f32.mrb[29].mxu1 }
 0x44f   :  { %v7211_v42 = vpop.f32.mrb[29].mxu0  ;;  %7982 = vst [vmem:[%s13028_s3 + $0x60] sm:$0xff] %v8882_v34  ;;  %v8883_v43 = vpack.c.bf16 %v7485_v37, %v7484_v33  ;;  %v8992_v44 = vadd.f32 %v5799_v41, %v12623_v36  ;;  %v5801_v45 = vpop.f32.mrb[30].mxu1 }
 0x450   :  { %v7213_v46 = vpop.f32.mrb[30].mxu0  ;;  %v8991_v47 = vadd.f32 %v8990_v40, %v7209_v39  ;;  %v8994_v48 = vadd.f32 %v5801_v45, %v12621_v35  ;;  %v5803_v49 = vpop.f32.mrb[31].mxu1 }
 0x451   :  { %v7215_v50 = vpop.f32.mrb[31].mxu0  ;;  %7983 = vst [vmem:[%s13028_s3 + $0x68] sm:$0xff] %v8883_v43  ;;  %v8993_v51 = vadd.f32 %v8992_v44, %v7211_v42  ;;  %v8996_v52 = vadd.f32 %v5803_v49, %v12623_v36 }
 0x452   :  { %v7486_v53 = vmax.f32 %v8991_v47, 0.0  ;;  %v8995_v54 = vadd.f32 %v8994_v48, %v7213_v46 }
 0x453   :  { %v7487_v55 = vmax.f32 %v8993_v51, 0.0  ;;  %v8997_v56 = vadd.f32 %v8996_v52, %v7215_v50 }
 0x454   :  { %v7488_v57 = vmax.f32 %v8995_v54, 0.0 }
 0x455   :  { %v8884_v58 = vpack.c.bf16 %v7487_v55, %v7486_v53  ;;  %v7489_v59 = vmax.f32 %v8997_v56, 0.0  ;;  %v5807_v60 = vpop.f32.mrb[32].mxu1 }
 0x456   :  { %v7219_v61 = vpop.f32.mrb[32].mxu0  ;;  %v8998_v62 = vadd.f32 %v5807_v60, %v12621_v35  ;;  %v5809_v63 = vpop.f32.mrb[33].mxu1 }
 0x457   :  { %v7221_v0 = vpop.f32.mrb[33].mxu0  ;;  %7984 = vst [vmem:[%s13028_s3 + $0x70] sm:$0xff] %v8884_v58  ;;  %v8885_v1 = vpack.c.bf16 %v7489_v59, %v7488_v57  ;;  %v9000_v2 = vadd.f32 %v5809_v63, %v12623_v36  ;;  %v5811_v3 = vpop.f32.mrb[34].mxu1 }
 0x458   :  { %v7223_v4 = vpop.f32.mrb[34].mxu0  ;;  %v8999_v5 = vadd.f32 %v8998_v62, %v7219_v61  ;;  %v9002_v6 = vadd.f32 %v5811_v3, %v12621_v35  ;;  %v5813_v7 = vpop.f32.mrb[35].mxu1 }
 0x459   :  { %v7225_v8 = vpop.f32.mrb[35].mxu0  ;;  %7985 = vst [vmem:[%s13028_s3 + $0x78] sm:$0xff] %v8885_v1  ;;  %v9001_v9 = vadd.f32 %v9000_v2, %v7221_v0  ;;  %v9004_v10 = vadd.f32 %v5813_v7, %v12623_v36 }
 0x45a   :  { %v7490_v11 = vmax.f32 %v8999_v5, 0.0  ;;  %v9003_v12 = vadd.f32 %v9002_v6, %v7223_v4 }
 0x45b   :  { %v7491_v13 = vmax.f32 %v9001_v9, 0.0  ;;  %v9005_v14 = vadd.f32 %v9004_v10, %v7225_v8 }
 0x45c   :  { %v7492_v15 = vmax.f32 %v9003_v12, 0.0 }
 0x45d   :  { %v8886_v16 = vpack.c.bf16 %v7491_v13, %v7490_v11  ;;  %v7493_v17 = vmax.f32 %v9005_v14, 0.0  ;;  %v5817_v18 = vpop.f32.mrb[36].mxu1 }
 0x45e   :  { %v7229_v19 = vpop.f32.mrb[36].mxu0  ;;  %v9006_v20 = vadd.f32 %v5817_v18, %v12621_v35  ;;  %v5819_v21 = vpop.f32.mrb[37].mxu1 }
 0x45f   :  { %v7231_v22 = vpop.f32.mrb[37].mxu0  ;;  %7986 = vst [vmem:[%s13028_s3 + $0x80] sm:$0xff] %v8886_v16  ;;  %v8887_v23 = vpack.c.bf16 %v7493_v17, %v7492_v15  ;;  %v9008_v24 = vadd.f32 %v5819_v21, %v12623_v36  ;;  %v5821_v25 = vpop.f32.mrb[38].mxu1 }
 0x460   :  { %v7233_v26 = vpop.f32.mrb[38].mxu0  ;;  %v9007_v27 = vadd.f32 %v9006_v20, %v7229_v19  ;;  %v9010_v28 = vadd.f32 %v5821_v25, %v12621_v35  ;;  %v5823_v29 = vpop.f32.mrb[39].mxu1 }
 0x461   :  { %v7235_v30 = vpop.f32.mrb[39].mxu0  ;;  %7987 = vst [vmem:[%s13028_s3 + $0x88] sm:$0xff] %v8887_v23  ;;  %v9009_v31 = vadd.f32 %v9008_v24, %v7231_v22  ;;  %v9012_v32 = vadd.f32 %v5823_v29, %v12623_v36 }
 0x462   :  { %v7494_v33 = vmax.f32 %v9007_v27, 0.0  ;;  %v9011_v34 = vadd.f32 %v9010_v28, %v7233_v26 }
 0x463   :  { %v7495_v37 = vmax.f32 %v9009_v31, 0.0  ;;  %v9013_v38 = vadd.f32 %v9012_v32, %v7235_v30 }
 0x464   :  { %v7496_v39 = vmax.f32 %v9011_v34, 0.0 }
 0x465   :  { %v8888_v40 = vpack.c.bf16 %v7495_v37, %v7494_v33  ;;  %v7497_v41 = vmax.f32 %v9013_v38, 0.0  ;;  %v5827_v42 = vpop.f32.mrb[40].mxu1 }
 0x466   :  { %v7239_v43 = vpop.f32.mrb[40].mxu0  ;;  %v9014_v44 = vadd.f32 %v5827_v42, %v12621_v35  ;;  %v5829_v45 = vpop.f32.mrb[41].mxu1 }
 0x467   :  { %v7241_v46 = vpop.f32.mrb[41].mxu0  ;;  %7988 = vst [vmem:[%s13028_s3 + $0x90] sm:$0xff] %v8888_v40  ;;  %v8889_v47 = vpack.c.bf16 %v7497_v41, %v7496_v39  ;;  %v9016_v48 = vadd.f32 %v5829_v45, %v12623_v36  ;;  %v5831_v49 = vpop.f32.mrb[42].mxu1 }
 0x468   :  { %v7243_v50 = vpop.f32.mrb[42].mxu0  ;;  %v9015_v51 = vadd.f32 %v9014_v44, %v7239_v43  ;;  %v9018_v52 = vadd.f32 %v5831_v49, %v12621_v35  ;;  %v5833_v53 = vpop.f32.mrb[43].mxu1 }
 0x469   :  { %v7245_v54 = vpop.f32.mrb[43].mxu0  ;;  %7989 = vst [vmem:[%s13028_s3 + $0x98] sm:$0xff] %v8889_v47  ;;  %v9017_v55 = vadd.f32 %v9016_v48, %v7241_v46  ;;  %v9020_v56 = vadd.f32 %v5833_v53, %v12623_v36 }
 0x46a   :  { %v7498_v57 = vmax.f32 %v9015_v51, 0.0  ;;  %v9019_v58 = vadd.f32 %v9018_v52, %v7243_v50 }
 0x46b   :  { %v7499_v59 = vmax.f32 %v9017_v55, 0.0  ;;  %v9021_v60 = vadd.f32 %v9020_v56, %v7245_v54 }
 0x46c   :  { %v7500_v61 = vmax.f32 %v9019_v58, 0.0 }
 0x46d   :  { %v8890_v62 = vpack.c.bf16 %v7499_v59, %v7498_v57  ;;  %v7501_v63 = vmax.f32 %v9021_v60, 0.0  ;;  %v5837_v0 = vpop.f32.mrb[44].mxu1 }
 0x46e   :  { %v7249_v1 = vpop.f32.mrb[44].mxu0  ;;  %v9022_v2 = vadd.f32 %v5837_v0, %v12621_v35  ;;  %v5839_v3 = vpop.f32.mrb[45].mxu1 }
 0x46f   :  { %v7251_v4 = vpop.f32.mrb[45].mxu0  ;;  %7990 = vst [vmem:[%s13028_s3 + $0xa0] sm:$0xff] %v8890_v62  ;;  %v8891_v5 = vpack.c.bf16 %v7501_v63, %v7500_v61  ;;  %v9024_v6 = vadd.f32 %v5839_v3, %v12623_v36  ;;  %v5841_v7 = vpop.f32.mrb[46].mxu1 }
 0x470   :  { %v7253_v8 = vpop.f32.mrb[46].mxu0  ;;  %v9023_v9 = vadd.f32 %v9022_v2, %v7249_v1  ;;  %v9026_v10 = vadd.f32 %v5841_v7, %v12621_v35  ;;  %v5843_v11 = vpop.f32.mrb[47].mxu1 }
 0x471   :  { %v7255_v12 = vpop.f32.mrb[47].mxu0  ;;  %7991 = vst [vmem:[%s13028_s3 + $0xa8] sm:$0xff] %v8891_v5  ;;  %v9025_v13 = vadd.f32 %v9024_v6, %v7251_v4  ;;  %v9028_v14 = vadd.f32 %v5843_v11, %v12623_v36 }
 0x472   :  { %v7502_v15 = vmax.f32 %v9023_v9, 0.0  ;;  %v9027_v16 = vadd.f32 %v9026_v10, %v7253_v8 }
 0x473   :  { %v7503_v17 = vmax.f32 %v9025_v13, 0.0  ;;  %v9029_v18 = vadd.f32 %v9028_v14, %v7255_v12 }
 0x474   :  { %v7504_v19 = vmax.f32 %v9027_v16, 0.0 }
 0x475   :  { %v8892_v20 = vpack.c.bf16 %v7503_v17, %v7502_v15  ;;  %v7505_v21 = vmax.f32 %v9029_v18, 0.0  ;;  %v5847_v22 = vpop.f32.mrb[48].mxu1 }
 0x476   :  { %v7259_v23 = vpop.f32.mrb[48].mxu0  ;;  %v9030_v24 = vadd.f32 %v5847_v22, %v12621_v35  ;;  %v5849_v25 = vpop.f32.mrb[49].mxu1 }
 0x477   :  { %v7261_v26 = vpop.f32.mrb[49].mxu0  ;;  %7992 = vst [vmem:[%s13028_s3 + $0xb0] sm:$0xff] %v8892_v20  ;;  %v8893_v27 = vpack.c.bf16 %v7505_v21, %v7504_v19  ;;  %v9032_v28 = vadd.f32 %v5849_v25, %v12623_v36  ;;  %v5851_v29 = vpop.f32.mrb[50].mxu1 }
 0x478   :  { %v7263_v30 = vpop.f32.mrb[50].mxu0  ;;  %v9031_v31 = vadd.f32 %v9030_v24, %v7259_v23  ;;  %v9034_v32 = vadd.f32 %v5851_v29, %v12621_v35  ;;  %v5853_v33 = vpop.f32.mrb[51].mxu1 }
 0x479   :  { %v7265_v34 = vpop.f32.mrb[51].mxu0  ;;  %7993 = vst [vmem:[%s13028_s3 + $0xb8] sm:$0xff] %v8893_v27  ;;  %v9033_v37 = vadd.f32 %v9032_v28, %v7261_v26  ;;  %v9036_v38 = vadd.f32 %v5853_v33, %v12623_v36 }
 0x47a   :  { %v7506_v39 = vmax.f32 %v9031_v31, 0.0  ;;  %v9035_v40 = vadd.f32 %v9034_v32, %v7263_v30 }
 0x47b   :  { %v7507_v41 = vmax.f32 %v9033_v37, 0.0  ;;  %v9037_v42 = vadd.f32 %v9036_v38, %v7265_v34 }
 0x47c   :  { %v7508_v43 = vmax.f32 %v9035_v40, 0.0 }
 0x47d   :  { %v8894_v44 = vpack.c.bf16 %v7507_v41, %v7506_v39  ;;  %v7509_v45 = vmax.f32 %v9037_v42, 0.0  ;;  %v5857_v46 = vpop.f32.mrb[52].mxu1 }
 0x47e   :  { %v7269_v47 = vpop.f32.mrb[52].mxu0  ;;  %v9038_v48 = vadd.f32 %v5857_v46, %v12621_v35  ;;  %v5859_v49 = vpop.f32.mrb[53].mxu1 }
 0x47f   :  { %v7271_v50 = vpop.f32.mrb[53].mxu0  ;;  %7994 = vst [vmem:[%s13028_s3 + $0xc0] sm:$0xff] %v8894_v44  ;;  %v8895_v51 = vpack.c.bf16 %v7509_v45, %v7508_v43  ;;  %v9040_v52 = vadd.f32 %v5859_v49, %v12623_v36  ;;  %v5861_v53 = vpop.f32.mrb[54].mxu1 }
 0x480   :  { %v7273_v54 = vpop.f32.mrb[54].mxu0  ;;  %v9039_v55 = vadd.f32 %v9038_v48, %v7269_v47  ;;  %v9042_v56 = vadd.f32 %v5861_v53, %v12621_v35  ;;  %v5863_v57 = vpop.f32.mrb[55].mxu1 }
 0x481   :  { %v7275_v58 = vpop.f32.mrb[55].mxu0  ;;  %7995 = vst [vmem:[%s13028_s3 + $0xc8] sm:$0xff] %v8895_v51  ;;  %v9041_v59 = vadd.f32 %v9040_v52, %v7271_v50  ;;  %v9044_v60 = vadd.f32 %v5863_v57, %v12623_v36 }
 0x482   :  { %v7510_v61 = vmax.f32 %v9039_v55, 0.0  ;;  %v9043_v62 = vadd.f32 %v9042_v56, %v7273_v54 }
 0x483   :  { %v7511_v63 = vmax.f32 %v9041_v59, 0.0  ;;  %v9045_v0 = vadd.f32 %v9044_v60, %v7275_v58 }
 0x484   :  { %v7512_v1 = vmax.f32 %v9043_v62, 0.0 }
 0x485   :  { %v8896_v2 = vpack.c.bf16 %v7511_v63, %v7510_v61  ;;  %v7513_v3 = vmax.f32 %v9045_v0, 0.0  ;;  %v5867_v4 = vpop.f32.mrb[56].mxu1 }
 0x486   :  { %v7279_v5 = vpop.f32.mrb[56].mxu0  ;;  %v9046_v6 = vadd.f32 %v5867_v4, %v12621_v35  ;;  %v5869_v7 = vpop.f32.mrb[57].mxu1 }
 0x487   :  { %v7281_v8 = vpop.f32.mrb[57].mxu0  ;;  %7996 = vst [vmem:[%s13028_s3 + $0xd0] sm:$0xff] %v8896_v2  ;;  %v8897_v9 = vpack.c.bf16 %v7513_v3, %v7512_v1  ;;  %v9048_v10 = vadd.f32 %v5869_v7, %v12623_v36  ;;  %v5871_v11 = vpop.f32.mrb[58].mxu1 }
 0x488   :  { %v7283_v12 = vpop.f32.mrb[58].mxu0  ;;  %v9047_v13 = vadd.f32 %v9046_v6, %v7279_v5  ;;  %v9050_v14 = vadd.f32 %v5871_v11, %v12621_v35  ;;  %v5873_v15 = vpop.f32.mrb[59].mxu1 }
 0x489   :  { %v7285_v16 = vpop.f32.mrb[59].mxu0  ;;  %7997 = vst [vmem:[%s13028_s3 + $0xd8] sm:$0xff] %v8897_v9  ;;  %v9049_v17 = vadd.f32 %v9048_v10, %v7281_v8  ;;  %v9052_v18 = vadd.f32 %v5873_v15, %v12623_v36 }
 0x48a   :  { %v7514_v19 = vmax.f32 %v9047_v13, 0.0  ;;  %v9051_v20 = vadd.f32 %v9050_v14, %v7283_v12 }
 0x48b   :  { %v7515_v21 = vmax.f32 %v9049_v17, 0.0  ;;  %v9053_v22 = vadd.f32 %v9052_v18, %v7285_v16 }
 0x48c   :  { %v7516_v23 = vmax.f32 %v9051_v20, 0.0 }
 0x48d   :  { %v8898_v24 = vpack.c.bf16 %v7515_v21, %v7514_v19  ;;  %v7517_v25 = vmax.f32 %v9053_v22, 0.0  ;;  %v5877_v26 = vpop.f32.mrb[60].mxu1 }
 0x48e   :  { %v7289_v27 = vpop.f32.mrb[60].mxu0  ;;  %v9054_v28 = vadd.f32 %v5877_v26, %v12621_v35  ;;  %v5879_v29 = vpop.f32.mrb[61].mxu1 }
 0x48f   :  { %v7291_v30 = vpop.f32.mrb[61].mxu0  ;;  %7998 = vst [vmem:[%s13028_s3 + $0xe0] sm:$0xff] %v8898_v24  ;;  %v8899_v31 = vpack.c.bf16 %v7517_v25, %v7516_v23  ;;  %v9056_v32 = vadd.f32 %v5879_v29, %v12623_v36  ;;  %v5881_v33 = vpop.f32.mrb[62].mxu1 }
 0x490   :  { %v7293_v34 = vpop.f32.mrb[62].mxu0  ;;  %v9055_v37 = vadd.f32 %v9054_v28, %v7289_v27  ;;  %v9058_v38 = vadd.f32 %v5881_v33, %v12621_v35  ;;  %v5883_v39 = vpop.f32.mrb[63].mxu1 }
 0x491   :  { %v7295_v40 = vpop.f32.mrb[63].mxu0  ;;  %7999 = vst [vmem:[%s13028_s3 + $0xe8] sm:$0xff] %v8899_v31  ;;  %v9057_v41 = vadd.f32 %v9056_v32, %v7291_v30  ;;  %v9060_v42 = vadd.f32 %v5883_v39, %v12623_v36 }
 0x492   :  { %v7518_v43 = vmax.f32 %v9055_v37, 0.0  ;;  %v9059_v44 = vadd.f32 %v9058_v38, %v7293_v34 }
 0x493   :  { %v7519_v45 = vmax.f32 %v9057_v41, 0.0  ;;  %v9061_v46 = vadd.f32 %v9060_v42, %v7295_v40 }
 0x494   :  { %v7520_v47 = vmax.f32 %v9059_v44, 0.0 }
 0x495   :  { %v8900_v48 = vpack.c.bf16 %v7519_v45, %v7518_v43  ;;  %v7521_v49 = vmax.f32 %v9061_v46, 0.0  ;;  %v5887_v50 = vpop.f32.mrb[64].mxu1 }
 0x496   :  { %v7299_v51 = vpop.f32.mrb[64].mxu0  ;;  %v9062_v52 = vadd.f32 %v5887_v50, %v12621_v35  ;;  %v5889_v53 = vpop.f32.mrb[65].mxu1 }
 0x497   :  { %v7301_v54 = vpop.f32.mrb[65].mxu0  ;;  %8000 = vst [vmem:[%s13028_s3 + $0xf0] sm:$0xff] %v8900_v48  ;;  %v8901_v55 = vpack.c.bf16 %v7521_v49, %v7520_v47  ;;  %v9064_v56 = vadd.f32 %v5889_v53, %v12623_v36  ;;  %v5891_v57 = vpop.f32.mrb[66].mxu1 }
 0x498   :  { %v7303_v58 = vpop.f32.mrb[66].mxu0  ;;  %v9063_v59 = vadd.f32 %v9062_v52, %v7299_v51  ;;  %v9066_v60 = vadd.f32 %v5891_v57, %v12621_v35  ;;  %v5893_v61 = vpop.f32.mrb[67].mxu1 }
 0x499   :  { %v7305_v62 = vpop.f32.mrb[67].mxu0  ;;  %8001 = vst [vmem:[%s13028_s3 + $0xf8] sm:$0xff] %v8901_v55  ;;  %v9065_v63 = vadd.f32 %v9064_v56, %v7301_v54  ;;  %v9068_v0 = vadd.f32 %v5893_v61, %v12623_v36 }
 0x49a   :  { %v7522_v1 = vmax.f32 %v9063_v59, 0.0  ;;  %v9067_v2 = vadd.f32 %v9066_v60, %v7303_v58 }
 0x49b   :  { %v7523_v3 = vmax.f32 %v9065_v63, 0.0  ;;  %v9069_v4 = vadd.f32 %v9068_v0, %v7305_v62 }
 0x49c   :  { %v7524_v5 = vmax.f32 %v9067_v2, 0.0 }
 0x49d   :  { %v8902_v6 = vpack.c.bf16 %v7523_v3, %v7522_v1  ;;  %v7525_v7 = vmax.f32 %v9069_v4, 0.0  ;;  %v5897_v8 = vpop.f32.mrb[68].mxu1 }
 0x49e   :  { %v7309_v9 = vpop.f32.mrb[68].mxu0  ;;  %v9070_v10 = vadd.f32 %v5897_v8, %v12621_v35  ;;  %v5899_v11 = vpop.f32.mrb[69].mxu1 }
 0x49f   :  { %v7311_v12 = vpop.f32.mrb[69].mxu0  ;;  %8002 = vst [vmem:[%s13028_s3 + $0x100] sm:$0xff] %v8902_v6  ;;  %v8903_v13 = vpack.c.bf16 %v7525_v7, %v7524_v5  ;;  %v9072_v14 = vadd.f32 %v5899_v11, %v12623_v36  ;;  %v5901_v15 = vpop.f32.mrb[70].mxu1 }
 0x4a0   :  { %v7313_v16 = vpop.f32.mrb[70].mxu0  ;;  %v9071_v17 = vadd.f32 %v9070_v10, %v7309_v9  ;;  %v9074_v18 = vadd.f32 %v5901_v15, %v12621_v35  ;;  %v5903_v19 = vpop.f32.mrb[71].mxu1 }
 0x4a1   :  { %v7315_v20 = vpop.f32.mrb[71].mxu0  ;;  %8003 = vst [vmem:[%s13028_s3 + $0x108] sm:$0xff] %v8903_v13  ;;  %v9073_v21 = vadd.f32 %v9072_v14, %v7311_v12  ;;  %v9076_v22 = vadd.f32 %v5903_v19, %v12623_v36 }
 0x4a2   :  { %v7526_v23 = vmax.f32 %v9071_v17, 0.0  ;;  %v9075_v24 = vadd.f32 %v9074_v18, %v7313_v16 }
 0x4a3   :  { %v7527_v25 = vmax.f32 %v9073_v21, 0.0  ;;  %v9077_v26 = vadd.f32 %v9076_v22, %v7315_v20 }
 0x4a4   :  { %v7528_v27 = vmax.f32 %v9075_v24, 0.0 }
 0x4a5   :  { %v8904_v28 = vpack.c.bf16 %v7527_v25, %v7526_v23  ;;  %v7529_v29 = vmax.f32 %v9077_v26, 0.0  ;;  %v5907_v30 = vpop.f32.mrb[72].mxu1 }
 0x4a6   :  { %v7319_v31 = vpop.f32.mrb[72].mxu0  ;;  %v9078_v32 = vadd.f32 %v5907_v30, %v12621_v35  ;;  %v5909_v33 = vpop.f32.mrb[73].mxu1 }
 0x4a7   :  { %v7321_v34 = vpop.f32.mrb[73].mxu0  ;;  %8004 = vst [vmem:[%s13028_s3 + $0x110] sm:$0xff] %v8904_v28  ;;  %v8905_v37 = vpack.c.bf16 %v7529_v29, %v7528_v27  ;;  %v9080_v38 = vadd.f32 %v5909_v33, %v12623_v36  ;;  %v5911_v39 = vpop.f32.mrb[74].mxu1 }
 0x4a8   :  { %v7323_v40 = vpop.f32.mrb[74].mxu0  ;;  %v9079_v41 = vadd.f32 %v9078_v32, %v7319_v31  ;;  %v9082_v42 = vadd.f32 %v5911_v39, %v12621_v35  ;;  %v5913_v43 = vpop.f32.mrb[75].mxu1 }
 0x4a9   :  { %v7325_v44 = vpop.f32.mrb[75].mxu0  ;;  %8005 = vst [vmem:[%s13028_s3 + $0x118] sm:$0xff] %v8905_v37  ;;  %v9081_v45 = vadd.f32 %v9080_v38, %v7321_v34  ;;  %v9084_v46 = vadd.f32 %v5913_v43, %v12623_v36 }
 0x4aa   :  { %v7530_v47 = vmax.f32 %v9079_v41, 0.0  ;;  %v9083_v48 = vadd.f32 %v9082_v42, %v7323_v40 }
 0x4ab   :  { %v7531_v49 = vmax.f32 %v9081_v45, 0.0  ;;  %v9085_v50 = vadd.f32 %v9084_v46, %v7325_v44 }
 0x4ac   :  { %v7532_v51 = vmax.f32 %v9083_v48, 0.0 }
 0x4ad   :  { %v8906_v52 = vpack.c.bf16 %v7531_v49, %v7530_v47  ;;  %v7533_v53 = vmax.f32 %v9085_v50, 0.0  ;;  %v5917_v54 = vpop.f32.mrb[76].mxu1 }
 0x4ae   :  { %v7329_v55 = vpop.f32.mrb[76].mxu0  ;;  %v9086_v56 = vadd.f32 %v5917_v54, %v12621_v35  ;;  %v5919_v57 = vpop.f32.mrb[77].mxu1 }
 0x4af   :  { %v7331_v58 = vpop.f32.mrb[77].mxu0  ;;  %8006 = vst [vmem:[%s13028_s3 + $0x120] sm:$0xff] %v8906_v52  ;;  %v8907_v59 = vpack.c.bf16 %v7533_v53, %v7532_v51  ;;  %v9088_v60 = vadd.f32 %v5919_v57, %v12623_v36  ;;  %v5921_v61 = vpop.f32.mrb[78].mxu1 }
 0x4b0   :  { %v7333_v62 = vpop.f32.mrb[78].mxu0  ;;  %v9087_v63 = vadd.f32 %v9086_v56, %v7329_v55  ;;  %v9090_v0 = vadd.f32 %v5921_v61, %v12621_v35  ;;  %v5923_v1 = vpop.f32.mrb[79].mxu1 }
 0x4b1   :  { %v7335_v2 = vpop.f32.mrb[79].mxu0  ;;  %8007 = vst [vmem:[%s13028_s3 + $0x128] sm:$0xff] %v8907_v59  ;;  %v9089_v3 = vadd.f32 %v9088_v60, %v7331_v58  ;;  %v9092_v4 = vadd.f32 %v5923_v1, %v12623_v36 }
 0x4b2   :  { %v7534_v5 = vmax.f32 %v9087_v63, 0.0  ;;  %v9091_v6 = vadd.f32 %v9090_v0, %v7333_v62 }
 0x4b3   :  { %v7535_v7 = vmax.f32 %v9089_v3, 0.0  ;;  %v9093_v8 = vadd.f32 %v9092_v4, %v7335_v2 }
 0x4b4   :  { %v7536_v9 = vmax.f32 %v9091_v6, 0.0 }
 0x4b5   :  { %v8908_v10 = vpack.c.bf16 %v7535_v7, %v7534_v5  ;;  %v7537_v11 = vmax.f32 %v9093_v8, 0.0  ;;  %v5927_v12 = vpop.f32.mrb[80].mxu1 }
 0x4b6   :  { %v7339_v13 = vpop.f32.mrb[80].mxu0  ;;  %v9094_v14 = vadd.f32 %v5927_v12, %v12621_v35  ;;  %v5929_v15 = vpop.f32.mrb[81].mxu1 }
 0x4b7   :  { %v7341_v16 = vpop.f32.mrb[81].mxu0  ;;  %8008 = vst [vmem:[%s13028_s3 + $0x130] sm:$0xff] %v8908_v10  ;;  %v8909_v17 = vpack.c.bf16 %v7537_v11, %v7536_v9  ;;  %v9096_v18 = vadd.f32 %v5929_v15, %v12623_v36  ;;  %v5931_v19 = vpop.f32.mrb[82].mxu1 }
 0x4b8   :  { %v7343_v20 = vpop.f32.mrb[82].mxu0  ;;  %v9095_v21 = vadd.f32 %v9094_v14, %v7339_v13  ;;  %v9098_v22 = vadd.f32 %v5931_v19, %v12621_v35  ;;  %v5933_v23 = vpop.f32.mrb[83].mxu1 }
 0x4b9   :  { %v7345_v24 = vpop.f32.mrb[83].mxu0  ;;  %8009 = vst [vmem:[%s13028_s3 + $0x138] sm:$0xff] %v8909_v17  ;;  %v9097_v25 = vadd.f32 %v9096_v18, %v7341_v16  ;;  %v9100_v26 = vadd.f32 %v5933_v23, %v12623_v36 }
 0x4ba   :  { %v7538_v27 = vmax.f32 %v9095_v21, 0.0  ;;  %v9099_v28 = vadd.f32 %v9098_v22, %v7343_v20 }
 0x4bb   :  { %v7539_v29 = vmax.f32 %v9097_v25, 0.0  ;;  %v9101_v30 = vadd.f32 %v9100_v26, %v7345_v24 }
 0x4bc   :  { %v7540_v31 = vmax.f32 %v9099_v28, 0.0 }
 0x4bd   :  { %v8910_v32 = vpack.c.bf16 %v7539_v29, %v7538_v27  ;;  %v7541_v33 = vmax.f32 %v9101_v30, 0.0  ;;  %v5937_v34 = vpop.f32.mrb[84].mxu1 }
 0x4be   :  { %v7349_v37 = vpop.f32.mrb[84].mxu0  ;;  %v9102_v38 = vadd.f32 %v5937_v34, %v12621_v35  ;;  %v5939_v39 = vpop.f32.mrb[85].mxu1 }
 0x4bf   :  { %v7351_v40 = vpop.f32.mrb[85].mxu0  ;;  %8010 = vst [vmem:[%s13028_s3 + $0x140] sm:$0xff] %v8910_v32  ;;  %v8911_v41 = vpack.c.bf16 %v7541_v33, %v7540_v31  ;;  %v9104_v42 = vadd.f32 %v5939_v39, %v12623_v36  ;;  %v5941_v43 = vpop.f32.mrb[86].mxu1 }
 0x4c0   :  { %v7353_v44 = vpop.f32.mrb[86].mxu0  ;;  %v9103_v45 = vadd.f32 %v9102_v38, %v7349_v37  ;;  %v9106_v46 = vadd.f32 %v5941_v43, %v12621_v35  ;;  %v5943_v47 = vpop.f32.mrb[87].mxu1 }
 0x4c1   :  { %v7355_v48 = vpop.f32.mrb[87].mxu0  ;;  %8011 = vst [vmem:[%s13028_s3 + $0x148] sm:$0xff] %v8911_v41  ;;  %v9105_v49 = vadd.f32 %v9104_v42, %v7351_v40  ;;  %v9108_v50 = vadd.f32 %v5943_v47, %v12623_v36 }
 0x4c2   :  { %v7542_v51 = vmax.f32 %v9103_v45, 0.0  ;;  %v9107_v52 = vadd.f32 %v9106_v46, %v7353_v44 }
 0x4c3   :  { %v7543_v53 = vmax.f32 %v9105_v49, 0.0  ;;  %v9109_v54 = vadd.f32 %v9108_v50, %v7355_v48 }
 0x4c4   :  { %v7544_v55 = vmax.f32 %v9107_v52, 0.0 }
 0x4c5   :  { %v8912_v56 = vpack.c.bf16 %v7543_v53, %v7542_v51  ;;  %v7545_v57 = vmax.f32 %v9109_v54, 0.0  ;;  %v5947_v58 = vpop.f32.mrb[88].mxu1 }
 0x4c6   :  { %v7359_v59 = vpop.f32.mrb[88].mxu0  ;;  %v9110_v60 = vadd.f32 %v5947_v58, %v12621_v35  ;;  %v5949_v61 = vpop.f32.mrb[89].mxu1 }
 0x4c7   :  { %v7361_v62 = vpop.f32.mrb[89].mxu0  ;;  %8012 = vst [vmem:[%s13028_s3 + $0x150] sm:$0xff] %v8912_v56  ;;  %v8913_v63 = vpack.c.bf16 %v7545_v57, %v7544_v55  ;;  %v9112_v0 = vadd.f32 %v5949_v61, %v12623_v36  ;;  %v5951_v1 = vpop.f32.mrb[90].mxu1 }
 0x4c8   :  { %v7363_v2 = vpop.f32.mrb[90].mxu0  ;;  %v9111_v3 = vadd.f32 %v9110_v60, %v7359_v59  ;;  %v9114_v4 = vadd.f32 %v5951_v1, %v12621_v35  ;;  %v5953_v5 = vpop.f32.mrb[91].mxu1 }
 0x4c9   :  { %v7365_v6 = vpop.f32.mrb[91].mxu0  ;;  %8013 = vst [vmem:[%s13028_s3 + $0x158] sm:$0xff] %v8913_v63  ;;  %v9113_v7 = vadd.f32 %v9112_v0, %v7361_v62  ;;  %v9116_v8 = vadd.f32 %v5953_v5, %v12623_v36 }
 0x4ca   :  { %v7546_v9 = vmax.f32 %v9111_v3, 0.0  ;;  %v9115_v10 = vadd.f32 %v9114_v4, %v7363_v2 }
 0x4cb   :  { %v7547_v11 = vmax.f32 %v9113_v7, 0.0  ;;  %v9117_v12 = vadd.f32 %v9116_v8, %v7365_v6 }
 0x4cc   :  { %v7548_v13 = vmax.f32 %v9115_v10, 0.0 }
 0x4cd   :  { %v8914_v14 = vpack.c.bf16 %v7547_v11, %v7546_v9  ;;  %v7549_v15 = vmax.f32 %v9117_v12, 0.0  ;;  %v5957_v16 = vpop.f32.mrb[92].mxu1 }
 0x4ce   :  { %v7369_v17 = vpop.f32.mrb[92].mxu0  ;;  %v9118_v18 = vadd.f32 %v5957_v16, %v12621_v35  ;;  %v5959_v19 = vpop.f32.mrb[93].mxu1 }
 0x4cf   :  { %v7371_v20 = vpop.f32.mrb[93].mxu0  ;;  %8014 = vst [vmem:[%s13028_s3 + $0x160] sm:$0xff] %v8914_v14  ;;  %v8915_v21 = vpack.c.bf16 %v7549_v15, %v7548_v13  ;;  %v9120_v22 = vadd.f32 %v5959_v19, %v12623_v36  ;;  %v5961_v23 = vpop.f32.mrb[94].mxu1 }
 0x4d0   :  { %v7373_v24 = vpop.f32.mrb[94].mxu0  ;;  %v9119_v25 = vadd.f32 %v9118_v18, %v7369_v17  ;;  %v9122_v26 = vadd.f32 %v5961_v23, %v12621_v35  ;;  %v5963_v27 = vpop.f32.mrb[95].mxu1 }
 0x4d1   :  { %v7375_v28 = vpop.f32.mrb[95].mxu0  ;;  %8015 = vst [vmem:[%s13028_s3 + $0x168] sm:$0xff] %v8915_v21  ;;  %v9121_v29 = vadd.f32 %v9120_v22, %v7371_v20  ;;  %v9124_v30 = vadd.f32 %v5963_v27, %v12623_v36 }
 0x4d2   :  { %v7550_v31 = vmax.f32 %v9119_v25, 0.0  ;;  %v9123_v32 = vadd.f32 %v9122_v26, %v7373_v24 }
 0x4d3   :  { %v7551_v33 = vmax.f32 %v9121_v29, 0.0  ;;  %v9125_v34 = vadd.f32 %v9124_v30, %v7375_v28 }
 0x4d4   :  { %v7552_v37 = vmax.f32 %v9123_v32, 0.0 }
 0x4d5   :  { %v8916_v38 = vpack.c.bf16 %v7551_v33, %v7550_v31  ;;  %v7553_v39 = vmax.f32 %v9125_v34, 0.0  ;;  %v5967_v40 = vpop.f32.mrb[96].mxu1 }
 0x4d6   :  { %v7379_v41 = vpop.f32.mrb[96].mxu0  ;;  %v9126_v42 = vadd.f32 %v5967_v40, %v12621_v35  ;;  %v5969_v43 = vpop.f32.mrb[97].mxu1 }
 0x4d7   :  { %v7381_v44 = vpop.f32.mrb[97].mxu0  ;;  %8016 = vst [vmem:[%s13028_s3 + $0x170] sm:$0xff] %v8916_v38  ;;  %v8917_v45 = vpack.c.bf16 %v7553_v39, %v7552_v37  ;;  %v9128_v46 = vadd.f32 %v5969_v43, %v12623_v36  ;;  %v5971_v47 = vpop.f32.mrb[98].mxu1 }
 0x4d8   :  { %v7383_v48 = vpop.f32.mrb[98].mxu0  ;;  %v9127_v49 = vadd.f32 %v9126_v42, %v7379_v41  ;;  %v9130_v50 = vadd.f32 %v5971_v47, %v12621_v35  ;;  %v5973_v51 = vpop.f32.mrb[99].mxu1 }
 0x4d9   :  { %v7385_v52 = vpop.f32.mrb[99].mxu0  ;;  %8017 = vst [vmem:[%s13028_s3 + $0x178] sm:$0xff] %v8917_v45  ;;  %v9129_v53 = vadd.f32 %v9128_v46, %v7381_v44  ;;  %v9132_v54 = vadd.f32 %v5973_v51, %v12623_v36 }
 0x4da   :  { %v7554_v55 = vmax.f32 %v9127_v49, 0.0  ;;  %v9131_v56 = vadd.f32 %v9130_v50, %v7383_v48 }
 0x4db   :  { %v7555_v57 = vmax.f32 %v9129_v53, 0.0  ;;  %v9133_v58 = vadd.f32 %v9132_v54, %v7385_v52 }
 0x4dc   :  { %v7556_v59 = vmax.f32 %v9131_v56, 0.0 }
 0x4dd   :  { %v8918_v60 = vpack.c.bf16 %v7555_v57, %v7554_v55  ;;  %v7557_v61 = vmax.f32 %v9133_v58, 0.0  ;;  %v5977_v62 = vpop.f32.mrb[100].mxu1 }
 0x4de   :  { %v7389_v63 = vpop.f32.mrb[100].mxu0  ;;  %v9134_v0 = vadd.f32 %v5977_v62, %v12621_v35  ;;  %v5979_v1 = vpop.f32.mrb[101].mxu1 }
 0x4df   :  { %v7391_v2 = vpop.f32.mrb[101].mxu0  ;;  %8018 = vst [vmem:[%s13028_s3 + $0x180] sm:$0xff] %v8918_v60  ;;  %v8919_v3 = vpack.c.bf16 %v7557_v61, %v7556_v59  ;;  %v9136_v4 = vadd.f32 %v5979_v1, %v12623_v36  ;;  %v5981_v5 = vpop.f32.mrb[102].mxu1 }
 0x4e0   :  { %v7393_v6 = vpop.f32.mrb[102].mxu0  ;;  %v9135_v7 = vadd.f32 %v9134_v0, %v7389_v63  ;;  %v9138_v8 = vadd.f32 %v5981_v5, %v12621_v35  ;;  %v5983_v9 = vpop.f32.mrb[103].mxu1 }
 0x4e1   :  { %v7395_v10 = vpop.f32.mrb[103].mxu0  ;;  %8019 = vst [vmem:[%s13028_s3 + $0x188] sm:$0xff] %v8919_v3  ;;  %v9137_v11 = vadd.f32 %v9136_v4, %v7391_v2  ;;  %v9140_v12 = vadd.f32 %v5983_v9, %v12623_v36 }
 0x4e2   :  { %v7558_v13 = vmax.f32 %v9135_v7, 0.0  ;;  %v9139_v14 = vadd.f32 %v9138_v8, %v7393_v6 }
 0x4e3   :  { %v7559_v15 = vmax.f32 %v9137_v11, 0.0  ;;  %v9141_v16 = vadd.f32 %v9140_v12, %v7395_v10 }
 0x4e4   :  { %v7560_v17 = vmax.f32 %v9139_v14, 0.0 }
 0x4e5   :  { %v8920_v18 = vpack.c.bf16 %v7559_v15, %v7558_v13  ;;  %v7561_v19 = vmax.f32 %v9141_v16, 0.0  ;;  %v5987_v20 = vpop.f32.mrb[104].mxu1 }
 0x4e6   :  { %v7399_v21 = vpop.f32.mrb[104].mxu0  ;;  %v9142_v22 = vadd.f32 %v5987_v20, %v12621_v35  ;;  %v5989_v23 = vpop.f32.mrb[105].mxu1 }
 0x4e7   :  { %v7401_v24 = vpop.f32.mrb[105].mxu0  ;;  %8020 = vst [vmem:[%s13028_s3 + $0x190] sm:$0xff] %v8920_v18  ;;  %v8921_v25 = vpack.c.bf16 %v7561_v19, %v7560_v17  ;;  %v9144_v26 = vadd.f32 %v5989_v23, %v12623_v36  ;;  %v5991_v27 = vpop.f32.mrb[106].mxu1 }
 0x4e8   :  { %v7403_v28 = vpop.f32.mrb[106].mxu0  ;;  %v9143_v29 = vadd.f32 %v9142_v22, %v7399_v21  ;;  %v9146_v30 = vadd.f32 %v5991_v27, %v12621_v35  ;;  %v5993_v31 = vpop.f32.mrb[107].mxu1 }
 0x4e9   :  { %v7405_v32 = vpop.f32.mrb[107].mxu0  ;;  %8021 = vst [vmem:[%s13028_s3 + $0x198] sm:$0xff] %v8921_v25  ;;  %v9145_v33 = vadd.f32 %v9144_v26, %v7401_v24  ;;  %v9148_v34 = vadd.f32 %v5993_v31, %v12623_v36 }
 0x4ea   :  { %v7562_v37 = vmax.f32 %v9143_v29, 0.0  ;;  %v9147_v38 = vadd.f32 %v9146_v30, %v7403_v28 }
 0x4eb   :  { %v7563_v39 = vmax.f32 %v9145_v33, 0.0  ;;  %v9149_v40 = vadd.f32 %v9148_v34, %v7405_v32 }
 0x4ec   :  { %v7564_v41 = vmax.f32 %v9147_v38, 0.0 }
 0x4ed   :  { %v8922_v42 = vpack.c.bf16 %v7563_v39, %v7562_v37  ;;  %v7565_v43 = vmax.f32 %v9149_v40, 0.0  ;;  %v5997_v44 = vpop.f32.mrb[108].mxu1 }
 0x4ee   :  { %v7409_v45 = vpop.f32.mrb[108].mxu0  ;;  %v9150_v46 = vadd.f32 %v5997_v44, %v12621_v35  ;;  %v5999_v47 = vpop.f32.mrb[109].mxu1 }
 0x4ef   :  { %v7411_v48 = vpop.f32.mrb[109].mxu0  ;;  %8022 = vst [vmem:[%s13028_s3 + $0x1a0] sm:$0xff] %v8922_v42  ;;  %v8923_v49 = vpack.c.bf16 %v7565_v43, %v7564_v41  ;;  %v9152_v50 = vadd.f32 %v5999_v47, %v12623_v36  ;;  %v6001_v51 = vpop.f32.mrb[110].mxu1 }
 0x4f0   :  { %v7413_v52 = vpop.f32.mrb[110].mxu0  ;;  %v9151_v53 = vadd.f32 %v9150_v46, %v7409_v45  ;;  %v9154_v54 = vadd.f32 %v6001_v51, %v12621_v35  ;;  %v6003_v55 = vpop.f32.mrb[111].mxu1 }
 0x4f1   :  { %v7415_v56 = vpop.f32.mrb[111].mxu0  ;;  %8023 = vst [vmem:[%s13028_s3 + $0x1a8] sm:$0xff] %v8923_v49  ;;  %v9153_v57 = vadd.f32 %v9152_v50, %v7411_v48  ;;  %v9156_v58 = vadd.f32 %v6003_v55, %v12623_v36 }
 0x4f2   :  { %v7566_v59 = vmax.f32 %v9151_v53, 0.0  ;;  %v9155_v60 = vadd.f32 %v9154_v54, %v7413_v52 }
 0x4f3   :  { %v7567_v61 = vmax.f32 %v9153_v57, 0.0  ;;  %v9157_v62 = vadd.f32 %v9156_v58, %v7415_v56 }
 0x4f4   :  { %v7568_v63 = vmax.f32 %v9155_v60, 0.0 }
 0x4f5   :  { %v8924_v0 = vpack.c.bf16 %v7567_v61, %v7566_v59  ;;  %v7569_v1 = vmax.f32 %v9157_v62, 0.0  ;;  %v6007_v2 = vpop.f32.mrb[112].mxu1 }
 0x4f6   :  { %v7419_v3 = vpop.f32.mrb[112].mxu0  ;;  %v9158_v4 = vadd.f32 %v6007_v2, %v12621_v35  ;;  %v6009_v5 = vpop.f32.mrb[113].mxu1 }
 0x4f7   :  { %v7421_v6 = vpop.f32.mrb[113].mxu0  ;;  %8024 = vst [vmem:[%s13028_s3 + $0x1b0] sm:$0xff] %v8924_v0  ;;  %v8925_v7 = vpack.c.bf16 %v7569_v1, %v7568_v63  ;;  %v9160_v8 = vadd.f32 %v6009_v5, %v12623_v36  ;;  %v6011_v9 = vpop.f32.mrb[114].mxu1 }
 0x4f8   :  { %v7423_v10 = vpop.f32.mrb[114].mxu0  ;;  %v9159_v11 = vadd.f32 %v9158_v4, %v7419_v3  ;;  %v9162_v12 = vadd.f32 %v6011_v9, %v12621_v35  ;;  %v6013_v13 = vpop.f32.mrb[115].mxu1 }
 0x4f9   :  { %v7425_v14 = vpop.f32.mrb[115].mxu0  ;;  %8025 = vst [vmem:[%s13028_s3 + $0x1b8] sm:$0xff] %v8925_v7  ;;  %v9161_v15 = vadd.f32 %v9160_v8, %v7421_v6  ;;  %v9164_v16 = vadd.f32 %v6013_v13, %v12623_v36 }
 0x4fa   :  { %v7570_v17 = vmax.f32 %v9159_v11, 0.0  ;;  %v9163_v18 = vadd.f32 %v9162_v12, %v7423_v10 }
 0x4fb   :  { %v7571_v19 = vmax.f32 %v9161_v15, 0.0  ;;  %v9165_v20 = vadd.f32 %v9164_v16, %v7425_v14 }
 0x4fc   :  { %v7572_v21 = vmax.f32 %v9163_v18, 0.0 }
 0x4fd   :  { %v8926_v22 = vpack.c.bf16 %v7571_v19, %v7570_v17  ;;  %v7573_v23 = vmax.f32 %v9165_v20, 0.0  ;;  %v6017_v24 = vpop.f32.mrb[116].mxu1 }
 0x4fe   :  { %v7429_v25 = vpop.f32.mrb[116].mxu0  ;;  %v9166_v26 = vadd.f32 %v6017_v24, %v12621_v35  ;;  %v6019_v27 = vpop.f32.mrb[117].mxu1 }
 0x4ff   :  { %v7431_v28 = vpop.f32.mrb[117].mxu0  ;;  %8026 = vst [vmem:[%s13028_s3 + $0x1c0] sm:$0xff] %v8926_v22  ;;  %v8927_v29 = vpack.c.bf16 %v7573_v23, %v7572_v21  ;;  %v9168_v30 = vadd.f32 %v6019_v27, %v12623_v36  ;;  %v6021_v31 = vpop.f32.mrb[118].mxu1 }
 0x500   :  { %v7433_v32 = vpop.f32.mrb[118].mxu0  ;;  %v9167_v33 = vadd.f32 %v9166_v26, %v7429_v25  ;;  %v9170_v34 = vadd.f32 %v6021_v31, %v12621_v35  ;;  %v6023_v37 = vpop.f32.mrb[119].mxu1 }
 0x501   :  { %v7435_v38 = vpop.f32.mrb[119].mxu0  ;;  %8027 = vst [vmem:[%s13028_s3 + $0x1c8] sm:$0xff] %v8927_v29  ;;  %v9169_v39 = vadd.f32 %v9168_v30, %v7431_v28  ;;  %v9172_v40 = vadd.f32 %v6023_v37, %v12623_v36 }
 0x502   :  { %v7574_v41 = vmax.f32 %v9167_v33, 0.0  ;;  %v9171_v42 = vadd.f32 %v9170_v34, %v7433_v32 }
 0x503   :  { %v7575_v43 = vmax.f32 %v9169_v39, 0.0  ;;  %v9173_v44 = vadd.f32 %v9172_v40, %v7435_v38 }
 0x504   :  { %v7576_v45 = vmax.f32 %v9171_v42, 0.0 }
 0x505   :  { %v8928_v46 = vpack.c.bf16 %v7575_v43, %v7574_v41  ;;  %v7577_v47 = vmax.f32 %v9173_v44, 0.0  ;;  %v6027_v48 = vpop.f32.mrb[120].mxu1 }
 0x506   :  { %v7439_v49 = vpop.f32.mrb[120].mxu0  ;;  %v9174_v50 = vadd.f32 %v6027_v48, %v12621_v35  ;;  %v6029_v51 = vpop.f32.mrb[121].mxu1 }
 0x507   :  { %v7441_v52 = vpop.f32.mrb[121].mxu0  ;;  %8028 = vst [vmem:[%s13028_s3 + $0x1d0] sm:$0xff] %v8928_v46  ;;  %v8929_v53 = vpack.c.bf16 %v7577_v47, %v7576_v45  ;;  %v9176_v54 = vadd.f32 %v6029_v51, %v12623_v36  ;;  %v6031_v55 = vpop.f32.mrb[122].mxu1 }
 0x508   :  { %v7443_v56 = vpop.f32.mrb[122].mxu0  ;;  %v9175_v57 = vadd.f32 %v9174_v50, %v7439_v49  ;;  %v9178_v58 = vadd.f32 %v6031_v55, %v12621_v35  ;;  %v6033_v59 = vpop.f32.mrb[123].mxu1 }
 0x509   :  { %v7445_v60 = vpop.f32.mrb[123].mxu0  ;;  %8029 = vst [vmem:[%s13028_s3 + $0x1d8] sm:$0xff] %v8929_v53  ;;  %v9177_v61 = vadd.f32 %v9176_v54, %v7441_v52  ;;  %v9180_v62 = vadd.f32 %v6033_v59, %v12623_v36 }
 0x50a   :  { %v7578_v63 = vmax.f32 %v9175_v57, 0.0  ;;  %v9179_v0 = vadd.f32 %v9178_v58, %v7443_v56 }
 0x50b   :  { %v7579_v1 = vmax.f32 %v9177_v61, 0.0  ;;  %v9181_v2 = vadd.f32 %v9180_v62, %v7445_v60 }
 0x50c   :  { %v7580_v3 = vmax.f32 %v9179_v0, 0.0 }
 0x50d   :  { %v8930_v4 = vpack.c.bf16 %v7579_v1, %v7578_v63  ;;  %v7581_v5 = vmax.f32 %v9181_v2, 0.0  ;;  %v6037_v6 = vpop.f32.mrb[124].mxu1 }
 0x50e   :  { %v7449_v7 = vpop.f32.mrb[124].mxu0  ;;  %v9182_v8 = vadd.f32 %v6037_v6, %v12621_v35  ;;  %v6039_v9 = vpop.f32.mrb[125].mxu1 }
 0x50f   :  { %v7451_v10 = vpop.f32.mrb[125].mxu0  ;;  %8030 = vst [vmem:[%s13028_s3 + $0x1e0] sm:$0xff] %v8930_v4  ;;  %v8931_v11 = vpack.c.bf16 %v7581_v5, %v7580_v3  ;;  %v9184_v12 = vadd.f32 %v6039_v9, %v12623_v36  ;;  %v6041_v13 = vpop.f32.mrb[126].mxu1 }
 0x510   :  { %v7453_v14 = vpop.f32.mrb[126].mxu0  ;;  %v9183_v15 = vadd.f32 %v9182_v8, %v7449_v7  ;;  %v9186_v16 = vadd.f32 %v6041_v13, %v12621_v35  ;;  %v6043_v17 = vpop.f32.mrb[127].mxu1 }
 0x511   :  { %v7455_v18 = vpop.f32.mrb[127].mxu0  ;;  %8031 = vst [vmem:[%s13028_s3 + $0x1e8] sm:$0xff] %v8931_v11  ;;  %v9185_v19 = vadd.f32 %v9184_v12, %v7451_v10  ;;  %v9188_v20 = vadd.f32 %v6043_v17, %v12623_v36 }
 0x512   :  { %v7582_v21 = vmax.f32 %v9183_v15, 0.0  ;;  %v9187_v22 = vadd.f32 %v9186_v16, %v7453_v14 }
 0x513   :  { %v7583_v23 = vmax.f32 %v9185_v19, 0.0  ;;  %v9189_v24 = vadd.f32 %v9188_v20, %v7455_v18 }
 0x514   :  { %v7584_v25 = vmax.f32 %v9187_v22, 0.0 }
 0x515   :  { %v8932_v26 = vpack.c.bf16 %v7583_v23, %v7582_v21  ;;  %v7585_v27 = vmax.f32 %v9189_v24, 0.0 }
 0x517   :  { %8032 = vst [vmem:[%s13028_s3 + $0x1f0] sm:$0xff] %v8932_v26  ;;  %v8933_v35 = vpack.c.bf16 %v7585_v27, %v7584_v25 }
 0x519   :  { %8033 = vst [vmem:[%s13028_s3 + $0x1f8] sm:$0xff] %v8933_v35 }

// kernel: vae_encoder.9
= control target key start
LH: loop header
LB: loop body
LE: loop exit
PB: predicated region body
PF: predicated region fallthrough
CT: control target
= control target key end

     0   :  { %s7895_s9 = smov 0   ;;  %s7897_s10 = smov 0   ;;  %s8530_s0 = inlined_call_operand.vmem [shape: bf16[8,65536], index: 0, kind: input, shape index: {}]   ;;  %s8531_s1 = inlined_call_operand.vmem [shape: bf16[65536,128], index: 1, kind: input, shape index: {}]   ;;  %s8532_s2 = inlined_call_operand.vmem [shape: f32[2,8,128], index: 2, kind: output, shape index: {}]  }
   0x1   :  { %s7899_s11 = smov 0   ;;  %s7901_s12 = smov 0  }
   0x2   :  { %s7903_s13 = smov 0  }
   0x3 LB: > { %s21_s14 = sadd.s32 1, %s7869_s11  ;;  %s24_s15 = sadd.s32 1, %s7873_s12  ;;  %s7877_s13 = sphi %s7903_s13, %s12_s13   ;;  %s7873_s12 = sphi %s7901_s12, %s8536_s12   ;;  %s7869_s11 = sphi %s7899_s11, %s8535_s11   ;;  %s7865_s10 = sphi %s7897_s10, %s8534_s10   ;;  %s7861_s9 = sphi %s7895_s9, %s8533_s9  }
   0x4   : > { %p22_p0 = scmp.ge.s32.totalorder %s21_s14, 4  ;;  %p5931_p1 = scmp.ge.s32.totalorder %s7877_s13, 1 }
   0x5   : > { %p152_p2 = scmp.lt.s32.totalorder %s7877_s13, 9 }
   0x6   : > { %s8538_s14 = smov (%p22_p0, %s21_s14), 0  ;;  %s8540_s15 = smov (!%p22_p0, %s24_s15), %s7873_s12 }
   0x7   : > { %p153_p3 = pnand %p5931_p1, %p152_p2  ;;  %p26_p4 = scmp.ge.s32.totalorder %s8540_s15, 2 }
   0x8   : > { %s5932_s16 = sshll.u32 (!%p153_p3), %s7865_s10, 2  ;;  %p202_p5 = scmp.lt.s32.totalorder (!%p153_p3), %s7865_s10, 1 }
   0x9   : > { %s8542_s15 = smov (%p26_p4, %s8540_s15), 0  ;;  %156 = sbr.rel (%p153_p3) target bundleno = 763 (0x2fb), region = 28 }
   0xa   : > { %s183_s17 = sadd.s32 (!%p153_p3), %s7861_s9, %s5932_s16  ;;  %p5939_p8 = scmp.ne.s32.totalorder (!%p153_p3), %s7861_s9, 0 }
   0xb   : > { %s5933_s18 = sshll.u32 (!%p153_p3), %s183_s17, 6  ;;  %s5936_s19 = sshll.u32 (!%p153_p3), %s183_s17, 10 }
   0xc   : > { %p185_p6 = scmp.lt.s32.totalorder (!%p153_p3), %s5933_s18, 511  ;;  %p195_p7 = scmp.lt.s32.totalorder (!%p153_p3), %s5936_s19, 8191 }
  0x10   : > { %s8544_s10 = smov (!%p202_p5, %s7865_s10), 1  ;;  %s8546_s18 = smov (!%p185_p6, %s5933_s18), 511 }
  0x11   : > { %s8548_s19 = smov (!%p195_p7, %s5936_s19), 8191  ;;  %s5934_s20 = sshll.u32 %s8546_s18, 2  ;;  %v7879_v0 = vmov (!%p5939_p8), 0.0  }
  0x12   : > { %s5938_s21 = sshll.u32 %s8544_s10, 3  ;;  %s7931_s24 = scalar_lea.vmem %s8530_s0, %s5934_s20 }
  0x13   : > { %s5937_s25 = sshll.u32 %s8548_s19, 2  ;;  %s7941_s3 = scalar_lea.vmem %s8532_s2, %s5938_s21 }
  0x14   : > { %s7936_s28 = scalar_lea.vmem %s8531_s1, %s5937_s25  ;;  %210 = sbr.rel (%p5939_p8) target bundleno = 27 (0x1b), region = 32  ;;  %211 = vst [vmem:[%s7941_s3] sm:$0xff] (!%p5939_p8), %v7879_v0 }
  0x1b PF: > { %v7263_v1 = vld [vmem:[%s7936_s28 + $0x40] sm:$0xff]   ;;  %v7267_v5 = vld [vmem:[%s7936_s28 + $0x48] sm:$0xff]   ;;  %v7271_v9 = vld [vmem:[%s7936_s28 + $0x50] sm:$0xff]  }
  0x1c   : > { %v7264_v2 = vld [vmem:[%s7936_s28 + $0xc0] sm:$0xff]   ;;  %6518 = vmatprep.subr.bf16.mxu0 %v7263_v1  ;;  %v7268_v6 = vld [vmem:[%s7936_s28 + $0xc8] sm:$0xff]   ;;  %v7272_v10 = vld [vmem:[%s7936_s28 + $0xd0] sm:$0xff]  }
  0x1d   : > { %v7265_v3 = vld [vmem:[%s7936_s28] sm:$0xff]   ;;  %6540 = vmatprep.subr.bf16.mxu1 %v7264_v2  ;;  %v7269_v7 = vld [vmem:[%s7936_s28 + $0x8] sm:$0xff]   ;;  %v7273_v11 = vld [vmem:[%s7936_s28 + $0x10] sm:$0xff]  }
  0x1e   : > { %v7266_v4 = vld [vmem:[%s7936_s28 + $0x80] sm:$0xff]   ;;  %6519 = vmatpush3.bf16.msra.mxu0 %v7265_v3  ;;  %v7270_v8 = vld [vmem:[%s7936_s28 + $0x88] sm:$0xff]   ;;  %v7274_v12 = vld [vmem:[%s7936_s28 + $0x90] sm:$0xff]  }
  0x1f   : > { %6541 = vmatpush3.bf16.msra.mxu1 %v7266_v4  ;;  %6520 = vmatprep.subr.bf16.mxu0 %v7267_v5  ;;  %v7275_v13 = vld [vmem:[%s7936_s28 + $0x58] sm:$0xff]   ;;  %v7279_v17 = vld [vmem:[%s7936_s28 + $0x60] sm:$0xff]   ;;  %v7283_v21 = vld [vmem:[%s7936_s28 + $0x68] sm:$0xff]  }
  0x20   : > { %6542 = vmatprep.subr.bf16.mxu1 %v7268_v6  ;;  %v7276_v14 = vld [vmem:[%s7936_s28 + $0xd8] sm:$0xff]   ;;  %v7280_v18 = vld [vmem:[%s7936_s28 + $0xe0] sm:$0xff]   ;;  %v7284_v22 = vld [vmem:[%s7936_s28 + $0xe8] sm:$0xff]  }
  0x21   : > { %v7277_v15 = vld [vmem:[%s7936_s28 + $0x18] sm:$0xff]   ;;  %v7281_v19 = vld [vmem:[%s7936_s28 + $0x20] sm:$0xff]   ;;  %v7285_v23 = vld [vmem:[%s7936_s28 + $0x28] sm:$0xff]  }
  0x22   : > { %6521 = vmatpush3.bf16.msra.mxu0 %v7269_v7  ;;  %v7278_v16 = vld [vmem:[%s7936_s28 + $0x98] sm:$0xff]   ;;  %v7282_v20 = vld [vmem:[%s7936_s28 + $0xa0] sm:$0xff]   ;;  %v7286_v24 = vld [vmem:[%s7936_s28 + $0xa8] sm:$0xff]  }
  0x23   : > { %6543 = vmatpush3.bf16.msra.mxu1 %v7270_v8  ;;  %6522 = vmatprep.subr.bf16.mxu0 %v7271_v9  ;;  %v7287_v25 = vld [vmem:[%s7936_s28 + $0x70] sm:$0xff]   ;;  %v7291_v29 = vld [vmem:[%s7936_s28 + $0x78] sm:$0xff]   ;;  %v213_v33 = vld [vmem:[%s7931_s24] sm:$0xff] }
  0x24   : > { %6544 = vmatprep.subr.bf16.mxu1 %v7272_v10  ;;  %v7288_v26 = vld [vmem:[%s7936_s28 + $0xf0] sm:$0xff]   ;;  %v7292_v30 = vld [vmem:[%s7936_s28 + $0xf8] sm:$0xff]   ;;  %v214_v34 = vld [vmem:[%s7931_s24 + $0x8] sm:$0xff]  ;;  %v5940_v35 = vcombine.low %v213_v33, %v213_v33  ;;  %v5941_v36 = vcombine.high %v213_v33, %v213_v33 }
  0x25   : > { %v7289_v27 = vld [vmem:[%s7936_s28 + $0x30] sm:$0xff]   ;;  %v7293_v31 = vld [vmem:[%s7936_s28 + $0x38] sm:$0xff]   ;;  %v5942_v37 = vcombine.low %v214_v34, %v214_v34  ;;  %v5943_v38 = vcombine.high %v214_v34, %v214_v34  ;;  %v7299_v39 = vld [vmem:[%s7936_s28 + $0x140] sm:$0xff]  }
  0x26   : > { %6523 = vmatpush3.bf16.msra.mxu0 %v7273_v11  ;;  %v7290_v28 = vld [vmem:[%s7936_s28 + $0xb0] sm:$0xff]   ;;  %v7294_v32 = vld [vmem:[%s7936_s28 + $0xb8] sm:$0xff]   ;;  %v7300_v40 = vld [vmem:[%s7936_s28 + $0x1c0] sm:$0xff]   ;;  %4597 = vmatprep.mubr.bf16.mxu0 %v5941_v36 }
  0x27   : > { %6545 = vmatpush3.bf16.msra.mxu1 %v7274_v12  ;;  %6524 = vmatprep.subr.bf16.mxu0 %v7275_v13  ;;  %v7301_v41 = vld [vmem:[%s7936_s28 + $0x100] sm:$0xff]   ;;  %v7303_v43 = vld [vmem:[%s7936_s28 + $0x148] sm:$0xff]   ;;  %v7307_v47 = vld [vmem:[%s7936_s28 + $0x150] sm:$0xff]  }
  0x28   : > { %6546 = vmatprep.subr.bf16.mxu1 %v7276_v14  ;;  %4637 = vmatprep.mubr.bf16.mxu1 %v5943_v38  ;;  %v7302_v42 = vld [vmem:[%s7936_s28 + $0x180] sm:$0xff]   ;;  %v7304_v44 = vld [vmem:[%s7936_s28 + $0x1c8] sm:$0xff]   ;;  %v7308_v48 = vld [vmem:[%s7936_s28 + $0x1d0] sm:$0xff]  }
  0x29   : > { %v7305_v45 = vld [vmem:[%s7936_s28 + $0x108] sm:$0xff]   ;;  %v7309_v49 = vld [vmem:[%s7936_s28 + $0x110] sm:$0xff]   ;;  %v7311_v51 = vld [vmem:[%s7936_s28 + $0x158] sm:$0xff]  }
  0x2a   : > { %6525 = vmatpush3.bf16.msra.mxu0 %v7277_v15  ;;  %v7306_v46 = vld [vmem:[%s7936_s28 + $0x188] sm:$0xff]   ;;  %v7310_v50 = vld [vmem:[%s7936_s28 + $0x190] sm:$0xff]   ;;  %v7312_v52 = vld [vmem:[%s7936_s28 + $0x1d8] sm:$0xff]  }
  0x2b   : > { %6547 = vmatpush3.bf16.msra.mxu1 %v7278_v16  ;;  %6526 = vmatprep.subr.bf16.mxu0 %v7279_v17  ;;  %v7313_v53 = vld [vmem:[%s7936_s28 + $0x118] sm:$0xff]   ;;  %v7315_v55 = vld [vmem:[%s7936_s28 + $0x160] sm:$0xff]   ;;  %v7319_v59 = vld [vmem:[%s7936_s28 + $0x168] sm:$0xff]  }
  0x2c   : > { %6548 = vmatprep.subr.bf16.mxu1 %v7280_v18  ;;  %v7314_v54 = vld [vmem:[%s7936_s28 + $0x198] sm:$0xff]   ;;  %v7316_v56 = vld [vmem:[%s7936_s28 + $0x1e0] sm:$0xff]   ;;  %v7320_v60 = vld [vmem:[%s7936_s28 + $0x1e8] sm:$0xff]  }
  0x2d   : > { %v7317_v57 = vld [vmem:[%s7936_s28 + $0x120] sm:$0xff]   ;;  %v7321_v61 = vld [vmem:[%s7936_s28 + $0x128] sm:$0xff]   ;;  %v7323_v63 = vld [vmem:[%s7936_s28 + $0x170] sm:$0xff]  }
  0x2e   : > { %6527 = vmatpush3.bf16.msra.mxu0 %v7281_v19  ;;  %v7318_v58 = vld [vmem:[%s7936_s28 + $0x1a0] sm:$0xff]   ;;  %v7322_v62 = vld [vmem:[%s7936_s28 + $0x1a8] sm:$0xff]   ;;  %v7324_v0 = vld [vmem:[%s7936_s28 + $0x1f0] sm:$0xff]  }
  0x2f   : > { %6549 = vmatpush3.bf16.msra.mxu1 %v7282_v20  ;;  %6528 = vmatprep.subr.bf16.mxu0 %v7283_v21  ;;  %v7325_v1 = vld [vmem:[%s7936_s28 + $0x130] sm:$0xff]   ;;  %v7327_v3 = vld [vmem:[%s7936_s28 + $0x178] sm:$0xff]   ;;  %v7335_v13 = vld [vmem:[%s7936_s28 + $0x240] sm:$0xff]  }
  0x30   : > { %6550 = vmatprep.subr.bf16.mxu1 %v7284_v22  ;;  %v7326_v2 = vld [vmem:[%s7936_s28 + $0x1b0] sm:$0xff]   ;;  %v7328_v4 = vld [vmem:[%s7936_s28 + $0x1f8] sm:$0xff]   ;;  %v7336_v14 = vld [vmem:[%s7936_s28 + $0x2c0] sm:$0xff]  }
  0x31   : > { %v7329_v5 = vld [vmem:[%s7936_s28 + $0x138] sm:$0xff]   ;;  %v215_v7 = vld [vmem:[%s7931_s24 + $0x10] sm:$0xff]  ;;  %v7337_v15 = vld [vmem:[%s7936_s28 + $0x200] sm:$0xff]  }
  0x32   : > { %6529 = vmatpush3.bf16.msra.mxu0 %v7285_v23  ;;  %v7330_v6 = vld [vmem:[%s7936_s28 + $0x1b8] sm:$0xff]   ;;  %v5944_v8 = vcombine.low %v215_v7, %v215_v7  ;;  %v5945_v9 = vcombine.high %v215_v7, %v215_v7  ;;  %v7338_v16 = vld [vmem:[%s7936_s28 + $0x280] sm:$0xff]   ;;  %v7339_v17 = vld [vmem:[%s7936_s28 + $0x248] sm:$0xff]  }
  0x33   : > { %6551 = vmatpush3.bf16.msra.mxu1 %v7286_v24  ;;  %6530 = vmatprep.subr.bf16.mxu0 %v7287_v25  ;;  %v216_v10 = vld [vmem:[%s7931_s24 + $0x18] sm:$0xff]  ;;  %v7340_v18 = vld [vmem:[%s7936_s28 + $0x2c8] sm:$0xff]   ;;  %v7343_v21 = vld [vmem:[%s7936_s28 + $0x250] sm:$0xff]  }
  0x34   : > { %6552 = vmatprep.subr.bf16.mxu1 %v7288_v26  ;;  %v5946_v11 = vcombine.low %v216_v10, %v216_v10  ;;  %v5947_v12 = vcombine.high %v216_v10, %v216_v10  ;;  %v7341_v19 = vld [vmem:[%s7936_s28 + $0x208] sm:$0xff]   ;;  %v7344_v22 = vld [vmem:[%s7936_s28 + $0x2d0] sm:$0xff]   ;;  %v7347_v25 = vld [vmem:[%s7936_s28 + $0x258] sm:$0xff]  }
  0x35   : > { %v7342_v20 = vld [vmem:[%s7936_s28 + $0x288] sm:$0xff]   ;;  %v7345_v23 = vld [vmem:[%s7936_s28 + $0x210] sm:$0xff]   ;;  %v7348_v26 = vld [vmem:[%s7936_s28 + $0x2d8] sm:$0xff]  }
  0x36   : > { %6531 = vmatpush3.bf16.msra.mxu0 %v7289_v27  ;;  %v7346_v24 = vld [vmem:[%s7936_s28 + $0x290] sm:$0xff]   ;;  %v7349_v27 = vld [vmem:[%s7936_s28 + $0x218] sm:$0xff]   ;;  %v7355_v33 = vld [vmem:[%s7936_s28 + $0x268] sm:$0xff]  }
  0x37   : > { %6553 = vmatpush3.bf16.msra.mxu1 %v7290_v28  ;;  %6532 = vmatprep.subr.bf16.mxu0 %v7291_v29  ;;  %v7350_v28 = vld [vmem:[%s7936_s28 + $0x298] sm:$0xff]   ;;  %v7351_v29 = vld [vmem:[%s7936_s28 + $0x260] sm:$0xff]   ;;  %v7356_v34 = vld [vmem:[%s7936_s28 + $0x2e8] sm:$0xff]  }
  0x38   : > { %6554 = vmatprep.subr.bf16.mxu1 %v7292_v30  ;;  %v7352_v30 = vld [vmem:[%s7936_s28 + $0x2e0] sm:$0xff]   ;;  %v7358_v36 = vld [vmem:[%s7936_s28 + $0x2a8] sm:$0xff]   ;;  %v7360_v38 = vld [vmem:[%s7936_s28 + $0x2f0] sm:$0xff]  }
  0x39   : > { %v7391_v7 = vld [vmem:[%s7936_s28 + $0x368] sm:$0xff]  }
  0x3a   : > { %6533 = vmatpush3.bf16.msra.mxu0 %v7293_v31  ;;  %v7353_v31 = vld [vmem:[%s7936_s28 + $0x220] sm:$0xff]   ;;  %v7394_v10 = vld [vmem:[%s7936_s28 + $0x3a8] sm:$0xff]  }
  0x3b   : > { %6555 = vmatpush3.bf16.msra.mxu1 %v7294_v32  ;;  %6562 = vmatprep.subr.bf16.mxu0 %v7299_v39  ;;  %v7354_v32 = vld [vmem:[%s7936_s28 + $0x2a0] sm:$0xff]   ;;  %v7361_v39 = vld [vmem:[%s7936_s28 + $0x230] sm:$0xff]  }
  0x3c   : > { %6584 = vmatprep.subr.bf16.mxu1 %v7300_v40  ;;  %v7362_v40 = vld [vmem:[%s7936_s28 + $0x2b0] sm:$0xff]  }
  0x3d   : > { %4598 = vmatmul.mubr.bf16.vlgmr.msra.gmra.mrb[0].mxu0 %v5940_v35  ;;  %v7357_v35 = vld [vmem:[%s7936_s28 + $0x228] sm:$0xff]  }
  0x3e   : > { %4638 = vmatmul.mubr.bf16.vlgmr.msra.gmra.mrb[0].mxu1 %v5942_v37  ;;  %6563 = vmatpush3.bf16.msra.mxu0 %v7301_v41  ;;  %v7359_v37 = vld [vmem:[%s7936_s28 + $0x270] sm:$0xff]   ;;  %v7363_v41 = vld [vmem:[%s7936_s28 + $0x278] sm:$0xff]  }
  0x3f   : > { %6585 = vmatpush3.bf16.msra.mxu1 %v7302_v42  ;;  %6564 = vmatprep.subr.bf16.mxu0 %v7303_v43  ;;  %v7364_v42 = vld [vmem:[%s7936_s28 + $0x2f8] sm:$0xff]  }
  0x40   : > { %6586 = vmatprep.subr.bf16.mxu1 %v7304_v44  ;;  %4677 = vmatprep.mubr.bf16.mxu0 %v5945_v9  ;;  %v7365_v43 = vld [vmem:[%s7936_s28 + $0x238] sm:$0xff]   ;;  %v7393_v9 = vld [vmem:[%s7936_s28 + $0x328] sm:$0xff]  }
  0x41   : > { %4717 = vmatprep.mubr.bf16.mxu1 %v5947_v12  ;;  %v7366_v44 = vld [vmem:[%s7936_s28 + $0x2b8] sm:$0xff]   ;;  %v7396_v12 = vld [vmem:[%s7936_s28 + $0x3f0] sm:$0xff]  }
  0x42   : > { %6565 = vmatpush3.bf16.msra.mxu0 %v7305_v45  ;;  %v217_v45 = vld [vmem:[%s7931_s24 + $0x20] sm:$0xff] }
  0x43   : > { %6587 = vmatpush3.bf16.msra.mxu1 %v7306_v46  ;;  %6566 = vmatprep.subr.bf16.mxu0 %v7307_v47  ;;  %v218_v46 = vld [vmem:[%s7931_s24 + $0x28] sm:$0xff]  ;;  %v5948_v47 = vcombine.low %v217_v45, %v217_v45 }
  0x44   : > { %6588 = vmatprep.subr.bf16.mxu1 %v7308_v48  ;;  %v5949_v48 = vcombine.high %v217_v45, %v217_v45  ;;  %v7427_v45 = vld [vmem:[%s7936_s28 + $0x468] sm:$0xff]  }
  0x46   : > { %6567 = vmatpush3.bf16.msra.mxu0 %v7309_v49  ;;  %v5950_v49 = vcombine.low %v218_v46, %v218_v46 }
  0x47   : > { %6589 = vmatpush3.bf16.msra.mxu1 %v7310_v50  ;;  %6568 = vmatprep.subr.bf16.mxu0 %v7311_v51  ;;  %v5951_v50 = vcombine.high %v218_v46, %v218_v46  ;;  %v7371_v51 = vld [vmem:[%s7936_s28 + $0x340] sm:$0xff]   ;;  %v7428_v46 = vld [vmem:[%s7936_s28 + $0x4e8] sm:$0xff]  }
  0x48   : > { %6590 = vmatprep.subr.bf16.mxu1 %v7312_v52  ;;  %v7372_v52 = vld [vmem:[%s7936_s28 + $0x3c0] sm:$0xff]  }
  0x4a   : > { %6569 = vmatpush3.bf16.msra.mxu0 %v7313_v53  ;;  %v7373_v53 = vld [vmem:[%s7936_s28 + $0x300] sm:$0xff]  }
  0x4b   : > { %6591 = vmatpush3.bf16.msra.mxu1 %v7314_v54  ;;  %6570 = vmatprep.subr.bf16.mxu0 %v7315_v55  ;;  %v7374_v54 = vld [vmem:[%s7936_s28 + $0x380] sm:$0xff]   ;;  %v7375_v55 = vld [vmem:[%s7936_s28 + $0x348] sm:$0xff]  }
  0x4c   : > { %6592 = vmatprep.subr.bf16.mxu1 %v7316_v56  ;;  %v7376_v56 = vld [vmem:[%s7936_s28 + $0x3c8] sm:$0xff]  }
  0x4e   : > { %6571 = vmatpush3.bf16.msra.mxu0 %v7317_v57  ;;  %v7377_v57 = vld [vmem:[%s7936_s28 + $0x308] sm:$0xff]  }
  0x4f   : > { %6593 = vmatpush3.bf16.msra.mxu1 %v7318_v58  ;;  %6572 = vmatprep.subr.bf16.mxu0 %v7319_v59  ;;  %v7378_v58 = vld [vmem:[%s7936_s28 + $0x388] sm:$0xff]   ;;  %v7379_v59 = vld [vmem:[%s7936_s28 + $0x350] sm:$0xff]  }
  0x50   : > { %6594 = vmatprep.subr.bf16.mxu1 %v7320_v60  ;;  %v7380_v60 = vld [vmem:[%s7936_s28 + $0x3d0] sm:$0xff]  }
  0x52   : > { %6573 = vmatpush3.bf16.msra.mxu0 %v7321_v61  ;;  %v7381_v61 = vld [vmem:[%s7936_s28 + $0x310] sm:$0xff]  }
  0x53   : > { %6595 = vmatpush3.bf16.msra.mxu1 %v7322_v62  ;;  %6574 = vmatprep.subr.bf16.mxu0 %v7323_v63  ;;  %v7382_v62 = vld [vmem:[%s7936_s28 + $0x390] sm:$0xff]   ;;  %v7383_v63 = vld [vmem:[%s7936_s28 + $0x358] sm:$0xff]  }
  0x54   : > { %6596 = vmatprep.subr.bf16.mxu1 %v7324_v0  ;;  %v7384_v0 = vld [vmem:[%s7936_s28 + $0x3d8] sm:$0xff]  }
  0x56   : > { %6575 = vmatpush3.bf16.msra.mxu0 %v7325_v1  ;;  %v7385_v1 = vld [vmem:[%s7936_s28 + $0x318] sm:$0xff]  }
  0x57   : > { %6597 = vmatpush3.bf16.msra.mxu1 %v7326_v2  ;;  %6576 = vmatprep.subr.bf16.mxu0 %v7327_v3  ;;  %v7386_v2 = vld [vmem:[%s7936_s28 + $0x398] sm:$0xff]   ;;  %v7387_v3 = vld [vmem:[%s7936_s28 + $0x360] sm:$0xff]  }
  0x58   : > { %6598 = vmatprep.subr.bf16.mxu1 %v7328_v4  ;;  %v7388_v4 = vld [vmem:[%s7936_s28 + $0x3e0] sm:$0xff]  }
  0x5a   : > { %6577 = vmatpush3.bf16.msra.mxu0 %v7329_v5  ;;  %v7389_v5 = vld [vmem:[%s7936_s28 + $0x320] sm:$0xff]  }
  0x5b   : > { %6599 = vmatpush3.bf16.msra.mxu1 %v7330_v6  ;;  %6606 = vmatprep.subr.bf16.mxu0 %v7335_v13  ;;  %v7390_v6 = vld [vmem:[%s7936_s28 + $0x3a0] sm:$0xff]   ;;  %v7397_v13 = vld [vmem:[%s7936_s28 + $0x330] sm:$0xff]  }
  0x5c   : > { %6628 = vmatprep.subr.bf16.mxu1 %v7336_v14  ;;  %v7398_v14 = vld [vmem:[%s7936_s28 + $0x3b0] sm:$0xff]  }
  0x5d   : > { %4678 = vmatmul.mubr.bf16.vlgmr.msra.gmra.mrb[4].mxu0 %v5944_v8  ;;  %v7392_v8 = vld [vmem:[%s7936_s28 + $0x3e8] sm:$0xff]  }
  0x5e   : > { %4718 = vmatmul.mubr.bf16.vlgmr.msra.gmra.mrb[4].mxu1 %v5946_v11  ;;  %6607 = vmatpush3.bf16.msra.mxu0 %v7337_v15  ;;  %v7395_v11 = vld [vmem:[%s7936_s28 + $0x370] sm:$0xff]   ;;  %v7399_v15 = vld [vmem:[%s7936_s28 + $0x378] sm:$0xff]  }
  0x5f   : > { %6629 = vmatpush3.bf16.msra.mxu1 %v7338_v16  ;;  %6608 = vmatprep.subr.bf16.mxu0 %v7339_v17  ;;  %v7400_v16 = vld [vmem:[%s7936_s28 + $0x3f8] sm:$0xff]  }
  0x60   : > { %6630 = vmatprep.subr.bf16.mxu1 %v7340_v18  ;;  %4757 = vmatprep.mubr.bf16.mxu0 %v5949_v48  ;;  %v7401_v17 = vld [vmem:[%s7936_s28 + $0x338] sm:$0xff]   ;;  %v7430_v48 = vld [vmem:[%s7936_s28 + $0x4a8] sm:$0xff]  }
  0x61   : > { %4797 = vmatprep.mubr.bf16.mxu1 %v5951_v50  ;;  %v7402_v18 = vld [vmem:[%s7936_s28 + $0x3b8] sm:$0xff]   ;;  %v7432_v50 = vld [vmem:[%s7936_s28 + $0x4f0] sm:$0xff]  }
  0x62   : > { %6609 = vmatpush3.bf16.msra.mxu0 %v7341_v19  ;;  %v219_v19 = vld [vmem:[%s7931_s24 + $0x30] sm:$0xff] }
  0x63   : > { %6631 = vmatpush3.bf16.msra.mxu1 %v7342_v20  ;;  %6610 = vmatprep.subr.bf16.mxu0 %v7343_v21  ;;  %v220_v20 = vld [vmem:[%s7931_s24 + $0x38] sm:$0xff]  ;;  %v5952_v21 = vcombine.low %v219_v19, %v219_v19 }
  0x64   : > { %6632 = vmatprep.subr.bf16.mxu1 %v7344_v22  ;;  %v5953_v22 = vcombine.high %v219_v19, %v219_v19  ;;  %v7463_v19 = vld [vmem:[%s7936_s28 + $0x568] sm:$0xff]  }
  0x66   : > { %6611 = vmatpush3.bf16.msra.mxu0 %v7345_v23  ;;  %v5954_v23 = vcombine.low %v220_v20, %v220_v20 }
  0x67   : > { %6633 = vmatpush3.bf16.msra.mxu1 %v7346_v24  ;;  %6612 = vmatprep.subr.bf16.mxu0 %v7347_v25  ;;  %v7407_v24 = vld [vmem:[%s7936_s28 + $0x440] sm:$0xff]   ;;  %v5955_v25 = vcombine.high %v220_v20, %v220_v20  ;;  %v7464_v20 = vld [vmem:[%s7936_s28 + $0x5e8] sm:$0xff]  }
  0x68   : > { %6634 = vmatprep.subr.bf16.mxu1 %v7348_v26  ;;  %v7408_v26 = vld [vmem:[%s7936_s28 + $0x4c0] sm:$0xff]  }
  0x6a   : > { %6613 = vmatpush3.bf16.msra.mxu0 %v7349_v27  ;;  %v7409_v27 = vld [vmem:[%s7936_s28 + $0x400] sm:$0xff]  }
  0x6b   : > { %6635 = vmatpush3.bf16.msra.mxu1 %v7350_v28  ;;  %6614 = vmatprep.subr.bf16.mxu0 %v7351_v29  ;;  %v7410_v28 = vld [vmem:[%s7936_s28 + $0x480] sm:$0xff]   ;;  %v7411_v29 = vld [vmem:[%s7936_s28 + $0x448] sm:$0xff]  }
  0x6c   : > { %6636 = vmatprep.subr.bf16.mxu1 %v7352_v30  ;;  %v7412_v30 = vld [vmem:[%s7936_s28 + $0x4c8] sm:$0xff]  }
  0x6e   : > { %6615 = vmatpush3.bf16.msra.mxu0 %v7353_v31  ;;  %v7413_v31 = vld [vmem:[%s7936_s28 + $0x408] sm:$0xff]  }
  0x6f   : > { %6637 = vmatpush3.bf16.msra.mxu1 %v7354_v32  ;;  %6616 = vmatprep.subr.bf16.mxu0 %v7355_v33  ;;  %v7414_v32 = vld [vmem:[%s7936_s28 + $0x488] sm:$0xff]   ;;  %v7415_v33 = vld [vmem:[%s7936_s28 + $0x450] sm:$0xff]  }
  0x70   : > { %6638 = vmatprep.subr.bf16.mxu1 %v7356_v34  ;;  %v7416_v34 = vld [vmem:[%s7936_s28 + $0x4d0] sm:$0xff]  }
  0x72   : > { %6617 = vmatpush3.bf16.msra.mxu0 %v7357_v35  ;;  %v7417_v35 = vld [vmem:[%s7936_s28 + $0x410] sm:$0xff]  }
  0x73   : > { %6639 = vmatpush3.bf16.msra.mxu1 %v7358_v36  ;;  %6618 = vmatprep.subr.bf16.mxu0 %v7359_v37  ;;  %v7418_v36 = vld [vmem:[%s7936_s28 + $0x490] sm:$0xff]   ;;  %v7419_v37 = vld [vmem:[%s7936_s28 + $0x458] sm:$0xff]  }
  0x74   : > { %6640 = vmatprep.subr.bf16.mxu1 %v7360_v38  ;;  %v7420_v38 = vld [vmem:[%s7936_s28 + $0x4d8] sm:$0xff]  }
  0x76   : > { %6619 = vmatpush3.bf16.msra.mxu0 %v7361_v39  ;;  %v7421_v39 = vld [vmem:[%s7936_s28 + $0x418] sm:$0xff]  }
  0x77   : > { %6641 = vmatpush3.bf16.msra.mxu1 %v7362_v40  ;;  %6620 = vmatprep.subr.bf16.mxu0 %v7363_v41  ;;  %v7422_v40 = vld [vmem:[%s7936_s28 + $0x498] sm:$0xff]   ;;  %v7423_v41 = vld [vmem:[%s7936_s28 + $0x460] sm:$0xff]  }
  0x78   : > { %6642 = vmatprep.subr.bf16.mxu1 %v7364_v42  ;;  %v7424_v42 = vld [vmem:[%s7936_s28 + $0x4e0] sm:$0xff]  }
  0x7a   : > { %6621 = vmatpush3.bf16.msra.mxu0 %v7365_v43  ;;  %v7425_v43 = vld [vmem:[%s7936_s28 + $0x420] sm:$0xff]  }
  0x7b   : > { %6643 = vmatpush3.bf16.msra.mxu1 %v7366_v44  ;;  %6650 = vmatprep.subr.bf16.mxu0 %v7371_v51  ;;  %v7426_v44 = vld [vmem:[%s7936_s28 + $0x4a0] sm:$0xff]   ;;  %v7433_v51 = vld [vmem:[%s7936_s28 + $0x430] sm:$0xff]  }
  0x7c   : > { %6672 = vmatprep.subr.bf16.mxu1 %v7372_v52  ;;  %v7434_v52 = vld [vmem:[%s7936_s28 + $0x4b0] sm:$0xff]  }
  0x7d   : > { %4758 = vmatmul.mubr.bf16.vlgmr.msra.gmra.mrb[8].mxu0 %v5948_v47  ;;  %v7429_v47 = vld [vmem:[%s7936_s28 + $0x428] sm:$0xff]  }
  0x7e   : > { %4798 = vmatmul.mubr.bf16.vlgmr.msra.gmra.mrb[8].mxu1 %v5950_v49  ;;  %6651 = vmatpush3.bf16.msra.mxu0 %v7373_v53  ;;  %v7431_v49 = vld [vmem:[%s7936_s28 + $0x470] sm:$0xff]   ;;  %v7435_v53 = vld [vmem:[%s7936_s28 + $0x478] sm:$0xff]  }
  0x7f   : > { %6673 = vmatpush3.bf16.msra.mxu1 %v7374_v54  ;;  %6652 = vmatprep.subr.bf16.mxu0 %v7375_v55  ;;  %v7436_v54 = vld [vmem:[%s7936_s28 + $0x4f8] sm:$0xff]  }
  0x80   : > { %6674 = vmatprep.subr.bf16.mxu1 %v7376_v56  ;;  %4837 = vmatprep.mubr.bf16.mxu0 %v5953_v22  ;;  %v7437_v55 = vld [vmem:[%s7936_s28 + $0x438] sm:$0xff]   ;;  %v7466_v22 = vld [vmem:[%s7936_s28 + $0x5a8] sm:$0xff]  }
  0x81   : > { %4877 = vmatprep.mubr.bf16.mxu1 %v5955_v25  ;;  %v7438_v56 = vld [vmem:[%s7936_s28 + $0x4b8] sm:$0xff]   ;;  %v7469_v25 = vld [vmem:[%s7936_s28 + $0x530] sm:$0xff]  }
  0x82   : > { %6653 = vmatpush3.bf16.msra.mxu0 %v7377_v57  ;;  %v221_v57 = vld [vmem:[%s7931_s24 + $0x40] sm:$0xff] }
  0x83   : > { %6675 = vmatpush3.bf16.msra.mxu1 %v7378_v58  ;;  %6654 = vmatprep.subr.bf16.mxu0 %v7379_v59  ;;  %v5956_v58 = vcombine.low %v221_v57, %v221_v57  ;;  %v5957_v59 = vcombine.high %v221_v57, %v221_v57  ;;  %v7499_v57 = vld [vmem:[%s7936_s28 + $0x668] sm:$0xff]  }
  0x84   : > { %6676 = vmatprep.subr.bf16.mxu1 %v7380_v60  ;;  %v222_v60 = vld [vmem:[%s7931_s24 + $0x48] sm:$0xff] }
  0x86   : > { %6655 = vmatpush3.bf16.msra.mxu0 %v7381_v61  ;;  %v5958_v61 = vcombine.low %v222_v60, %v222_v60 }
  0x87   : > { %6677 = vmatpush3.bf16.msra.mxu1 %v7382_v62  ;;  %6656 = vmatprep.subr.bf16.mxu0 %v7383_v63  ;;  %v5959_v62 = vcombine.high %v222_v60, %v222_v60  ;;  %v7443_v63 = vld [vmem:[%s7936_s28 + $0x540] sm:$0xff]   ;;  %v7502_v60 = vld [vmem:[%s7936_s28 + $0x6a8] sm:$0xff]  }
  0x88   : > { %6678 = vmatprep.subr.bf16.mxu1 %v7384_v0  ;;  %v7444_v0 = vld [vmem:[%s7936_s28 + $0x5c0] sm:$0xff]  }
  0x8a   : > { %6657 = vmatpush3.bf16.msra.mxu0 %v7385_v1  ;;  %v7445_v1 = vld [vmem:[%s7936_s28 + $0x500] sm:$0xff]  }
  0x8b   : > { %6679 = vmatpush3.bf16.msra.mxu1 %v7386_v2  ;;  %6658 = vmatprep.subr.bf16.mxu0 %v7387_v3  ;;  %v7446_v2 = vld [vmem:[%s7936_s28 + $0x580] sm:$0xff]   ;;  %v7447_v3 = vld [vmem:[%s7936_s28 + $0x548] sm:$0xff]  }
  0x8c   : > { %6680 = vmatprep.subr.bf16.mxu1 %v7388_v4  ;;  %v7448_v4 = vld [vmem:[%s7936_s28 + $0x5c8] sm:$0xff]  }
  0x8e   : > { %6659 = vmatpush3.bf16.msra.mxu0 %v7389_v5  ;;  %v7449_v5 = vld [vmem:[%s7936_s28 + $0x508] sm:$0xff]  }
  0x8f   : > { %6681 = vmatpush3.bf16.msra.mxu1 %v7390_v6  ;;  %6660 = vmatprep.subr.bf16.mxu0 %v7391_v7  ;;  %v7450_v6 = vld [vmem:[%s7936_s28 + $0x588] sm:$0xff]   ;;  %v7451_v7 = vld [vmem:[%s7936_s28 + $0x550] sm:$0xff]  }
  0x90   : > { %6682 = vmatprep.subr.bf16.mxu1 %v7392_v8  ;;  %v7452_v8 = vld [vmem:[%s7936_s28 + $0x5d0] sm:$0xff]  }
  0x92   : > { %6661 = vmatpush3.bf16.msra.mxu0 %v7393_v9  ;;  %v7453_v9 = vld [vmem:[%s7936_s28 + $0x510] sm:$0xff]  }
  0x93   : > { %6683 = vmatpush3.bf16.msra.mxu1 %v7394_v10  ;;  %6662 = vmatprep.subr.bf16.mxu0 %v7395_v11  ;;  %v7454_v10 = vld [vmem:[%s7936_s28 + $0x590] sm:$0xff]   ;;  %v7455_v11 = vld [vmem:[%s7936_s28 + $0x558] sm:$0xff]  }
  0x94   : > { %6684 = vmatprep.subr.bf16.mxu1 %v7396_v12  ;;  %v7456_v12 = vld [vmem:[%s7936_s28 + $0x5d8] sm:$0xff]  }
  0x96   : > { %6663 = vmatpush3.bf16.msra.mxu0 %v7397_v13  ;;  %v7457_v13 = vld [vmem:[%s7936_s28 + $0x518] sm:$0xff]  }
  0x97   : > { %6685 = vmatpush3.bf16.msra.mxu1 %v7398_v14  ;;  %6664 = vmatprep.subr.bf16.mxu0 %v7399_v15  ;;  %v7458_v14 = vld [vmem:[%s7936_s28 + $0x598] sm:$0xff]   ;;  %v7459_v15 = vld [vmem:[%s7936_s28 + $0x560] sm:$0xff]  }
  0x98   : > { %6686 = vmatprep.subr.bf16.mxu1 %v7400_v16  ;;  %v7460_v16 = vld [vmem:[%s7936_s28 + $0x5e0] sm:$0xff]  }
  0x9a   : > { %6665 = vmatpush3.bf16.msra.mxu0 %v7401_v17  ;;  %v7461_v17 = vld [vmem:[%s7936_s28 + $0x520] sm:$0xff]  }
  0x9b   : > { %6687 = vmatpush3.bf16.msra.mxu1 %v7402_v18  ;;  %6694 = vmatprep.subr.bf16.mxu0 %v7407_v24  ;;  %v7462_v18 = vld [vmem:[%s7936_s28 + $0x5a0] sm:$0xff]   ;;  %v7468_v24 = vld [vmem:[%s7936_s28 + $0x5f0] sm:$0xff]  }
  0x9c   : > { %6716 = vmatprep.subr.bf16.mxu1 %v7408_v26  ;;  %v7470_v26 = vld [vmem:[%s7936_s28 + $0x5b0] sm:$0xff]  }
  0x9d   : > { %4838 = vmatmul.mubr.bf16.vlgmr.msra.gmra.mrb[12].mxu0 %v5952_v21  ;;  %v7465_v21 = vld [vmem:[%s7936_s28 + $0x528] sm:$0xff]  }
  0x9e   : > { %4878 = vmatmul.mubr.bf16.vlgmr.msra.gmra.mrb[12].mxu1 %v5954_v23  ;;  %6695 = vmatpush3.bf16.msra.mxu0 %v7409_v27  ;;  %v7467_v23 = vld [vmem:[%s7936_s28 + $0x570] sm:$0xff]   ;;  %v7471_v27 = vld [vmem:[%s7936_s28 + $0x578] sm:$0xff]  }
  0x9f   : > { %6717 = vmatpush3.bf16.msra.mxu1 %v7410_v28  ;;  %6696 = vmatprep.subr.bf16.mxu0 %v7411_v29  ;;  %v7472_v28 = vld [vmem:[%s7936_s28 + $0x5f8] sm:$0xff]  }
  0xa0   : > { %6718 = vmatprep.subr.bf16.mxu1 %v7412_v30  ;;  %4917 = vmatprep.mubr.bf16.mxu0 %v5957_v59  ;;  %v7473_v29 = vld [vmem:[%s7936_s28 + $0x538] sm:$0xff]   ;;  %v7501_v59 = vld [vmem:[%s7936_s28 + $0x628] sm:$0xff]  }
  0xa1   : > { %4957 = vmatprep.mubr.bf16.mxu1 %v5959_v62  ;;  %v7474_v30 = vld [vmem:[%s7936_s28 + $0x5b8] sm:$0xff]   ;;  %v7504_v62 = vld [vmem:[%s7936_s28 + $0x6f0] sm:$0xff]  }
  0xa2   : > { %6697 = vmatpush3.bf16.msra.mxu0 %v7413_v31  ;;  %v223_v31 = vld [vmem:[%s7931_s24 + $0x50] sm:$0xff] }
  0xa3   : > { %6719 = vmatpush3.bf16.msra.mxu1 %v7414_v32  ;;  %6698 = vmatprep.subr.bf16.mxu0 %v7415_v33  ;;  %v224_v32 = vld [vmem:[%s7931_s24 + $0x58] sm:$0xff]  ;;  %v5960_v33 = vcombine.low %v223_v31, %v223_v31 }
  0xa4   : > { %6720 = vmatprep.subr.bf16.mxu1 %v7416_v34  ;;  %v5961_v34 = vcombine.high %v223_v31, %v223_v31  ;;  %v7534_v31 = vld [vmem:[%s7936_s28 + $0x7a0] sm:$0xff]  }
  0xa6   : > { %6699 = vmatpush3.bf16.msra.mxu0 %v7417_v35  ;;  %v5962_v35 = vcombine.low %v224_v32, %v224_v32 }
  0xa7   : > { %6721 = vmatpush3.bf16.msra.mxu1 %v7418_v36  ;;  %6700 = vmatprep.subr.bf16.mxu0 %v7419_v37  ;;  %v5963_v36 = vcombine.high %v224_v32, %v224_v32  ;;  %v7479_v37 = vld [vmem:[%s7936_s28 + $0x640] sm:$0xff]  }
  0xa8   : > { %6722 = vmatprep.subr.bf16.mxu1 %v7420_v38  ;;  %v7480_v38 = vld [vmem:[%s7936_s28 + $0x6c0] sm:$0xff]  }
  0xaa   : > { %6701 = vmatpush3.bf16.msra.mxu0 %v7421_v39  ;;  %v7481_v39 = vld [vmem:[%s7936_s28 + $0x600] sm:$0xff]  }
  0xab   : > { %6723 = vmatpush3.bf16.msra.mxu1 %v7422_v40  ;;  %6702 = vmatprep.subr.bf16.mxu0 %v7423_v41  ;;  %v7482_v40 = vld [vmem:[%s7936_s28 + $0x680] sm:$0xff]   ;;  %v7483_v41 = vld [vmem:[%s7936_s28 + $0x648] sm:$0xff]  }
  0xac   : > { %6724 = vmatprep.subr.bf16.mxu1 %v7424_v42  ;;  %v7484_v42 = vld [vmem:[%s7936_s28 + $0x6c8] sm:$0xff]  }
  0xae   : > { %6703 = vmatpush3.bf16.msra.mxu0 %v7425_v43  ;;  %v7485_v43 = vld [vmem:[%s7936_s28 + $0x608] sm:$0xff]  }
  0xaf   : > { %6725 = vmatpush3.bf16.msra.mxu1 %v7426_v44  ;;  %6704 = vmatprep.subr.bf16.mxu0 %v7427_v45  ;;  %v7486_v44 = vld [vmem:[%s7936_s28 + $0x688] sm:$0xff]   ;;  %v7487_v45 = vld [vmem:[%s7936_s28 + $0x650] sm:$0xff]  }
  0xb0   : > { %6726 = vmatprep.subr.bf16.mxu1 %v7428_v46  ;;  %v7488_v46 = vld [vmem:[%s7936_s28 + $0x6d0] sm:$0xff]  }
  0xb2   : > { %6705 = vmatpush3.bf16.msra.mxu0 %v7429_v47  ;;  %v7489_v47 = vld [vmem:[%s7936_s28 + $0x610] sm:$0xff]  }
  0xb3   : > { %6727 = vmatpush3.bf16.msra.mxu1 %v7430_v48  ;;  %6706 = vmatprep.subr.bf16.mxu0 %v7431_v49  ;;  %v7490_v48 = vld [vmem:[%s7936_s28 + $0x690] sm:$0xff]   ;;  %v7491_v49 = vld [vmem:[%s7936_s28 + $0x658] sm:$0xff]  }
  0xb4   : > { %6728 = vmatprep.subr.bf16.mxu1 %v7432_v50  ;;  %v7492_v50 = vld [vmem:[%s7936_s28 + $0x6d8] sm:$0xff]  }
  0xb6   : > { %6707 = vmatpush3.bf16.msra.mxu0 %v7433_v51  ;;  %v7493_v51 = vld [vmem:[%s7936_s28 + $0x618] sm:$0xff]  }
  0xb7   : > { %6729 = vmatpush3.bf16.msra.mxu1 %v7434_v52  ;;  %6708 = vmatprep.subr.bf16.mxu0 %v7435_v53  ;;  %v7494_v52 = vld [vmem:[%s7936_s28 + $0x698] sm:$0xff]   ;;  %v7495_v53 = vld [vmem:[%s7936_s28 + $0x660] sm:$0xff]  }
  0xb8   : > { %6730 = vmatprep.subr.bf16.mxu1 %v7436_v54  ;;  %v7496_v54 = vld [vmem:[%s7936_s28 + $0x6e0] sm:$0xff]  }
  0xba   : > { %6709 = vmatpush3.bf16.msra.mxu0 %v7437_v55  ;;  %v7497_v55 = vld [vmem:[%s7936_s28 + $0x620] sm:$0xff]  }
  0xbb   : > { %6731 = vmatpush3.bf16.msra.mxu1 %v7438_v56  ;;  %6738 = vmatprep.subr.bf16.mxu0 %v7443_v63  ;;  %v7498_v56 = vld [vmem:[%s7936_s28 + $0x6a0] sm:$0xff]   ;;  %v7505_v63 = vld [vmem:[%s7936_s28 + $0x630] sm:$0xff]  }
  0xbc   : > { %6760 = vmatprep.subr.bf16.mxu1 %v7444_v0  ;;  %v7506_v0 = vld [vmem:[%s7936_s28 + $0x6b0] sm:$0xff]  }
  0xbd   : > { %4918 = vmatmul.mubr.bf16.vlgmr.msra.gmra.mrb[16].mxu0 %v5956_v58  ;;  %v7500_v58 = vld [vmem:[%s7936_s28 + $0x6e8] sm:$0xff]  }
  0xbe   : > { %4958 = vmatmul.mubr.bf16.vlgmr.msra.gmra.mrb[16].mxu1 %v5958_v61  ;;  %6739 = vmatpush3.bf16.msra.mxu0 %v7445_v1  ;;  %v7503_v61 = vld [vmem:[%s7936_s28 + $0x670] sm:$0xff]   ;;  %v7507_v1 = vld [vmem:[%s7936_s28 + $0x678] sm:$0xff]  }
  0xbf   : > { %6761 = vmatpush3.bf16.msra.mxu1 %v7446_v2  ;;  %6740 = vmatprep.subr.bf16.mxu0 %v7447_v3  ;;  %v7508_v2 = vld [vmem:[%s7936_s28 + $0x6f8] sm:$0xff]  }
  0xc0   : > { %6762 = vmatprep.subr.bf16.mxu1 %v7448_v4  ;;  %4997 = vmatprep.mubr.bf16.mxu0 %v5961_v34  ;;  %v7509_v3 = vld [vmem:[%s7936_s28 + $0x638] sm:$0xff]   ;;  %v7535_v34 = vld [vmem:[%s7936_s28 + $0x768] sm:$0xff]  }
  0xc1   : > { %5037 = vmatprep.mubr.bf16.mxu1 %v5963_v36  ;;  %v7510_v4 = vld [vmem:[%s7936_s28 + $0x6b8] sm:$0xff]  }
  0xc2   : > { %6741 = vmatpush3.bf16.msra.mxu0 %v7449_v5  ;;  %v225_v5 = vld [vmem:[%s7931_s24 + $0x60] sm:$0xff] }
  0xc3   : > { %6763 = vmatpush3.bf16.msra.mxu1 %v7450_v6  ;;  %6742 = vmatprep.subr.bf16.mxu0 %v7451_v7  ;;  %v226_v6 = vld [vmem:[%s7931_s24 + $0x68] sm:$0xff]  ;;  %v5964_v7 = vcombine.low %v225_v5, %v225_v5 }
  0xc4   : > { %6764 = vmatprep.subr.bf16.mxu1 %v7452_v8  ;;  %v5965_v8 = vcombine.high %v225_v5, %v225_v5  ;;  %v7560_v5 = vld [vmem:[%s7936_s28 + $0x8d0] sm:$0xff]  }
  0xc6   : > { %6743 = vmatpush3.bf16.msra.mxu0 %v7453_v9  ;;  %v5966_v9 = vcombine.low %v226_v6, %v226_v6 }
  0xc7   : > { %6765 = vmatpush3.bf16.msra.mxu1 %v7454_v10  ;;  %6744 = vmatprep.subr.bf16.mxu0 %v7455_v11  ;;  %v7515_v10 = vld [vmem:[%s7936_s28 + $0x740] sm:$0xff]   ;;  %v5967_v11 = vcombine.high %v226_v6, %v226_v6  ;;  %v7561_v6 = vld [vmem:[%s7936_s28 + $0x810] sm:$0xff]  }
  0xc8   : > { %6766 = vmatprep.subr.bf16.mxu1 %v7456_v12  ;;  %v7516_v12 = vld [vmem:[%s7936_s28 + $0x7c0] sm:$0xff]  }
  0xca   : > { %6745 = vmatpush3.bf16.msra.mxu0 %v7457_v13  ;;  %v7517_v13 = vld [vmem:[%s7936_s28 + $0x700] sm:$0xff]  }
  0xcb   : > { %6767 = vmatpush3.bf16.msra.mxu1 %v7458_v14  ;;  %6746 = vmatprep.subr.bf16.mxu0 %v7459_v15  ;;  %v7518_v14 = vld [vmem:[%s7936_s28 + $0x780] sm:$0xff]   ;;  %v7519_v15 = vld [vmem:[%s7936_s28 + $0x748] sm:$0xff]  }
  0xcc   : > { %6768 = vmatprep.subr.bf16.mxu1 %v7460_v16  ;;  %v7520_v16 = vld [vmem:[%s7936_s28 + $0x7c8] sm:$0xff]  }
  0xce   : > { %6747 = vmatpush3.bf16.msra.mxu0 %v7461_v17  ;;  %v7521_v17 = vld [vmem:[%s7936_s28 + $0x708] sm:$0xff]  }
  0xcf   : > { %6769 = vmatpush3.bf16.msra.mxu1 %v7462_v18  ;;  %6748 = vmatprep.subr.bf16.mxu0 %v7463_v19  ;;  %v7522_v18 = vld [vmem:[%s7936_s28 + $0x788] sm:$0xff]   ;;  %v7523_v19 = vld [vmem:[%s7936_s28 + $0x750] sm:$0xff]  }
  0xd0   : > { %6770 = vmatprep.subr.bf16.mxu1 %v7464_v20  ;;  %v7524_v20 = vld [vmem:[%s7936_s28 + $0x7d0] sm:$0xff]  }
  0xd2   : > { %6749 = vmatpush3.bf16.msra.mxu0 %v7465_v21  ;;  %v7525_v21 = vld [vmem:[%s7936_s28 + $0x710] sm:$0xff]  }
  0xd3   : > { %6771 = vmatpush3.bf16.msra.mxu1 %v7466_v22  ;;  %6750 = vmatprep.subr.bf16.mxu0 %v7467_v23  ;;  %v7526_v22 = vld [vmem:[%s7936_s28 + $0x790] sm:$0xff]   ;;  %v7527_v23 = vld [vmem:[%s7936_s28 + $0x758] sm:$0xff]  }
  0xd4   : > { %6772 = vmatprep.subr.bf16.mxu1 %v7468_v24  ;;  %v7528_v24 = vld [vmem:[%s7936_s28 + $0x7d8] sm:$0xff]  }
  0xd6   : > { %6751 = vmatpush3.bf16.msra.mxu0 %v7469_v25  ;;  %v7529_v25 = vld [vmem:[%s7936_s28 + $0x718] sm:$0xff]  }
  0xd7   : > { %6773 = vmatpush3.bf16.msra.mxu1 %v7470_v26  ;;  %6752 = vmatprep.subr.bf16.mxu0 %v7471_v27  ;;  %v7530_v26 = vld [vmem:[%s7936_s28 + $0x798] sm:$0xff]   ;;  %v7531_v27 = vld [vmem:[%s7936_s28 + $0x760] sm:$0xff]  }
  0xd8   : > { %6774 = vmatprep.subr.bf16.mxu1 %v7472_v28  ;;  %v7532_v28 = vld [vmem:[%s7936_s28 + $0x7e0] sm:$0xff]  }
  0xda   : > { %6753 = vmatpush3.bf16.msra.mxu0 %v7473_v29  ;;  %v7533_v29 = vld [vmem:[%s7936_s28 + $0x720] sm:$0xff]  }
  0xdb   : > { %6775 = vmatpush3.bf16.msra.mxu1 %v7474_v30  ;;  %6782 = vmatprep.subr.bf16.mxu0 %v7479_v37  ;;  %v7536_v37 = vld [vmem:[%s7936_s28 + $0x7e8] sm:$0xff]  }
  0xdc   : > { %6804 = vmatprep.subr.bf16.mxu1 %v7480_v38 }
  0xdd   : > { %4998 = vmatmul.mubr.bf16.vlgmr.msra.gmra.mrb[20].mxu0 %v5960_v33 }
  0xde   : > { %5038 = vmatmul.mubr.bf16.vlgmr.msra.gmra.mrb[20].mxu1 %v5962_v35  ;;  %6783 = vmatpush3.bf16.msra.mxu0 %v7481_v39 }
  0xdf   : > { %6805 = vmatpush3.bf16.msra.mxu1 %v7482_v40  ;;  %6784 = vmatprep.subr.bf16.mxu0 %v7483_v41  ;;  %v7537_v41 = vld [vmem:[%s7936_s28 + $0x728] sm:$0xff]  }
  0xe0   : > { %6806 = vmatprep.subr.bf16.mxu1 %v7484_v42  ;;  %5077 = vmatprep.mubr.bf16.mxu0 %v5965_v8  ;;  %v7563_v8 = vld [vmem:[%s7936_s28 + $0x858] sm:$0xff]  }
  0xe1   : > { %5117 = vmatprep.mubr.bf16.mxu1 %v5967_v11  ;;  %v7566_v11 = vld [vmem:[%s7936_s28 + $0x898] sm:$0xff]  }
  0xe2   : > { %6785 = vmatpush3.bf16.msra.mxu0 %v7485_v43 }
  0xe3   : > { %6807 = vmatpush3.bf16.msra.mxu1 %v7486_v44  ;;  %6786 = vmatprep.subr.bf16.mxu0 %v7487_v45  ;;  %v7538_v44 = vld [vmem:[%s7936_s28 + $0x7a8] sm:$0xff]  }
  0xe4   : > { %6808 = vmatprep.subr.bf16.mxu1 %v7488_v46  ;;  %v7539_v46 = vld [vmem:[%s7936_s28 + $0x770] sm:$0xff]  }
  0xe6   : > { %6787 = vmatpush3.bf16.msra.mxu0 %v7489_v47  ;;  %v7540_v47 = vld [vmem:[%s7936_s28 + $0x7f0] sm:$0xff]  }
  0xe7   : > { %6809 = vmatpush3.bf16.msra.mxu1 %v7490_v48  ;;  %6788 = vmatprep.subr.bf16.mxu0 %v7491_v49  ;;  %v7541_v48 = vld [vmem:[%s7936_s28 + $0x730] sm:$0xff]  }
  0xe8   : > { %6810 = vmatprep.subr.bf16.mxu1 %v7492_v50  ;;  %v7542_v49 = vld [vmem:[%s7936_s28 + $0x7b0] sm:$0xff]   ;;  %v7543_v50 = vld [vmem:[%s7936_s28 + $0x778] sm:$0xff]  }
  0xea   : > { %6789 = vmatpush3.bf16.msra.mxu0 %v7493_v51  ;;  %v7544_v51 = vld [vmem:[%s7936_s28 + $0x7f8] sm:$0xff]  }
  0xeb   : > { %6811 = vmatpush3.bf16.msra.mxu1 %v7494_v52  ;;  %6790 = vmatprep.subr.bf16.mxu0 %v7495_v53  ;;  %v7545_v52 = vld [vmem:[%s7936_s28 + $0x738] sm:$0xff]  }
  0xec   : > { %6812 = vmatprep.subr.bf16.mxu1 %v7496_v54  ;;  %v7546_v53 = vld [vmem:[%s7936_s28 + $0x7b8] sm:$0xff]   ;;  %v227_v54 = vld [vmem:[%s7931_s24 + $0x70] sm:$0xff] }
  0xee   : > { %6791 = vmatpush3.bf16.msra.mxu0 %v7497_v55  ;;  %v228_v55 = vld [vmem:[%s7931_s24 + $0x78] sm:$0xff] }
  0xef   : > { %6813 = vmatpush3.bf16.msra.mxu1 %v7498_v56  ;;  %6792 = vmatprep.subr.bf16.mxu0 %v7499_v57  ;;  %v5968_v56 = vcombine.low %v227_v54, %v227_v54  ;;  %v5969_v57 = vcombine.high %v227_v54, %v227_v54  ;;  %v7595_v54 = vld [vmem:[%s7936_s28 + $0x950] sm:$0xff]  }
  0xf0   : > { %6814 = vmatprep.subr.bf16.mxu1 %v7500_v58  ;;  %v5970_v58 = vcombine.low %v228_v55, %v228_v55 }
  0xf2   : > { %6793 = vmatpush3.bf16.msra.mxu0 %v7501_v59  ;;  %v7551_v59 = vld [vmem:[%s7936_s28 + $0x840] sm:$0xff]  }
  0xf3   : > { %6815 = vmatpush3.bf16.msra.mxu1 %v7502_v60  ;;  %6794 = vmatprep.subr.bf16.mxu0 %v7503_v61  ;;  %v5971_v60 = vcombine.high %v228_v55, %v228_v55  ;;  %v7552_v61 = vld [vmem:[%s7936_s28 + $0x8c0] sm:$0xff]   ;;  %v7596_v55 = vld [vmem:[%s7936_s28 + $0x9d0] sm:$0xff]  }
  0xf4   : > { %6816 = vmatprep.subr.bf16.mxu1 %v7504_v62  ;;  %v7553_v62 = vld [vmem:[%s7936_s28 + $0x800] sm:$0xff]  }
  0xf6   : > { %6795 = vmatpush3.bf16.msra.mxu0 %v7505_v63  ;;  %v7554_v63 = vld [vmem:[%s7936_s28 + $0x880] sm:$0xff]  }
  0xf7   : > { %6817 = vmatpush3.bf16.msra.mxu1 %v7506_v0  ;;  %6796 = vmatprep.subr.bf16.mxu0 %v7507_v1  ;;  %v7555_v0 = vld [vmem:[%s7936_s28 + $0x848] sm:$0xff]  }
  0xf8   : > { %6818 = vmatprep.subr.bf16.mxu1 %v7508_v2  ;;  %v7556_v1 = vld [vmem:[%s7936_s28 + $0x8c8] sm:$0xff]  }
  0xf9   : > { %v7557_v2 = vld [vmem:[%s7936_s28 + $0x808] sm:$0xff]  }
  0xfa   : > { %6797 = vmatpush3.bf16.msra.mxu0 %v7509_v3  ;;  %v7558_v3 = vld [vmem:[%s7936_s28 + $0x888] sm:$0xff]  }
  0xfb   : > { %6819 = vmatpush3.bf16.msra.mxu1 %v7510_v4  ;;  %6826 = vmatprep.subr.bf16.mxu0 %v7515_v10  ;;  %v7559_v4 = vld [vmem:[%s7936_s28 + $0x850] sm:$0xff]   ;;  %v7565_v10 = vld [vmem:[%s7936_s28 + $0x818] sm:$0xff]  }
  0xfc   : > { %6848 = vmatprep.subr.bf16.mxu1 %v7516_v12  ;;  %v7567_v12 = vld [vmem:[%s7936_s28 + $0x860] sm:$0xff]  }
  0xfd   : > { %5078 = vmatmul.mubr.bf16.vlgmr.msra.gmra.mrb[24].mxu0 %v5964_v7  ;;  %v7562_v7 = vld [vmem:[%s7936_s28 + $0x890] sm:$0xff]  }
  0xfe   : > { %5118 = vmatmul.mubr.bf16.vlgmr.msra.gmra.mrb[24].mxu1 %v5966_v9  ;;  %6827 = vmatpush3.bf16.msra.mxu0 %v7517_v13  ;;  %v7564_v9 = vld [vmem:[%s7936_s28 + $0x8d8] sm:$0xff]   ;;  %v7568_v13 = vld [vmem:[%s7936_s28 + $0x8e0] sm:$0xff]  }
  0xff   : > { %6849 = vmatpush3.bf16.msra.mxu1 %v7518_v14  ;;  %6828 = vmatprep.subr.bf16.mxu0 %v7519_v15  ;;  %v7569_v14 = vld [vmem:[%s7936_s28 + $0x820] sm:$0xff]  }
 0x100   : > { %6850 = vmatprep.subr.bf16.mxu1 %v7520_v16  ;;  %5157 = vmatprep.mubr.bf16.mxu0 %v5969_v57  ;;  %v7570_v16 = vld [vmem:[%s7936_s28 + $0x8a0] sm:$0xff]   ;;  %v7598_v57 = vld [vmem:[%s7936_s28 + $0x990] sm:$0xff]  }
 0x101   : > { %5197 = vmatprep.mubr.bf16.mxu1 %v5971_v60  ;;  %v7601_v60 = vld [vmem:[%s7936_s28 + $0x918] sm:$0xff]  }
 0x102   : > { %6829 = vmatpush3.bf16.msra.mxu0 %v7521_v17 }
 0x103   : > { %6851 = vmatpush3.bf16.msra.mxu1 %v7522_v18  ;;  %6830 = vmatprep.subr.bf16.mxu0 %v7523_v19  ;;  %v7571_v19 = vld [vmem:[%s7936_s28 + $0x868] sm:$0xff]  }
 0x104   : > { %6852 = vmatprep.subr.bf16.mxu1 %v7524_v20 }
 0x106   : > { %6831 = vmatpush3.bf16.msra.mxu0 %v7525_v21 }
 0x107   : > { %6853 = vmatpush3.bf16.msra.mxu1 %v7526_v22  ;;  %6832 = vmatprep.subr.bf16.mxu0 %v7527_v23  ;;  %v7572_v22 = vld [vmem:[%s7936_s28 + $0x8e8] sm:$0xff]  }
 0x108   : > { %6854 = vmatprep.subr.bf16.mxu1 %v7528_v24 }
 0x10a   : > { %6833 = vmatpush3.bf16.msra.mxu0 %v7529_v25 }
 0x10b   : > { %6855 = vmatpush3.bf16.msra.mxu1 %v7530_v26  ;;  %6834 = vmatprep.subr.bf16.mxu0 %v7531_v27  ;;  %v7573_v27 = vld [vmem:[%s7936_s28 + $0x828] sm:$0xff]  }
 0x10c   : > { %6856 = vmatprep.subr.bf16.mxu1 %v7532_v28 }
 0x10e   : > { %6835 = vmatpush3.bf16.msra.mxu0 %v7533_v29  ;;  %v7574_v29 = vld [vmem:[%s7936_s28 + $0x8a8] sm:$0xff]  }
 0x10f   : > { %6857 = vmatpush3.bf16.msra.mxu1 %v7534_v31  ;;  %6836 = vmatprep.subr.bf16.mxu0 %v7535_v34  ;;  %v7577_v34 = vld [vmem:[%s7936_s28 + $0x830] sm:$0xff]  }
 0x110   : > { %v6534_v30 = vpop.f32.mrb[0].mxu0  ;;  %6858 = vmatprep.subr.bf16.mxu1 %v7536_v37  ;;  %v7580_v37 = vld [vmem:[%s7936_s28 + $0x8f8] sm:$0xff]  }
 0x111   : > { %v6556_v32 = vpop.f32.mrb[0].mxu1  ;;  %v6535_v33 = vpop.f32.mrb[1].mxu0 }
 0x112   : > { %v6536_v35 = vadd.f32 %v6535_v33, %v6534_v30  ;;  %v6557_v36 = vpop.f32.mrb[1].mxu1  ;;  %v6537_v39 = vpop.f32.mrb[2].mxu0  ;;  %6837 = vmatpush3.bf16.msra.mxu0 %v7537_v41  ;;  %v7576_v33 = vld [vmem:[%s7936_s28 + $0x8f0] sm:$0xff]   ;;  %v230_v41 = vld [vmem:[%s7931_s24 + $0x88] sm:$0xff] }
 0x113   : > { %v6558_v38 = vadd.f32 %v6557_v36, %v6556_v32  ;;  %v6559_v40 = vpop.f32.mrb[2].mxu1  ;;  %v6538_v42 = vpop.f32.mrb[3].mxu0  ;;  %6859 = vmatpush3.bf16.msra.mxu1 %v7538_v44  ;;  %6838 = vmatprep.subr.bf16.mxu0 %v7539_v46  ;;  %v7575_v32 = vld [vmem:[%s7936_s28 + $0x870] sm:$0xff]   ;;  %v7579_v36 = vld [vmem:[%s7936_s28 + $0x878] sm:$0xff]   ;;  %v5974_v44 = vcombine.low %v230_v41, %v230_v41  ;;  %v5975_v46 = vcombine.high %v230_v41, %v230_v41 }
 0x114   : > { %v6560_v45 = vpop.f32.mrb[3].mxu1  ;;  %6860 = vmatprep.subr.bf16.mxu1 %v7540_v47  ;;  %v7582_v39 = vld [vmem:[%s7936_s28 + $0x8b8] sm:$0xff]   ;;  %v229_v40 = vld [vmem:[%s7931_s24 + $0x80] sm:$0xff]  ;;  %v7632_v41 = vld [vmem:[%s7936_s28 + $0xad0] sm:$0xff]  }
 0x115   : > { %v8206_v43 = vadd.f32 %v6558_v38, %v6536_v35  ;;  %v7578_v35 = vld [vmem:[%s7936_s28 + $0x8b0] sm:$0xff]   ;;  %v7581_v38 = vld [vmem:[%s7936_s28 + $0x838] sm:$0xff]   ;;  %v5972_v42 = vcombine.low %v229_v40, %v229_v40  ;;  %v7587_v45 = vld [vmem:[%s7936_s28 + $0x940] sm:$0xff]  }
 0x116   : > { %6839 = vmatpush3.bf16.msra.mxu0 %v7541_v48  ;;  %v7588_v47 = vld [vmem:[%s7936_s28 + $0x9c0] sm:$0xff]  }
 0x117   : > { %6861 = vmatpush3.bf16.msra.mxu1 %v7542_v49  ;;  %6840 = vmatprep.subr.bf16.mxu0 %v7543_v50  ;;  %v7589_v48 = vld [vmem:[%s7936_s28 + $0x900] sm:$0xff]   ;;  %v7591_v50 = vld [vmem:[%s7936_s28 + $0x948] sm:$0xff]  }
 0x118   : > { %6862 = vmatprep.subr.bf16.mxu1 %v7544_v51  ;;  %v7590_v49 = vld [vmem:[%s7936_s28 + $0x980] sm:$0xff]   ;;  %v7592_v51 = vld [vmem:[%s7936_s28 + $0x9c8] sm:$0xff]  }
 0x11a   : > { %6841 = vmatpush3.bf16.msra.mxu0 %v7545_v52  ;;  %v7593_v52 = vld [vmem:[%s7936_s28 + $0x908] sm:$0xff]  }
 0x11b   : > { %6863 = vmatpush3.bf16.msra.mxu1 %v7546_v53  ;;  %6870 = vmatprep.subr.bf16.mxu0 %v7551_v59  ;;  %v7594_v53 = vld [vmem:[%s7936_s28 + $0x988] sm:$0xff]   ;;  %v7600_v59 = vld [vmem:[%s7936_s28 + $0x9d8] sm:$0xff]  }
 0x11c   : > { %6892 = vmatprep.subr.bf16.mxu1 %v7552_v61  ;;  %v7602_v61 = vld [vmem:[%s7936_s28 + $0x998] sm:$0xff]  }
 0x11d   : > { %5158 = vmatmul.mubr.bf16.vlgmr.msra.gmra.mrb[28].mxu0 %v5968_v56  ;;  %v7597_v56 = vld [vmem:[%s7936_s28 + $0x910] sm:$0xff]  }
 0x11e   : > { %5198 = vmatmul.mubr.bf16.vlgmr.msra.gmra.mrb[28].mxu1 %v5970_v58  ;;  %6871 = vmatpush3.bf16.msra.mxu0 %v7553_v62  ;;  %v7599_v58 = vld [vmem:[%s7936_s28 + $0x958] sm:$0xff]   ;;  %v7603_v62 = vld [vmem:[%s7936_s28 + $0x960] sm:$0xff]  }
 0x11f   : > { %6893 = vmatpush3.bf16.msra.mxu1 %v7554_v63  ;;  %6872 = vmatprep.subr.bf16.mxu0 %v7555_v0  ;;  %v7604_v63 = vld [vmem:[%s7936_s28 + $0x9e0] sm:$0xff]  }
 0x120   : > { %6894 = vmatprep.subr.bf16.mxu1 %v7556_v1  ;;  %5277 = vmatprep.mubr.bf16.mxu1 %v5975_v46  ;;  %v7605_v1 = vld [vmem:[%s7936_s28 + $0x920] sm:$0xff]   ;;  %v7637_v46 = vld [vmem:[%s7936_s28 + $0xa18] sm:$0xff]  }
 0x122   : > { %6873 = vmatpush3.bf16.msra.mxu0 %v7557_v2 }
 0x123   : > { %6895 = vmatpush3.bf16.msra.mxu1 %v7558_v3  ;;  %6874 = vmatprep.subr.bf16.mxu0 %v7559_v4  ;;  %v7606_v3 = vld [vmem:[%s7936_s28 + $0x9a0] sm:$0xff]  }
 0x124   : > { %6896 = vmatprep.subr.bf16.mxu1 %v7560_v5 }
 0x126   : > { %6875 = vmatpush3.bf16.msra.mxu0 %v7561_v6  ;;  %v7607_v6 = vld [vmem:[%s7936_s28 + $0x968] sm:$0xff]  }
 0x127   : > { %6897 = vmatpush3.bf16.msra.mxu1 %v7562_v7  ;;  %6876 = vmatprep.subr.bf16.mxu0 %v7563_v8 }
 0x128   : > { %6898 = vmatprep.subr.bf16.mxu1 %v7564_v9  ;;  %v7608_v9 = vld [vmem:[%s7936_s28 + $0x9e8] sm:$0xff]  }
 0x12a   : > { %6877 = vmatpush3.bf16.msra.mxu0 %v7565_v10 }
 0x12b   : > { %6899 = vmatpush3.bf16.msra.mxu1 %v7566_v11  ;;  %6878 = vmatprep.subr.bf16.mxu0 %v7567_v12  ;;  %v7609_v12 = vld [vmem:[%s7936_s28 + $0x928] sm:$0xff]  }
 0x12c   : > { %6900 = vmatprep.subr.bf16.mxu1 %v7568_v13 }
 0x12e   : > { %6879 = vmatpush3.bf16.msra.mxu0 %v7569_v14  ;;  %v7610_v14 = vld [vmem:[%s7936_s28 + $0x9a8] sm:$0xff]  }
 0x12f   : > { %6901 = vmatpush3.bf16.msra.mxu1 %v7570_v16  ;;  %6880 = vmatprep.subr.bf16.mxu0 %v7571_v19  ;;  %v7612_v19 = vld [vmem:[%s7936_s28 + $0x9f0] sm:$0xff]  }
 0x130   : > { %v6578_v15 = vpop.f32.mrb[4].mxu0  ;;  %6902 = vmatprep.subr.bf16.mxu1 %v7572_v22  ;;  %v7615_v22 = vld [vmem:[%s7936_s28 + $0x978] sm:$0xff]  }
 0x131   : > { %v6600_v17 = vpop.f32.mrb[4].mxu1  ;;  %v6579_v18 = vpop.f32.mrb[5].mxu0 }
 0x132   : > { %v6580_v20 = vadd.f32 %v6579_v18, %v6578_v15  ;;  %v6601_v21 = vpop.f32.mrb[5].mxu1  ;;  %v6581_v24 = vpop.f32.mrb[6].mxu0  ;;  %6881 = vmatpush3.bf16.msra.mxu0 %v7573_v27 }
 0x133   : > { %v6602_v23 = vadd.f32 %v6601_v21, %v6600_v17  ;;  %v6603_v25 = vpop.f32.mrb[6].mxu1  ;;  %v6582_v28 = vpop.f32.mrb[7].mxu0  ;;  %6903 = vmatpush3.bf16.msra.mxu1 %v7574_v29  ;;  %6882 = vmatprep.subr.bf16.mxu0 %v7575_v32  ;;  %v7611_v17 = vld [vmem:[%s7936_s28 + $0x970] sm:$0xff]   ;;  %v7617_v24 = vld [vmem:[%s7936_s28 + $0x938] sm:$0xff]   ;;  %v7623_v32 = vld [vmem:[%s7936_s28 + $0xa40] sm:$0xff]  }
 0x134   : > { %v4680_v26 = vadd.f32 %v6580_v20, %v8206_v43  ;;  %v6604_v30 = vpop.f32.mrb[7].mxu1  ;;  %6904 = vmatprep.subr.bf16.mxu1 %v7576_v33  ;;  %v5973_v43 = vcombine.high %v229_v40, %v229_v40  ;;  %v7613_v20 = vld [vmem:[%s7936_s28 + $0x930] sm:$0xff]   ;;  %v7618_v25 = vld [vmem:[%s7936_s28 + $0x9b8] sm:$0xff]   ;;  %v7624_v33 = vld [vmem:[%s7936_s28 + $0xac0] sm:$0xff]  }
 0x135   : > { %v7614_v21 = vld [vmem:[%s7936_s28 + $0x9b0] sm:$0xff]   ;;  %v232_v29 = vld [vmem:[%s7931_s24 + $0x98] sm:$0xff] }
 0x136   : > { %v8244_v31 = vadd.f32 %v6602_v23, %v4680_v26  ;;  %6883 = vmatpush3.bf16.msra.mxu0 %v7577_v34  ;;  %5237 = vmatprep.mubr.bf16.mxu0 %v5973_v43  ;;  %v7616_v23 = vld [vmem:[%s7936_s28 + $0x9f8] sm:$0xff]   ;;  %v231_v26 = vld [vmem:[%s7931_s24 + $0x90] sm:$0xff]  ;;  %v5978_v30 = vcombine.low %v232_v29, %v232_v29  ;;  %v7625_v34 = vld [vmem:[%s7936_s28 + $0xa00] sm:$0xff]  }
 0x137   : > { %6905 = vmatpush3.bf16.msra.mxu1 %v7578_v35  ;;  %6884 = vmatprep.subr.bf16.mxu0 %v7579_v36  ;;  %v5976_v27 = vcombine.low %v231_v26, %v231_v26  ;;  %v5977_v28 = vcombine.high %v231_v26, %v231_v26  ;;  %v7626_v35 = vld [vmem:[%s7936_s28 + $0xa80] sm:$0xff]   ;;  %v7627_v36 = vld [vmem:[%s7936_s28 + $0xa48] sm:$0xff]   ;;  %v7631_v40 = vld [vmem:[%s7936_s28 + $0xa50] sm:$0xff]  }
 0x138   : > { %6906 = vmatprep.subr.bf16.mxu1 %v7580_v37  ;;  %v7628_v37 = vld [vmem:[%s7936_s28 + $0xac8] sm:$0xff]   ;;  %v7634_v43 = vld [vmem:[%s7936_s28 + $0xa90] sm:$0xff]  }
 0x139   : > { %v7667_v26 = vld [vmem:[%s7936_s28 + $0xb50] sm:$0xff]  }
 0x13a   : > { %6885 = vmatpush3.bf16.msra.mxu0 %v7581_v38  ;;  %v7629_v38 = vld [vmem:[%s7936_s28 + $0xa08] sm:$0xff]  }
 0x13b   : > { %6907 = vmatpush3.bf16.msra.mxu1 %v7582_v39  ;;  %6914 = vmatprep.subr.bf16.mxu0 %v7587_v45  ;;  %v7630_v39 = vld [vmem:[%s7936_s28 + $0xa88] sm:$0xff]   ;;  %v7636_v45 = vld [vmem:[%s7936_s28 + $0xad8] sm:$0xff]  }
 0x13c   : > { %6936 = vmatprep.subr.bf16.mxu1 %v7588_v47  ;;  %v7638_v47 = vld [vmem:[%s7936_s28 + $0xa98] sm:$0xff]  }
 0x13d   : > { %5238 = vmatmul.mubr.bf16.vlgmr.msra.gmra.mrb[32].mxu0 %v5972_v42  ;;  %v7633_v42 = vld [vmem:[%s7936_s28 + $0xa10] sm:$0xff]  }
 0x13e   : > { %5278 = vmatmul.mubr.bf16.vlgmr.msra.gmra.mrb[32].mxu1 %v5974_v44  ;;  %6915 = vmatpush3.bf16.msra.mxu0 %v7589_v48  ;;  %v7635_v44 = vld [vmem:[%s7936_s28 + $0xa58] sm:$0xff]   ;;  %v7639_v48 = vld [vmem:[%s7936_s28 + $0xa60] sm:$0xff]  }
 0x13f   : > { %6937 = vmatpush3.bf16.msra.mxu1 %v7590_v49  ;;  %6916 = vmatprep.subr.bf16.mxu0 %v7591_v50  ;;  %v7640_v49 = vld [vmem:[%s7936_s28 + $0xae0] sm:$0xff]  }
 0x140   : > { %6938 = vmatprep.subr.bf16.mxu1 %v7592_v51  ;;  %5317 = vmatprep.mubr.bf16.mxu0 %v5977_v28  ;;  %v7641_v51 = vld [vmem:[%s7936_s28 + $0xa20] sm:$0xff]   ;;  %v7669_v28 = vld [vmem:[%s7936_s28 + $0xb10] sm:$0xff]  }
 0x142   : > { %6917 = vmatpush3.bf16.msra.mxu0 %v7593_v52 }
 0x143   : > { %6939 = vmatpush3.bf16.msra.mxu1 %v7594_v53  ;;  %6918 = vmatprep.subr.bf16.mxu0 %v7595_v54  ;;  %v7642_v53 = vld [vmem:[%s7936_s28 + $0xaa0] sm:$0xff]  }
 0x144   : > { %6940 = vmatprep.subr.bf16.mxu1 %v7596_v55 }
 0x146   : > { %6919 = vmatpush3.bf16.msra.mxu0 %v7597_v56  ;;  %v7643_v56 = vld [vmem:[%s7936_s28 + $0xa68] sm:$0xff]  }
 0x147   : > { %6941 = vmatpush3.bf16.msra.mxu1 %v7598_v57  ;;  %6920 = vmatprep.subr.bf16.mxu0 %v7599_v58 }
 0x148   : > { %6942 = vmatprep.subr.bf16.mxu1 %v7600_v59  ;;  %v7644_v59 = vld [vmem:[%s7936_s28 + $0xae8] sm:$0xff]  }
 0x14a   : > { %6921 = vmatpush3.bf16.msra.mxu0 %v7601_v60 }
 0x14b   : > { %6943 = vmatpush3.bf16.msra.mxu1 %v7602_v61  ;;  %6922 = vmatprep.subr.bf16.mxu0 %v7603_v62  ;;  %v7645_v62 = vld [vmem:[%s7936_s28 + $0xa28] sm:$0xff]  }
 0x14c   : > { %6944 = vmatprep.subr.bf16.mxu1 %v7604_v63 }
 0x14e   : > { %6923 = vmatpush3.bf16.msra.mxu0 %v7605_v1 }
 0x14f   : > { %6945 = vmatpush3.bf16.msra.mxu1 %v7606_v3  ;;  %6924 = vmatprep.subr.bf16.mxu0 %v7607_v6  ;;  %v7647_v3 = vld [vmem:[%s7936_s28 + $0xa70] sm:$0xff]  }
 0x150   : > { %v6622_v0 = vpop.f32.mrb[8].mxu0  ;;  %6946 = vmatprep.subr.bf16.mxu1 %v7608_v9  ;;  %v7649_v6 = vld [vmem:[%s7936_s28 + $0xa30] sm:$0xff]   ;;  %v7652_v9 = vld [vmem:[%s7936_s28 + $0xaf8] sm:$0xff]  }
 0x151   : > { %v6644_v2 = vpop.f32.mrb[8].mxu1  ;;  %v6623_v4 = vpop.f32.mrb[9].mxu0 }
 0x152   : > { %v6645_v5 = vpop.f32.mrb[9].mxu1  ;;  %v6624_v7 = vadd.f32 %v6623_v4, %v6622_v0  ;;  %v6625_v10 = vpop.f32.mrb[10].mxu0  ;;  %6925 = vmatpush3.bf16.msra.mxu0 %v7609_v12  ;;  %v7646_v0 = vld [vmem:[%s7936_s28 + $0xaa8] sm:$0xff]   ;;  %v233_v12 = vld [vmem:[%s7931_s24 + $0xa0] sm:$0xff] }
 0x153   : > { %v6646_v8 = vadd.f32 %v6645_v5, %v6644_v2  ;;  %v6647_v11 = vpop.f32.mrb[10].mxu1  ;;  %v6626_v15 = vpop.f32.mrb[11].mxu0  ;;  %6947 = vmatpush3.bf16.msra.mxu1 %v7610_v14  ;;  %6926 = vmatprep.subr.bf16.mxu0 %v7611_v17  ;;  %v7648_v5 = vld [vmem:[%s7936_s28 + $0xaf0] sm:$0xff]   ;;  %v7653_v10 = vld [vmem:[%s7936_s28 + $0xa38] sm:$0xff]   ;;  %v5980_v14 = vcombine.low %v233_v12, %v233_v12 }
 0x154   : > { %v4760_v13 = vadd.f32 %v6624_v7, %v8244_v31  ;;  %v6648_v16 = vpop.f32.mrb[11].mxu1  ;;  %6948 = vmatprep.subr.bf16.mxu1 %v7612_v19  ;;  %v5979_v31 = vcombine.high %v232_v29, %v232_v29  ;;  %v7650_v7 = vld [vmem:[%s7936_s28 + $0xab0] sm:$0xff]   ;;  %v7654_v11 = vld [vmem:[%s7936_s28 + $0xab8] sm:$0xff]   ;;  %v5981_v15 = vcombine.high %v233_v12, %v233_v12  ;;  %v7660_v19 = vld [vmem:[%s7936_s28 + $0xbc0] sm:$0xff]  }
 0x155   : > { %v7670_v29 = vld [vmem:[%s7936_s28 + $0xb90] sm:$0xff]  }
 0x156   : > { %v8282_v18 = vadd.f32 %v6646_v8, %v4760_v13  ;;  %6927 = vmatpush3.bf16.msra.mxu0 %v7613_v20  ;;  %5357 = vmatprep.mubr.bf16.mxu1 %v5979_v31  ;;  %v7651_v8 = vld [vmem:[%s7936_s28 + $0xa78] sm:$0xff]   ;;  %v234_v13 = vld [vmem:[%s7931_s24 + $0xa8] sm:$0xff]  ;;  %v7661_v20 = vld [vmem:[%s7936_s28 + $0xb00] sm:$0xff]  }
 0x157   : > { %6949 = vmatpush3.bf16.msra.mxu1 %v7614_v21  ;;  %6928 = vmatprep.subr.bf16.mxu0 %v7615_v22  ;;  %v5982_v16 = vcombine.low %v234_v13, %v234_v13  ;;  %v5983_v17 = vcombine.high %v234_v13, %v234_v13  ;;  %v7662_v21 = vld [vmem:[%s7936_s28 + $0xb80] sm:$0xff]   ;;  %v7663_v22 = vld [vmem:[%s7936_s28 + $0xb48] sm:$0xff]   ;;  %v7672_v31 = vld [vmem:[%s7936_s28 + $0xbd8] sm:$0xff]  }
 0x158   : > { %6950 = vmatprep.subr.bf16.mxu1 %v7616_v23  ;;  %v7664_v23 = vld [vmem:[%s7936_s28 + $0xbc8] sm:$0xff]   ;;  %v7703_v12 = vld [vmem:[%s7936_s28 + $0xc50] sm:$0xff]  }
 0x159   : > { %v7704_v13 = vld [vmem:[%s7936_s28 + $0xcd0] sm:$0xff]  }
 0x15a   : > { %6929 = vmatpush3.bf16.msra.mxu0 %v7617_v24  ;;  %v7665_v24 = vld [vmem:[%s7936_s28 + $0xb08] sm:$0xff]  }
 0x15b   : > { %6951 = vmatpush3.bf16.msra.mxu1 %v7618_v25  ;;  %6958 = vmatprep.subr.bf16.mxu0 %v7623_v32  ;;  %v7666_v25 = vld [vmem:[%s7936_s28 + $0xb88] sm:$0xff]   ;;  %v7673_v32 = vld [vmem:[%s7936_s28 + $0xb18] sm:$0xff]  }
 0x15c   : > { %6980 = vmatprep.subr.bf16.mxu1 %v7624_v33  ;;  %v7674_v33 = vld [vmem:[%s7936_s28 + $0xb98] sm:$0xff]  }
 0x15d   : > { %5318 = vmatmul.mubr.bf16.vlgmr.msra.gmra.mrb[36].mxu0 %v5976_v27  ;;  %v7668_v27 = vld [vmem:[%s7936_s28 + $0xbd0] sm:$0xff]  }
 0x15e   : > { %5358 = vmatmul.mubr.bf16.vlgmr.msra.gmra.mrb[36].mxu1 %v5978_v30  ;;  %6959 = vmatpush3.bf16.msra.mxu0 %v7625_v34  ;;  %v7671_v30 = vld [vmem:[%s7936_s28 + $0xb58] sm:$0xff]   ;;  %v7675_v34 = vld [vmem:[%s7936_s28 + $0xb60] sm:$0xff]  }
 0x15f   : > { %6981 = vmatpush3.bf16.msra.mxu1 %v7626_v35  ;;  %6960 = vmatprep.subr.bf16.mxu0 %v7627_v36  ;;  %v7676_v35 = vld [vmem:[%s7936_s28 + $0xbe0] sm:$0xff]  }
 0x160   : > { %6982 = vmatprep.subr.bf16.mxu1 %v7628_v37  ;;  %5397 = vmatprep.mubr.bf16.mxu0 %v5981_v15  ;;  %v7677_v36 = vld [vmem:[%s7936_s28 + $0xb20] sm:$0xff]   ;;  %v7706_v15 = vld [vmem:[%s7936_s28 + $0xc90] sm:$0xff]  }
 0x161   : > { %5437 = vmatprep.mubr.bf16.mxu1 %v5983_v17  ;;  %v7708_v17 = vld [vmem:[%s7936_s28 + $0xcd8] sm:$0xff]  }
 0x162   : > { %6961 = vmatpush3.bf16.msra.mxu0 %v7629_v38  ;;  %v7678_v38 = vld [vmem:[%s7936_s28 + $0xba0] sm:$0xff]  }
 0x163   : > { %6983 = vmatpush3.bf16.msra.mxu1 %v7630_v39  ;;  %6962 = vmatprep.subr.bf16.mxu0 %v7631_v40 }
 0x164   : > { %6984 = vmatprep.subr.bf16.mxu1 %v7632_v41 }
 0x166   : > { %6963 = vmatpush3.bf16.msra.mxu0 %v7633_v42 }
 0x167   : > { %6985 = vmatpush3.bf16.msra.mxu1 %v7634_v43  ;;  %6964 = vmatprep.subr.bf16.mxu0 %v7635_v44  ;;  %v7679_v44 = vld [vmem:[%s7936_s28 + $0xb68] sm:$0xff]  }
 0x168   : > { %6986 = vmatprep.subr.bf16.mxu1 %v7636_v45 }
 0x16a   : > { %6965 = vmatpush3.bf16.msra.mxu0 %v7637_v46  ;;  %v7680_v46 = vld [vmem:[%s7936_s28 + $0xbe8] sm:$0xff]  }
 0x16b   : > { %6987 = vmatpush3.bf16.msra.mxu1 %v7638_v47  ;;  %6966 = vmatprep.subr.bf16.mxu0 %v7639_v48 }
 0x16c   : > { %6988 = vmatprep.subr.bf16.mxu1 %v7640_v49  ;;  %v7681_v49 = vld [vmem:[%s7936_s28 + $0xb28] sm:$0xff]  }
 0x16e   : > { %6967 = vmatpush3.bf16.msra.mxu0 %v7641_v51  ;;  %v7682_v51 = vld [vmem:[%s7936_s28 + $0xba8] sm:$0xff]  }
 0x16f   : > { %6989 = vmatpush3.bf16.msra.mxu1 %v7642_v53  ;;  %6968 = vmatprep.subr.bf16.mxu0 %v7643_v56  ;;  %v7685_v56 = vld [vmem:[%s7936_s28 + $0xb30] sm:$0xff]  }
 0x170   : > { %v6666_v50 = vpop.f32.mrb[12].mxu0  ;;  %6990 = vmatprep.subr.bf16.mxu1 %v7644_v59  ;;  %v7688_v59 = vld [vmem:[%s7936_s28 + $0xbf8] sm:$0xff]  }
 0x171   : > { %v6688_v52 = vpop.f32.mrb[12].mxu1  ;;  %v6667_v54 = vpop.f32.mrb[13].mxu0 }
 0x172   : > { %v6689_v55 = vpop.f32.mrb[13].mxu1  ;;  %v6668_v57 = vadd.f32 %v6667_v54, %v6666_v50  ;;  %v6669_v60 = vpop.f32.mrb[14].mxu0  ;;  %6969 = vmatpush3.bf16.msra.mxu0 %v7645_v62  ;;  %v7683_v54 = vld [vmem:[%s7936_s28 + $0xb70] sm:$0xff]  }
 0x173   : > { %v6690_v58 = vadd.f32 %v6689_v55, %v6688_v52  ;;  %v6691_v61 = vpop.f32.mrb[14].mxu1  ;;  %v6670_v1 = vpop.f32.mrb[15].mxu0  ;;  %6991 = vmatpush3.bf16.msra.mxu1 %v7646_v0  ;;  %6970 = vmatprep.subr.bf16.mxu0 %v7647_v3  ;;  %v7684_v55 = vld [vmem:[%s7936_s28 + $0xbf0] sm:$0xff]   ;;  %v7689_v60 = vld [vmem:[%s7936_s28 + $0xb38] sm:$0xff]  }
 0x174   : > { %v4840_v63 = vadd.f32 %v6668_v57, %v8282_v18  ;;  %v6692_v2 = vpop.f32.mrb[15].mxu1  ;;  %6992 = vmatprep.subr.bf16.mxu1 %v7648_v5  ;;  %v7659_v18 = vld [vmem:[%s7936_s28 + $0xb40] sm:$0xff]   ;;  %v7686_v57 = vld [vmem:[%s7936_s28 + $0xbb0] sm:$0xff]   ;;  %v7690_v61 = vld [vmem:[%s7936_s28 + $0xbb8] sm:$0xff]  }
 0x175   : > { %v235_v62 = vld [vmem:[%s7931_s24 + $0xb0] sm:$0xff]  ;;  %v7696_v5 = vld [vmem:[%s7936_s28 + $0xcc0] sm:$0xff]  }
 0x176   : > { %v8319_v4 = vadd.f32 %v6690_v58, %v4840_v63  ;;  %6971 = vmatpush3.bf16.msra.mxu0 %v7649_v6  ;;  %v7687_v58 = vld [vmem:[%s7936_s28 + $0xb78] sm:$0xff]   ;;  %v5984_v0 = vcombine.low %v235_v62, %v235_v62  ;;  %v5985_v1 = vcombine.high %v235_v62, %v235_v62  ;;  %v7697_v6 = vld [vmem:[%s7936_s28 + $0xc00] sm:$0xff]   ;;  %v7739_v62 = vld [vmem:[%s7936_s28 + $0xd50] sm:$0xff]  }
 0x177   : > { %6993 = vmatpush3.bf16.msra.mxu1 %v7650_v7  ;;  %6972 = vmatprep.subr.bf16.mxu0 %v7651_v8  ;;  %v236_v63 = vld [vmem:[%s7931_s24 + $0xb8] sm:$0xff]  ;;  %v7698_v7 = vld [vmem:[%s7936_s28 + $0xc80] sm:$0xff]   ;;  %v7699_v8 = vld [vmem:[%s7936_s28 + $0xc48] sm:$0xff]  }
 0x178   : > { %6994 = vmatprep.subr.bf16.mxu1 %v7652_v9  ;;  %v5986_v2 = vcombine.low %v236_v63, %v236_v63  ;;  %v5987_v3 = vcombine.high %v236_v63, %v236_v63  ;;  %v7700_v9 = vld [vmem:[%s7936_s28 + $0xcc8] sm:$0xff]   ;;  %v7740_v63 = vld [vmem:[%s7936_s28 + $0xdd0] sm:$0xff]  }
 0x17a   : > { %6973 = vmatpush3.bf16.msra.mxu0 %v7653_v10  ;;  %v7701_v10 = vld [vmem:[%s7936_s28 + $0xc08] sm:$0xff]  }
 0x17b   : > { %6995 = vmatpush3.bf16.msra.mxu1 %v7654_v11  ;;  %7002 = vmatprep.subr.bf16.mxu0 %v7659_v18  ;;  %v7702_v11 = vld [vmem:[%s7936_s28 + $0xc88] sm:$0xff]   ;;  %v7709_v18 = vld [vmem:[%s7936_s28 + $0xc18] sm:$0xff]  }
 0x17c   : > { %7024 = vmatprep.subr.bf16.mxu1 %v7660_v19  ;;  %v7710_v19 = vld [vmem:[%s7936_s28 + $0xc98] sm:$0xff]  }
 0x17d   : > { %5398 = vmatmul.mubr.bf16.vlgmr.msra.gmra.mrb[40].mxu0 %v5980_v14  ;;  %v7705_v14 = vld [vmem:[%s7936_s28 + $0xc10] sm:$0xff]  }
 0x17e   : > { %5438 = vmatmul.mubr.bf16.vlgmr.msra.gmra.mrb[40].mxu1 %v5982_v16  ;;  %7003 = vmatpush3.bf16.msra.mxu0 %v7661_v20  ;;  %v7707_v16 = vld [vmem:[%s7936_s28 + $0xc58] sm:$0xff]   ;;  %v7711_v20 = vld [vmem:[%s7936_s28 + $0xc60] sm:$0xff]  }
 0x17f   : > { %7025 = vmatpush3.bf16.msra.mxu1 %v7662_v21  ;;  %7004 = vmatprep.subr.bf16.mxu0 %v7663_v22  ;;  %v7712_v21 = vld [vmem:[%s7936_s28 + $0xce0] sm:$0xff]  }
 0x180   : > { %7026 = vmatprep.subr.bf16.mxu1 %v7664_v23  ;;  %5477 = vmatprep.mubr.bf16.mxu0 %v5985_v1  ;;  %v7713_v23 = vld [vmem:[%s7936_s28 + $0xc20] sm:$0xff]   ;;  %v7742_v1 = vld [vmem:[%s7936_s28 + $0xd90] sm:$0xff]  }
 0x181   : > { %5517 = vmatprep.mubr.bf16.mxu1 %v5987_v3  ;;  %v7744_v3 = vld [vmem:[%s7936_s28 + $0xdd8] sm:$0xff]  }
 0x182   : > { %7005 = vmatpush3.bf16.msra.mxu0 %v7665_v24 }
 0x183   : > { %7027 = vmatpush3.bf16.msra.mxu1 %v7666_v25  ;;  %7006 = vmatprep.subr.bf16.mxu0 %v7667_v26  ;;  %v7714_v25 = vld [vmem:[%s7936_s28 + $0xca0] sm:$0xff]  }
 0x184   : > { %7028 = vmatprep.subr.bf16.mxu1 %v7668_v27 }
 0x186   : > { %7007 = vmatpush3.bf16.msra.mxu0 %v7669_v28 }
 0x187   : > { %7029 = vmatpush3.bf16.msra.mxu1 %v7670_v29  ;;  %7008 = vmatprep.subr.bf16.mxu0 %v7671_v30  ;;  %v7715_v29 = vld [vmem:[%s7936_s28 + $0xc68] sm:$0xff]  }
 0x188   : > { %7030 = vmatprep.subr.bf16.mxu1 %v7672_v31  ;;  %v7716_v31 = vld [vmem:[%s7936_s28 + $0xce8] sm:$0xff]  }
 0x18a   : > { %7009 = vmatpush3.bf16.msra.mxu0 %v7673_v32 }
 0x18b   : > { %7031 = vmatpush3.bf16.msra.mxu1 %v7674_v33  ;;  %7010 = vmatprep.subr.bf16.mxu0 %v7675_v34 }
 0x18c   : > { %7032 = vmatprep.subr.bf16.mxu1 %v7676_v35  ;;  %v7717_v35 = vld [vmem:[%s7936_s28 + $0xc28] sm:$0xff]  }
 0x18e   : > { %7011 = vmatpush3.bf16.msra.mxu0 %v7677_v36  ;;  %v7718_v36 = vld [vmem:[%s7936_s28 + $0xca8] sm:$0xff]  }
 0x18f   : > { %7033 = vmatpush3.bf16.msra.mxu1 %v7678_v38  ;;  %7012 = vmatprep.subr.bf16.mxu0 %v7679_v44  ;;  %v7723_v44 = vld [vmem:[%s7936_s28 + $0xc78] sm:$0xff]  }
 0x190   : > { %v6710_v37 = vpop.f32.mrb[16].mxu0  ;;  %7034 = vmatprep.subr.bf16.mxu1 %v7680_v46  ;;  %v7725_v46 = vld [vmem:[%s7936_s28 + $0xc38] sm:$0xff]  }
 0x191   : > { %v6732_v39 = vpop.f32.mrb[16].mxu1  ;;  %v6711_v40 = vpop.f32.mrb[17].mxu0 }
 0x192   : > { %v6733_v41 = vpop.f32.mrb[17].mxu1  ;;  %v6712_v42 = vadd.f32 %v6711_v40, %v6710_v37  ;;  %v6713_v45 = vpop.f32.mrb[18].mxu0  ;;  %7013 = vmatpush3.bf16.msra.mxu0 %v7681_v49  ;;  %v7719_v40 = vld [vmem:[%s7936_s28 + $0xc70] sm:$0xff]   ;;  %v238_v49 = vld [vmem:[%s7931_s24 + $0xc8] sm:$0xff] }
 0x193   : > { %v6734_v43 = vadd.f32 %v6733_v41, %v6732_v39  ;;  %v6735_v47 = vpop.f32.mrb[18].mxu1  ;;  %v6714_v50 = vpop.f32.mrb[19].mxu0  ;;  %7035 = vmatpush3.bf16.msra.mxu1 %v7682_v51  ;;  %7014 = vmatprep.subr.bf16.mxu0 %v7683_v54  ;;  %v7720_v41 = vld [vmem:[%s7936_s28 + $0xcf0] sm:$0xff]   ;;  %v7724_v45 = vld [vmem:[%s7936_s28 + $0xcf8] sm:$0xff]   ;;  %v5991_v54 = vcombine.high %v238_v49, %v238_v49 }
 0x194   : > { %v4920_v48 = vadd.f32 %v6712_v42, %v8319_v4  ;;  %v6736_v52 = vpop.f32.mrb[19].mxu1  ;;  %7036 = vmatprep.subr.bf16.mxu1 %v7684_v55  ;;  %v7695_v4 = vld [vmem:[%s7936_s28 + $0xc40] sm:$0xff]   ;;  %v7721_v42 = vld [vmem:[%s7936_s28 + $0xc30] sm:$0xff]   ;;  %v7726_v47 = vld [vmem:[%s7936_s28 + $0xcb8] sm:$0xff]  }
 0x195   : > { %v5990_v52 = vcombine.low %v238_v49, %v238_v49  ;;  %v7732_v55 = vld [vmem:[%s7936_s28 + $0xdc0] sm:$0xff]   ;;  %v7776_v49 = vld [vmem:[%s7936_s28 + $0xed0] sm:$0xff]  }
 0x196   : > { %v8355_v53 = vadd.f32 %v6734_v43, %v4920_v48  ;;  %7015 = vmatpush3.bf16.msra.mxu0 %v7685_v56  ;;  %v7722_v43 = vld [vmem:[%s7936_s28 + $0xcb0] sm:$0xff]   ;;  %v237_v48 = vld [vmem:[%s7931_s24 + $0xc0] sm:$0xff] }
 0x197   : > { %7037 = vmatpush3.bf16.msra.mxu1 %v7686_v57  ;;  %7016 = vmatprep.subr.bf16.mxu0 %v7687_v58  ;;  %v5988_v50 = vcombine.low %v237_v48, %v237_v48  ;;  %v5989_v51 = vcombine.high %v237_v48, %v237_v48  ;;  %v7733_v56 = vld [vmem:[%s7936_s28 + $0xd00] sm:$0xff]   ;;  %v7735_v58 = vld [vmem:[%s7936_s28 + $0xd48] sm:$0xff]   ;;  %v7775_v48 = vld [vmem:[%s7936_s28 + $0xe50] sm:$0xff]  }
 0x198   : > { %7038 = vmatprep.subr.bf16.mxu1 %v7688_v59  ;;  %v7734_v57 = vld [vmem:[%s7936_s28 + $0xd80] sm:$0xff]   ;;  %v7736_v59 = vld [vmem:[%s7936_s28 + $0xdc8] sm:$0xff]  }
 0x19a   : > { %7017 = vmatpush3.bf16.msra.mxu0 %v7689_v60  ;;  %v7737_v60 = vld [vmem:[%s7936_s28 + $0xd08] sm:$0xff]  }
 0x19b   : > { %7039 = vmatpush3.bf16.msra.mxu1 %v7690_v61  ;;  %7046 = vmatprep.subr.bf16.mxu0 %v7695_v4  ;;  %v7738_v61 = vld [vmem:[%s7936_s28 + $0xd88] sm:$0xff]   ;;  %v7745_v4 = vld [vmem:[%s7936_s28 + $0xd18] sm:$0xff]  }
 0x19c   : > { %7068 = vmatprep.subr.bf16.mxu1 %v7696_v5  ;;  %v7746_v5 = vld [vmem:[%s7936_s28 + $0xd98] sm:$0xff]  }
 0x19d   : > { %5478 = vmatmul.mubr.bf16.vlgmr.msra.gmra.mrb[44].mxu0 %v5984_v0  ;;  %v7741_v0 = vld [vmem:[%s7936_s28 + $0xd10] sm:$0xff]  }
 0x19e   : > { %5518 = vmatmul.mubr.bf16.vlgmr.msra.gmra.mrb[44].mxu1 %v5986_v2  ;;  %7047 = vmatpush3.bf16.msra.mxu0 %v7697_v6  ;;  %v7743_v2 = vld [vmem:[%s7936_s28 + $0xd58] sm:$0xff]   ;;  %v7747_v6 = vld [vmem:[%s7936_s28 + $0xd60] sm:$0xff]  }
 0x19f   : > { %7069 = vmatpush3.bf16.msra.mxu1 %v7698_v7  ;;  %7048 = vmatprep.subr.bf16.mxu0 %v7699_v8  ;;  %v7748_v7 = vld [vmem:[%s7936_s28 + $0xde0] sm:$0xff]  }
 0x1a0   : > { %7070 = vmatprep.subr.bf16.mxu1 %v7700_v9  ;;  %5557 = vmatprep.mubr.bf16.mxu0 %v5989_v51  ;;  %v7749_v9 = vld [vmem:[%s7936_s28 + $0xd20] sm:$0xff]   ;;  %v7778_v51 = vld [vmem:[%s7936_s28 + $0xe90] sm:$0xff]  }
 0x1a1   : > { %5597 = vmatprep.mubr.bf16.mxu1 %v5991_v54  ;;  %v7781_v54 = vld [vmem:[%s7936_s28 + $0xe18] sm:$0xff]  }
 0x1a2   : > { %7049 = vmatpush3.bf16.msra.mxu0 %v7701_v10 }
 0x1a3   : > { %7071 = vmatpush3.bf16.msra.mxu1 %v7702_v11  ;;  %7050 = vmatprep.subr.bf16.mxu0 %v7703_v12  ;;  %v7750_v11 = vld [vmem:[%s7936_s28 + $0xda0] sm:$0xff]  }
 0x1a4   : > { %7072 = vmatprep.subr.bf16.mxu1 %v7704_v13 }
 0x1a6   : > { %7051 = vmatpush3.bf16.msra.mxu0 %v7705_v14  ;;  %v7751_v14 = vld [vmem:[%s7936_s28 + $0xd68] sm:$0xff]  }
 0x1a7   : > { %7073 = vmatpush3.bf16.msra.mxu1 %v7706_v15  ;;  %7052 = vmatprep.subr.bf16.mxu0 %v7707_v16 }
 0x1a8   : > { %7074 = vmatprep.subr.bf16.mxu1 %v7708_v17  ;;  %v7752_v17 = vld [vmem:[%s7936_s28 + $0xde8] sm:$0xff]  }
 0x1aa   : > { %7053 = vmatpush3.bf16.msra.mxu0 %v7709_v18 }
 0x1ab   : > { %7075 = vmatpush3.bf16.msra.mxu1 %v7710_v19  ;;  %7054 = vmatprep.subr.bf16.mxu0 %v7711_v20  ;;  %v7753_v20 = vld [vmem:[%s7936_s28 + $0xd28] sm:$0xff]  }
 0x1ac   : > { %7076 = vmatprep.subr.bf16.mxu1 %v7712_v21 }
 0x1ae   : > { %7055 = vmatpush3.bf16.msra.mxu0 %v7713_v23 }
 0x1af   : > { %7077 = vmatpush3.bf16.msra.mxu1 %v7714_v25  ;;  %7056 = vmatprep.subr.bf16.mxu0 %v7715_v29  ;;  %v7755_v25 = vld [vmem:[%s7936_s28 + $0xd70] sm:$0xff]  }
 0x1b0   : > { %v6754_v22 = vpop.f32.mrb[20].mxu0  ;;  %7078 = vmatprep.subr.bf16.mxu1 %v7716_v31  ;;  %v7758_v29 = vld [vmem:[%s7936_s28 + $0xdb0] sm:$0xff]   ;;  %v7760_v31 = vld [vmem:[%s7936_s28 + $0xdf8] sm:$0xff]  }
 0x1b1   : > { %v6776_v24 = vpop.f32.mrb[20].mxu1  ;;  %v6755_v26 = vpop.f32.mrb[21].mxu0 }
 0x1b2   : > { %v6756_v27 = vadd.f32 %v6755_v26, %v6754_v22  ;;  %v6777_v28 = vpop.f32.mrb[21].mxu1  ;;  %v6757_v32 = vpop.f32.mrb[22].mxu0  ;;  %7057 = vmatpush3.bf16.msra.mxu0 %v7717_v35  ;;  %v7754_v22 = vld [vmem:[%s7936_s28 + $0xda8] sm:$0xff]  }
 0x1b3   : > { %v6778_v30 = vadd.f32 %v6777_v28, %v6776_v24  ;;  %v6779_v34 = vpop.f32.mrb[22].mxu1  ;;  %v6758_v37 = vpop.f32.mrb[23].mxu0  ;;  %7079 = vmatpush3.bf16.msra.mxu1 %v7718_v36  ;;  %7058 = vmatprep.subr.bf16.mxu0 %v7719_v40  ;;  %v7757_v28 = vld [vmem:[%s7936_s28 + $0xd30] sm:$0xff]   ;;  %v7761_v32 = vld [vmem:[%s7936_s28 + $0xd38] sm:$0xff]   ;;  %v7767_v40 = vld [vmem:[%s7936_s28 + $0xe40] sm:$0xff]  }
 0x1b4   : > { %v5000_v33 = vadd.f32 %v6756_v27, %v8355_v53  ;;  %v6780_v39 = vpop.f32.mrb[23].mxu1  ;;  %7080 = vmatprep.subr.bf16.mxu1 %v7720_v41  ;;  %v7731_v53 = vld [vmem:[%s7936_s28 + $0xd40] sm:$0xff]   ;;  %v7756_v27 = vld [vmem:[%s7936_s28 + $0xdf0] sm:$0xff]   ;;  %v240_v37 = vld [vmem:[%s7931_s24 + $0xd8] sm:$0xff] }
 0x1b5   : > { %v239_v34 = vld [vmem:[%s7931_s24 + $0xd0] sm:$0xff]  ;;  %v5995_v39 = vcombine.high %v240_v37, %v240_v37  ;;  %v7768_v41 = vld [vmem:[%s7936_s28 + $0xec0] sm:$0xff]  }
 0x1b6   : > { %v8392_v38 = vadd.f32 %v6778_v30, %v5000_v33  ;;  %7059 = vmatpush3.bf16.msra.mxu0 %v7721_v42  ;;  %v7759_v30 = vld [vmem:[%s7936_s28 + $0xd78] sm:$0xff]   ;;  %v5992_v35 = vcombine.low %v239_v34, %v239_v34  ;;  %v5993_v36 = vcombine.high %v239_v34, %v239_v34  ;;  %v7769_v42 = vld [vmem:[%s7936_s28 + $0xe00] sm:$0xff]   ;;  %v7811_v34 = vld [vmem:[%s7936_s28 + $0xf50] sm:$0xff]  }
 0x1b7   : > { %7081 = vmatpush3.bf16.msra.mxu1 %v7722_v43  ;;  %7060 = vmatprep.subr.bf16.mxu0 %v7723_v44  ;;  %v7762_v33 = vld [vmem:[%s7936_s28 + $0xdb8] sm:$0xff]   ;;  %v7770_v43 = vld [vmem:[%s7936_s28 + $0xe80] sm:$0xff]   ;;  %v7771_v44 = vld [vmem:[%s7936_s28 + $0xe48] sm:$0xff]  }
 0x1b8   : > { %7082 = vmatprep.subr.bf16.mxu1 %v7724_v45  ;;  %v7772_v45 = vld [vmem:[%s7936_s28 + $0xec8] sm:$0xff]  }
 0x1ba   : > { %7061 = vmatpush3.bf16.msra.mxu0 %v7725_v46  ;;  %v7773_v46 = vld [vmem:[%s7936_s28 + $0xe08] sm:$0xff]  }
 0x1bb   : > { %7083 = vmatpush3.bf16.msra.mxu1 %v7726_v47  ;;  %7090 = vmatprep.subr.bf16.mxu0 %v7731_v53  ;;  %v7774_v47 = vld [vmem:[%s7936_s28 + $0xe88] sm:$0xff]   ;;  %v7780_v53 = vld [vmem:[%s7936_s28 + $0xed8] sm:$0xff]  }
 0x1bc   : > { %7112 = vmatprep.subr.bf16.mxu1 %v7732_v55  ;;  %v7782_v55 = vld [vmem:[%s7936_s28 + $0xe98] sm:$0xff]  }
 0x1bd   : > { %5558 = vmatmul.mubr.bf16.vlgmr.msra.gmra.mrb[48].mxu0 %v5988_v50  ;;  %v7777_v50 = vld [vmem:[%s7936_s28 + $0xe10] sm:$0xff]  }
 0x1be   : > { %5598 = vmatmul.mubr.bf16.vlgmr.msra.gmra.mrb[48].mxu1 %v5990_v52  ;;  %7091 = vmatpush3.bf16.msra.mxu0 %v7733_v56  ;;  %v7779_v52 = vld [vmem:[%s7936_s28 + $0xe58] sm:$0xff]   ;;  %v7783_v56 = vld [vmem:[%s7936_s28 + $0xe60] sm:$0xff]  }
 0x1bf   : > { %7113 = vmatpush3.bf16.msra.mxu1 %v7734_v57  ;;  %7092 = vmatprep.subr.bf16.mxu0 %v7735_v58  ;;  %v7784_v57 = vld [vmem:[%s7936_s28 + $0xee0] sm:$0xff]  }
 0x1c0   : > { %7114 = vmatprep.subr.bf16.mxu1 %v7736_v59  ;;  %5637 = vmatprep.mubr.bf16.mxu0 %v5993_v36  ;;  %v7785_v59 = vld [vmem:[%s7936_s28 + $0xe20] sm:$0xff]   ;;  %v7813_v36 = vld [vmem:[%s7936_s28 + $0xf10] sm:$0xff]  }
 0x1c1   : > { %5677 = vmatprep.mubr.bf16.mxu1 %v5995_v39  ;;  %v7816_v39 = vld [vmem:[%s7936_s28 + $0xfd8] sm:$0xff]  }
 0x1c2   : > { %7093 = vmatpush3.bf16.msra.mxu0 %v7737_v60 }
 0x1c3   : > { %7115 = vmatpush3.bf16.msra.mxu1 %v7738_v61  ;;  %7094 = vmatprep.subr.bf16.mxu0 %v7739_v62  ;;  %v7786_v61 = vld [vmem:[%s7936_s28 + $0xea0] sm:$0xff]  }
 0x1c4   : > { %7116 = vmatprep.subr.bf16.mxu1 %v7740_v63 }
 0x1c6   : > { %7095 = vmatpush3.bf16.msra.mxu0 %v7741_v0  ;;  %v7787_v0 = vld [vmem:[%s7936_s28 + $0xe68] sm:$0xff]  }
 0x1c7   : > { %7117 = vmatpush3.bf16.msra.mxu1 %v7742_v1  ;;  %7096 = vmatprep.subr.bf16.mxu0 %v7743_v2 }
 0x1c8   : > { %7118 = vmatprep.subr.bf16.mxu1 %v7744_v3  ;;  %v7788_v3 = vld [vmem:[%s7936_s28 + $0xee8] sm:$0xff]  }
 0x1ca   : > { %7097 = vmatpush3.bf16.msra.mxu0 %v7745_v4 }
 0x1cb   : > { %7119 = vmatpush3.bf16.msra.mxu1 %v7746_v5  ;;  %7098 = vmatprep.subr.bf16.mxu0 %v7747_v6  ;;  %v7789_v6 = vld [vmem:[%s7936_s28 + $0xe28] sm:$0xff]  }
 0x1cc   : > { %7120 = vmatprep.subr.bf16.mxu1 %v7748_v7 }
 0x1ce   : > { %7099 = vmatpush3.bf16.msra.mxu0 %v7749_v9 }
 0x1cf   : > { %7121 = vmatpush3.bf16.msra.mxu1 %v7750_v11  ;;  %7100 = vmatprep.subr.bf16.mxu0 %v7751_v14  ;;  %v7791_v11 = vld [vmem:[%s7936_s28 + $0xe70] sm:$0xff]  }
 0x1d0   : > { %v6798_v8 = vpop.f32.mrb[24].mxu0  ;;  %7122 = vmatprep.subr.bf16.mxu1 %v7752_v17  ;;  %v7793_v14 = vld [vmem:[%s7936_s28 + $0xe30] sm:$0xff]   ;;  %v7796_v17 = vld [vmem:[%s7936_s28 + $0xef8] sm:$0xff]  }
 0x1d1   : > { %v6820_v10 = vpop.f32.mrb[24].mxu1  ;;  %v6799_v12 = vpop.f32.mrb[25].mxu0 }
 0x1d2   : > { %v6821_v13 = vpop.f32.mrb[25].mxu1  ;;  %v6800_v15 = vadd.f32 %v6799_v12, %v6798_v8  ;;  %v6801_v18 = vpop.f32.mrb[26].mxu0  ;;  %7101 = vmatpush3.bf16.msra.mxu0 %v7753_v20  ;;  %v7790_v8 = vld [vmem:[%s7936_s28 + $0xea8] sm:$0xff]   ;;  %v241_v20 = vld [vmem:[%s7931_s24 + $0xe0] sm:$0xff] }
 0x1d3   : > { %v6822_v16 = vadd.f32 %v6821_v13, %v6820_v10  ;;  %v6823_v19 = vpop.f32.mrb[26].mxu1  ;;  %v6802_v23 = vpop.f32.mrb[27].mxu0  ;;  %7123 = vmatpush3.bf16.msra.mxu1 %v7754_v22  ;;  %7102 = vmatprep.subr.bf16.mxu0 %v7755_v25  ;;  %v7792_v13 = vld [vmem:[%s7936_s28 + $0xef0] sm:$0xff]   ;;  %v7797_v18 = vld [vmem:[%s7936_s28 + $0xe38] sm:$0xff]   ;;  %v5996_v22 = vcombine.low %v241_v20, %v241_v20 }
 0x1d4   : > { %v5080_v21 = vadd.f32 %v6800_v15, %v8392_v38  ;;  %v6824_v24 = vpop.f32.mrb[27].mxu1  ;;  %7124 = vmatprep.subr.bf16.mxu1 %v7756_v27  ;;  %v5994_v38 = vcombine.low %v240_v37, %v240_v37  ;;  %v7794_v15 = vld [vmem:[%s7936_s28 + $0xeb0] sm:$0xff]   ;;  %v7798_v19 = vld [vmem:[%s7936_s28 + $0xeb8] sm:$0xff]   ;;  %v5997_v23 = vcombine.high %v241_v20, %v241_v20  ;;  %v7804_v27 = vld [vmem:[%s7936_s28 + $0xfc0] sm:$0xff]  }
 0x1d5   : > { %v7814_v37 = vld [vmem:[%s7936_s28 + $0xf90] sm:$0xff]  }
 0x1d6   : > { %v8430_v26 = vadd.f32 %v6822_v16, %v5080_v21  ;;  %7103 = vmatpush3.bf16.msra.mxu0 %v7757_v28  ;;  %v7795_v16 = vld [vmem:[%s7936_s28 + $0xe78] sm:$0xff]   ;;  %v242_v21 = vld [vmem:[%s7931_s24 + $0xe8] sm:$0xff]  ;;  %v7805_v28 = vld [vmem:[%s7936_s28 + $0xf00] sm:$0xff]  }
 0x1d7   : > { %7125 = vmatpush3.bf16.msra.mxu1 %v7758_v29  ;;  %7104 = vmatprep.subr.bf16.mxu0 %v7759_v30  ;;  %v5998_v24 = vcombine.low %v242_v21, %v242_v21  ;;  %v5999_v25 = vcombine.high %v242_v21, %v242_v21  ;;  %v7806_v29 = vld [vmem:[%s7936_s28 + $0xf80] sm:$0xff]   ;;  %v7807_v30 = vld [vmem:[%s7936_s28 + $0xf48] sm:$0xff]  }
 0x1d8   : > { %7126 = vmatprep.subr.bf16.mxu1 %v7760_v31  ;;  %v7808_v31 = vld [vmem:[%s7936_s28 + $0xfc8] sm:$0xff]  }
 0x1da   : > { %7105 = vmatpush3.bf16.msra.mxu0 %v7761_v32  ;;  %v7809_v32 = vld [vmem:[%s7936_s28 + $0xf08] sm:$0xff]  }
 0x1db   : > { %7127 = vmatpush3.bf16.msra.mxu1 %v7762_v33  ;;  %7134 = vmatprep.subr.bf16.mxu0 %v7767_v40  ;;  %v7810_v33 = vld [vmem:[%s7936_s28 + $0xf88] sm:$0xff]   ;;  %v7817_v40 = vld [vmem:[%s7936_s28 + $0xf18] sm:$0xff]  }
 0x1dc   : > { %7156 = vmatprep.subr.bf16.mxu1 %v7768_v41  ;;  %v7818_v41 = vld [vmem:[%s7936_s28 + $0xf98] sm:$0xff]  }
 0x1dd   : > { %5638 = vmatmul.mubr.bf16.vlgmr.msra.gmra.mrb[52].mxu0 %v5992_v35  ;;  %v7812_v35 = vld [vmem:[%s7936_s28 + $0xfd0] sm:$0xff]  }
 0x1de   : > { %5678 = vmatmul.mubr.bf16.vlgmr.msra.gmra.mrb[52].mxu1 %v5994_v38  ;;  %7135 = vmatpush3.bf16.msra.mxu0 %v7769_v42  ;;  %v7815_v38 = vld [vmem:[%s7936_s28 + $0xf58] sm:$0xff]   ;;  %v7819_v42 = vld [vmem:[%s7936_s28 + $0xf60] sm:$0xff]  }
 0x1df   : > { %7157 = vmatpush3.bf16.msra.mxu1 %v7770_v43  ;;  %7136 = vmatprep.subr.bf16.mxu0 %v7771_v44  ;;  %v7820_v43 = vld [vmem:[%s7936_s28 + $0xfe0] sm:$0xff]  }
 0x1e0   : > { %7158 = vmatprep.subr.bf16.mxu1 %v7772_v45  ;;  %5717 = vmatprep.mubr.bf16.mxu0 %v5997_v23  ;;  %v7821_v44 = vld [vmem:[%s7936_s28 + $0xf20] sm:$0xff]  }
 0x1e1   : > { %5757 = vmatprep.mubr.bf16.mxu1 %v5999_v25 }
 0x1e2   : > { %7137 = vmatpush3.bf16.msra.mxu0 %v7773_v46  ;;  %v7822_v46 = vld [vmem:[%s7936_s28 + $0xfa0] sm:$0xff]  }
 0x1e3   : > { %7159 = vmatpush3.bf16.msra.mxu1 %v7774_v47  ;;  %7138 = vmatprep.subr.bf16.mxu0 %v7775_v48 }
 0x1e4   : > { %7160 = vmatprep.subr.bf16.mxu1 %v7776_v49 }
 0x1e6   : > { %7139 = vmatpush3.bf16.msra.mxu0 %v7777_v50 }
 0x1e7   : > { %7161 = vmatpush3.bf16.msra.mxu1 %v7778_v51  ;;  %7140 = vmatprep.subr.bf16.mxu0 %v7779_v52  ;;  %v7823_v52 = vld [vmem:[%s7936_s28 + $0xf68] sm:$0xff]  }
 0x1e8   : > { %7162 = vmatprep.subr.bf16.mxu1 %v7780_v53 }
 0x1ea   : > { %7141 = vmatpush3.bf16.msra.mxu0 %v7781_v54  ;;  %v7824_v54 = vld [vmem:[%s7936_s28 + $0xfe8] sm:$0xff]  }
 0x1eb   : > { %7163 = vmatpush3.bf16.msra.mxu1 %v7782_v55  ;;  %7142 = vmatprep.subr.bf16.mxu0 %v7783_v56 }
 0x1ec   : > { %7164 = vmatprep.subr.bf16.mxu1 %v7784_v57  ;;  %v7825_v57 = vld [vmem:[%s7936_s28 + $0xf28] sm:$0xff]  }
 0x1ee   : > { %7143 = vmatpush3.bf16.msra.mxu0 %v7785_v59  ;;  %v7826_v59 = vld [vmem:[%s7936_s28 + $0xfa8] sm:$0xff]  }
 0x1ef   : > { %7165 = vmatpush3.bf16.msra.mxu1 %v7786_v61  ;;  %7144 = vmatprep.subr.bf16.mxu0 %v7787_v0  ;;  %v7829_v0 = vld [vmem:[%s7936_s28 + $0xf30] sm:$0xff]  }
 0x1f0   : > { %v6842_v58 = vpop.f32.mrb[28].mxu0  ;;  %7166 = vmatprep.subr.bf16.mxu1 %v7788_v3  ;;  %v7832_v3 = vld [vmem:[%s7936_s28 + $0xff8] sm:$0xff]  }
 0x1f1   : > { %v6864_v60 = vpop.f32.mrb[28].mxu1  ;;  %v6843_v62 = vpop.f32.mrb[29].mxu0 }
 0x1f2   : > { %v6865_v63 = vpop.f32.mrb[29].mxu1  ;;  %v6844_v1 = vadd.f32 %v6843_v62, %v6842_v58  ;;  %v6845_v4 = vpop.f32.mrb[30].mxu0  ;;  %7145 = vmatpush3.bf16.msra.mxu0 %v7789_v6  ;;  %v7827_v62 = vld [vmem:[%s7936_s28 + $0xf70] sm:$0xff]  }
 0x1f3   : > { %v6866_v2 = vadd.f32 %v6865_v63, %v6864_v60  ;;  %v6867_v5 = vpop.f32.mrb[30].mxu1  ;;  %v6846_v9 = vpop.f32.mrb[31].mxu0  ;;  %7167 = vmatpush3.bf16.msra.mxu1 %v7790_v8  ;;  %7146 = vmatprep.subr.bf16.mxu0 %v7791_v11  ;;  %v7828_v63 = vld [vmem:[%s7936_s28 + $0xff0] sm:$0xff]   ;;  %v7833_v4 = vld [vmem:[%s7936_s28 + $0xf38] sm:$0xff]  }
 0x1f4   : > { %v5160_v7 = vadd.f32 %v6844_v1, %v8430_v26  ;;  %v6868_v10 = vpop.f32.mrb[31].mxu1  ;;  %7168 = vmatprep.subr.bf16.mxu1 %v7792_v13  ;;  %v7803_v26 = vld [vmem:[%s7936_s28 + $0xf40] sm:$0xff]   ;;  %v7830_v1 = vld [vmem:[%s7936_s28 + $0xfb0] sm:$0xff]   ;;  %v7834_v5 = vld [vmem:[%s7936_s28 + $0xfb8] sm:$0xff]  }
 0x1f5   : > { %v243_v6 = vld [vmem:[%s7931_s24 + $0xf0] sm:$0xff] }
 0x1f6   : > { %v8467_v12 = vadd.f32 %v6866_v2, %v5160_v7  ;;  %7147 = vmatpush3.bf16.msra.mxu0 %v7793_v14  ;;  %v7831_v2 = vld [vmem:[%s7936_s28 + $0xf78] sm:$0xff]   ;;  %v6000_v8 = vcombine.low %v243_v6, %v243_v6  ;;  %v6001_v9 = vcombine.high %v243_v6, %v243_v6 }
 0x1f7   : > { %7169 = vmatpush3.bf16.msra.mxu1 %v7794_v15  ;;  %7148 = vmatprep.subr.bf16.mxu0 %v7795_v16  ;;  %v244_v7 = vld [vmem:[%s7931_s24 + $0xf8] sm:$0xff] }
 0x1f8   : > { %7170 = vmatprep.subr.bf16.mxu1 %v7796_v17  ;;  %v6002_v10 = vcombine.low %v244_v7, %v244_v7  ;;  %v6003_v11 = vcombine.high %v244_v7, %v244_v7 }
 0x1fa   : > { %7149 = vmatpush3.bf16.msra.mxu0 %v7797_v18 }
 0x1fb   : > { %7171 = vmatpush3.bf16.msra.mxu1 %v7798_v19  ;;  %7178 = vmatprep.subr.bf16.mxu0 %v7803_v26 }
 0x1fc   : > { %7200 = vmatprep.subr.bf16.mxu1 %v7804_v27 }
 0x1fd   : > { %5718 = vmatmul.mubr.bf16.vlgmr.msra.gmra.mrb[56].mxu0 %v5996_v22 }
 0x1fe   : > { %5758 = vmatmul.mubr.bf16.vlgmr.msra.gmra.mrb[56].mxu1 %v5998_v24  ;;  %7179 = vmatpush3.bf16.msra.mxu0 %v7805_v28 }
 0x1ff   : > { %7201 = vmatpush3.bf16.msra.mxu1 %v7806_v29  ;;  %7180 = vmatprep.subr.bf16.mxu0 %v7807_v30 }
 0x200   : > { %7202 = vmatprep.subr.bf16.mxu1 %v7808_v31  ;;  %5797 = vmatprep.mubr.bf16.mxu0 %v6001_v9 }
 0x201   : > { %5837 = vmatprep.mubr.bf16.mxu1 %v6003_v11 }
 0x202   : > { %7181 = vmatpush3.bf16.msra.mxu0 %v7809_v32 }
 0x203   : > { %7203 = vmatpush3.bf16.msra.mxu1 %v7810_v33  ;;  %7182 = vmatprep.subr.bf16.mxu0 %v7811_v34 }
 0x204   : > { %7204 = vmatprep.subr.bf16.mxu1 %v7812_v35 }
 0x206   : > { %7183 = vmatpush3.bf16.msra.mxu0 %v7813_v36 }
 0x207   : > { %7205 = vmatpush3.bf16.msra.mxu1 %v7814_v37  ;;  %7184 = vmatprep.subr.bf16.mxu0 %v7815_v38 }
 0x208   : > { %7206 = vmatprep.subr.bf16.mxu1 %v7816_v39 }
 0x20a   : > { %7185 = vmatpush3.bf16.msra.mxu0 %v7817_v40 }
 0x20b   : > { %7207 = vmatpush3.bf16.msra.mxu1 %v7818_v41  ;;  %7186 = vmatprep.subr.bf16.mxu0 %v7819_v42 }
 0x20c   : > { %7208 = vmatprep.subr.bf16.mxu1 %v7820_v43 }
 0x20e   : > { %7187 = vmatpush3.bf16.msra.mxu0 %v7821_v44 }
 0x20f   : > { %7209 = vmatpush3.bf16.msra.mxu1 %v7822_v46  ;;  %7188 = vmatprep.subr.bf16.mxu0 %v7823_v52 }
 0x210   : > { %v6886_v45 = vpop.f32.mrb[32].mxu0  ;;  %7210 = vmatprep.subr.bf16.mxu1 %v7824_v54 }
 0x211   : > { %v6908_v47 = vpop.f32.mrb[32].mxu1  ;;  %v6887_v48 = vpop.f32.mrb[33].mxu0 }
 0x212   : > { %v6909_v49 = vpop.f32.mrb[33].mxu1  ;;  %v6888_v50 = vadd.f32 %v6887_v48, %v6886_v45  ;;  %v6889_v53 = vpop.f32.mrb[34].mxu0  ;;  %7189 = vmatpush3.bf16.msra.mxu0 %v7825_v57 }
 0x213   : > { %v6910_v51 = vadd.f32 %v6909_v49, %v6908_v47  ;;  %v6911_v55 = vpop.f32.mrb[34].mxu1  ;;  %v6890_v58 = vpop.f32.mrb[35].mxu0  ;;  %7211 = vmatpush3.bf16.msra.mxu1 %v7826_v59  ;;  %7190 = vmatprep.subr.bf16.mxu0 %v7827_v62 }
 0x214   : > { %v5240_v56 = vadd.f32 %v6888_v50, %v8467_v12  ;;  %v6912_v60 = vpop.f32.mrb[35].mxu1  ;;  %7212 = vmatprep.subr.bf16.mxu1 %v7828_v63 }
 0x216   : > { %v5280_v61 = vadd.f32 %v6910_v51, %v5240_v56  ;;  %7191 = vmatpush3.bf16.msra.mxu0 %v7829_v0 }
 0x217   : > { %7213 = vmatpush3.bf16.msra.mxu1 %v7830_v1  ;;  %7192 = vmatprep.subr.bf16.mxu0 %v7831_v2 }
 0x218   : > { %7214 = vmatprep.subr.bf16.mxu1 %v7832_v3 }
 0x21a   : > { %7193 = vmatpush3.bf16.msra.mxu0 %v7833_v4 }
 0x21b   : > { %7215 = vmatpush3.bf16.msra.mxu1 %v7834_v5 }
 0x21d   : > { %5798 = vmatmul.mubr.bf16.vlgmr.msra.gmra.mrb[60].mxu0 %v6000_v8 }
 0x21e   : > { %5838 = vmatmul.mubr.bf16.vlgmr.msra.gmra.mrb[60].mxu1 %v6002_v10 }
 0x230   : > { %v6930_v12 = vpop.f32.mrb[36].mxu0 }
 0x231   : > { %v6952_v13 = vpop.f32.mrb[36].mxu1  ;;  %v6931_v14 = vpop.f32.mrb[37].mxu0 }
 0x232   : > { %v6953_v15 = vpop.f32.mrb[37].mxu1  ;;  %v6932_v16 = vadd.f32 %v6931_v14, %v6930_v12  ;;  %v6933_v18 = vpop.f32.mrb[38].mxu0 }
 0x233   : > { %v6954_v17 = vadd.f32 %v6953_v15, %v6952_v13  ;;  %v6955_v19 = vpop.f32.mrb[38].mxu1  ;;  %v6934_v20 = vpop.f32.mrb[39].mxu0 }
 0x234   : > { %v6956_v21 = vpop.f32.mrb[39].mxu1  ;;  %v5320_v22 = vadd.f32 %v6932_v16, %v5280_v61 }
 0x236   : > { %v5360_v23 = vadd.f32 %v6954_v17, %v5320_v22 }
 0x250   : > { %v6974_v24 = vpop.f32.mrb[40].mxu0 }
 0x251   : > { %v6996_v25 = vpop.f32.mrb[40].mxu1  ;;  %v6975_v26 = vpop.f32.mrb[41].mxu0 }
 0x252   : > { %v6976_v27 = vadd.f32 %v6975_v26, %v6974_v24  ;;  %v6997_v28 = vpop.f32.mrb[41].mxu1  ;;  %v6977_v29 = vpop.f32.mrb[42].mxu0 }
 0x253   : > { %v6998_v30 = vadd.f32 %v6997_v28, %v6996_v25  ;;  %v6999_v31 = vpop.f32.mrb[42].mxu1  ;;  %v6978_v32 = vpop.f32.mrb[43].mxu0 }
 0x254   : > { %v5400_v33 = vadd.f32 %v6976_v27, %v5360_v23  ;;  %v7000_v34 = vpop.f32.mrb[43].mxu1  ;;  %v212_v31 = vld [vmem:[%s7941_s3] sm:$0xff] }
 0x256   : > { %v5440_v35 = vadd.f32 %v6998_v30, %v5400_v33 }
 0x270   : > { %v7018_v36 = vpop.f32.mrb[44].mxu0 }
 0x271   : > { %v7040_v37 = vpop.f32.mrb[44].mxu1  ;;  %v7019_v38 = vpop.f32.mrb[45].mxu0 }
 0x272   : > { %v7020_v39 = vadd.f32 %v7019_v38, %v7018_v36  ;;  %v7041_v40 = vpop.f32.mrb[45].mxu1  ;;  %v7021_v41 = vpop.f32.mrb[46].mxu0 }
 0x273   : > { %v7042_v42 = vadd.f32 %v7041_v40, %v7040_v37  ;;  %v7043_v43 = vpop.f32.mrb[46].mxu1  ;;  %v7022_v44 = vpop.f32.mrb[47].mxu0 }
 0x274   : > { %v5480_v45 = vadd.f32 %v7020_v39, %v5440_v35  ;;  %v7044_v46 = vpop.f32.mrb[47].mxu1 }
 0x276   : > { %v5520_v47 = vadd.f32 %v7042_v42, %v5480_v45 }
 0x290   : > { %v7062_v48 = vpop.f32.mrb[48].mxu0 }
 0x291   : > { %v7084_v49 = vpop.f32.mrb[48].mxu1  ;;  %v7063_v50 = vpop.f32.mrb[49].mxu0 }
 0x292   : > { %v7064_v51 = vadd.f32 %v7063_v50, %v7062_v48  ;;  %v7085_v52 = vpop.f32.mrb[49].mxu1  ;;  %v7065_v53 = vpop.f32.mrb[50].mxu0 }
 0x293   : > { %v7086_v54 = vadd.f32 %v7085_v52, %v7084_v49  ;;  %v7087_v55 = vpop.f32.mrb[50].mxu1  ;;  %v7066_v56 = vpop.f32.mrb[51].mxu0 }
 0x294   : > { %v5560_v57 = vadd.f32 %v7064_v51, %v5520_v47  ;;  %v7088_v58 = vpop.f32.mrb[51].mxu1 }
 0x296   : > { %v5600_v59 = vadd.f32 %v7086_v54, %v5560_v57 }
 0x2b0   : > { %v7106_v60 = vpop.f32.mrb[52].mxu0 }
 0x2b1   : > { %v7128_v61 = vpop.f32.mrb[52].mxu1  ;;  %v7107_v62 = vpop.f32.mrb[53].mxu0 }
 0x2b2   : > { %v7129_v63 = vpop.f32.mrb[53].mxu1  ;;  %v7108_v0 = vadd.f32 %v7107_v62, %v7106_v60  ;;  %v7109_v2 = vpop.f32.mrb[54].mxu0 }
 0x2b3   : > { %v7130_v1 = vadd.f32 %v7129_v63, %v7128_v61  ;;  %v7131_v3 = vpop.f32.mrb[54].mxu1  ;;  %v7110_v4 = vpop.f32.mrb[55].mxu0 }
 0x2b4   : > { %v7132_v5 = vpop.f32.mrb[55].mxu1  ;;  %v5640_v6 = vadd.f32 %v7108_v0, %v5600_v59 }
 0x2b6   : > { %v5680_v7 = vadd.f32 %v7130_v1, %v5640_v6 }
 0x2d0   : > { %v7150_v8 = vpop.f32.mrb[56].mxu0 }
 0x2d1   : > { %v7172_v9 = vpop.f32.mrb[56].mxu1  ;;  %v7151_v10 = vpop.f32.mrb[57].mxu0 }
 0x2d2   : > { %v7152_v11 = vadd.f32 %v7151_v10, %v7150_v8  ;;  %v7173_v12 = vpop.f32.mrb[57].mxu1  ;;  %v7153_v13 = vpop.f32.mrb[58].mxu0 }
 0x2d3   : > { %v7174_v14 = vadd.f32 %v7173_v12, %v7172_v9  ;;  %v7175_v15 = vpop.f32.mrb[58].mxu1  ;;  %v7154_v16 = vpop.f32.mrb[59].mxu0 }
 0x2d4   : > { %v5720_v17 = vadd.f32 %v7152_v11, %v5680_v7  ;;  %v7176_v18 = vpop.f32.mrb[59].mxu1 }
 0x2d6   : > { %v5760_v19 = vadd.f32 %v7174_v14, %v5720_v17 }
 0x2f0   : > { %v7194_v20 = vpop.f32.mrb[60].mxu0 }
 0x2f1   : > { %v7216_v21 = vpop.f32.mrb[60].mxu1  ;;  %v7195_v22 = vpop.f32.mrb[61].mxu0 }
 0x2f2   : > { %v7196_v23 = vadd.f32 %v7195_v22, %v7194_v20  ;;  %v7217_v24 = vpop.f32.mrb[61].mxu1  ;;  %v7197_v25 = vpop.f32.mrb[62].mxu0 }
 0x2f3   : > { %v7218_v26 = vadd.f32 %v7217_v24, %v7216_v21  ;;  %v7219_v27 = vpop.f32.mrb[62].mxu1  ;;  %v7198_v28 = vpop.f32.mrb[63].mxu0 }
 0x2f4   : > { %v5800_v29 = vadd.f32 %v7196_v23, %v5760_v19  ;;  %v7220_v30 = vpop.f32.mrb[63].mxu1 }
 0x2f6   : > { %v5840_v32 = vadd.f32 %v7218_v26, %v5800_v29 }
 0x2f8   : > { %v5845_v33 = vadd.f32 %v5840_v32, %v212_v31 }
 0x2fa   : > { %5846 = vst [vmem:[%s7941_s3] sm:$0xff] %v5845_v33 }
 0x2fb PF: > { %s12_s13 = sadd.s32 1, %s7877_s13   ;;  %s8533_s9 = smov %s7869_s11 }
 0x2fc   : > { %p9_p9 = scmp.ge.s32.totalorder %s12_s13, 10   ;;  %s8534_s10 = smov %s7873_s12 }
 0x2fd   : > { %s8535_s11 = smov %s8538_s14  ;;  %s8536_s12 = smov %s8542_s15 }
 0x2fe   :  { %11 = sbr.rel (!%p9_p9) target bundleno = 3 (0x3), region = 65 }

</bundles_post_ra>
